<compile_context>
chip_gen: v7x
topology: tpu7x:2x2x1
jax: 0.10.0
libtpu: 0.0.40
codegen_flags: <defaults>
</compile_context>

<pallas_src>
import functools

import jax
import jax.numpy as jnp
from jax.experimental import pallas as pl
from jax.experimental.pallas import tpu as pltpu


# ----------------------------------------------------------------------------
# Fused matmul + bias + (optional) ReLU Pallas kernel
# ----------------------------------------------------------------------------
def _matmul_bias_act_kernel(a_ref, b_ref, bias_ref, o_ref, *, apply_relu):
    acc = jnp.dot(a_ref[...], b_ref[...], preferred_element_type=jnp.float32)
    acc = acc + bias_ref[...]                      # (1, tn) broadcast over (tm, tn)
    if apply_relu:
        acc = jnp.maximum(acc, 0.0)
    o_ref[...] = acc.astype(o_ref.dtype)


def _round_up(x, m):
    return ((x + m - 1) // m) * m


def fused_matmul_bias_act(a, b, bias, *, relu, tm=128, tn=128):
    """out = act(a @ b + bias); a:(M,K) b:(K,N) bias:(1,N). Zero-padded to tiles."""
    M, K = a.shape
    K2, N = b.shape
    assert K == K2
    Mp = _round_up(M, tm)
    Np = _round_up(N, tn)
    Kp = _round_up(K, 128)                          # lane-dense contraction dim

    a_p = jnp.pad(a.astype(jnp.float32), ((0, Mp - M), (0, Kp - K)))
    b_p = jnp.pad(b.astype(jnp.float32), ((0, Kp - K), (0, Np - N)))
    bias_p = jnp.pad(bias.astype(jnp.float32), ((0, 0), (0, Np - N)))

    grid = (Mp // tm, Np // tn)
    out = pl.pallas_call(
        functools.partial(_matmul_bias_act_kernel, apply_relu=relu),
        out_shape=jax.ShapeDtypeStruct((Mp, Np), jnp.float32),
        grid=grid,
        in_specs=[
            pl.BlockSpec((tm, Kp), lambda i, j: (i, 0)),
            pl.BlockSpec((Kp, tn), lambda i, j: (0, j)),
            pl.BlockSpec((1, tn), lambda i, j: (0, j)),
        ],
        out_specs=pl.BlockSpec((tm, tn), lambda i, j: (i, j)),
        compiler_params=pltpu.CompilerParams(
            dimension_semantics=("parallel", "parallel"),
            vmem_limit_bytes=32 * 1024 * 1024,
        ),
    )(a_p, b_p, bias_p)
    return out[:M, :N]


# ----------------------------------------------------------------------------
# Conv2d = im2col (wrapper-side layout plumbing) + fused Pallas matmul kernel
# ----------------------------------------------------------------------------
def _im2col_nhwc(x, kh, kw, stride, pad):
    """x: (B,H,W,C) NHWC -> patches (B*Hout*Wout, kh*kw*C), feature order (kh,kw,C)."""
    if pad:
        x = jnp.pad(x, ((0, 0), (pad, pad), (pad, pad), (0, 0)))
    B, Hp, Wp, C = x.shape
    Hout = (Hp - kh) // stride + 1
    Wout = (Wp - kw) // stride + 1
    cols = []
    for i in range(kh):
        for j in range(kw):
            cols.append(
                x[:, i:i + stride * (Hout - 1) + 1:stride,
                     j:j + stride * (Wout - 1) + 1:stride, :]
            )
    patches = jnp.concatenate(cols, axis=-1)        # (B, Hout, Wout, kh*kw*C)
    return patches.reshape(B * Hout * Wout, kh * kw * C), Hout, Wout


def conv2d_bias_relu(x_nhwc, w_oihw, b, *, stride, pad, relu=True):
    cout, cin, kh, kw = w_oihw.shape
    patches, Hout, Wout = _im2col_nhwc(x_nhwc, kh, kw, stride, pad)
    # (Cout,Cin,kh,kw) -> (kh,kw,Cin,Cout) -> (kh*kw*Cin, Cout); matches patch order
    w_mat = jnp.transpose(w_oihw, (2, 3, 1, 0)).reshape(kh * kw * cin, cout)
    out = fused_matmul_bias_act(patches, w_mat, b.reshape(1, -1), relu=relu)
    B = x_nhwc.shape[0]
    return out.reshape(B, Hout, Wout, cout)


# ----------------------------------------------------------------------------
# BasicModel forward (keeps PyTorch semantics, incl. (C,H,W)-order flatten)
# ----------------------------------------------------------------------------
def basic_model_forward(params, x_nchw):
    x = jnp.transpose(x_nchw.astype(jnp.float32), (0, 2, 3, 1))   # NCHW -> NHWC
    x = conv2d_bias_relu(x, params["conv1_w"], params["conv1_b"], stride=2, pad=3)
    x = conv2d_bias_relu(x, params["conv2_w"], params["conv2_b"], stride=2, pad=3)
    x = conv2d_bias_relu(x, params["conv3_w"], params["conv3_b"], stride=1, pad=0)
    B = x.shape[0]
    x = jnp.transpose(x, (0, 3, 1, 2)).reshape(B, -1)             # flatten as (C,H,W)
    logits = fused_matmul_bias_act(
        x, params["fc_w"].T, params["fc_b"].reshape(1, -1), relu=False)
    return logits


def init_params(key, num_classes=10):
    ks = jax.random.split(key, 8)

    def kaiming_conv(k, cout, cin, kh, kw):          # fan_out mode, relu gain
        std = (2.0 / (cout * kh * kw)) ** 0.5
        return jax.random.normal(k, (cout, cin, kh, kw), jnp.float32) * std

    def uniform_(k, shape, fan_in):                  # PyTorch default bias/linear init
        bound = 1.0 / (fan_in ** 0.5)
        return jax.random.uniform(k, shape, jnp.float32, -bound, bound)

    return {
        "conv1_w": kaiming_conv(ks[0], 64, 1, 8, 8),
        "conv1_b": uniform_(ks[1], (64,), 1 * 8 * 8),
        "conv2_w": kaiming_conv(ks[2], 128, 64, 6, 6),
        "conv2_b": uniform_(ks[3], (128,), 64 * 6 * 6),
        "conv3_w": kaiming_conv(ks[4], 128, 128, 5, 5),
        "conv3_b": uniform_(ks[5], (128,), 128 * 5 * 5),
        "fc_w": uniform_(ks[6], (num_classes, 2048), 2048),
        "fc_b": uniform_(ks[7], (num_classes,), 2048),
    }


# ----------------------------------------------------------------------------
# Pure-JAX reference (for correctness check only; not the kernel path)
# ----------------------------------------------------------------------------
def _reference_forward(params, x_nchw):
    def conv(x, w, b, stride, pad):
        y = jax.lax.conv_general_dilated(
            x, w, window_strides=(stride, stride),
            padding=((pad, pad), (pad, pad)),
            dimension_numbers=("NCHW", "OIHW", "NCHW"),
            precision=jax.lax.Precision.HIGHEST)
        return jax.nn.relu(y + b.reshape(1, -1, 1, 1))

    h = conv(x_nchw, params["conv1_w"], params["conv1_b"], 2, 3)
    h = conv(h, params["conv2_w"], params["conv2_b"], 2, 3)
    h = conv(h, params["conv3_w"], params["conv3_b"], 1, 0)
    h = h.reshape(h.shape[0], -1)
    return h @ params["fc_w"].T + params["fc_b"]


if __name__ == "__main__":
    key = jax.random.PRNGKey(0)
    pkey, xkey = jax.random.split(key)
    params = init_params(pkey, num_classes=10)

    # Input shape implied by the module: fc expects 2048 = 128*4*4 -> 1x28x28 input.
    x = jax.random.normal(xkey, (2, 1, 28, 28), dtype=jnp.float32)

    fwd = jax.jit(basic_model_forward)
    y = jax.block_until_ready(fwd(params, x))

    assert y.shape == (2, 10) and y.dtype == jnp.float32
    assert bool(jnp.all(jnp.isfinite(y)))

    y_ref = _reference_forward(params, x)
    max_err = float(jnp.max(jnp.abs(y - y_ref)))
    assert max_err < 5e-2, f"mismatch vs reference: {max_err}"

    print("KERNEL_OK")
</pallas_src>

<mosaic_0001>
module attributes {stable_mosaic.version = 11 : i64} {
  func.func @_matmul_bias_act_kernel(%arg0: i32, %arg1: i32, %arg2: memref<128x128xf32, #tpu.memory_space<vmem>>, %arg3: memref<128x128xf32, #tpu.memory_space<vmem>>, %arg4: memref<1x128xf32, #tpu.memory_space<vmem>>, %arg5: memref<128x128xf32, #tpu.memory_space<vmem>>) attributes {dimension_semantics = [#tpu.dimension_semantics<parallel>, #tpu.dimension_semantics<parallel>], iteration_bounds = array<i64: 4, 1>, scalar_prefetch = 0 : i64, scratch_operands = 0 : i64, tpu.core_type = #tpu.core_type<tc>, window_params = [{transform_indices = @transform_0, window_bounds = array<i64: 128, 128>}, {transform_indices = @transform_1, window_bounds = array<i64: 128, 128>}, {transform_indices = @transform_2, window_bounds = array<i64: 1, 128>}, {transform_indices = @transform_3, window_bounds = array<i64: 128, 128>}]} {
    %c0 = arith.constant 0 : index
    %c0_0 = arith.constant 0 : index
    %0 = vector.load %arg2[%c0, %c0_0] : memref<128x128xf32, #tpu.memory_space<vmem>>, vector<128x128xf32>
    %c0_1 = arith.constant 0 : index
    %c0_2 = arith.constant 0 : index
    %1 = vector.load %arg3[%c0_1, %c0_2] : memref<128x128xf32, #tpu.memory_space<vmem>>, vector<128x128xf32>
    %cst = arith.constant dense<0.000000e+00> : vector<128x128xf32>
    %2 = tpu.matmul %0, %1, %cst {dimension_numbers = #tpu.dot_dimension_numbers<[1], [0], [0], [1], [0, 0, 1, 1], [], []>} : vector<128x128xf32>, vector<128x128xf32>, vector<128x128xf32> -> vector<128x128xf32>
    %c0_3 = arith.constant 0 : index
    %c0_4 = arith.constant 0 : index
    %3 = vector.load %arg4[%c0_3, %c0_4] : memref<1x128xf32, #tpu.memory_space<vmem>>, vector<1x128xf32>
    %4 = vector.broadcast %3 : vector<1x128xf32> to vector<128x128xf32>
    %5 = arith.addf %2, %4 : vector<128x128xf32>
    %cst_5 = arith.constant 0.000000e+00 : f32
    %6 = vector.broadcast %cst_5 : f32 to vector<128x128xf32>
    %7 = arith.maximumf %5, %6 : vector<128x128xf32>
    %c0_6 = arith.constant 0 : index
    %c0_7 = arith.constant 0 : index
    %8 = vector.load %arg5[%c0_6, %c0_7] : memref<128x128xf32, #tpu.memory_space<vmem>>, vector<128x128xf32>
    tpu.vector_store %arg5[%c0_6, %c0_7], %7 {strides = array<i32>} : memref<128x128xf32, #tpu.memory_space<vmem>>, vector<128x128xf32>,
    return
  }
  func.func @transform_0(%arg0: i32, %arg1: i32) -> (i32, i32) {
    %c0_i32 = arith.constant 0 : i32
    %c0_i32_0 = arith.constant 0 : i32
    return %arg0, %c0_i32 : i32, i32
  }
  func.func @transform_1(%arg0: i32, %arg1: i32) -> (i32, i32) {
    %c0_i32 = arith.constant 0 : i32
    %c0_i32_0 = arith.constant 0 : i32
    return %c0_i32, %arg1 : i32, i32
  }
  func.func @transform_2(%arg0: i32, %arg1: i32) -> (i32, i32) {
    %c0_i32 = arith.constant 0 : i32
    %c0_i32_0 = arith.constant 0 : i32
    return %c0_i32, %arg1 : i32, i32
  }
  func.func @transform_3(%arg0: i32, %arg1: i32) -> (i32, i32) {
    %c0_i32 = arith.constant 0 : i32
    return %arg0, %arg1 : i32, i32
  }
}

module attributes {stable_mosaic.version = 11 : i64} {
  func.func @_matmul_bias_act_kernel(%arg0: i32, %arg1: i32, %arg2: memref<128x2304xf32, #tpu.memory_space<vmem>>, %arg3: memref<2304x128xf32, #tpu.memory_space<vmem>>, %arg4: memref<1x128xf32, #tpu.memory_space<vmem>>, %arg5: memref<128x128xf32, #tpu.memory_space<vmem>>) attributes {dimension_semantics = [#tpu.dimension_semantics<parallel>, #tpu.dimension_semantics<parallel>], iteration_bounds = array<i64: 1, 1>, scalar_prefetch = 0 : i64, scratch_operands = 0 : i64, tpu.core_type = #tpu.core_type<tc>, window_params = [{transform_indices = @transform_0, window_bounds = array<i64: 128, 2304>}, {transform_indices = @transform_1, window_bounds = array<i64: 2304, 128>}, {transform_indices = @transform_2, window_bounds = array<i64: 1, 128>}, {transform_indices = @transform_3, window_bounds = array<i64: 128, 128>}]} {
    %c0 = arith.constant 0 : index
    %c0_0 = arith.constant 0 : index
    %0 = vector.load %arg2[%c0, %c0_0] : memref<128x2304xf32, #tpu.memory_space<vmem>>, vector<128x2304xf32>
    %c0_1 = arith.constant 0 : index
    %c0_2 = arith.constant 0 : index
    %1 = vector.load %arg3[%c0_1, %c0_2] : memref<2304x128xf32, #tpu.memory_space<vmem>>, vector<2304x128xf32>
    %cst = arith.constant dense<0.000000e+00> : vector<128x128xf32>
    %2 = tpu.matmul %0, %1, %cst {dimension_numbers = #tpu.dot_dimension_numbers<[1], [0], [0], [1], [0, 0, 1, 1], [], []>} : vector<128x2304xf32>, vector<2304x128xf32>, vector<128x128xf32> -> vector<128x128xf32>
    %c0_3 = arith.constant 0 : index
    %c0_4 = arith.constant 0 : index
    %3 = vector.load %arg4[%c0_3, %c0_4] : memref<1x128xf32, #tpu.memory_space<vmem>>, vector<1x128xf32>
    %4 = vector.broadcast %3 : vector<1x128xf32> to vector<128x128xf32>
    %5 = arith.addf %2, %4 : vector<128x128xf32>
    %cst_5 = arith.constant 0.000000e+00 : f32
    %6 = vector.broadcast %cst_5 : f32 to vector<128x128xf32>
    %7 = arith.maximumf %5, %6 : vector<128x128xf32>
    %c0_6 = arith.constant 0 : index
    %c0_7 = arith.constant 0 : index
    %8 = vector.load %arg5[%c0_6, %c0_7] : memref<128x128xf32, #tpu.memory_space<vmem>>, vector<128x128xf32>
    tpu.vector_store %arg5[%c0_6, %c0_7], %7 {strides = array<i32>} : memref<128x128xf32, #tpu.memory_space<vmem>>, vector<128x128xf32>,
    return
  }
  func.func @transform_0(%arg0: i32, %arg1: i32) -> (i32, i32) {
    %c0_i32 = arith.constant 0 : i32
    %c0_i32_0 = arith.constant 0 : i32
    return %arg0, %c0_i32 : i32, i32
  }
  func.func @transform_1(%arg0: i32, %arg1: i32) -> (i32, i32) {
    %c0_i32 = arith.constant 0 : i32
    %c0_i32_0 = arith.constant 0 : i32
    return %c0_i32, %arg1 : i32, i32
  }
  func.func @transform_2(%arg0: i32, %arg1: i32) -> (i32, i32) {
    %c0_i32 = arith.constant 0 : i32
    %c0_i32_0 = arith.constant 0 : i32
    return %c0_i32, %arg1 : i32, i32
  }
  func.func @transform_3(%arg0: i32, %arg1: i32) -> (i32, i32) {
    %c0_i32 = arith.constant 0 : i32
    return %arg0, %arg1 : i32, i32
  }
}

module attributes {stable_mosaic.version = 11 : i64} {
  func.func @_matmul_bias_act_kernel(%arg0: i32, %arg1: i32, %arg2: memref<128x3200xf32, #tpu.memory_space<vmem>>, %arg3: memref<3200x128xf32, #tpu.memory_space<vmem>>, %arg4: memref<1x128xf32, #tpu.memory_space<vmem>>, %arg5: memref<128x128xf32, #tpu.memory_space<vmem>>) attributes {dimension_semantics = [#tpu.dimension_semantics<parallel>, #tpu.dimension_semantics<parallel>], iteration_bounds = array<i64: 1, 1>, scalar_prefetch = 0 : i64, scratch_operands = 0 : i64, tpu.core_type = #tpu.core_type<tc>, window_params = [{transform_indices = @transform_0, window_bounds = array<i64: 128, 3200>}, {transform_indices = @transform_1, window_bounds = array<i64: 3200, 128>}, {transform_indices = @transform_2, window_bounds = array<i64: 1, 128>}, {transform_indices = @transform_3, window_bounds = array<i64: 128, 128>}]} {
    %c0 = arith.constant 0 : index
    %c0_0 = arith.constant 0 : index
    %0 = vector.load %arg2[%c0, %c0_0] : memref<128x3200xf32, #tpu.memory_space<vmem>>, vector<128x3200xf32>
    %c0_1 = arith.constant 0 : index
    %c0_2 = arith.constant 0 : index
    %1 = vector.load %arg3[%c0_1, %c0_2] : memref<3200x128xf32, #tpu.memory_space<vmem>>, vector<3200x128xf32>
    %cst = arith.constant dense<0.000000e+00> : vector<128x128xf32>
    %2 = tpu.matmul %0, %1, %cst {dimension_numbers = #tpu.dot_dimension_numbers<[1], [0], [0], [1], [0, 0, 1, 1], [], []>} : vector<128x3200xf32>, vector<3200x128xf32>, vector<128x128xf32> -> vector<128x128xf32>
    %c0_3 = arith.constant 0 : index
    %c0_4 = arith.constant 0 : index
    %3 = vector.load %arg4[%c0_3, %c0_4] : memref<1x128xf32, #tpu.memory_space<vmem>>, vector<1x128xf32>
    %4 = vector.broadcast %3 : vector<1x128xf32> to vector<128x128xf32>
    %5 = arith.addf %2, %4 : vector<128x128xf32>
    %cst_5 = arith.constant 0.000000e+00 : f32
    %6 = vector.broadcast %cst_5 : f32 to vector<128x128xf32>
    %7 = arith.maximumf %5, %6 : vector<128x128xf32>
    %c0_6 = arith.constant 0 : index
    %c0_7 = arith.constant 0 : index
    %8 = vector.load %arg5[%c0_6, %c0_7] : memref<128x128xf32, #tpu.memory_space<vmem>>, vector<128x128xf32>
    tpu.vector_store %arg5[%c0_6, %c0_7], %7 {strides = array<i32>} : memref<128x128xf32, #tpu.memory_space<vmem>>, vector<128x128xf32>,
    return
  }
  func.func @transform_0(%arg0: i32, %arg1: i32) -> (i32, i32) {
    %c0_i32 = arith.constant 0 : i32
    %c0_i32_0 = arith.constant 0 : i32
    return %arg0, %c0_i32 : i32, i32
  }
  func.func @transform_1(%arg0: i32, %arg1: i32) -> (i32, i32) {
    %c0_i32 = arith.constant 0 : i32
    %c0_i32_0 = arith.constant 0 : i32
    return %c0_i32, %arg1 : i32, i32
  }
  func.func @transform_2(%arg0: i32, %arg1: i32) -> (i32, i32) {
    %c0_i32 = arith.constant 0 : i32
    %c0_i32_0 = arith.constant 0 : i32
    return %c0_i32, %arg1 : i32, i32
  }
  func.func @transform_3(%arg0: i32, %arg1: i32) -> (i32, i32) {
    %c0_i32 = arith.constant 0 : i32
    return %arg0, %arg1 : i32, i32
  }
}

module attributes {stable_mosaic.version = 11 : i64} {
  func.func @_matmul_bias_act_kernel(%arg0: i32, %arg1: i32, %arg2: memref<128x2048xf32, #tpu.memory_space<vmem>>, %arg3: memref<2048x128xf32, #tpu.memory_space<vmem>>, %arg4: memref<1x128xf32, #tpu.memory_space<vmem>>, %arg5: memref<128x128xf32, #tpu.memory_space<vmem>>) attributes {dimension_semantics = [#tpu.dimension_semantics<parallel>, #tpu.dimension_semantics<parallel>], iteration_bounds = array<i64: 1, 1>, scalar_prefetch = 0 : i64, scratch_operands = 0 : i64, tpu.core_type = #tpu.core_type<tc>, window_params = [{transform_indices = @transform_0, window_bounds = array<i64: 128, 2048>}, {transform_indices = @transform_1, window_bounds = array<i64: 2048, 128>}, {transform_indices = @transform_2, window_bounds = array<i64: 1, 128>}, {transform_indices = @transform_3, window_bounds = array<i64: 128, 128>}]} {
    %c0 = arith.constant 0 : index
    %c0_0 = arith.constant 0 : index
    %0 = vector.load %arg2[%c0, %c0_0] : memref<128x2048xf32, #tpu.memory_space<vmem>>, vector<128x2048xf32>
    %c0_1 = arith.constant 0 : index
    %c0_2 = arith.constant 0 : index
    %1 = vector.load %arg3[%c0_1, %c0_2] : memref<2048x128xf32, #tpu.memory_space<vmem>>, vector<2048x128xf32>
    %cst = arith.constant dense<0.000000e+00> : vector<128x128xf32>
    %2 = tpu.matmul %0, %1, %cst {dimension_numbers = #tpu.dot_dimension_numbers<[1], [0], [0], [1], [0, 0, 1, 1], [], []>} : vector<128x2048xf32>, vector<2048x128xf32>, vector<128x128xf32> -> vector<128x128xf32>
    %c0_3 = arith.constant 0 : index
    %c0_4 = arith.constant 0 : index
    %3 = vector.load %arg4[%c0_3, %c0_4] : memref<1x128xf32, #tpu.memory_space<vmem>>, vector<1x128xf32>
    %4 = vector.broadcast %3 : vector<1x128xf32> to vector<128x128xf32>
    %5 = arith.addf %2, %4 : vector<128x128xf32>
    %c0_5 = arith.constant 0 : index
    %c0_6 = arith.constant 0 : index
    %6 = vector.load %arg5[%c0_5, %c0_6] : memref<128x128xf32, #tpu.memory_space<vmem>>, vector<128x128xf32>
    tpu.vector_store %arg5[%c0_5, %c0_6], %5 {strides = array<i32>} : memref<128x128xf32, #tpu.memory_space<vmem>>, vector<128x128xf32>,
    return
  }
  func.func @transform_0(%arg0: i32, %arg1: i32) -> (i32, i32) {
    %c0_i32 = arith.constant 0 : i32
    %c0_i32_0 = arith.constant 0 : i32
    return %arg0, %c0_i32 : i32, i32
  }
  func.func @transform_1(%arg0: i32, %arg1: i32) -> (i32, i32) {
    %c0_i32 = arith.constant 0 : i32
    %c0_i32_0 = arith.constant 0 : i32
    return %c0_i32, %arg1 : i32, i32
  }
  func.func @transform_2(%arg0: i32, %arg1: i32) -> (i32, i32) {
    %c0_i32 = arith.constant 0 : i32
    %c0_i32_0 = arith.constant 0 : i32
    return %c0_i32, %arg1 : i32, i32
  }
  func.func @transform_3(%arg0: i32, %arg1: i32) -> (i32, i32) {
    %c0_i32 = arith.constant 0 : i32
    return %arg0, %arg1 : i32, i32
  }
}

</mosaic_0001>

<bundles_post_ra>
// kernel: basic_model_forward.4
= control target key start
LH: loop header
LB: loop body
LE: loop exit
PB: predicated region body
PF: predicated region fallthrough
CT: control target
= control target key end

     0   :  { %s761_s12 = smov 0   ;;  %s763_s13 = smov 0   ;;  %s888_s0 = inlined_call_operand.vmem [shape: f32[512,128], index: 0, kind: input, shape index: {}]   ;;  %s889_s1 = inlined_call_operand.vmem [shape: f32[128,128], index: 1, kind: input, shape index: {}]   ;;  %s890_s2 = inlined_call_operand.vmem [shape: f32[1,128], index: 2, kind: input, shape index: {}]   ;;  %s891_s3 = inlined_call_operand.vmem [shape: f32[512,128], index: 3, kind: output, shape index: {}]  }
   0x1   :  { %s765_s14 = smov 0  }
   0x2 LB: > { %s25_s15 = sadd.s32 1, %s735_s13  ;;  %p549_p0 = scmp.ge.s32.totalorder %s739_s14, 1  ;;  %s739_s14 = sphi %s765_s14, %s13_s14   ;;  %s735_s13 = sphi %s763_s13, %s893_s13   ;;  %s731_s12 = sphi %s761_s12, %s892_s12  }
   0x3   : > { %p27_p1 = scmp.ge.s32.totalorder %s25_s15, 4  ;;  %p169_p2 = scmp.lt.s32.totalorder %s739_s14, 5 }
   0x5   : > { %s895_s15 = smov (%p27_p1, %s25_s15), 0  ;;  %p170_p3 = pnand %p549_p0, %p169_p2 }
   0x6   : > { %v241_v0 = vld [vmem:[%s889_s1] sm:$0xff] (!%p170_p3)  ;;  %v242_v1 = vld [vmem:[%s889_s1 + $0x8] sm:$0xff] (!%p170_p3)  ;;  %v243_v2 = vld [vmem:[%s889_s1 + $0x10] sm:$0xff] (!%p170_p3)  ;;  %s550_s22 = sshll.u32 (!%p170_p3), %s731_s12, 4 }
   0x7   : > { %173 = sbr.rel (%p170_p3) target bundleno = 272 (0x110), region = 32  ;;  %v645_v3 = vpack.c.bf16 (!%p170_p3), %v242_v1, %v241_v0  ;;  %v244_v4 = vld [vmem:[%s889_s1 + $0x18] sm:$0xff] (!%p170_p3)  ;;  %p204_p4 = scmp.lt.s32.totalorder (!%p170_p3), %s550_s22, 63  ;;  %v245_v6 = vld [vmem:[%s889_s1 + $0x20] sm:$0xff] (!%p170_p3)  ;;  %v246_v7 = vld [vmem:[%s889_s1 + $0x28] sm:$0xff] (!%p170_p3) }
   0x8   : > { %v649_v5 = vpack.c.bf16 (!%p170_p3), %v244_v4, %v243_v2  ;;  %v653_v8 = vpack.c.bf16 (!%p170_p3), %v246_v7, %v245_v6  ;;  %v247_v9 = vld [vmem:[%s889_s1 + $0x30] sm:$0xff] (!%p170_p3)  ;;  %v248_v10 = vld [vmem:[%s889_s1 + $0x38] sm:$0xff] (!%p170_p3)  ;;  %v249_v14 = vld [vmem:[%s889_s1 + $0x40] sm:$0xff] (!%p170_p3) }
   0x9   : > { %646 = vmatprep.subr.bf16.mxu0 (!%p170_p3), %v645_v3  ;;  %677 = vmatprep.subr.bf16.mxu1 (!%p170_p3), %v645_v3  ;;  %v657_v13 = vpack.c.bf16 (!%p170_p3), %v248_v10, %v247_v9  ;;  %v250_v15 = vld [vmem:[%s889_s1 + $0x48] sm:$0xff] (!%p170_p3)  ;;  %v251_v17 = vld [vmem:[%s889_s1 + $0x50] sm:$0xff] (!%p170_p3)  ;;  %v252_v18 = vld [vmem:[%s889_s1 + $0x58] sm:$0xff] (!%p170_p3) }
   0xa   : > { %648 = vmatpush3.bf16.msra.mxu0 (!%p170_p3), %v645_v3  ;;  %685 = vmatpush3.bf16.msra.mxu1 (!%p170_p3), %v645_v3  ;;  %v661_v16 = vpack.c.bf16 (!%p170_p3), %v250_v15, %v249_v14  ;;  %v665_v19 = vpack.c.bf16 (!%p170_p3), %v252_v18, %v251_v17  ;;  %v253_v20 = vld [vmem:[%s889_s1 + $0x60] sm:$0xff] (!%p170_p3)  ;;  %v254_v21 = vld [vmem:[%s889_s1 + $0x68] sm:$0xff] (!%p170_p3)  ;;  %v255_v23 = vld [vmem:[%s889_s1 + $0x70] sm:$0xff] (!%p170_p3) }
   0xb   : > { %650 = vmatprep.subr.bf16.mxu0 (!%p170_p3), %v649_v5  ;;  %678 = vmatprep.subr.bf16.mxu1 (!%p170_p3), %v649_v5  ;;  %v669_v22 = vpack.c.bf16 (!%p170_p3), %v254_v21, %v253_v20  ;;  %v256_v24 = vld [vmem:[%s889_s1 + $0x78] sm:$0xff] (!%p170_p3)  ;;  %v554_v40 = vld [vmem:[%s890_s2] ss:$0 sm:$0xff] (!%p170_p3) }
   0xc   : > { %v673_v25 = vpack.c.bf16 (!%p170_p3), %v256_v24, %v255_v23 }
   0xe   : > { %s897_s22 = smov (!%p204_p4, %s550_s22), 63  ;;  %652 = vmatpush3.bf16.msra.mxu0 %v649_v5  ;;  %686 = vmatpush3.bf16.msra.mxu1 %v649_v5 }
   0xf   : > { %s551_s29 = sshll.u32 %s897_s22, 3  ;;  %654 = vmatprep.subr.bf16.mxu0 %v653_v8  ;;  %679 = vmatprep.subr.bf16.mxu1 %v653_v8 }
  0x10   : > { %s811_s9 = scalar_lea.vmem %s888_s0, %s551_s29  ;;  %s861_s8 = scalar_lea.vmem %s891_s3, %s551_s29 }
  0x11   : > { %v225_v11 = vld [vmem:[%s811_s9] sm:$0xff]  ;;  %v226_v26 = vld [vmem:[%s811_s9 + $0x8] sm:$0xff]  ;;  %v227_v28 = vld [vmem:[%s811_s9 + $0x10] sm:$0xff] }
  0x12   : > { %v233_v12 = vld [vmem:[%s811_s9 + $0x40] sm:$0xff]  ;;  %621 = vmatprep.mubr.f32.mxu0 %v225_v11  ;;  %656 = vmatpush3.bf16.msra.mxu0 %v653_v8  ;;  %v234_v27 = vld [vmem:[%s811_s9 + $0x48] sm:$0xff]  ;;  %v235_v29 = vld [vmem:[%s811_s9 + $0x50] sm:$0xff] }
  0x13   : > { %633 = vmatprep.mubr.f32.mxu1 %v233_v12  ;;  %687 = vmatpush3.bf16.msra.mxu1 %v653_v8  ;;  %v228_v30 = vld [vmem:[%s811_s9 + $0x18] sm:$0xff]  ;;  %v229_v32 = vld [vmem:[%s811_s9 + $0x20] sm:$0xff]  ;;  %v230_v34 = vld [vmem:[%s811_s9 + $0x28] sm:$0xff] }
  0x14   : > { %658 = vmatprep.subr.bf16.mxu0 %v657_v13  ;;  %680 = vmatprep.subr.bf16.mxu1 %v657_v13  ;;  %v236_v31 = vld [vmem:[%s811_s9 + $0x58] sm:$0xff]  ;;  %v237_v33 = vld [vmem:[%s811_s9 + $0x60] sm:$0xff]  ;;  %v238_v35 = vld [vmem:[%s811_s9 + $0x68] sm:$0xff] }
  0x15   : > { %v231_v36 = vld [vmem:[%s811_s9 + $0x30] sm:$0xff]  ;;  %v232_v38 = vld [vmem:[%s811_s9 + $0x38] sm:$0xff] }
  0x16   : > { %660 = vmatpush3.bf16.msra.mxu0 %v657_v13  ;;  %v239_v37 = vld [vmem:[%s811_s9 + $0x70] sm:$0xff]  ;;  %v240_v39 = vld [vmem:[%s811_s9 + $0x78] sm:$0xff] }
  0x17   : > { %688 = vmatpush3.bf16.msra.mxu1 %v657_v13  ;;  %662 = vmatprep.subr.bf16.mxu0 %v661_v16 }
  0x18   : > { %681 = vmatprep.subr.bf16.mxu1 %v661_v16 }
  0x1a   : > { %664 = vmatpush3.bf16.msra.mxu0 %v661_v16 }
  0x1b   : > { %689 = vmatpush3.bf16.msra.mxu1 %v661_v16  ;;  %666 = vmatprep.subr.bf16.mxu0 %v665_v19 }
  0x1c   : > { %682 = vmatprep.subr.bf16.mxu1 %v665_v19 }
  0x1e   : > { %668 = vmatpush3.bf16.msra.mxu0 %v665_v19 }
  0x1f   : > { %690 = vmatpush3.bf16.msra.mxu1 %v665_v19  ;;  %670 = vmatprep.subr.bf16.mxu0 %v669_v22 }
  0x20   : > { %683 = vmatprep.subr.bf16.mxu1 %v669_v22 }
  0x22   : > { %672 = vmatpush3.bf16.msra.mxu0 %v669_v22 }
  0x23   : > { %691 = vmatpush3.bf16.msra.mxu1 %v669_v22  ;;  %674 = vmatprep.subr.bf16.mxu0 %v673_v25 }
  0x24   : > { %684 = vmatprep.subr.bf16.mxu1 %v673_v25 }
  0x26   : > { %676 = vmatpush3.bf16.msra.mxu0 %v673_v25 }
  0x27   : > { %692 = vmatpush3.bf16.msra.mxu1 %v673_v25 }
  0x29   : > { %622 = vmatmul.mubr.f32.vlgmr.msra.gmra.mrb[0].mxu0 %v226_v26 }
  0x2a   : > { %634 = vmatmul.mubr.f32.vlgmr.msra.gmra.mrb[0].mxu1 %v234_v27  ;;  %624 = vmatprep.mubr.f32.mxu0 %v227_v28 }
  0x2b   : > { %636 = vmatprep.mubr.f32.mxu1 %v235_v29 }
  0x2d   : > { %625 = vmatmul.mubr.f32.gmra.mrb[2].mxu0 %v228_v30 }
  0x2e   : > { %637 = vmatmul.mubr.f32.gmra.mrb[2].mxu1 %v236_v31  ;;  %627 = vmatprep.mubr.f32.mxu0 %v229_v32 }
  0x2f   : > { %639 = vmatprep.mubr.f32.mxu1 %v237_v33 }
  0x31   : > { %628 = vmatmul.mubr.f32.gmra.mrb[4].mxu0 %v230_v34 }
  0x32   : > { %640 = vmatmul.mubr.f32.gmra.mrb[4].mxu1 %v238_v35  ;;  %630 = vmatprep.mubr.f32.mxu0 %v231_v36 }
  0x33   : > { %642 = vmatprep.mubr.f32.mxu1 %v239_v37 }
  0x35   : > { %631 = vmatmul.mubr.f32.gmra.mrb[6].mxu0 %v232_v38 }
  0x36   : > { %643 = vmatmul.mubr.f32.gmra.mrb[6].mxu1 %v240_v39 }
  0xfc   : > { %v623_v41 = vpop.f32.mrb[0].mxu0 }
  0xfd   : > { %v635_v42 = vpop.f32.mrb[0].mxu1  ;;  %v336_v43 = vadd.f32 %v623_v41, %v554_v40  ;;  %v330_v45 = vpop.f32.mrb[1].mxu0 }
  0xfe   : > { %v376_v44 = vadd.f32 %v635_v42, %v554_v40  ;;  %v370_v46 = vpop.f32.mrb[1].mxu1  ;;  %v331_v47 = vadd.f32 %v554_v40, %v330_v45 }
  0xff   : > { %v371_v48 = vadd.f32 %v554_v40, %v370_v46  ;;  %v410_v49 = vmax.f32 %v336_v43, 0.0 }
 0x100   : > { %v418_v50 = vmax.f32 %v376_v44, 0.0  ;;  %v409_v51 = vmax.f32 %v331_v47, 0.0  ;;  %v626_v53 = vpop.f32.mrb[2].mxu0 }
 0x101   : > { %v417_v52 = vmax.f32 %v371_v48, 0.0  ;;  %v638_v54 = vpop.f32.mrb[2].mxu1  ;;  %426 = vst [vmem:[%s861_s8 + $0x8] sm:$0xff] %v410_v49  ;;  %v346_v55 = vadd.f32 %v626_v53, %v554_v40  ;;  %v340_v57 = vpop.f32.mrb[3].mxu0 }
 0x102   : > { %434 = vst [vmem:[%s861_s8 + $0x48] sm:$0xff] %v418_v50  ;;  %v386_v56 = vadd.f32 %v638_v54, %v554_v40  ;;  %v380_v58 = vpop.f32.mrb[3].mxu1  ;;  %425 = vst [vmem:[%s861_s8] sm:$0xff] %v409_v51  ;;  %v341_v59 = vadd.f32 %v554_v40, %v340_v57 }
 0x103   : > { %433 = vst [vmem:[%s861_s8 + $0x40] sm:$0xff] %v417_v52  ;;  %v381_v60 = vadd.f32 %v554_v40, %v380_v58  ;;  %v412_v61 = vmax.f32 %v346_v55, 0.0 }
 0x104   : > { %v420_v62 = vmax.f32 %v386_v56, 0.0  ;;  %v411_v63 = vmax.f32 %v341_v59, 0.0  ;;  %v629_v1 = vpop.f32.mrb[4].mxu0 }
 0x105   : > { %v419_v0 = vmax.f32 %v381_v60, 0.0  ;;  %v641_v2 = vpop.f32.mrb[4].mxu1  ;;  %428 = vst [vmem:[%s861_s8 + $0x18] sm:$0xff] %v412_v61  ;;  %v356_v3 = vadd.f32 %v629_v1, %v554_v40  ;;  %v350_v5 = vpop.f32.mrb[5].mxu0 }
 0x106   : > { %436 = vst [vmem:[%s861_s8 + $0x58] sm:$0xff] %v420_v62  ;;  %v396_v4 = vadd.f32 %v641_v2, %v554_v40  ;;  %v390_v6 = vpop.f32.mrb[5].mxu1  ;;  %427 = vst [vmem:[%s861_s8 + $0x10] sm:$0xff] %v411_v63  ;;  %v351_v7 = vadd.f32 %v554_v40, %v350_v5 }
 0x107   : > { %435 = vst [vmem:[%s861_s8 + $0x50] sm:$0xff] %v419_v0  ;;  %v391_v8 = vadd.f32 %v554_v40, %v390_v6  ;;  %v414_v9 = vmax.f32 %v356_v3, 0.0 }
 0x108   : > { %v422_v10 = vmax.f32 %v396_v4, 0.0  ;;  %v413_v11 = vmax.f32 %v351_v7, 0.0  ;;  %v632_v13 = vpop.f32.mrb[6].mxu0 }
 0x109   : > { %v421_v12 = vmax.f32 %v391_v8, 0.0  ;;  %v644_v14 = vpop.f32.mrb[6].mxu1  ;;  %430 = vst [vmem:[%s861_s8 + $0x28] sm:$0xff] %v414_v9  ;;  %v366_v15 = vadd.f32 %v632_v13, %v554_v40  ;;  %v360_v17 = vpop.f32.mrb[7].mxu0 }
 0x10a   : > { %438 = vst [vmem:[%s861_s8 + $0x68] sm:$0xff] %v422_v10  ;;  %v406_v16 = vadd.f32 %v644_v14, %v554_v40  ;;  %v400_v18 = vpop.f32.mrb[7].mxu1  ;;  %429 = vst [vmem:[%s861_s8 + $0x20] sm:$0xff] %v413_v11  ;;  %v361_v19 = vadd.f32 %v554_v40, %v360_v17 }
 0x10b   : > { %437 = vst [vmem:[%s861_s8 + $0x60] sm:$0xff] %v421_v12  ;;  %v401_v20 = vadd.f32 %v554_v40, %v400_v18  ;;  %v416_v21 = vmax.f32 %v366_v15, 0.0 }
 0x10c   : > { %v424_v22 = vmax.f32 %v406_v16, 0.0  ;;  %v415_v23 = vmax.f32 %v361_v19, 0.0 }
 0x10d   : > { %v423_v24 = vmax.f32 %v401_v20, 0.0  ;;  %432 = vst [vmem:[%s861_s8 + $0x38] sm:$0xff] %v416_v21 }
 0x10e   : > { %440 = vst [vmem:[%s861_s8 + $0x78] sm:$0xff] %v424_v22  ;;  %431 = vst [vmem:[%s861_s8 + $0x30] sm:$0xff] %v415_v23 }
 0x10f   : > { %439 = vst [vmem:[%s861_s8 + $0x70] sm:$0xff] %v423_v24 }
 0x110 PF: > { %s13_s14 = sadd.s32 1, %s739_s14   ;;  %s892_s12 = smov %s735_s13 }
 0x111   : > { %p10_p5 = scmp.ge.s32.totalorder %s13_s14, 6   ;;  %s893_s13 = smov %s895_s15 }
 0x113   :  { %12 = sbr.rel (!%p10_p5) target bundleno = 2 (0x2), region = 68 }

// kernel: basic_model_forward.5
= control target key start
LH: loop header
LB: loop body
LE: loop exit
PB: predicated region body
PF: predicated region fallthrough
CT: control target
= control target key end

     0   :  { %s4972_s1 = inlined_call_operand.vmem [shape: f32[2304,128], index: 1, kind: input, shape index: {}]   ;;  %s4973_s0 = inlined_call_operand.vmem [shape: f32[128,2304], index: 0, kind: input, shape index: {}]   ;;  %s4974_s2 = inlined_call_operand.vmem [shape: f32[1,128], index: 2, kind: input, shape index: {}]   ;;  %s4975_s3 = inlined_call_operand.vmem [shape: f32[128,128], index: 3, kind: output, shape index: {}]  }
   0x1   :  { %v318_v0 = vld [vmem:[%s4972_s1 + $0x80] sm:$0xff]  ;;  %v319_v1 = vld [vmem:[%s4972_s1 + $0x88] sm:$0xff]  ;;  %v320_v5 = vld [vmem:[%s4972_s1 + $0x90] sm:$0xff] }
   0x2   :  { %v302_v2 = vld [vmem:[%s4972_s1] sm:$0xff]  ;;  %v2659_v3 = vpack.c.bf16 %v319_v1, %v318_v0  ;;  %v303_v4 = vld [vmem:[%s4972_s1 + $0x8] sm:$0xff]  ;;  %v321_v6 = vld [vmem:[%s4972_s1 + $0x98] sm:$0xff] }
   0x3   :  { %v2661_v7 = vpack.c.bf16 %v303_v4, %v302_v2  ;;  %v2663_v8 = vpack.c.bf16 %v321_v6, %v320_v5  ;;  %v304_v9 = vld [vmem:[%s4972_s1 + $0x10] sm:$0xff]  ;;  %v305_v10 = vld [vmem:[%s4972_s1 + $0x18] sm:$0xff]  ;;  %v322_v11 = vld [vmem:[%s4972_s1 + $0xa0] sm:$0xff] }
   0x4   :  { %2947 = vmatprep.subr.bf16.mxu1 %v2659_v3  ;;  %2660 = vmatprep.subr.bf16.mxu0 %v2659_v3  ;;  %v323_v12 = vld [vmem:[%s4972_s1 + $0xa8] sm:$0xff]  ;;  %v2665_v13 = vpack.c.bf16 %v305_v10, %v304_v9  ;;  %v306_v15 = vld [vmem:[%s4972_s1 + $0x20] sm:$0xff]  ;;  %v324_v17 = vld [vmem:[%s4972_s1 + $0xb0] sm:$0xff] }
   0x5   :  { %2955 = vmatpush3.bf16.msra.mxu1 %v2661_v7  ;;  %2662 = vmatpush3.bf16.msra.mxu0 %v2661_v7  ;;  %v2667_v14 = vpack.c.bf16 %v323_v12, %v322_v11  ;;  %v307_v16 = vld [vmem:[%s4972_s1 + $0x28] sm:$0xff]  ;;  %v325_v18 = vld [vmem:[%s4972_s1 + $0xb8] sm:$0xff]  ;;  %v308_v21 = vld [vmem:[%s4972_s1 + $0x30] sm:$0xff] }
   0x6   :  { %2948 = vmatprep.subr.bf16.mxu1 %v2663_v8  ;;  %2664 = vmatprep.subr.bf16.mxu0 %v2663_v8  ;;  %v2669_v19 = vpack.c.bf16 %v307_v16, %v306_v15  ;;  %v2671_v20 = vpack.c.bf16 %v325_v18, %v324_v17  ;;  %v309_v22 = vld [vmem:[%s4972_s1 + $0x38] sm:$0xff]  ;;  %v326_v23 = vld [vmem:[%s4972_s1 + $0xc0] sm:$0xff]  ;;  %v327_v24 = vld [vmem:[%s4972_s1 + $0xc8] sm:$0xff] }
   0x7   :  { %v159_v25 = vld [vmem:[%s4973_s0 + $0x488] sm:$0xff]  ;;  %v2673_v26 = vpack.c.bf16 %v309_v22, %v308_v21  ;;  %v2675_v28 = vpack.c.bf16 %v327_v24, %v326_v23  ;;  %v310_v29 = vld [vmem:[%s4972_s1 + $0x40] sm:$0xff]  ;;  %v328_v31 = vld [vmem:[%s4972_s1 + $0xd0] sm:$0xff] }
   0x8   :  { %701 = vmatprep.mubr.f32.mxu1 %v159_v25  ;;  %v15_v27 = vld [vmem:[%s4973_s0 + $0x8] sm:$0xff]  ;;  %v329_v32 = vld [vmem:[%s4972_s1 + $0xd8] sm:$0xff]  ;;  %v312_v35 = vld [vmem:[%s4972_s1 + $0x50] sm:$0xff] }
   0x9   :  { %2956 = vmatpush3.bf16.msra.mxu1 %v2665_v13  ;;  %2666 = vmatpush3.bf16.msra.mxu0 %v2665_v13  ;;  %v311_v30 = vld [vmem:[%s4972_s1 + $0x48] sm:$0xff]  ;;  %v2679_v34 = vpack.c.bf16 %v329_v32, %v328_v31  ;;  %v313_v36 = vld [vmem:[%s4972_s1 + $0x58] sm:$0xff]  ;;  %v330_v37 = vld [vmem:[%s4972_s1 + $0xe0] sm:$0xff] }
   0xa   :  { %2949 = vmatprep.subr.bf16.mxu1 %v2667_v14  ;;  %2668 = vmatprep.subr.bf16.mxu0 %v2667_v14  ;;  %v2677_v33 = vpack.c.bf16 %v311_v30, %v310_v29  ;;  %v331_v38 = vld [vmem:[%s4972_s1 + $0xe8] sm:$0xff]  ;;  %v2681_v39 = vpack.c.bf16 %v313_v36, %v312_v35  ;;  %v314_v41 = vld [vmem:[%s4972_s1 + $0x60] sm:$0xff]  ;;  %v332_v43 = vld [vmem:[%s4972_s1 + $0xf0] sm:$0xff] }
   0xb   :  { %661 = vmatprep.mubr.f32.mxu0 %v15_v27  ;;  %v2683_v40 = vpack.c.bf16 %v331_v38, %v330_v37  ;;  %v315_v42 = vld [vmem:[%s4972_s1 + $0x68] sm:$0xff]  ;;  %v333_v44 = vld [vmem:[%s4972_s1 + $0xf8] sm:$0xff]  ;;  %v316_v47 = vld [vmem:[%s4972_s1 + $0x70] sm:$0xff] }
   0xc   :  { %v2685_v45 = vpack.c.bf16 %v315_v42, %v314_v41  ;;  %v2687_v46 = vpack.c.bf16 %v333_v44, %v332_v43  ;;  %v317_v48 = vld [vmem:[%s4972_s1 + $0x78] sm:$0xff]  ;;  %v350_v49 = vld [vmem:[%s4972_s1 + $0x180] sm:$0xff]  ;;  %v351_v50 = vld [vmem:[%s4972_s1 + $0x188] sm:$0xff] }
   0xd   :  { %2957 = vmatpush3.bf16.msra.mxu1 %v2669_v19  ;;  %2670 = vmatpush3.bf16.msra.mxu0 %v2669_v19  ;;  %v382_v51 = vld [vmem:[%s4972_s1 + $0x280] sm:$0xff]  ;;  %v383_v52 = vld [vmem:[%s4972_s1 + $0x288] sm:$0xff]  ;;  %v2689_v53 = vpack.c.bf16 %v317_v48, %v316_v47  ;;  %v2691_v54 = vpack.c.bf16 %v351_v50, %v350_v49  ;;  %v352_v60 = vld [vmem:[%s4972_s1 + $0x190] sm:$0xff] }
   0xe   :  { %2950 = vmatprep.subr.bf16.mxu1 %v2671_v20  ;;  %2672 = vmatprep.subr.bf16.mxu0 %v2671_v20  ;;  %v334_v55 = vld [vmem:[%s4972_s1 + $0x100] sm:$0xff]  ;;  %v335_v56 = vld [vmem:[%s4972_s1 + $0x108] sm:$0xff]  ;;  %v2723_v57 = vpack.c.bf16 %v383_v52, %v382_v51  ;;  %v353_v61 = vld [vmem:[%s4972_s1 + $0x198] sm:$0xff] }
   0xf   :  { %v366_v58 = vld [vmem:[%s4972_s1 + $0x200] sm:$0xff]  ;;  %v367_v59 = vld [vmem:[%s4972_s1 + $0x208] sm:$0xff]  ;;  %v384_v62 = vld [vmem:[%s4972_s1 + $0x290] sm:$0xff]  ;;  %v2693_v1 = vpack.c.bf16 %v335_v56, %v334_v55  ;;  %v2695_v5 = vpack.c.bf16 %v353_v61, %v352_v60 }
  0x10   :  { %v385_v63 = vld [vmem:[%s4972_s1 + $0x298] sm:$0xff]  ;;  %v158_v0 = vld [vmem:[%s4973_s0 + $0x480] sm:$0xff]  ;;  %v2725_v4 = vpack.c.bf16 %v367_v59, %v366_v58  ;;  %v336_v6 = vld [vmem:[%s4972_s1 + $0x110] sm:$0xff] }
  0x11   :  { %2958 = vmatpush3.bf16.msra.mxu1 %v2673_v26  ;;  %2674 = vmatpush3.bf16.msra.mxu0 %v2673_v26  ;;  %v14_v2 = vld [vmem:[%s4973_s0] sm:$0xff]  ;;  %v177_v3 = vld [vmem:[%s4973_s0 + $0x518] sm:$0xff]  ;;  %v368_v8 = vld [vmem:[%s4972_s1 + $0x210] sm:$0xff]  ;;  %v2727_v9 = vpack.c.bf16 %v385_v63, %v384_v62 }
  0x12   :  { %2951 = vmatprep.subr.bf16.mxu1 %v2675_v28  ;;  %2676 = vmatprep.subr.bf16.mxu0 %v2675_v28  ;;  %v337_v7 = vld [vmem:[%s4972_s1 + $0x118] sm:$0xff]  ;;  %v354_v11 = vld [vmem:[%s4972_s1 + $0x1a0] sm:$0xff]  ;;  %v355_v12 = vld [vmem:[%s4972_s1 + $0x1a8] sm:$0xff] }
  0x13   :  { %v369_v10 = vld [vmem:[%s4972_s1 + $0x218] sm:$0xff]  ;;  %v386_v14 = vld [vmem:[%s4972_s1 + $0x2a0] sm:$0xff]  ;;  %v387_v15 = vld [vmem:[%s4972_s1 + $0x2a8] sm:$0xff]  ;;  %v2697_v17 = vpack.c.bf16 %v337_v7, %v336_v6  ;;  %v2699_v21 = vpack.c.bf16 %v355_v12, %v354_v11 }
  0x14   :  { %v33_v13 = vld [vmem:[%s4973_s0 + $0x98] sm:$0xff]  ;;  %v176_v16 = vld [vmem:[%s4973_s0 + $0x510] sm:$0xff]  ;;  %v195_v19 = vld [vmem:[%s4973_s0 + $0x5a8] sm:$0xff]  ;;  %v2729_v20 = vpack.c.bf16 %v369_v10, %v368_v8  ;;  %v2731_v25 = vpack.c.bf16 %v387_v15, %v386_v14 }
  0x15   :  { %2959 = vmatpush3.bf16.msra.mxu1 %v2677_v33  ;;  %2678 = vmatpush3.bf16.msra.mxu0 %v2677_v33  ;;  %v32_v18 = vld [vmem:[%s4973_s0 + $0x90] sm:$0xff]  ;;  %v338_v22 = vld [vmem:[%s4972_s1 + $0x120] sm:$0xff]  ;;  %v339_v23 = vld [vmem:[%s4972_s1 + $0x128] sm:$0xff] }
  0x16   :  { %2952 = vmatprep.subr.bf16.mxu1 %v2679_v34  ;;  %2680 = vmatprep.subr.bf16.mxu0 %v2679_v34  ;;  %v370_v24 = vld [vmem:[%s4972_s1 + $0x220] sm:$0xff]  ;;  %v371_v26 = vld [vmem:[%s4972_s1 + $0x228] sm:$0xff]  ;;  %v356_v27 = vld [vmem:[%s4972_s1 + $0x1b0] sm:$0xff]  ;;  %v2701_v33 = vpack.c.bf16 %v339_v23, %v338_v22 }
  0x17   :  { %v357_v28 = vld [vmem:[%s4972_s1 + $0x1b8] sm:$0xff]  ;;  %v51_v29 = vld [vmem:[%s4973_s0 + $0x128] sm:$0xff]  ;;  %v388_v30 = vld [vmem:[%s4972_s1 + $0x2b0] sm:$0xff]  ;;  %v2733_v36 = vpack.c.bf16 %v371_v26, %v370_v24 }
  0x18   :  { %v389_v31 = vld [vmem:[%s4972_s1 + $0x2b8] sm:$0xff]  ;;  %v194_v32 = vld [vmem:[%s4973_s0 + $0x5a0] sm:$0xff]  ;;  %v2703_v37 = vpack.c.bf16 %v357_v28, %v356_v27  ;;  %v340_v38 = vld [vmem:[%s4972_s1 + $0x130] sm:$0xff] }
  0x19   :  { %2960 = vmatpush3.bf16.msra.mxu1 %v2681_v39  ;;  %2682 = vmatpush3.bf16.msra.mxu0 %v2681_v39  ;;  %v50_v34 = vld [vmem:[%s4973_s0 + $0x120] sm:$0xff]  ;;  %v213_v35 = vld [vmem:[%s4973_s0 + $0x638] sm:$0xff]  ;;  %v2735_v41 = vpack.c.bf16 %v389_v31, %v388_v30  ;;  %v359_v44 = vld [vmem:[%s4972_s1 + $0x1c8] sm:$0xff] }
  0x1a   :  { %2953 = vmatprep.subr.bf16.mxu1 %v2683_v40  ;;  %2684 = vmatprep.subr.bf16.mxu0 %v2683_v40  ;;  %v341_v39 = vld [vmem:[%s4972_s1 + $0x138] sm:$0xff]  ;;  %v372_v40 = vld [vmem:[%s4972_s1 + $0x230] sm:$0xff]  ;;  %v358_v43 = vld [vmem:[%s4972_s1 + $0x1c0] sm:$0xff] }
  0x1b   :  { %v373_v42 = vld [vmem:[%s4972_s1 + $0x238] sm:$0xff]  ;;  %v391_v47 = vld [vmem:[%s4972_s1 + $0x2c8] sm:$0xff]  ;;  %v212_v48 = vld [vmem:[%s4973_s0 + $0x630] sm:$0xff]  ;;  %v2705_v49 = vpack.c.bf16 %v341_v39, %v340_v38 }
  0x1c   :  { %v68_v50 = vld [vmem:[%s4973_s0 + $0x1b0] sm:$0xff]  ;;  %v231_v51 = vld [vmem:[%s4973_s0 + $0x6c8] sm:$0xff]  ;;  %v2737_v52 = vpack.c.bf16 %v373_v42, %v372_v40  ;;  %v374_v56 = vld [vmem:[%s4972_s1 + $0x240] sm:$0xff] }
  0x1d   :  { %2961 = vmatpush3.bf16.msra.mxu1 %v2685_v45  ;;  %2686 = vmatpush3.bf16.msra.mxu0 %v2685_v45  ;;  %v69_v45 = vld [vmem:[%s4973_s0 + $0x1b8] sm:$0xff]  ;;  %v343_v55 = vld [vmem:[%s4972_s1 + $0x148] sm:$0xff]  ;;  %v360_v59 = vld [vmem:[%s4972_s1 + $0x1d0] sm:$0xff] }
  0x1e   :  { %2954 = vmatprep.subr.bf16.mxu1 %v2687_v46  ;;  %2688 = vmatprep.subr.bf16.mxu0 %v2687_v46  ;;  %v390_v46 = vld [vmem:[%s4972_s1 + $0x2c0] sm:$0xff]  ;;  %v375_v58 = vld [vmem:[%s4972_s1 + $0x248] sm:$0xff]  ;;  %v361_v60 = vld [vmem:[%s4972_s1 + $0x1d8] sm:$0xff] }
  0x1f   :  { %v87_v61 = vld [vmem:[%s4973_s0 + $0x248] sm:$0xff]  ;;  %v392_v62 = vld [vmem:[%s4972_s1 + $0x2d0] sm:$0xff]  ;;  %v393_v63 = vld [vmem:[%s4972_s1 + $0x2d8] sm:$0xff] }
  0x20   :  { %v344_v6 = vld [vmem:[%s4972_s1 + $0x150] sm:$0xff]  ;;  %v345_v7 = vld [vmem:[%s4972_s1 + $0x158] sm:$0xff]  ;;  %v362_v11 = vld [vmem:[%s4972_s1 + $0x1e0] sm:$0xff] }
  0x21   :  { %2962 = vmatpush3.bf16.msra.mxu1 %v2689_v53  ;;  %2690 = vmatpush3.bf16.msra.mxu0 %v2689_v53  ;;  %v2707_v53 = vpack.c.bf16 %v359_v44, %v358_v43  ;;  %v376_v8 = vld [vmem:[%s4972_s1 + $0x250] sm:$0xff]  ;;  %v377_v10 = vld [vmem:[%s4972_s1 + $0x258] sm:$0xff]  ;;  %v363_v12 = vld [vmem:[%s4972_s1 + $0x1e8] sm:$0xff] }
  0x22   :  { %2692 = vmatprep.subr.bf16.mxu1 %v2691_v54  ;;  %2724 = vmatprep.subr.bf16.mxu0 %v2723_v57  ;;  %v342_v54 = vld [vmem:[%s4972_s1 + $0x140] sm:$0xff]  ;;  %v2739_v57 = vpack.c.bf16 %v391_v47, %v390_v46  ;;  %v395_v15 = vld [vmem:[%s4972_s1 + $0x2e8] sm:$0xff]  ;;  %v364_v27 = vld [vmem:[%s4972_s1 + $0x1f0] sm:$0xff] }
  0x23   :  { %v394_v14 = vld [vmem:[%s4972_s1 + $0x2e0] sm:$0xff]  ;;  %v347_v23 = vld [vmem:[%s4972_s1 + $0x168] sm:$0xff]  ;;  %v365_v28 = vld [vmem:[%s4972_s1 + $0x1f8] sm:$0xff] }
  0x24   :  { %702 = vmatmul.mubr.f32.vlgmr.msra.gmra.mrb[0].mxu1 %v158_v0  ;;  %662 = vmatmul.mubr.f32.vlgmr.msra.gmra.mrb[0].mxu0 %v14_v2  ;;  %v230_v0 = vld [vmem:[%s4973_s0 + $0x6c0] sm:$0xff]  ;;  %v379_v26 = vld [vmem:[%s4972_s1 + $0x268] sm:$0xff]  ;;  %v396_v30 = vld [vmem:[%s4972_s1 + $0x2f0] sm:$0xff] }
  0x25   :  { %2694 = vmatpush3.bf16.msra.mxu1 %v2693_v1  ;;  %706 = vmatprep.mubr.f32.mxu1 %v177_v3  ;;  %v2709_v1 = vpack.c.bf16 %v343_v55, %v342_v54  ;;  %v86_v2 = vld [vmem:[%s4973_s0 + $0x240] sm:$0xff]  ;;  %v249_v3 = vld [vmem:[%s4973_s0 + $0x758] sm:$0xff]  ;;  %v348_v38 = vld [vmem:[%s4972_s1 + $0x170] sm:$0xff] }
  0x26   :  { %2726 = vmatpush3.bf16.msra.mxu0 %v2725_v4  ;;  %2696 = vmatprep.subr.bf16.mxu1 %v2695_v5  ;;  %v2741_v4 = vpack.c.bf16 %v375_v58, %v374_v56  ;;  %v2711_v5 = vpack.c.bf16 %v361_v60, %v360_v59  ;;  %v346_v22 = vld [vmem:[%s4972_s1 + $0x160] sm:$0xff]  ;;  %v397_v31 = vld [vmem:[%s4972_s1 + $0x2f8] sm:$0xff]  ;;  %v380_v40 = vld [vmem:[%s4972_s1 + $0x270] sm:$0xff] }
  0x27   :  { %666 = vmatprep.mubr.f32.mxu0 %v33_v13  ;;  %2728 = vmatprep.subr.bf16.mxu0 %v2727_v9  ;;  %v2743_v9 = vpack.c.bf16 %v393_v63, %v392_v62  ;;  %v105_v13 = vld [vmem:[%s4973_s0 + $0x2d8] sm:$0xff]  ;;  %v378_v24 = vld [vmem:[%s4972_s1 + $0x260] sm:$0xff]  ;;  %v415_v44 = vld [vmem:[%s4972_s1 + $0x388] sm:$0xff] }
  0x28   :  { %707 = vmatmul.mubr.f32.gmra.mrb[2].mxu1 %v176_v16  ;;  %667 = vmatmul.mubr.f32.gmra.mrb[2].mxu0 %v32_v18  ;;  %v248_v16 = vld [vmem:[%s4973_s0 + $0x750] sm:$0xff]  ;;  %v349_v39 = vld [vmem:[%s4972_s1 + $0x178] sm:$0xff]  ;;  %v414_v43 = vld [vmem:[%s4972_s1 + $0x380] sm:$0xff] }
  0x29   :  { %2698 = vmatpush3.bf16.msra.mxu1 %v2697_v17  ;;  %711 = vmatprep.mubr.f32.mxu1 %v195_v19  ;;  %v2713_v17 = vpack.c.bf16 %v345_v7, %v344_v6  ;;  %v104_v18 = vld [vmem:[%s4973_s0 + $0x2d0] sm:$0xff]  ;;  %v267_v19 = vld [vmem:[%s4973_s0 + $0x7e8] sm:$0xff]  ;;  %v381_v42 = vld [vmem:[%s4972_s1 + $0x278] sm:$0xff] }
  0x2a   :  { %2730 = vmatpush3.bf16.msra.mxu0 %v2729_v20  ;;  %2700 = vmatprep.subr.bf16.mxu1 %v2699_v21  ;;  %v2745_v20 = vpack.c.bf16 %v377_v10, %v376_v8  ;;  %v2715_v21 = vpack.c.bf16 %v363_v12, %v362_v11  ;;  %v446_v46 = vld [vmem:[%s4972_s1 + $0x480] sm:$0xff]  ;;  %v447_v47 = vld [vmem:[%s4972_s1 + $0x488] sm:$0xff]  ;;  %v416_v60 = vld [vmem:[%s4972_s1 + $0x390] sm:$0xff] }
  0x2b   :  { %671 = vmatprep.mubr.f32.mxu0 %v51_v29  ;;  %2732 = vmatprep.subr.bf16.mxu0 %v2731_v25  ;;  %v2747_v25 = vpack.c.bf16 %v395_v15, %v394_v14  ;;  %v123_v29 = vld [vmem:[%s4973_s0 + $0x368] sm:$0xff]  ;;  %v398_v54 = vld [vmem:[%s4972_s1 + $0x300] sm:$0xff]  ;;  %v2787_v56 = vpack.c.bf16 %v447_v47, %v446_v46  ;;  %v16_v62 = vld [vmem:[%s4973_s0 + $0x10] sm:$0xff] }
  0x2c   :  { %712 = vmatmul.mubr.f32.gmra.mrb[4].mxu1 %v194_v32  ;;  %672 = vmatmul.mubr.f32.gmra.mrb[4].mxu0 %v50_v34  ;;  %v266_v32 = vld [vmem:[%s4973_s0 + $0x7e0] sm:$0xff]  ;;  %v399_v55 = vld [vmem:[%s4972_s1 + $0x308] sm:$0xff]  ;;  %v400_v7 = vld [vmem:[%s4972_s1 + $0x310] sm:$0xff] }
  0x2d   :  { %2702 = vmatpush3.bf16.msra.mxu1 %v2701_v33  ;;  %716 = vmatprep.mubr.f32.mxu1 %v213_v35  ;;  %v2717_v33 = vpack.c.bf16 %v347_v23, %v346_v22  ;;  %v122_v34 = vld [vmem:[%s4973_s0 + $0x360] sm:$0xff]  ;;  %v285_v35 = vld [vmem:[%s4973_s0 + $0x878] sm:$0xff]  ;;  %v431_v58 = vld [vmem:[%s4972_s1 + $0x408] sm:$0xff]  ;;  %v2757_v63 = vpack.c.bf16 %v399_v55, %v398_v54 }
  0x2e   :  { %2734 = vmatpush3.bf16.msra.mxu0 %v2733_v36  ;;  %2704 = vmatprep.subr.bf16.mxu1 %v2703_v37  ;;  %v2749_v36 = vpack.c.bf16 %v379_v26, %v378_v24  ;;  %v2719_v37 = vpack.c.bf16 %v365_v28, %v364_v27  ;;  %v19_v59 = vld [vmem:[%s4973_s0 + $0x28] sm:$0xff]  ;;  %v401_v8 = vld [vmem:[%s4972_s1 + $0x318] sm:$0xff]  ;;  %v418_v12 = vld [vmem:[%s4972_s1 + $0x3a0] sm:$0xff] }
  0x2f   :  { %676 = vmatprep.mubr.f32.mxu0 %v69_v45  ;;  %2736 = vmatprep.subr.bf16.mxu0 %v2735_v41  ;;  %v2751_v41 = vpack.c.bf16 %v397_v31, %v396_v30  ;;  %v141_v45 = vld [vmem:[%s4973_s0 + $0x3f8] sm:$0xff]  ;;  %v34_v14 = vld [vmem:[%s4973_s0 + $0xa0] sm:$0xff]  ;;  %v403_v24 = vld [vmem:[%s4972_s1 + $0x328] sm:$0xff] }
  0x30   :  { %717 = vmatmul.mubr.f32.gmra.mrb[6].mxu1 %v212_v48  ;;  %677 = vmatmul.mubr.f32.gmra.mrb[6].mxu0 %v68_v50  ;;  %v284_v48 = vld [vmem:[%s4973_s0 + $0x870] sm:$0xff]  ;;  %v433_v11 = vld [vmem:[%s4972_s1 + $0x418] sm:$0xff]  ;;  %v450_v15 = vld [vmem:[%s4972_s1 + $0x4a0] sm:$0xff] }
  0x31   :  { %2706 = vmatpush3.bf16.msra.mxu1 %v2705_v49  ;;  %721 = vmatprep.mubr.f32.mxu1 %v231_v51  ;;  %v2721_v49 = vpack.c.bf16 %v349_v39, %v348_v38  ;;  %v140_v50 = vld [vmem:[%s4973_s0 + $0x3f0] sm:$0xff]  ;;  %v17_v51 = vld [vmem:[%s4973_s0 + $0x18] sm:$0xff]  ;;  %v402_v23 = vld [vmem:[%s4972_s1 + $0x320] sm:$0xff] }
  0x32   :  { %2738 = vmatpush3.bf16.msra.mxu0 %v2737_v52  ;;  %2708 = vmatprep.subr.bf16.mxu1 %v2707_v53  ;;  %v2753_v52 = vpack.c.bf16 %v381_v42, %v380_v40  ;;  %v2755_v53 = vpack.c.bf16 %v415_v44, %v414_v43  ;;  %v435_v27 = vld [vmem:[%s4972_s1 + $0x428] sm:$0xff]  ;;  %v420_v28 = vld [vmem:[%s4972_s1 + $0x3b0] sm:$0xff]  ;;  %v405_v40 = vld [vmem:[%s4972_s1 + $0x338] sm:$0xff] }
  0x33   :  { %681 = vmatprep.mubr.f32.mxu0 %v87_v61  ;;  %2740 = vmatprep.subr.bf16.mxu0 %v2739_v57  ;;  %v430_v57 = vld [vmem:[%s4972_s1 + $0x400] sm:$0xff]  ;;  %v417_v61 = vld [vmem:[%s4972_s1 + $0x398] sm:$0xff]  ;;  %v52_v30 = vld [vmem:[%s4973_s0 + $0x130] sm:$0xff] }
  0x34   :  { %722 = vmatmul.mubr.f32.gmra.mrb[8].mxu1 %v230_v0  ;;  %682 = vmatmul.mubr.f32.gmra.mrb[8].mxu0 %v86_v2  ;;  %v448_v0 = vld [vmem:[%s4972_s1 + $0x490] sm:$0xff]  ;;  %v18_v2 = vld [vmem:[%s4973_s0 + $0x20] sm:$0xff]  ;;  %v2759_v6 = vpack.c.bf16 %v417_v61, %v416_v60  ;;  %v437_v43 = vld [vmem:[%s4972_s1 + $0x438] sm:$0xff] }
  0x35   :  { %2710 = vmatpush3.bf16.msra.mxu1 %v2709_v1  ;;  %726 = vmatprep.mubr.f32.mxu1 %v249_v3  ;;  %v449_v1 = vld [vmem:[%s4972_s1 + $0x498] sm:$0xff]  ;;  %v35_v3 = vld [vmem:[%s4973_s0 + $0xa8] sm:$0xff]  ;;  %v452_v31 = vld [vmem:[%s4972_s1 + $0x4b0] sm:$0xff] }
  0x36   :  { %2742 = vmatpush3.bf16.msra.mxu0 %v2741_v4  ;;  %2712 = vmatprep.subr.bf16.mxu1 %v2711_v5  ;;  %v2789_v4 = vpack.c.bf16 %v431_v58, %v430_v57  ;;  %v37_v5 = vld [vmem:[%s4973_s0 + $0xb8] sm:$0xff]  ;;  %v2791_v10 = vpack.c.bf16 %v449_v1, %v448_v0  ;;  %v404_v39 = vld [vmem:[%s4972_s1 + $0x330] sm:$0xff]  ;;  %v422_v44 = vld [vmem:[%s4972_s1 + $0x3c0] sm:$0xff] }
  0x37   :  { %686 = vmatprep.mubr.f32.mxu0 %v105_v13  ;;  %2744 = vmatprep.subr.bf16.mxu0 %v2743_v9  ;;  %v432_v9 = vld [vmem:[%s4972_s1 + $0x410] sm:$0xff]  ;;  %v419_v13 = vld [vmem:[%s4972_s1 + $0x3a8] sm:$0xff]  ;;  %v70_v46 = vld [vmem:[%s4973_s0 + $0x1c0] sm:$0xff] }
  0x38   :  { %727 = vmatmul.mubr.f32.gmra.mrb[10].mxu1 %v248_v16  ;;  %687 = vmatmul.mubr.f32.gmra.mrb[10].mxu0 %v104_v18  ;;  %v451_v16 = vld [vmem:[%s4972_s1 + $0x4a8] sm:$0xff]  ;;  %v53_v18 = vld [vmem:[%s4973_s0 + $0x138] sm:$0xff]  ;;  %v2763_v22 = vpack.c.bf16 %v419_v13, %v418_v12  ;;  %v454_v47 = vld [vmem:[%s4972_s1 + $0x4c0] sm:$0xff] }
  0x39   :  { %2714 = vmatpush3.bf16.msra.mxu1 %v2713_v17  ;;  %731 = vmatprep.mubr.f32.mxu1 %v267_v19  ;;  %v36_v17 = vld [vmem:[%s4973_s0 + $0xb0] sm:$0xff]  ;;  %v55_v19 = vld [vmem:[%s4973_s0 + $0x148] sm:$0xff]  ;;  %v2795_v26 = vpack.c.bf16 %v451_v16, %v450_v15  ;;  %v406_v55 = vld [vmem:[%s4972_s1 + $0x340] sm:$0xff] }
  0x3a   :  { %2746 = vmatpush3.bf16.msra.mxu0 %v2745_v20  ;;  %2716 = vmatprep.subr.bf16.mxu1 %v2715_v21  ;;  %v2761_v20 = vpack.c.bf16 %v401_v8, %v400_v7  ;;  %v2793_v21 = vpack.c.bf16 %v433_v11, %v432_v9  ;;  %v438_v57 = vld [vmem:[%s4972_s1 + $0x440] sm:$0xff]  ;;  %v424_v60 = vld [vmem:[%s4972_s1 + $0x3d0] sm:$0xff]  ;;  %v425_v61 = vld [vmem:[%s4972_s1 + $0x3d8] sm:$0xff] }
  0x3b   :  { %691 = vmatprep.mubr.f32.mxu0 %v123_v29  ;;  %2748 = vmatprep.subr.bf16.mxu0 %v2747_v25  ;;  %v434_v25 = vld [vmem:[%s4972_s1 + $0x420] sm:$0xff]  ;;  %v421_v29 = vld [vmem:[%s4972_s1 + $0x3b8] sm:$0xff]  ;;  %v408_v7 = vld [vmem:[%s4972_s1 + $0x350] sm:$0xff] }
  0x3c   :  { %732 = vmatmul.mubr.f32.gmra.mrb[12].mxu1 %v266_v32  ;;  %692 = vmatmul.mubr.f32.gmra.mrb[12].mxu0 %v122_v34  ;;  %v453_v32 = vld [vmem:[%s4972_s1 + $0x4b8] sm:$0xff]  ;;  %v71_v34 = vld [vmem:[%s4973_s0 + $0x1c8] sm:$0xff]  ;;  %v2767_v38 = vpack.c.bf16 %v421_v29, %v420_v28  ;;  %v90_v1 = vld [vmem:[%s4973_s0 + $0x260] sm:$0xff] }
  0x3d   :  { %2718 = vmatpush3.bf16.msra.mxu1 %v2717_v33  ;;  %736 = vmatprep.mubr.f32.mxu1 %v285_v35  ;;  %v54_v33 = vld [vmem:[%s4973_s0 + $0x140] sm:$0xff]  ;;  %v73_v35 = vld [vmem:[%s4973_s0 + $0x1d8] sm:$0xff]  ;;  %v2799_v42 = vpack.c.bf16 %v453_v32, %v452_v31  ;;  %v440_v9 = vld [vmem:[%s4972_s1 + $0x450] sm:$0xff] }
  0x3e   :  { %2750 = vmatpush3.bf16.msra.mxu0 %v2749_v36  ;;  %2720 = vmatprep.subr.bf16.mxu1 %v2719_v37  ;;  %v2765_v36 = vpack.c.bf16 %v403_v24, %v402_v23  ;;  %v2797_v37 = vpack.c.bf16 %v435_v27, %v434_v25  ;;  %v457_v0 = vld [vmem:[%s4972_s1 + $0x4d8] sm:$0xff]  ;;  %v426_v12 = vld [vmem:[%s4972_s1 + $0x3e0] sm:$0xff]  ;;  %v427_v13 = vld [vmem:[%s4972_s1 + $0x3e8] sm:$0xff] }
  0x3f   :  { %696 = vmatprep.mubr.f32.mxu0 %v141_v45  ;;  %2752 = vmatprep.subr.bf16.mxu0 %v2751_v41  ;;  %v436_v41 = vld [vmem:[%s4972_s1 + $0x430] sm:$0xff]  ;;  %v423_v45 = vld [vmem:[%s4972_s1 + $0x3c8] sm:$0xff]  ;;  %v409_v8 = vld [vmem:[%s4972_s1 + $0x358] sm:$0xff] }
  0x40   :  { %737 = vmatmul.mubr.f32.gmra.mrb[14].mxu1 %v284_v48  ;;  %697 = vmatmul.mubr.f32.gmra.mrb[14].mxu0 %v140_v50  ;;  %v455_v48 = vld [vmem:[%s4972_s1 + $0x4c8] sm:$0xff]  ;;  %v89_v50 = vld [vmem:[%s4973_s0 + $0x258] sm:$0xff]  ;;  %v2771_v54 = vpack.c.bf16 %v423_v45, %v422_v44  ;;  %v458_v15 = vld [vmem:[%s4972_s1 + $0x4e0] sm:$0xff] }
  0x41   :  { %2722 = vmatpush3.bf16.msra.mxu1 %v2721_v49  ;;  %806 = vmatprep.mubr.f32.mxu1 %v17_v51  ;;  %v72_v49 = vld [vmem:[%s4973_s0 + $0x1d0] sm:$0xff]  ;;  %v91_v51 = vld [vmem:[%s4973_s0 + $0x268] sm:$0xff]  ;;  %v2803_v58 = vpack.c.bf16 %v455_v48, %v454_v47  ;;  %v441_v11 = vld [vmem:[%s4972_s1 + $0x458] sm:$0xff] }
  0x42   :  { %2754 = vmatpush3.bf16.msra.mxu0 %v2753_v52  ;;  %2756 = vmatprep.subr.bf16.mxu1 %v2755_v53  ;;  %v2769_v52 = vpack.c.bf16 %v405_v40, %v404_v39  ;;  %v2801_v53 = vpack.c.bf16 %v437_v43, %v436_v41  ;;  %v459_v16 = vld [vmem:[%s4972_s1 + $0x4e8] sm:$0xff]  ;;  %v410_v23 = vld [vmem:[%s4972_s1 + $0x360] sm:$0xff]  ;;  %v428_v28 = vld [vmem:[%s4972_s1 + $0x3f0] sm:$0xff] }
  0x43   :  { %951 = vmatprep.mubr.f32.mxu0 %v19_v59  ;;  %2788 = vmatprep.subr.bf16.mxu0 %v2787_v56  ;;  %v407_v56 = vld [vmem:[%s4972_s1 + $0x348] sm:$0xff]  ;;  %v442_v25 = vld [vmem:[%s4972_s1 + $0x460] sm:$0xff]  ;;  %v429_v29 = vld [vmem:[%s4972_s1 + $0x3f8] sm:$0xff] }
  0x44   :  { %807 = vmatmul.mubr.f32.vlgmr.msra.gmra.mrb[16].mxu1 %v16_v62  ;;  %v439_v59 = vld [vmem:[%s4972_s1 + $0x448] sm:$0xff]  ;;  %v88_v62 = vld [vmem:[%s4973_s0 + $0x250] sm:$0xff]  ;;  %v461_v32 = vld [vmem:[%s4972_s1 + $0x4f8] sm:$0xff] }
  0x45   :  { %2758 = vmatpush3.bf16.msra.mxu1 %v2757_v63  ;;  %952 = vmatmul.mubr.f32.vlgmr.msra.gmra.mrb[16].mxu0 %v18_v2  ;;  %v456_v63 = vld [vmem:[%s4972_s1 + $0x4d0] sm:$0xff]  ;;  %v107_v2 = vld [vmem:[%s4973_s0 + $0x2e8] sm:$0xff]  ;;  %v413_v40 = vld [vmem:[%s4972_s1 + $0x378] sm:$0xff] }
  0x46   :  { %811 = vmatprep.mubr.f32.mxu1 %v35_v3  ;;  %2790 = vmatpush3.bf16.msra.mxu0 %v2789_v4  ;;  %v109_v3 = vld [vmem:[%s4973_s0 + $0x2f8] sm:$0xff]  ;;  %v2773_v4 = vpack.c.bf16 %v407_v56, %v406_v55  ;;  %v411_v24 = vld [vmem:[%s4972_s1 + $0x368] sm:$0xff]  ;;  %v460_v31 = vld [vmem:[%s4972_s1 + $0x4f0] sm:$0xff] }
  0x47   :  { %956 = vmatprep.mubr.f32.mxu0 %v37_v5  ;;  %2760 = vmatprep.subr.bf16.mxu1 %v2759_v6  ;;  %v2805_v5 = vpack.c.bf16 %v439_v59, %v438_v57  ;;  %v2775_v6 = vpack.c.bf16 %v425_v61, %v424_v60  ;;  %v443_v27 = vld [vmem:[%s4972_s1 + $0x468] sm:$0xff]  ;;  %v412_v39 = vld [vmem:[%s4972_s1 + $0x370] sm:$0xff]  ;;  %v445_v43 = vld [vmem:[%s4972_s1 + $0x478] sm:$0xff] }
  0x48   :  { %812 = vmatmul.mubr.f32.gmra.mrb[18].mxu1 %v34_v14  ;;  %2792 = vmatprep.subr.bf16.mxu0 %v2791_v10  ;;  %v2807_v10 = vpack.c.bf16 %v457_v0, %v456_v63  ;;  %v106_v14 = vld [vmem:[%s4973_s0 + $0x2e0] sm:$0xff]  ;;  %v444_v41 = vld [vmem:[%s4972_s1 + $0x470] sm:$0xff]  ;;  %v479_v45 = vld [vmem:[%s4972_s1 + $0x588] sm:$0xff] }
  0x49   :  { %957 = vmatmul.mubr.f32.gmra.mrb[18].mxu0 %v36_v17  ;;  %816 = vmatprep.mubr.f32.mxu1 %v53_v18  ;;  %v108_v17 = vld [vmem:[%s4973_s0 + $0x2f0] sm:$0xff]  ;;  %v125_v18 = vld [vmem:[%s4973_s0 + $0x378] sm:$0xff]  ;;  %v478_v44 = vld [vmem:[%s4972_s1 + $0x580] sm:$0xff] }
  0x4a   :  { %961 = vmatprep.mubr.f32.mxu0 %v55_v19  ;;  %2762 = vmatpush3.bf16.msra.mxu1 %v2761_v20  ;;  %v127_v19 = vld [vmem:[%s4973_s0 + $0x388] sm:$0xff]  ;;  %v2777_v20 = vpack.c.bf16 %v409_v8, %v408_v7  ;;  %v510_v47 = vld [vmem:[%s4972_s1 + $0x680] sm:$0xff]  ;;  %v160_v56 = vld [vmem:[%s4973_s0 + $0x490] sm:$0xff] }
  0x4b   :  { %2794 = vmatpush3.bf16.msra.mxu0 %v2793_v21  ;;  %2764 = vmatprep.subr.bf16.mxu1 %v2763_v22  ;;  %v2809_v21 = vpack.c.bf16 %v441_v11, %v440_v9  ;;  %v2779_v22 = vpack.c.bf16 %v427_v13, %v426_v12  ;;  %v511_v48 = vld [vmem:[%s4972_s1 + $0x688] sm:$0xff]  ;;  %v162_v57 = vld [vmem:[%s4973_s0 + $0x4a0] sm:$0xff]  ;;  %v181_v59 = vld [vmem:[%s4973_s0 + $0x538] sm:$0xff] }
  0x4c   :  { %817 = vmatmul.mubr.f32.gmra.mrb[20].mxu1 %v52_v30  ;;  %2796 = vmatprep.subr.bf16.mxu0 %v2795_v26  ;;  %v2811_v26 = vpack.c.bf16 %v459_v16, %v458_v15  ;;  %v124_v30 = vld [vmem:[%s4973_s0 + $0x370] sm:$0xff]  ;;  %v2851_v55 = vpack.c.bf16 %v511_v48, %v510_v47  ;;  %v178_v60 = vld [vmem:[%s4973_s0 + $0x520] sm:$0xff]  ;;  %v199_v63 = vld [vmem:[%s4973_s0 + $0x5c8] sm:$0xff] }
  0x4d   :  { %962 = vmatmul.mubr.f32.gmra.mrb[20].mxu0 %v54_v33  ;;  %821 = vmatprep.mubr.f32.mxu1 %v71_v34  ;;  %v126_v33 = vld [vmem:[%s4973_s0 + $0x380] sm:$0xff]  ;;  %v143_v34 = vld [vmem:[%s4973_s0 + $0x408] sm:$0xff]  ;;  %v180_v61 = vld [vmem:[%s4973_s0 + $0x530] sm:$0xff] }
  0x4e   :  { %966 = vmatprep.mubr.f32.mxu0 %v73_v35  ;;  %2766 = vmatpush3.bf16.msra.mxu1 %v2765_v36  ;;  %v145_v35 = vld [vmem:[%s4973_s0 + $0x418] sm:$0xff]  ;;  %v2781_v36 = vpack.c.bf16 %v411_v24, %v410_v23  ;;  %v196_v0 = vld [vmem:[%s4973_s0 + $0x5b0] sm:$0xff]  ;;  %v235_v7 = vld [vmem:[%s4973_s0 + $0x6e8] sm:$0xff] }
  0x4f   :  { %2798 = vmatpush3.bf16.msra.mxu0 %v2797_v37  ;;  %2768 = vmatprep.subr.bf16.mxu1 %v2767_v38  ;;  %v2813_v37 = vpack.c.bf16 %v443_v27, %v442_v25  ;;  %v2783_v38 = vpack.c.bf16 %v429_v29, %v428_v28  ;;  %v232_v8 = vld [vmem:[%s4973_s0 + $0x6d0] sm:$0xff]  ;;  %v234_v9 = vld [vmem:[%s4973_s0 + $0x6e0] sm:$0xff]  ;;  %v253_v11 = vld [vmem:[%s4973_s0 + $0x778] sm:$0xff] }
  0x50   :  { %822 = vmatmul.mubr.f32.gmra.mrb[22].mxu1 %v70_v46  ;;  %2800 = vmatprep.subr.bf16.mxu0 %v2799_v42  ;;  %v2815_v42 = vpack.c.bf16 %v461_v32, %v460_v31  ;;  %v142_v46 = vld [vmem:[%s4973_s0 + $0x400] sm:$0xff]  ;;  %v252_v13 = vld [vmem:[%s4973_s0 + $0x770] sm:$0xff]  ;;  %v271_v15 = vld [vmem:[%s4973_s0 + $0x808] sm:$0xff] }
  0x51   :  { %967 = vmatmul.mubr.f32.gmra.mrb[22].mxu0 %v72_v49  ;;  %826 = vmatprep.mubr.f32.mxu1 %v89_v50  ;;  %v144_v49 = vld [vmem:[%s4973_s0 + $0x410] sm:$0xff]  ;;  %v161_v50 = vld [vmem:[%s4973_s0 + $0x498] sm:$0xff]  ;;  %v250_v12 = vld [vmem:[%s4973_s0 + $0x760] sm:$0xff] }
  0x52   :  { %971 = vmatprep.mubr.f32.mxu0 %v91_v51  ;;  %2770 = vmatpush3.bf16.msra.mxu1 %v2769_v52  ;;  %v2785_v51 = vpack.c.bf16 %v413_v40, %v412_v39  ;;  %v163_v52 = vld [vmem:[%s4973_s0 + $0x4a8] sm:$0xff]  ;;  %v268_v16 = vld [vmem:[%s4973_s0 + $0x7f0] sm:$0xff]  ;;  %v462_v23 = vld [vmem:[%s4972_s1 + $0x500] sm:$0xff] }
  0x53   :  { %2802 = vmatpush3.bf16.msra.mxu0 %v2801_v53  ;;  %2772 = vmatprep.subr.bf16.mxu1 %v2771_v54  ;;  %v2817_v53 = vpack.c.bf16 %v445_v43, %v444_v41  ;;  %v2819_v54 = vpack.c.bf16 %v479_v45, %v478_v44  ;;  %v463_v24 = vld [vmem:[%s4972_s1 + $0x508] sm:$0xff]  ;;  %v480_v28 = vld [vmem:[%s4972_s1 + $0x590] sm:$0xff]  ;;  %v481_v29 = vld [vmem:[%s4972_s1 + $0x598] sm:$0xff] }
  0x54   :  { %827 = vmatmul.mubr.f32.gmra.mrb[24].mxu1 %v88_v62  ;;  %2804 = vmatprep.subr.bf16.mxu0 %v2803_v58  ;;  %v179_v58 = vld [vmem:[%s4973_s0 + $0x528] sm:$0xff]  ;;  %v197_v62 = vld [vmem:[%s4973_s0 + $0x5b8] sm:$0xff]  ;;  %v2821_v31 = vpack.c.bf16 %v463_v24, %v462_v23  ;;  %v512_v32 = vld [vmem:[%s4972_s1 + $0x690] sm:$0xff] }
  0x55   :  { %972 = vmatmul.mubr.f32.gmra.mrb[24].mxu0 %v90_v1  ;;  %831 = vmatprep.mubr.f32.mxu1 %v107_v2  ;;  %v198_v1 = vld [vmem:[%s4973_s0 + $0x5c0] sm:$0xff]  ;;  %v215_v2 = vld [vmem:[%s4973_s0 + $0x648] sm:$0xff]  ;;  %v464_v39 = vld [vmem:[%s4972_s1 + $0x510] sm:$0xff] }
  0x56   :  { %976 = vmatprep.mubr.f32.mxu0 %v109_v3  ;;  %2774 = vmatpush3.bf16.msra.mxu1 %v2773_v4  ;;  %v217_v3 = vld [vmem:[%s4973_s0 + $0x658] sm:$0xff]  ;;  %v214_v4 = vld [vmem:[%s4973_s0 + $0x640] sm:$0xff]  ;;  %v23_v25 = vld [vmem:[%s4973_s0 + $0x48] sm:$0xff] }
  0x57   :  { %2806 = vmatpush3.bf16.msra.mxu0 %v2805_v5  ;;  %2776 = vmatprep.subr.bf16.mxu1 %v2775_v6  ;;  %v216_v5 = vld [vmem:[%s4973_s0 + $0x650] sm:$0xff]  ;;  %v233_v6 = vld [vmem:[%s4973_s0 + $0x6d8] sm:$0xff]  ;;  %v495_v27 = vld [vmem:[%s4972_s1 + $0x608] sm:$0xff] }
  0x58   :  { %832 = vmatmul.mubr.f32.gmra.mrb[26].mxu1 %v106_v14  ;;  %2808 = vmatprep.subr.bf16.mxu0 %v2807_v10  ;;  %v251_v10 = vld [vmem:[%s4973_s0 + $0x768] sm:$0xff]  ;;  %v269_v14 = vld [vmem:[%s4973_s0 + $0x7f8] sm:$0xff]  ;;  %v496_v41 = vld [vmem:[%s4972_s1 + $0x610] sm:$0xff] }
  0x59   :  { %977 = vmatmul.mubr.f32.gmra.mrb[26].mxu0 %v108_v17  ;;  %836 = vmatprep.mubr.f32.mxu1 %v125_v18  ;;  %v270_v17 = vld [vmem:[%s4973_s0 + $0x800] sm:$0xff]  ;;  %v287_v18 = vld [vmem:[%s4973_s0 + $0x888] sm:$0xff]  ;;  %v465_v40 = vld [vmem:[%s4972_s1 + $0x518] sm:$0xff] }
  0x5a   :  { %981 = vmatprep.mubr.f32.mxu0 %v127_v19  ;;  %2778 = vmatpush3.bf16.msra.mxu1 %v2777_v20  ;;  %v289_v19 = vld [vmem:[%s4973_s0 + $0x898] sm:$0xff]  ;;  %v286_v20 = vld [vmem:[%s4973_s0 + $0x880] sm:$0xff]  ;;  %v483_v45 = vld [vmem:[%s4972_s1 + $0x5a8] sm:$0xff] }
  0x5b   :  { %2810 = vmatpush3.bf16.msra.mxu0 %v2809_v21  ;;  %2780 = vmatprep.subr.bf16.mxu1 %v2779_v22  ;;  %v288_v21 = vld [vmem:[%s4973_s0 + $0x890] sm:$0xff]  ;;  %v21_v22 = vld [vmem:[%s4973_s0 + $0x38] sm:$0xff]  ;;  %v482_v44 = vld [vmem:[%s4972_s1 + $0x5a0] sm:$0xff] }
  0x5c   :  { %837 = vmatmul.mubr.f32.gmra.mrb[28].mxu1 %v124_v30  ;;  %2812 = vmatprep.subr.bf16.mxu0 %v2811_v26  ;;  %v494_v26 = vld [vmem:[%s4972_s1 + $0x600] sm:$0xff]  ;;  %v20_v30 = vld [vmem:[%s4973_s0 + $0x30] sm:$0xff]  ;;  %v497_v43 = vld [vmem:[%s4972_s1 + $0x618] sm:$0xff] }
  0x5d   :  { %982 = vmatmul.mubr.f32.gmra.mrb[28].mxu0 %v126_v33  ;;  %841 = vmatprep.mubr.f32.mxu1 %v143_v34  ;;  %v513_v33 = vld [vmem:[%s4972_s1 + $0x698] sm:$0xff]  ;;  %v22_v34 = vld [vmem:[%s4973_s0 + $0x40] sm:$0xff]  ;;  %v515_v48 = vld [vmem:[%s4972_s1 + $0x6a8] sm:$0xff] }
  0x5e   :  { %986 = vmatprep.mubr.f32.mxu0 %v145_v35  ;;  %2782 = vmatpush3.bf16.msra.mxu1 %v2781_v36  ;;  %v39_v35 = vld [vmem:[%s4973_s0 + $0xc8] sm:$0xff]  ;;  %v2853_v36 = vpack.c.bf16 %v495_v27, %v494_v26  ;;  %v514_v47 = vld [vmem:[%s4972_s1 + $0x6a0] sm:$0xff] }
  0x5f   :  { %2814 = vmatpush3.bf16.msra.mxu0 %v2813_v37  ;;  %2784 = vmatprep.subr.bf16.mxu1 %v2783_v38  ;;  %v41_v37 = vld [vmem:[%s4973_s0 + $0xd8] sm:$0xff]  ;;  %v2823_v38 = vpack.c.bf16 %v481_v29, %v480_v28  ;;  %v470_v23 = vld [vmem:[%s4972_s1 + $0x540] sm:$0xff]  ;;  %v471_v24 = vld [vmem:[%s4972_s1 + $0x548] sm:$0xff] }
  0x60   :  { %842 = vmatmul.mubr.f32.gmra.mrb[30].mxu1 %v142_v46  ;;  %2816 = vmatprep.subr.bf16.mxu0 %v2815_v42  ;;  %v2855_v42 = vpack.c.bf16 %v513_v33, %v512_v32  ;;  %v38_v46 = vld [vmem:[%s4973_s0 + $0xc0] sm:$0xff]  ;;  %v503_v27 = vld [vmem:[%s4972_s1 + $0x648] sm:$0xff]  ;;  %v488_v28 = vld [vmem:[%s4972_s1 + $0x5d0] sm:$0xff] }
  0x61   :  { %987 = vmatmul.mubr.f32.gmra.mrb[30].mxu0 %v144_v49  ;;  %846 = vmatprep.mubr.f32.mxu1 %v161_v50  ;;  %v40_v49 = vld [vmem:[%s4973_s0 + $0xd0] sm:$0xff]  ;;  %v57_v50 = vld [vmem:[%s4973_s0 + $0x158] sm:$0xff]  ;;  %v94_v33 = vld [vmem:[%s4973_s0 + $0x280] sm:$0xff] }
  0x62   :  { %991 = vmatprep.mubr.f32.mxu0 %v163_v52  ;;  %2786 = vmatpush3.bf16.msra.mxu1 %v2785_v51  ;;  %v59_v51 = vld [vmem:[%s4973_s0 + $0x168] sm:$0xff]  ;;  %v2825_v52 = vpack.c.bf16 %v465_v40, %v464_v39  ;;  %v489_v29 = vld [vmem:[%s4972_s1 + $0x5d8] sm:$0xff]  ;;  %v472_v39 = vld [vmem:[%s4972_s1 + $0x550] sm:$0xff] }
  0x63   :  { %2818 = vmatpush3.bf16.msra.mxu0 %v2817_v53  ;;  %2820 = vmatprep.subr.bf16.mxu1 %v2819_v54  ;;  %v2857_v53 = vpack.c.bf16 %v497_v43, %v496_v41  ;;  %v2827_v54 = vpack.c.bf16 %v483_v45, %v482_v44  ;;  %v521_v32 = vld [vmem:[%s4972_s1 + $0x6d8] sm:$0xff]  ;;  %v504_v41 = vld [vmem:[%s4972_s1 + $0x650] sm:$0xff]  ;;  %v490_v44 = vld [vmem:[%s4972_s1 + $0x5e0] sm:$0xff] }
  0x64   :  { %847 = vmatmul.mubr.f32.gmra.mrb[32].mxu1 %v160_v56  ;;  %2852 = vmatprep.subr.bf16.mxu0 %v2851_v55  ;;  %v466_v55 = vld [vmem:[%s4972_s1 + $0x520] sm:$0xff]  ;;  %v467_v56 = vld [vmem:[%s4972_s1 + $0x528] sm:$0xff]  ;;  %v473_v40 = vld [vmem:[%s4972_s1 + $0x558] sm:$0xff] }
  0x65   :  { %992 = vmatmul.mubr.f32.gmra.mrb[32].mxu0 %v162_v57  ;;  %851 = vmatprep.mubr.f32.mxu1 %v179_v58  ;;  %v498_v57 = vld [vmem:[%s4972_s1 + $0x620] sm:$0xff]  ;;  %v2859_v58 = vpack.c.bf16 %v515_v48, %v514_v47  ;;  %v505_v43 = vld [vmem:[%s4972_s1 + $0x658] sm:$0xff]  ;;  %v491_v45 = vld [vmem:[%s4972_s1 + $0x5e8] sm:$0xff] }
  0x66   :  { %996 = vmatprep.mubr.f32.mxu0 %v181_v59  ;;  %v499_v59 = vld [vmem:[%s4972_s1 + $0x628] sm:$0xff]  ;;  %v522_v47 = vld [vmem:[%s4972_s1 + $0x6e0] sm:$0xff] }
  0x67   :  { %v523_v48 = vld [vmem:[%s4972_s1 + $0x6e8] sm:$0xff] }
  0x68   :  { %852 = vmatmul.mubr.f32.gmra.mrb[34].mxu1 %v178_v60  ;;  %v484_v60 = vld [vmem:[%s4972_s1 + $0x5b0] sm:$0xff] }
  0x69   :  { %997 = vmatmul.mubr.f32.gmra.mrb[34].mxu0 %v180_v61  ;;  %856 = vmatprep.mubr.f32.mxu1 %v197_v62  ;;  %v485_v61 = vld [vmem:[%s4972_s1 + $0x5b8] sm:$0xff]  ;;  %v56_v62 = vld [vmem:[%s4973_s0 + $0x150] sm:$0xff] }
  0x6a   :  { %1001 = vmatprep.mubr.f32.mxu0 %v199_v63  ;;  %v516_v63 = vld [vmem:[%s4972_s1 + $0x6b0] sm:$0xff] }
  0x6c   :  { %857 = vmatmul.mubr.f32.gmra.mrb[36].mxu1 %v196_v0  ;;  %v517_v0 = vld [vmem:[%s4972_s1 + $0x6b8] sm:$0xff] }
  0x6d   :  { %1002 = vmatmul.mubr.f32.gmra.mrb[36].mxu0 %v198_v1  ;;  %861 = vmatprep.mubr.f32.mxu1 %v215_v2  ;;  %v58_v1 = vld [vmem:[%s4973_s0 + $0x160] sm:$0xff]  ;;  %v75_v2 = vld [vmem:[%s4973_s0 + $0x1e8] sm:$0xff] }
  0x6e   :  { %1006 = vmatprep.mubr.f32.mxu0 %v217_v3  ;;  %v77_v3 = vld [vmem:[%s4973_s0 + $0x1f8] sm:$0xff] }
  0x70   :  { %862 = vmatmul.mubr.f32.gmra.mrb[38].mxu1 %v214_v4  ;;  %v2829_v4 = vpack.c.bf16 %v467_v56, %v466_v55  ;;  %v474_v55 = vld [vmem:[%s4972_s1 + $0x560] sm:$0xff]  ;;  %v475_v56 = vld [vmem:[%s4972_s1 + $0x568] sm:$0xff] }
  0x71   :  { %1007 = vmatmul.mubr.f32.gmra.mrb[38].mxu0 %v216_v5  ;;  %866 = vmatprep.mubr.f32.mxu1 %v233_v6  ;;  %v2861_v5 = vpack.c.bf16 %v499_v59, %v498_v57  ;;  %v2831_v6 = vpack.c.bf16 %v485_v61, %v484_v60  ;;  %v506_v57 = vld [vmem:[%s4972_s1 + $0x660] sm:$0xff]  ;;  %v507_v59 = vld [vmem:[%s4972_s1 + $0x668] sm:$0xff]  ;;  %v492_v60 = vld [vmem:[%s4972_s1 + $0x5f0] sm:$0xff] }
  0x72   :  { %1011 = vmatprep.mubr.f32.mxu0 %v235_v7  ;;  %v468_v7 = vld [vmem:[%s4972_s1 + $0x530] sm:$0xff]  ;;  %v493_v61 = vld [vmem:[%s4972_s1 + $0x5f8] sm:$0xff] }
  0x74   :  { %867 = vmatmul.mubr.f32.gmra.mrb[40].mxu1 %v232_v8  ;;  %v469_v8 = vld [vmem:[%s4972_s1 + $0x538] sm:$0xff] }
  0x75   :  { %1012 = vmatmul.mubr.f32.gmra.mrb[40].mxu0 %v234_v9  ;;  %871 = vmatprep.mubr.f32.mxu1 %v251_v10  ;;  %v500_v9 = vld [vmem:[%s4972_s1 + $0x630] sm:$0xff]  ;;  %v2863_v10 = vpack.c.bf16 %v517_v0, %v516_v63  ;;  %v525_v0 = vld [vmem:[%s4972_s1 + $0x6f8] sm:$0xff] }
  0x76   :  { %1016 = vmatprep.mubr.f32.mxu0 %v253_v11  ;;  %v501_v11 = vld [vmem:[%s4972_s1 + $0x638] sm:$0xff]  ;;  %v524_v63 = vld [vmem:[%s4972_s1 + $0x6f0] sm:$0xff] }
  0x78   :  { %872 = vmatmul.mubr.f32.gmra.mrb[42].mxu1 %v250_v12  ;;  %v486_v12 = vld [vmem:[%s4972_s1 + $0x5c0] sm:$0xff] }
  0x79   :  { %1017 = vmatmul.mubr.f32.gmra.mrb[42].mxu0 %v252_v13  ;;  %876 = vmatprep.mubr.f32.mxu1 %v269_v14  ;;  %v487_v13 = vld [vmem:[%s4972_s1 + $0x5c8] sm:$0xff]  ;;  %v74_v14 = vld [vmem:[%s4973_s0 + $0x1e0] sm:$0xff] }
  0x7a   :  { %1021 = vmatprep.mubr.f32.mxu0 %v271_v15  ;;  %v518_v15 = vld [vmem:[%s4972_s1 + $0x6c0] sm:$0xff] }
  0x7c   :  { %877 = vmatmul.mubr.f32.gmra.mrb[44].mxu1 %v268_v16  ;;  %v519_v16 = vld [vmem:[%s4972_s1 + $0x6c8] sm:$0xff] }
  0x7d   :  { %1022 = vmatmul.mubr.f32.gmra.mrb[44].mxu0 %v270_v17  ;;  %881 = vmatprep.mubr.f32.mxu1 %v287_v18  ;;  %v76_v17 = vld [vmem:[%s4973_s0 + $0x1f0] sm:$0xff]  ;;  %v93_v18 = vld [vmem:[%s4973_s0 + $0x278] sm:$0xff]  ;;  %v2867_v26 = vpack.c.bf16 %v519_v16, %v518_v15  ;;  %v574_v15 = vld [vmem:[%s4972_s1 + $0x880] sm:$0xff] }
  0x7e   :  { %1026 = vmatprep.mubr.f32.mxu0 %v289_v19  ;;  %v95_v19 = vld [vmem:[%s4973_s0 + $0x288] sm:$0xff] }
  0x7f   :  { %v575_v16 = vld [vmem:[%s4972_s1 + $0x888] sm:$0xff] }
  0x80   :  { %882 = vmatmul.mubr.f32.gmra.mrb[46].mxu1 %v286_v20  ;;  %v2833_v20 = vpack.c.bf16 %v469_v8, %v468_v7  ;;  %v476_v7 = vld [vmem:[%s4972_s1 + $0x570] sm:$0xff]  ;;  %v477_v8 = vld [vmem:[%s4972_s1 + $0x578] sm:$0xff] }
  0x81   :  { %1027 = vmatmul.mubr.f32.gmra.mrb[46].mxu0 %v288_v21  ;;  %1096 = vmatprep.mubr.f32.mxu1 %v21_v22  ;;  %v2865_v21 = vpack.c.bf16 %v501_v11, %v500_v9  ;;  %v2835_v22 = vpack.c.bf16 %v487_v13, %v486_v12  ;;  %v508_v9 = vld [vmem:[%s4972_s1 + $0x670] sm:$0xff]  ;;  %v509_v11 = vld [vmem:[%s4972_s1 + $0x678] sm:$0xff]  ;;  %v542_v12 = vld [vmem:[%s4972_s1 + $0x780] sm:$0xff] }
  0x82   :  { %1241 = vmatprep.mubr.f32.mxu0 %v23_v25  ;;  %v502_v25 = vld [vmem:[%s4972_s1 + $0x640] sm:$0xff]  ;;  %v543_v13 = vld [vmem:[%s4972_s1 + $0x788] sm:$0xff] }
  0x84   :  { %1097 = vmatmul.mubr.f32.vlgmr.msra.gmra.mrb[48].mxu1 %v20_v30  ;;  %v92_v30 = vld [vmem:[%s4973_s0 + $0x270] sm:$0xff] }
  0x85   :  { %2822 = vmatpush3.bf16.msra.mxu1 %v2821_v31  ;;  %1242 = vmatmul.mubr.f32.vlgmr.msra.gmra.mrb[48].mxu0 %v22_v34  ;;  %v520_v31 = vld [vmem:[%s4972_s1 + $0x6d0] sm:$0xff]  ;;  %v111_v34 = vld [vmem:[%s4973_s0 + $0x308] sm:$0xff] }
  0x86   :  { %1101 = vmatprep.mubr.f32.mxu1 %v39_v35  ;;  %2854 = vmatpush3.bf16.msra.mxu0 %v2853_v36  ;;  %v113_v35 = vld [vmem:[%s4973_s0 + $0x318] sm:$0xff]  ;;  %v2837_v36 = vpack.c.bf16 %v471_v24, %v470_v23  ;;  %v2915_v23 = vpack.c.bf16 %v575_v16, %v574_v15  ;;  %v164_v24 = vld [vmem:[%s4973_s0 + $0x4b0] sm:$0xff]  ;;  %v578_v15 = vld [vmem:[%s4972_s1 + $0x8a0] sm:$0xff] }
  0x87   :  { %1246 = vmatprep.mubr.f32.mxu0 %v41_v37  ;;  %2824 = vmatprep.subr.bf16.mxu1 %v2823_v38  ;;  %v2869_v37 = vpack.c.bf16 %v503_v27, %v502_v25  ;;  %v2839_v38 = vpack.c.bf16 %v489_v29, %v488_v28  ;;  %v166_v25 = vld [vmem:[%s4973_s0 + $0x4c0] sm:$0xff]  ;;  %v185_v27 = vld [vmem:[%s4973_s0 + $0x558] sm:$0xff]  ;;  %v184_v29 = vld [vmem:[%s4973_s0 + $0x550] sm:$0xff] }
  0x88   :  { %1102 = vmatmul.mubr.f32.gmra.mrb[50].mxu1 %v38_v46  ;;  %2856 = vmatprep.subr.bf16.mxu0 %v2855_v42  ;;  %v2871_v42 = vpack.c.bf16 %v521_v32, %v520_v31  ;;  %v110_v46 = vld [vmem:[%s4973_s0 + $0x300] sm:$0xff]  ;;  %v203_v31 = vld [vmem:[%s4973_s0 + $0x5e8] sm:$0xff]  ;;  %v200_v32 = vld [vmem:[%s4973_s0 + $0x5d0] sm:$0xff] }
  0x89   :  { %1247 = vmatmul.mubr.f32.gmra.mrb[50].mxu0 %v40_v49  ;;  %1106 = vmatprep.mubr.f32.mxu1 %v57_v50  ;;  %v112_v49 = vld [vmem:[%s4973_s0 + $0x310] sm:$0xff]  ;;  %v129_v50 = vld [vmem:[%s4973_s0 + $0x398] sm:$0xff]  ;;  %v182_v28 = vld [vmem:[%s4973_s0 + $0x540] sm:$0xff] }
  0x8a   :  { %1251 = vmatprep.mubr.f32.mxu0 %v59_v51  ;;  %2826 = vmatpush3.bf16.msra.mxu1 %v2825_v52  ;;  %v131_v51 = vld [vmem:[%s4973_s0 + $0x3a8] sm:$0xff]  ;;  %v2841_v52 = vpack.c.bf16 %v473_v40, %v472_v39  ;;  %v236_v40 = vld [vmem:[%s4973_s0 + $0x6f0] sm:$0xff] }
  0x8b   :  { %2858 = vmatpush3.bf16.msra.mxu0 %v2857_v53  ;;  %2828 = vmatprep.subr.bf16.mxu1 %v2827_v54  ;;  %v2873_v53 = vpack.c.bf16 %v505_v43, %v504_v41  ;;  %v2843_v54 = vpack.c.bf16 %v491_v45, %v490_v44  ;;  %v239_v39 = vld [vmem:[%s4973_s0 + $0x708] sm:$0xff]  ;;  %v238_v41 = vld [vmem:[%s4973_s0 + $0x700] sm:$0xff]  ;;  %v257_v43 = vld [vmem:[%s4973_s0 + $0x798] sm:$0xff] }
  0x8c   :  { %1107 = vmatmul.mubr.f32.gmra.mrb[52].mxu1 %v56_v62  ;;  %2860 = vmatprep.subr.bf16.mxu0 %v2859_v58  ;;  %v2875_v58 = vpack.c.bf16 %v523_v48, %v522_v47  ;;  %v128_v62 = vld [vmem:[%s4973_s0 + $0x390] sm:$0xff]  ;;  %v254_v44 = vld [vmem:[%s4973_s0 + $0x780] sm:$0xff]  ;;  %v275_v47 = vld [vmem:[%s4973_s0 + $0x828] sm:$0xff] }
  0x8d   :  { %1252 = vmatmul.mubr.f32.gmra.mrb[52].mxu0 %v58_v1  ;;  %1111 = vmatprep.mubr.f32.mxu1 %v75_v2  ;;  %v130_v1 = vld [vmem:[%s4973_s0 + $0x3a0] sm:$0xff]  ;;  %v147_v2 = vld [vmem:[%s4973_s0 + $0x428] sm:$0xff]  ;;  %v256_v45 = vld [vmem:[%s4973_s0 + $0x790] sm:$0xff] }
  0x8e   :  { %1256 = vmatprep.mubr.f32.mxu0 %v77_v3  ;;  %2830 = vmatpush3.bf16.msra.mxu1 %v2829_v4  ;;  %v149_v3 = vld [vmem:[%s4973_s0 + $0x438] sm:$0xff]  ;;  %v2845_v4 = vpack.c.bf16 %v475_v56, %v474_v55  ;;  %v272_v48 = vld [vmem:[%s4973_s0 + $0x810] sm:$0xff]  ;;  %v526_v55 = vld [vmem:[%s4972_s1 + $0x700] sm:$0xff] }
  0x8f   :  { %2862 = vmatpush3.bf16.msra.mxu0 %v2861_v5  ;;  %2832 = vmatprep.subr.bf16.mxu1 %v2831_v6  ;;  %v2877_v5 = vpack.c.bf16 %v507_v59, %v506_v57  ;;  %v2847_v6 = vpack.c.bf16 %v493_v61, %v492_v60  ;;  %v527_v56 = vld [vmem:[%s4972_s1 + $0x708] sm:$0xff]  ;;  %v544_v60 = vld [vmem:[%s4972_s1 + $0x790] sm:$0xff]  ;;  %v545_v61 = vld [vmem:[%s4972_s1 + $0x798] sm:$0xff] }
  0x90   :  { %1112 = vmatmul.mubr.f32.gmra.mrb[54].mxu1 %v74_v14  ;;  %2864 = vmatprep.subr.bf16.mxu0 %v2863_v10  ;;  %v2879_v10 = vpack.c.bf16 %v525_v0, %v524_v63  ;;  %v146_v14 = vld [vmem:[%s4973_s0 + $0x420] sm:$0xff]  ;;  %v27_v57 = vld [vmem:[%s4973_s0 + $0x68] sm:$0xff]  ;;  %v2885_v63 = vpack.c.bf16 %v527_v56, %v526_v55  ;;  %v576_v0 = vld [vmem:[%s4972_s1 + $0x890] sm:$0xff] }
  0x91   :  { %1257 = vmatmul.mubr.f32.gmra.mrb[54].mxu0 %v76_v17  ;;  %1116 = vmatprep.mubr.f32.mxu1 %v93_v18  ;;  %v148_v17 = vld [vmem:[%s4973_s0 + $0x430] sm:$0xff]  ;;  %v165_v18 = vld [vmem:[%s4973_s0 + $0x4b8] sm:$0xff]  ;;  %v559_v59 = vld [vmem:[%s4972_s1 + $0x808] sm:$0xff] }
  0x92   :  { %1261 = vmatprep.mubr.f32.mxu0 %v95_v19  ;;  %2834 = vmatpush3.bf16.msra.mxu1 %v2833_v20  ;;  %v2849_v19 = vpack.c.bf16 %v477_v8, %v476_v7  ;;  %v167_v20 = vld [vmem:[%s4973_s0 + $0x4c8] sm:$0xff]  ;;  %v528_v7 = vld [vmem:[%s4972_s1 + $0x710] sm:$0xff]  ;;  %v529_v8 = vld [vmem:[%s4972_s1 + $0x718] sm:$0xff] }
  0x93   :  { %2866 = vmatpush3.bf16.msra.mxu0 %v2865_v21  ;;  %2836 = vmatprep.subr.bf16.mxu1 %v2835_v22  ;;  %v2881_v21 = vpack.c.bf16 %v509_v11, %v508_v9  ;;  %v2883_v22 = vpack.c.bf16 %v543_v13, %v542_v12  ;;  %v560_v9 = vld [vmem:[%s4972_s1 + $0x810] sm:$0xff]  ;;  %v561_v11 = vld [vmem:[%s4972_s1 + $0x818] sm:$0xff]  ;;  %v546_v12 = vld [vmem:[%s4972_s1 + $0x7a0] sm:$0xff] }
  0x94   :  { %1117 = vmatmul.mubr.f32.gmra.mrb[56].mxu1 %v92_v30  ;;  %2868 = vmatprep.subr.bf16.mxu0 %v2867_v26  ;;  %v183_v26 = vld [vmem:[%s4973_s0 + $0x548] sm:$0xff]  ;;  %v201_v30 = vld [vmem:[%s4973_s0 + $0x5d8] sm:$0xff]  ;;  %v534_v55 = vld [vmem:[%s4972_s1 + $0x740] sm:$0xff] }
  0x95   :  { %1262 = vmatmul.mubr.f32.gmra.mrb[56].mxu0 %v94_v33  ;;  %1121 = vmatprep.mubr.f32.mxu1 %v111_v34  ;;  %v202_v33 = vld [vmem:[%s4973_s0 + $0x5e0] sm:$0xff]  ;;  %v219_v34 = vld [vmem:[%s4973_s0 + $0x668] sm:$0xff] }
  0x96   :  { %1266 = vmatprep.mubr.f32.mxu0 %v113_v35  ;;  %2838 = vmatpush3.bf16.msra.mxu1 %v2837_v36  ;;  %v221_v35 = vld [vmem:[%s4973_s0 + $0x678] sm:$0xff]  ;;  %v218_v36 = vld [vmem:[%s4973_s0 + $0x660] sm:$0xff]  ;;  %v547_v13 = vld [vmem:[%s4972_s1 + $0x7a8] sm:$0xff] }
  0x97   :  { %2870 = vmatpush3.bf16.msra.mxu0 %v2869_v37  ;;  %2840 = vmatprep.subr.bf16.mxu1 %v2839_v38  ;;  %v220_v37 = vld [vmem:[%s4973_s0 + $0x670] sm:$0xff]  ;;  %v237_v38 = vld [vmem:[%s4973_s0 + $0x6f8] sm:$0xff]  ;;  %v579_v16 = vld [vmem:[%s4972_s1 + $0x8a8] sm:$0xff] }
  0x98   :  { %1122 = vmatmul.mubr.f32.gmra.mrb[58].mxu1 %v110_v46  ;;  %2872 = vmatprep.subr.bf16.mxu0 %v2871_v42  ;;  %v255_v42 = vld [vmem:[%s4973_s0 + $0x788] sm:$0xff]  ;;  %v273_v46 = vld [vmem:[%s4973_s0 + $0x818] sm:$0xff] }
  0x99   :  { %1267 = vmatmul.mubr.f32.gmra.mrb[58].mxu0 %v112_v49  ;;  %1126 = vmatprep.mubr.f32.mxu1 %v129_v50  ;;  %v274_v49 = vld [vmem:[%s4973_s0 + $0x820] sm:$0xff]  ;;  %v291_v50 = vld [vmem:[%s4973_s0 + $0x8a8] sm:$0xff] }
  0x9a   :  { %1271 = vmatprep.mubr.f32.mxu0 %v131_v51  ;;  %2842 = vmatpush3.bf16.msra.mxu1 %v2841_v52  ;;  %v293_v51 = vld [vmem:[%s4973_s0 + $0x8b8] sm:$0xff]  ;;  %v290_v52 = vld [vmem:[%s4973_s0 + $0x8a0] sm:$0xff]  ;;  %v535_v56 = vld [vmem:[%s4972_s1 + $0x748] sm:$0xff] }
  0x9b   :  { %2874 = vmatpush3.bf16.msra.mxu0 %v2873_v53  ;;  %2844 = vmatprep.subr.bf16.mxu1 %v2843_v54  ;;  %v292_v53 = vld [vmem:[%s4973_s0 + $0x8b0] sm:$0xff]  ;;  %v25_v54 = vld [vmem:[%s4973_s0 + $0x58] sm:$0xff] }
  0x9c   :  { %1127 = vmatmul.mubr.f32.gmra.mrb[60].mxu1 %v128_v62  ;;  %2876 = vmatprep.subr.bf16.mxu0 %v2875_v58  ;;  %v558_v58 = vld [vmem:[%s4972_s1 + $0x800] sm:$0xff]  ;;  %v24_v62 = vld [vmem:[%s4973_s0 + $0x50] sm:$0xff] }
  0x9d   :  { %1272 = vmatmul.mubr.f32.gmra.mrb[60].mxu0 %v130_v1  ;;  %1131 = vmatprep.mubr.f32.mxu1 %v147_v2  ;;  %v577_v1 = vld [vmem:[%s4972_s1 + $0x898] sm:$0xff]  ;;  %v26_v2 = vld [vmem:[%s4973_s0 + $0x60] sm:$0xff] }
  0x9e   :  { %1276 = vmatprep.mubr.f32.mxu0 %v149_v3  ;;  %2846 = vmatpush3.bf16.msra.mxu1 %v2845_v4  ;;  %v43_v3 = vld [vmem:[%s4973_s0 + $0xe8] sm:$0xff]  ;;  %v2917_v4 = vpack.c.bf16 %v559_v59, %v558_v58 }
  0x9f   :  { %2878 = vmatpush3.bf16.msra.mxu0 %v2877_v5  ;;  %2848 = vmatprep.subr.bf16.mxu1 %v2847_v6  ;;  %v45_v5 = vld [vmem:[%s4973_s0 + $0xf8] sm:$0xff]  ;;  %v2887_v6 = vpack.c.bf16 %v545_v61, %v544_v60  ;;  %v567_v59 = vld [vmem:[%s4972_s1 + $0x848] sm:$0xff]  ;;  %v552_v60 = vld [vmem:[%s4972_s1 + $0x7d0] sm:$0xff] }
  0xa0   :  { %1132 = vmatmul.mubr.f32.gmra.mrb[62].mxu1 %v146_v14  ;;  %2880 = vmatprep.subr.bf16.mxu0 %v2879_v10  ;;  %v2919_v10 = vpack.c.bf16 %v577_v1, %v576_v0  ;;  %v42_v14 = vld [vmem:[%s4973_s0 + $0xe0] sm:$0xff]  ;;  %v553_v61 = vld [vmem:[%s4972_s1 + $0x7d8] sm:$0xff] }
  0xa1   :  { %1277 = vmatmul.mubr.f32.gmra.mrb[62].mxu0 %v148_v17  ;;  %1136 = vmatprep.mubr.f32.mxu1 %v165_v18  ;;  %v44_v17 = vld [vmem:[%s4973_s0 + $0xf0] sm:$0xff]  ;;  %v61_v18 = vld [vmem:[%s4973_s0 + $0x178] sm:$0xff]  ;;  %v98_v1 = vld [vmem:[%s4973_s0 + $0x2a0] sm:$0xff] }
  0xa2   :  { %1281 = vmatprep.mubr.f32.mxu0 %v167_v20  ;;  %2850 = vmatpush3.bf16.msra.mxu1 %v2849_v19  ;;  %v63_v19 = vld [vmem:[%s4973_s0 + $0x188] sm:$0xff]  ;;  %v2889_v20 = vpack.c.bf16 %v529_v8, %v528_v7  ;;  %v585_v0 = vld [vmem:[%s4972_s1 + $0x8d8] sm:$0xff]  ;;  %v536_v7 = vld [vmem:[%s4972_s1 + $0x750] sm:$0xff] }
  0xa3   :  { %2882 = vmatpush3.bf16.msra.mxu0 %v2881_v21  ;;  %2884 = vmatprep.subr.bf16.mxu1 %v2883_v22  ;;  %v2921_v21 = vpack.c.bf16 %v561_v11, %v560_v9  ;;  %v2891_v22 = vpack.c.bf16 %v547_v13, %v546_v12  ;;  %v537_v8 = vld [vmem:[%s4972_s1 + $0x758] sm:$0xff]  ;;  %v568_v9 = vld [vmem:[%s4972_s1 + $0x850] sm:$0xff]  ;;  %v554_v12 = vld [vmem:[%s4972_s1 + $0x7e0] sm:$0xff] }
  0xa4   :  { %1137 = vmatmul.mubr.f32.gmra.mrb[64].mxu1 %v164_v24  ;;  %2916 = vmatprep.subr.bf16.mxu0 %v2915_v23  ;;  %v530_v23 = vld [vmem:[%s4972_s1 + $0x720] sm:$0xff]  ;;  %v531_v24 = vld [vmem:[%s4972_s1 + $0x728] sm:$0xff]  ;;  %v569_v11 = vld [vmem:[%s4972_s1 + $0x858] sm:$0xff] }
  0xa5   :  { %1282 = vmatmul.mubr.f32.gmra.mrb[64].mxu0 %v166_v25  ;;  %1141 = vmatprep.mubr.f32.mxu1 %v183_v26  ;;  %v562_v25 = vld [vmem:[%s4972_s1 + $0x820] sm:$0xff]  ;;  %v2923_v26 = vpack.c.bf16 %v579_v16, %v578_v15  ;;  %v555_v13 = vld [vmem:[%s4972_s1 + $0x7e8] sm:$0xff] }
  0xa6   :  { %1286 = vmatprep.mubr.f32.mxu0 %v185_v27  ;;  %v563_v27 = vld [vmem:[%s4972_s1 + $0x828] sm:$0xff]  ;;  %v586_v15 = vld [vmem:[%s4972_s1 + $0x8e0] sm:$0xff] }
  0xa7   :  { %v587_v16 = vld [vmem:[%s4972_s1 + $0x8e8] sm:$0xff] }
  0xa8   :  { %1142 = vmatmul.mubr.f32.gmra.mrb[66].mxu1 %v182_v28  ;;  %v548_v28 = vld [vmem:[%s4972_s1 + $0x7b0] sm:$0xff] }
  0xa9   :  { %1287 = vmatmul.mubr.f32.gmra.mrb[66].mxu0 %v184_v29  ;;  %1146 = vmatprep.mubr.f32.mxu1 %v201_v30  ;;  %v549_v29 = vld [vmem:[%s4972_s1 + $0x7b8] sm:$0xff]  ;;  %v60_v30 = vld [vmem:[%s4973_s0 + $0x170] sm:$0xff] }
  0xaa   :  { %1291 = vmatprep.mubr.f32.mxu0 %v203_v31  ;;  %v580_v31 = vld [vmem:[%s4972_s1 + $0x8b0] sm:$0xff] }
  0xac   :  { %1147 = vmatmul.mubr.f32.gmra.mrb[68].mxu1 %v200_v32  ;;  %v581_v32 = vld [vmem:[%s4972_s1 + $0x8b8] sm:$0xff] }
  0xad   :  { %1292 = vmatmul.mubr.f32.gmra.mrb[68].mxu0 %v202_v33  ;;  %1151 = vmatprep.mubr.f32.mxu1 %v219_v34  ;;  %v62_v33 = vld [vmem:[%s4973_s0 + $0x180] sm:$0xff]  ;;  %v79_v34 = vld [vmem:[%s4973_s0 + $0x208] sm:$0xff] }
  0xae   :  { %1296 = vmatprep.mubr.f32.mxu0 %v221_v35  ;;  %v81_v35 = vld [vmem:[%s4973_s0 + $0x218] sm:$0xff] }
  0xb0   :  { %1152 = vmatmul.mubr.f32.gmra.mrb[70].mxu1 %v218_v36  ;;  %v2893_v36 = vpack.c.bf16 %v531_v24, %v530_v23  ;;  %v538_v23 = vld [vmem:[%s4972_s1 + $0x760] sm:$0xff]  ;;  %v539_v24 = vld [vmem:[%s4972_s1 + $0x768] sm:$0xff] }
  0xb1   :  { %1297 = vmatmul.mubr.f32.gmra.mrb[70].mxu0 %v220_v37  ;;  %1156 = vmatprep.mubr.f32.mxu1 %v237_v38  ;;  %v2925_v37 = vpack.c.bf16 %v563_v27, %v562_v25  ;;  %v2895_v38 = vpack.c.bf16 %v549_v29, %v548_v28  ;;  %v570_v25 = vld [vmem:[%s4972_s1 + $0x860] sm:$0xff]  ;;  %v571_v27 = vld [vmem:[%s4972_s1 + $0x868] sm:$0xff]  ;;  %v556_v28 = vld [vmem:[%s4972_s1 + $0x7f0] sm:$0xff] }
  0xb2   :  { %1301 = vmatprep.mubr.f32.mxu0 %v239_v39  ;;  %v532_v39 = vld [vmem:[%s4972_s1 + $0x730] sm:$0xff]  ;;  %v557_v29 = vld [vmem:[%s4972_s1 + $0x7f8] sm:$0xff] }
  0xb4   :  { %1157 = vmatmul.mubr.f32.gmra.mrb[72].mxu1 %v236_v40  ;;  %v533_v40 = vld [vmem:[%s4972_s1 + $0x738] sm:$0xff] }
  0xb5   :  { %1302 = vmatmul.mubr.f32.gmra.mrb[72].mxu0 %v238_v41  ;;  %1161 = vmatprep.mubr.f32.mxu1 %v255_v42  ;;  %v564_v41 = vld [vmem:[%s4972_s1 + $0x830] sm:$0xff]  ;;  %v2927_v42 = vpack.c.bf16 %v581_v32, %v580_v31  ;;  %v589_v32 = vld [vmem:[%s4972_s1 + $0x8f8] sm:$0xff] }
  0xb6   :  { %1306 = vmatprep.mubr.f32.mxu0 %v257_v43  ;;  %v565_v43 = vld [vmem:[%s4972_s1 + $0x838] sm:$0xff]  ;;  %v588_v31 = vld [vmem:[%s4972_s1 + $0x8f0] sm:$0xff] }
  0xb8   :  { %1162 = vmatmul.mubr.f32.gmra.mrb[74].mxu1 %v254_v44  ;;  %v550_v44 = vld [vmem:[%s4972_s1 + $0x7c0] sm:$0xff] }
  0xb9   :  { %1307 = vmatmul.mubr.f32.gmra.mrb[74].mxu0 %v256_v45  ;;  %1166 = vmatprep.mubr.f32.mxu1 %v273_v46  ;;  %v551_v45 = vld [vmem:[%s4972_s1 + $0x7c8] sm:$0xff]  ;;  %v78_v46 = vld [vmem:[%s4973_s0 + $0x200] sm:$0xff] }
  0xba   :  { %1311 = vmatprep.mubr.f32.mxu0 %v275_v47  ;;  %v582_v47 = vld [vmem:[%s4972_s1 + $0x8c0] sm:$0xff] }
  0xbc   :  { %1167 = vmatmul.mubr.f32.gmra.mrb[76].mxu1 %v272_v48  ;;  %v583_v48 = vld [vmem:[%s4972_s1 + $0x8c8] sm:$0xff] }
  0xbd   :  { %1312 = vmatmul.mubr.f32.gmra.mrb[76].mxu0 %v274_v49  ;;  %1171 = vmatprep.mubr.f32.mxu1 %v291_v50  ;;  %v80_v49 = vld [vmem:[%s4973_s0 + $0x210] sm:$0xff]  ;;  %v97_v50 = vld [vmem:[%s4973_s0 + $0x298] sm:$0xff]  ;;  %v2931_v58 = vpack.c.bf16 %v583_v48, %v582_v47  ;;  %v171_v48 = vld [vmem:[%s4973_s0 + $0x4e8] sm:$0xff] }
  0xbe   :  { %1316 = vmatprep.mubr.f32.mxu0 %v293_v51  ;;  %v99_v51 = vld [vmem:[%s4973_s0 + $0x2a8] sm:$0xff] }
  0xc0   :  { %1172 = vmatmul.mubr.f32.gmra.mrb[78].mxu1 %v290_v52  ;;  %v2897_v52 = vpack.c.bf16 %v533_v40, %v532_v39  ;;  %v540_v39 = vld [vmem:[%s4972_s1 + $0x770] sm:$0xff]  ;;  %v541_v40 = vld [vmem:[%s4972_s1 + $0x778] sm:$0xff] }
  0xc1   :  { %1317 = vmatmul.mubr.f32.gmra.mrb[78].mxu0 %v292_v53  ;;  %1386 = vmatprep.mubr.f32.mxu1 %v25_v54  ;;  %v2929_v53 = vpack.c.bf16 %v565_v43, %v564_v41  ;;  %v2899_v54 = vpack.c.bf16 %v551_v45, %v550_v44  ;;  %v2943_v41 = vpack.c.bf16 %v589_v32, %v588_v31  ;;  %v573_v43 = vld [vmem:[%s4972_s1 + $0x878] sm:$0xff]  ;;  %v150_v44 = vld [vmem:[%s4973_s0 + $0x440] sm:$0xff]  ;;  %v152_v45 = vld [vmem:[%s4973_s0 + $0x450] sm:$0xff] }
  0xc2   :  { %1531 = vmatprep.mubr.f32.mxu0 %v27_v57  ;;  %v566_v57 = vld [vmem:[%s4972_s1 + $0x840] sm:$0xff]  ;;  %v2913_v47 = vpack.c.bf16 %v541_v40, %v540_v39  ;;  %v31_v31 = vld [vmem:[%s4973_s0 + $0x88] sm:$0xff] }
  0xc4   :  { %1387 = vmatmul.mubr.f32.vlgmr.msra.gmra.mrb[80].mxu1 %v24_v62  ;;  %v96_v62 = vld [vmem:[%s4973_s0 + $0x290] sm:$0xff] }
  0xc5   :  { %2886 = vmatpush3.bf16.msra.mxu1 %v2885_v63  ;;  %1532 = vmatmul.mubr.f32.vlgmr.msra.gmra.mrb[80].mxu0 %v26_v2  ;;  %v584_v63 = vld [vmem:[%s4972_s1 + $0x8d0] sm:$0xff]  ;;  %v115_v2 = vld [vmem:[%s4973_s0 + $0x328] sm:$0xff] }
  0xc6   :  { %1391 = vmatprep.mubr.f32.mxu1 %v43_v3  ;;  %2918 = vmatpush3.bf16.msra.mxu0 %v2917_v4  ;;  %v117_v3 = vld [vmem:[%s4973_s0 + $0x338] sm:$0xff]  ;;  %v2901_v4 = vpack.c.bf16 %v535_v56, %v534_v55  ;;  %v188_v55 = vld [vmem:[%s4973_s0 + $0x570] sm:$0xff] }
  0xc7   :  { %1536 = vmatprep.mubr.f32.mxu0 %v45_v5  ;;  %2888 = vmatprep.subr.bf16.mxu1 %v2887_v6  ;;  %v2933_v5 = vpack.c.bf16 %v567_v59, %v566_v57  ;;  %v2903_v6 = vpack.c.bf16 %v553_v61, %v552_v60  ;;  %v205_v56 = vld [vmem:[%s4973_s0 + $0x5f8] sm:$0xff]  ;;  %v207_v57 = vld [vmem:[%s4973_s0 + $0x608] sm:$0xff]  ;;  %v206_v59 = vld [vmem:[%s4973_s0 + $0x600] sm:$0xff] }
  0xc8   :  { %1392 = vmatmul.mubr.f32.gmra.mrb[82].mxu1 %v42_v14  ;;  %2920 = vmatprep.subr.bf16.mxu0 %v2919_v10  ;;  %v2935_v10 = vpack.c.bf16 %v585_v0, %v584_v63  ;;  %v114_v14 = vld [vmem:[%s4973_s0 + $0x320] sm:$0xff]  ;;  %v223_v60 = vld [vmem:[%s4973_s0 + $0x688] sm:$0xff]  ;;  %v225_v61 = vld [vmem:[%s4973_s0 + $0x698] sm:$0xff] }
  0xc9   :  { %1537 = vmatmul.mubr.f32.gmra.mrb[82].mxu0 %v44_v17  ;;  %1396 = vmatprep.mubr.f32.mxu1 %v61_v18  ;;  %v116_v17 = vld [vmem:[%s4973_s0 + $0x330] sm:$0xff]  ;;  %v133_v18 = vld [vmem:[%s4973_s0 + $0x3b8] sm:$0xff] }
  0xca   :  { %1541 = vmatprep.mubr.f32.mxu0 %v63_v19  ;;  %2890 = vmatpush3.bf16.msra.mxu1 %v2889_v20  ;;  %v135_v19 = vld [vmem:[%s4973_s0 + $0x3c8] sm:$0xff]  ;;  %v2905_v20 = vpack.c.bf16 %v537_v8, %v536_v7  ;;  %v224_v63 = vld [vmem:[%s4973_s0 + $0x690] sm:$0xff]  ;;  %v241_v0 = vld [vmem:[%s4973_s0 + $0x718] sm:$0xff] }
  0xcb   :  { %2922 = vmatpush3.bf16.msra.mxu0 %v2921_v21  ;;  %2892 = vmatprep.subr.bf16.mxu1 %v2891_v22  ;;  %v2937_v21 = vpack.c.bf16 %v569_v11, %v568_v9  ;;  %v2907_v22 = vpack.c.bf16 %v555_v13, %v554_v12  ;;  %v260_v7 = vld [vmem:[%s4973_s0 + $0x7b0] sm:$0xff]  ;;  %v277_v8 = vld [vmem:[%s4973_s0 + $0x838] sm:$0xff]  ;;  %v279_v11 = vld [vmem:[%s4973_s0 + $0x848] sm:$0xff] }
  0xcc   :  { %1397 = vmatmul.mubr.f32.gmra.mrb[84].mxu1 %v60_v30  ;;  %2924 = vmatprep.subr.bf16.mxu0 %v2923_v26  ;;  %v2939_v26 = vpack.c.bf16 %v587_v16, %v586_v15  ;;  %v132_v30 = vld [vmem:[%s4973_s0 + $0x3b0] sm:$0xff] }
  0xcd   :  { %1542 = vmatmul.mubr.f32.gmra.mrb[84].mxu0 %v62_v33  ;;  %1401 = vmatprep.mubr.f32.mxu1 %v79_v34  ;;  %v134_v33 = vld [vmem:[%s4973_s0 + $0x3c0] sm:$0xff]  ;;  %v151_v34 = vld [vmem:[%s4973_s0 + $0x448] sm:$0xff]  ;;  %v276_v16 = vld [vmem:[%s4973_s0 + $0x830] sm:$0xff] }
  0xce   :  { %1546 = vmatprep.mubr.f32.mxu0 %v81_v35  ;;  %2894 = vmatpush3.bf16.msra.mxu1 %v2893_v36  ;;  %v2909_v35 = vpack.c.bf16 %v539_v24, %v538_v23  ;;  %v153_v36 = vld [vmem:[%s4973_s0 + $0x458] sm:$0xff] }
  0xcf   :  { %2926 = vmatpush3.bf16.msra.mxu0 %v2925_v37  ;;  %2896 = vmatprep.subr.bf16.mxu1 %v2895_v38  ;;  %v2941_v37 = vpack.c.bf16 %v571_v27, %v570_v25  ;;  %v2911_v38 = vpack.c.bf16 %v557_v29, %v556_v28  ;;  %v296_v27 = vld [vmem:[%s4973_s0 + $0x8d0] sm:$0xff]  ;;  %v29_v28 = vld [vmem:[%s4973_s0 + $0x78] sm:$0xff] }
  0xd0   :  { %1402 = vmatmul.mubr.f32.gmra.mrb[86].mxu1 %v78_v46  ;;  %2928 = vmatprep.subr.bf16.mxu0 %v2927_v42  ;;  %v572_v42 = vld [vmem:[%s4972_s1 + $0x870] sm:$0xff]  ;;  %v169_v46 = vld [vmem:[%s4973_s0 + $0x4d8] sm:$0xff] }
  0xd1   :  { %1547 = vmatmul.mubr.f32.gmra.mrb[86].mxu0 %v80_v49  ;;  %1406 = vmatprep.mubr.f32.mxu1 %v97_v50  ;;  %v2945_v49 = vpack.c.bf16 %v573_v43, %v572_v42  ;;  %v168_v50 = vld [vmem:[%s4973_s0 + $0x4d0] sm:$0xff] }
  0xd2   :  { %1551 = vmatprep.mubr.f32.mxu0 %v99_v51  ;;  %2898 = vmatpush3.bf16.msra.mxu1 %v2897_v52  ;;  %v170_v51 = vld [vmem:[%s4973_s0 + $0x4e0] sm:$0xff]  ;;  %v187_v52 = vld [vmem:[%s4973_s0 + $0x568] sm:$0xff] }
  0xd3   :  { %2930 = vmatpush3.bf16.msra.mxu0 %v2929_v53  ;;  %2900 = vmatprep.subr.bf16.mxu1 %v2899_v54  ;;  %v189_v53 = vld [vmem:[%s4973_s0 + $0x578] sm:$0xff]  ;;  %v186_v54 = vld [vmem:[%s4973_s0 + $0x560] sm:$0xff] }
  0xd4   :  { %1407 = vmatmul.mubr.f32.gmra.mrb[88].mxu1 %v96_v62  ;;  %2932 = vmatprep.subr.bf16.mxu0 %v2931_v58  ;;  %v204_v58 = vld [vmem:[%s4973_s0 + $0x5f0] sm:$0xff]  ;;  %v222_v62 = vld [vmem:[%s4973_s0 + $0x680] sm:$0xff] }
  0xd5   :  { %1552 = vmatmul.mubr.f32.gmra.mrb[88].mxu0 %v98_v1  ;;  %1411 = vmatprep.mubr.f32.mxu1 %v115_v2  ;;  %v243_v1 = vld [vmem:[%s4973_s0 + $0x728] sm:$0xff]  ;;  %v240_v2 = vld [vmem:[%s4973_s0 + $0x710] sm:$0xff] }
  0xd6   :  { %1556 = vmatprep.mubr.f32.mxu0 %v117_v3  ;;  %2902 = vmatpush3.bf16.msra.mxu1 %v2901_v4  ;;  %v242_v3 = vld [vmem:[%s4973_s0 + $0x720] sm:$0xff]  ;;  %v259_v4 = vld [vmem:[%s4973_s0 + $0x7a8] sm:$0xff] }
  0xd7   :  { %2934 = vmatpush3.bf16.msra.mxu0 %v2933_v5  ;;  %2904 = vmatprep.subr.bf16.mxu1 %v2903_v6  ;;  %v261_v5 = vld [vmem:[%s4973_s0 + $0x7b8] sm:$0xff]  ;;  %v258_v6 = vld [vmem:[%s4973_s0 + $0x7a0] sm:$0xff] }
  0xd8   :  { %1412 = vmatmul.mubr.f32.gmra.mrb[90].mxu1 %v114_v14  ;;  %2936 = vmatprep.subr.bf16.mxu0 %v2935_v10 }
  0xd9   :  { %1557 = vmatmul.mubr.f32.gmra.mrb[90].mxu0 %v116_v17  ;;  %1416 = vmatprep.mubr.f32.mxu1 %v133_v18  ;;  %v278_v17 = vld [vmem:[%s4973_s0 + $0x840] sm:$0xff]  ;;  %v295_v18 = vld [vmem:[%s4973_s0 + $0x8c8] sm:$0xff] }
  0xda   :  { %1561 = vmatprep.mubr.f32.mxu0 %v135_v19  ;;  %2906 = vmatpush3.bf16.msra.mxu1 %v2905_v20 }
  0xdb   :  { %2938 = vmatpush3.bf16.msra.mxu0 %v2937_v21  ;;  %2908 = vmatprep.subr.bf16.mxu1 %v2907_v22  ;;  %v297_v21 = vld [vmem:[%s4973_s0 + $0x8d8] sm:$0xff] }
  0xdc   :  { %1417 = vmatmul.mubr.f32.gmra.mrb[92].mxu1 %v132_v30  ;;  %2940 = vmatprep.subr.bf16.mxu0 %v2939_v26  ;;  %v294_v26 = vld [vmem:[%s4973_s0 + $0x8c0] sm:$0xff] }
  0xdd   :  { %1562 = vmatmul.mubr.f32.gmra.mrb[92].mxu0 %v134_v33  ;;  %1421 = vmatprep.mubr.f32.mxu1 %v151_v34 }
  0xde   :  { %1566 = vmatprep.mubr.f32.mxu0 %v153_v36  ;;  %2910 = vmatpush3.bf16.msra.mxu1 %v2909_v35  ;;  %v28_v36 = vld [vmem:[%s4973_s0 + $0x70] sm:$0xff] }
  0xdf   :  { %2942 = vmatpush3.bf16.msra.mxu0 %v2941_v37  ;;  %2912 = vmatprep.subr.bf16.mxu1 %v2911_v38  ;;  %v30_v37 = vld [vmem:[%s4973_s0 + $0x80] sm:$0xff]  ;;  %v47_v38 = vld [vmem:[%s4973_s0 + $0x108] sm:$0xff] }
  0xe0   :  { %1422 = vmatmul.mubr.f32.gmra.mrb[94].mxu1 %v150_v44  ;;  %2944 = vmatprep.subr.bf16.mxu0 %v2943_v41  ;;  %v49_v41 = vld [vmem:[%s4973_s0 + $0x118] sm:$0xff] }
  0xe1   :  { %1567 = vmatmul.mubr.f32.gmra.mrb[94].mxu0 %v152_v45  ;;  %1426 = vmatprep.mubr.f32.mxu1 %v169_v46  ;;  %v46_v46 = vld [vmem:[%s4973_s0 + $0x100] sm:$0xff] }
  0xe2   :  { %1571 = vmatprep.mubr.f32.mxu0 %v171_v48  ;;  %2914 = vmatpush3.bf16.msra.mxu1 %v2913_v47  ;;  %v48_v47 = vld [vmem:[%s4973_s0 + $0x110] sm:$0xff]  ;;  %v65_v48 = vld [vmem:[%s4973_s0 + $0x198] sm:$0xff] }
  0xe3   :  { %2946 = vmatpush3.bf16.msra.mxu0 %v2945_v49 }
  0xe4   :  { %1427 = vmatmul.mubr.f32.gmra.mrb[96].mxu1 %v168_v50 }
  0xe5   :  { %1572 = vmatmul.mubr.f32.gmra.mrb[96].mxu0 %v170_v51  ;;  %1431 = vmatprep.mubr.f32.mxu1 %v187_v52  ;;  %v67_v51 = vld [vmem:[%s4973_s0 + $0x1a8] sm:$0xff] }
  0xe6   :  { %1576 = vmatprep.mubr.f32.mxu0 %v189_v53 }
  0xe8   :  { %1432 = vmatmul.mubr.f32.gmra.mrb[98].mxu1 %v186_v54 }
  0xe9   :  { %1577 = vmatmul.mubr.f32.gmra.mrb[98].mxu0 %v188_v55  ;;  %1436 = vmatprep.mubr.f32.mxu1 %v205_v56  ;;  %v64_v56 = vld [vmem:[%s4973_s0 + $0x190] sm:$0xff] }
  0xea   :  { %1581 = vmatprep.mubr.f32.mxu0 %v207_v57  ;;  %v66_v57 = vld [vmem:[%s4973_s0 + $0x1a0] sm:$0xff] }
  0xec   :  { %1437 = vmatmul.mubr.f32.gmra.mrb[100].mxu1 %v204_v58  ;;  %v83_v58 = vld [vmem:[%s4973_s0 + $0x228] sm:$0xff] }
  0xed   :  { %1582 = vmatmul.mubr.f32.gmra.mrb[100].mxu0 %v206_v59  ;;  %1441 = vmatprep.mubr.f32.mxu1 %v223_v60 }
  0xee   :  { %1586 = vmatprep.mubr.f32.mxu0 %v225_v61  ;;  %v85_v61 = vld [vmem:[%s4973_s0 + $0x238] sm:$0xff] }
  0xf0   :  { %1442 = vmatmul.mubr.f32.gmra.mrb[102].mxu1 %v222_v62 }
  0xf1   :  { %1587 = vmatmul.mubr.f32.gmra.mrb[102].mxu0 %v224_v63  ;;  %1446 = vmatprep.mubr.f32.mxu1 %v241_v0 }
  0xf2   :  { %1591 = vmatprep.mubr.f32.mxu0 %v243_v1 }
  0xf4   :  { %1447 = vmatmul.mubr.f32.gmra.mrb[104].mxu1 %v240_v2  ;;  %v82_v2 = vld [vmem:[%s4973_s0 + $0x220] sm:$0xff] }
  0xf5   :  { %1592 = vmatmul.mubr.f32.gmra.mrb[104].mxu0 %v242_v3  ;;  %1451 = vmatprep.mubr.f32.mxu1 %v259_v4  ;;  %v84_v3 = vld [vmem:[%s4973_s0 + $0x230] sm:$0xff]  ;;  %v101_v4 = vld [vmem:[%s4973_s0 + $0x2b8] sm:$0xff] }
  0xf6   :  { %1596 = vmatprep.mubr.f32.mxu0 %v261_v5 }
  0xf7   :  { %v1995_v9 = vpop.f32.mrb[0].mxu1  ;;  %v1971_v10 = vpop.f32.mrb[0].mxu0 }
  0xf8   :  { %v1996_v12 = vpop.f32.mrb[1].mxu1  ;;  %1452 = vmatmul.mubr.f32.gmra.mrb[106].mxu1 %v258_v6  ;;  %v1972_v13 = vpop.f32.mrb[1].mxu0 }
  0xf9   :  { %v4501_v14 = vadd.f32 %v1996_v12, %v1995_v9  ;;  %v4503_v15 = vadd.f32 %v1972_v13, %v1971_v10  ;;  %1597 = vmatmul.mubr.f32.gmra.mrb[106].mxu0 %v260_v7  ;;  %1456 = vmatprep.mubr.f32.mxu1 %v277_v8  ;;  %v103_v7 = vld [vmem:[%s4973_s0 + $0x2c8] sm:$0xff]  ;;  %v100_v12 = vld [vmem:[%s4973_s0 + $0x2b0] sm:$0xff]  ;;  %v102_v13 = vld [vmem:[%s4973_s0 + $0x2c0] sm:$0xff] }
  0xfa   :  { %1601 = vmatprep.mubr.f32.mxu0 %v279_v11 }
  0xfb   :  { %v1998_v19 = vpop.f32.mrb[2].mxu1  ;;  %v1974_v20 = vpop.f32.mrb[2].mxu0 }
  0xfc   :  { %v1999_v22 = vpop.f32.mrb[3].mxu1  ;;  %1457 = vmatmul.mubr.f32.gmra.mrb[108].mxu1 %v276_v16  ;;  %v1975_v23 = vpop.f32.mrb[3].mxu0  ;;  %v119_v16 = vld [vmem:[%s4973_s0 + $0x348] sm:$0xff] }
  0xfd   :  { %v4517_v24 = vadd.f32 %v1999_v22, %v1998_v19  ;;  %v4519_v25 = vadd.f32 %v1975_v23, %v1974_v20  ;;  %1602 = vmatmul.mubr.f32.gmra.mrb[108].mxu0 %v278_v17  ;;  %1461 = vmatprep.mubr.f32.mxu1 %v295_v18  ;;  %v121_v19 = vld [vmem:[%s4973_s0 + $0x358] sm:$0xff] }
  0xfe   :  { %1606 = vmatprep.mubr.f32.mxu0 %v297_v21 }
  0xff   :  { %v2001_v29 = vpop.f32.mrb[4].mxu1  ;;  %v1977_v30 = vpop.f32.mrb[4].mxu0 }
 0x100   :  { %v2002_v32 = vpop.f32.mrb[5].mxu1  ;;  %1462 = vmatmul.mubr.f32.gmra.mrb[110].mxu1 %v294_v26  ;;  %v1978_v33 = vpop.f32.mrb[5].mxu0  ;;  %v118_v26 = vld [vmem:[%s4973_s0 + $0x340] sm:$0xff] }
 0x101   :  { %v4533_v34 = vadd.f32 %v2002_v32, %v2001_v29  ;;  %v4535_v35 = vadd.f32 %v1978_v33, %v1977_v30  ;;  %1607 = vmatmul.mubr.f32.gmra.mrb[110].mxu0 %v296_v27  ;;  %1676 = vmatprep.mubr.f32.mxu1 %v29_v28  ;;  %v4623_v27 = vld [vmem:[%s4974_s2] ss:$0 sm:$0xff]  ;;  %v120_v28 = vld [vmem:[%s4973_s0 + $0x350] sm:$0xff]  ;;  %v137_v29 = vld [vmem:[%s4973_s0 + $0x3d8] sm:$0xff] }
 0x102   :  { %1821 = vmatprep.mubr.f32.mxu0 %v31_v31  ;;  %v139_v31 = vld [vmem:[%s4973_s0 + $0x3e8] sm:$0xff] }
 0x103   :  { %v2004_v39 = vpop.f32.mrb[6].mxu1  ;;  %v1980_v40 = vpop.f32.mrb[6].mxu0 }
 0x104   :  { %v2005_v42 = vpop.f32.mrb[7].mxu1  ;;  %1677 = vmatmul.mubr.f32.vlgmr.msra.gmra.mrb[112].mxu1 %v28_v36  ;;  %v1981_v43 = vpop.f32.mrb[7].mxu0  ;;  %v664_v36 = vadd.f32 %v4503_v15, %v4623_v27 }
 0x105   :  { %v4549_v44 = vadd.f32 %v2005_v42, %v2004_v39  ;;  %v4551_v45 = vadd.f32 %v1981_v43, %v1980_v40  ;;  %1822 = vmatmul.mubr.f32.vlgmr.msra.gmra.mrb[112].mxu0 %v30_v37  ;;  %1681 = vmatprep.mubr.f32.mxu1 %v47_v38  ;;  %v136_v39 = vld [vmem:[%s4973_s0 + $0x3d0] sm:$0xff]  ;;  %v155_v42 = vld [vmem:[%s4973_s0 + $0x468] sm:$0xff] }
 0x106   :  { %1826 = vmatprep.mubr.f32.mxu0 %v49_v41  ;;  %v138_v41 = vld [vmem:[%s4973_s0 + $0x3e0] sm:$0xff] }
 0x107   :  { %v2007_v49 = vpop.f32.mrb[8].mxu1  ;;  %v1983_v50 = vpop.f32.mrb[8].mxu0 }
 0x108   :  { %v2008_v52 = vpop.f32.mrb[9].mxu1  ;;  %1682 = vmatmul.mubr.f32.gmra.mrb[114].mxu1 %v46_v46  ;;  %v1984_v53 = vpop.f32.mrb[9].mxu0  ;;  %v157_v46 = vld [vmem:[%s4973_s0 + $0x478] sm:$0xff] }
 0x109   :  { %v4565_v54 = vadd.f32 %v2008_v52, %v2007_v49  ;;  %v4567_v55 = vadd.f32 %v1984_v53, %v1983_v50  ;;  %1827 = vmatmul.mubr.f32.gmra.mrb[114].mxu0 %v48_v47  ;;  %1686 = vmatprep.mubr.f32.mxu1 %v65_v48  ;;  %v669_v49 = vadd.f32 %v4519_v25, %v4623_v27  ;;  %v154_v53 = vld [vmem:[%s4973_s0 + $0x460] sm:$0xff]  ;;  %v173_v25 = vld [vmem:[%s4973_s0 + $0x4f8] sm:$0xff] }
 0x10a   :  { %1831 = vmatprep.mubr.f32.mxu0 %v67_v51 }
 0x10b   :  { %v2010_v59 = vpop.f32.mrb[10].mxu1  ;;  %v1986_v60 = vpop.f32.mrb[10].mxu0 }
 0x10c   :  { %v2011_v62 = vpop.f32.mrb[11].mxu1  ;;  %1687 = vmatmul.mubr.f32.gmra.mrb[116].mxu1 %v64_v56  ;;  %v1987_v63 = vpop.f32.mrb[11].mxu0 }
 0x10d   :  { %v4581_v0 = vadd.f32 %v2011_v62, %v2010_v59  ;;  %v4583_v1 = vadd.f32 %v1987_v63, %v1986_v60  ;;  %1832 = vmatmul.mubr.f32.gmra.mrb[116].mxu0 %v66_v57  ;;  %1691 = vmatprep.mubr.f32.mxu1 %v83_v58  ;;  %v156_v57 = vld [vmem:[%s4973_s0 + $0x470] sm:$0xff]  ;;  %v175_v60 = vld [vmem:[%s4973_s0 + $0x508] sm:$0xff]  ;;  %v674_v63 = vadd.f32 %v4535_v35, %v4623_v27 }
 0x10e   :  { %1836 = vmatprep.mubr.f32.mxu0 %v85_v61  ;;  %v191_v35 = vld [vmem:[%s4973_s0 + $0x588] sm:$0xff] }
 0x10f   :  { %v2013_v5 = vpop.f32.mrb[12].mxu1  ;;  %v1989_v6 = vpop.f32.mrb[12].mxu0 }
 0x110   :  { %v2014_v8 = vpop.f32.mrb[13].mxu1  ;;  %1692 = vmatmul.mubr.f32.gmra.mrb[118].mxu1 %v82_v2  ;;  %v1990_v9 = vpop.f32.mrb[13].mxu0 }
 0x111   :  { %v4597_v10 = vadd.f32 %v2014_v8, %v2013_v5  ;;  %v4599_v11 = vadd.f32 %v1990_v9, %v1989_v6  ;;  %1837 = vmatmul.mubr.f32.gmra.mrb[118].mxu0 %v84_v3  ;;  %1696 = vmatprep.mubr.f32.mxu1 %v101_v4  ;;  %v172_v5 = vld [vmem:[%s4973_s0 + $0x4f0] sm:$0xff] }
 0x112   :  { %1841 = vmatprep.mubr.f32.mxu0 %v103_v7  ;;  %v174_v7 = vld [vmem:[%s4973_s0 + $0x500] sm:$0xff] }
 0x113   :  { %v2016_v17 = vpop.f32.mrb[14].mxu1  ;;  %v1992_v18 = vpop.f32.mrb[14].mxu0 }
 0x114   :  { %v2017_v20 = vpop.f32.mrb[15].mxu1  ;;  %1697 = vmatmul.mubr.f32.gmra.mrb[120].mxu1 %v100_v12  ;;  %v1993_v21 = vpop.f32.mrb[15].mxu0  ;;  %v193_v12 = vld [vmem:[%s4973_s0 + $0x598] sm:$0xff] }
 0x115   :  { %v4613_v22 = vadd.f32 %v2017_v20, %v2016_v17  ;;  %v4615_v23 = vadd.f32 %v1993_v21, %v1992_v18  ;;  %1842 = vmatmul.mubr.f32.gmra.mrb[120].mxu0 %v102_v13  ;;  %1701 = vmatprep.mubr.f32.mxu1 %v119_v16  ;;  %v679_v17 = vadd.f32 %v4551_v45, %v4623_v27  ;;  %v190_v21 = vld [vmem:[%s4973_s0 + $0x580] sm:$0xff]  ;;  %v209_v45 = vld [vmem:[%s4973_s0 + $0x618] sm:$0xff] }
 0x116   :  { %1846 = vmatprep.mubr.f32.mxu0 %v121_v19 }
 0x117   :  { %v2051_v30 = vpop.f32.mrb[16].mxu1 }
 0x118   :  { %v2052_v32 = vpop.f32.mrb[17].mxu1  ;;  %1702 = vmatmul.mubr.f32.gmra.mrb[122].mxu1 %v118_v26  ;;  %v2131_v33 = vpop.f32.mrb[16].mxu0 }
 0x119   :  { %v2053_v37 = vadd.f32 %v2052_v32, %v2051_v30  ;;  %v2132_v38 = vpop.f32.mrb[17].mxu0  ;;  %1847 = vmatmul.mubr.f32.gmra.mrb[122].mxu0 %v120_v28  ;;  %1706 = vmatprep.mubr.f32.mxu1 %v137_v29  ;;  %v192_v28 = vld [vmem:[%s4973_s0 + $0x590] sm:$0xff] }
 0x11a   :  { %v2133_v40 = vadd.f32 %v2132_v38, %v2131_v33  ;;  %1851 = vmatprep.mubr.f32.mxu0 %v139_v31  ;;  %v211_v31 = vld [vmem:[%s4973_s0 + $0x628] sm:$0xff] }
 0x11b   :  { %v809_v43 = vadd.f32 %v2053_v37, %v664_v36  ;;  %v2054_v15 = vpop.f32.mrb[18].mxu1  ;;  %v684_v36 = vadd.f32 %v4567_v55, %v4623_v27  ;;  %v227_v55 = vld [vmem:[%s4973_s0 + $0x6a8] sm:$0xff] }
 0x11c   :  { %v2055_v47 = vpop.f32.mrb[19].mxu1  ;;  %1707 = vmatmul.mubr.f32.gmra.mrb[124].mxu1 %v136_v39  ;;  %v2134_v48 = vpop.f32.mrb[18].mxu0 }
 0x11d   :  { %v4650_v50 = vadd.f32 %v2133_v40, %v809_v43  ;;  %v2056_v51 = vadd.f32 %v2055_v47, %v2054_v15  ;;  %v2135_v52 = vpop.f32.mrb[19].mxu0  ;;  %1852 = vmatmul.mubr.f32.gmra.mrb[124].mxu0 %v138_v41  ;;  %1711 = vmatprep.mubr.f32.mxu1 %v155_v42  ;;  %v208_v40 = vld [vmem:[%s4973_s0 + $0x610] sm:$0xff]  ;;  %v210_v42 = vld [vmem:[%s4973_s0 + $0x620] sm:$0xff] }
 0x11e   :  { %v2136_v56 = vadd.f32 %v2135_v52, %v2134_v48  ;;  %1856 = vmatprep.mubr.f32.mxu0 %v157_v46  ;;  %v229_v46 = vld [vmem:[%s4973_s0 + $0x6b8] sm:$0xff] }
 0x11f   :  { %v814_v58 = vadd.f32 %v2056_v51, %v669_v49  ;;  %v2057_v59 = vpop.f32.mrb[20].mxu1  ;;  %v689_v49 = vadd.f32 %v4583_v1, %v4623_v27  ;;  %v245_v1 = vld [vmem:[%s4973_s0 + $0x738] sm:$0xff] }
 0x120   :  { %v2058_v61 = vpop.f32.mrb[21].mxu1  ;;  %1712 = vmatmul.mubr.f32.gmra.mrb[126].mxu1 %v154_v53  ;;  %v2137_v62 = vpop.f32.mrb[20].mxu0 }
 0x121   :  { %v4666_v2 = vadd.f32 %v2136_v56, %v814_v58  ;;  %v2059_v3 = vadd.f32 %v2058_v61, %v2057_v59  ;;  %v2138_v4 = vpop.f32.mrb[21].mxu0  ;;  %1857 = vmatmul.mubr.f32.gmra.mrb[126].mxu0 %v156_v57  ;;  %1716 = vmatprep.mubr.f32.mxu1 %v173_v25  ;;  %v226_v56 = vld [vmem:[%s4973_s0 + $0x6a0] sm:$0xff]  ;;  %v228_v25 = vld [vmem:[%s4973_s0 + $0x6b0] sm:$0xff] }
 0x122   :  { %v2139_v6 = vadd.f32 %v2138_v4, %v2137_v62  ;;  %1861 = vmatprep.mubr.f32.mxu0 %v175_v60  ;;  %v247_v60 = vld [vmem:[%s4973_s0 + $0x748] sm:$0xff] }
 0x123   :  { %v819_v8 = vadd.f32 %v2059_v3, %v674_v63  ;;  %v2060_v9 = vpop.f32.mrb[22].mxu1  ;;  %v694_v63 = vadd.f32 %v4599_v11, %v4623_v27  ;;  %v263_v11 = vld [vmem:[%s4973_s0 + $0x7c8] sm:$0xff] }
 0x124   :  { %v2061_v13 = vpop.f32.mrb[23].mxu1  ;;  %1717 = vmatmul.mubr.f32.gmra.mrb[128].mxu1 %v172_v5  ;;  %v2140_v16 = vpop.f32.mrb[22].mxu0 }
 0x125   :  { %v4682_v18 = vadd.f32 %v2139_v6, %v819_v8  ;;  %v2062_v19 = vadd.f32 %v2061_v13, %v2060_v9  ;;  %v2141_v20 = vpop.f32.mrb[23].mxu0  ;;  %1862 = vmatmul.mubr.f32.gmra.mrb[128].mxu0 %v174_v7  ;;  %1721 = vmatprep.mubr.f32.mxu1 %v191_v35  ;;  %v244_v6 = vld [vmem:[%s4973_s0 + $0x730] sm:$0xff]  ;;  %v246_v35 = vld [vmem:[%s4973_s0 + $0x740] sm:$0xff] }
 0x126   :  { %v2142_v26 = vadd.f32 %v2141_v20, %v2140_v16  ;;  %1866 = vmatprep.mubr.f32.mxu0 %v193_v12  ;;  %v265_v12 = vld [vmem:[%s4973_s0 + $0x7d8] sm:$0xff] }
 0x127   :  { %v824_v29 = vadd.f32 %v2062_v19, %v679_v17  ;;  %v2063_v30 = vpop.f32.mrb[24].mxu1  ;;  %v699_v17 = vadd.f32 %v4615_v23, %v4623_v27  ;;  %v281_v23 = vld [vmem:[%s4973_s0 + $0x858] sm:$0xff] }
 0x128   :  { %v2064_v32 = vpop.f32.mrb[25].mxu1  ;;  %1722 = vmatmul.mubr.f32.gmra.mrb[130].mxu1 %v190_v21  ;;  %v2143_v33 = vpop.f32.mrb[24].mxu0 }
 0x129   :  { %v4698_v37 = vadd.f32 %v2142_v26, %v824_v29  ;;  %v2065_v38 = vadd.f32 %v2064_v32, %v2063_v30  ;;  %v2144_v39 = vpop.f32.mrb[25].mxu0  ;;  %1867 = vmatmul.mubr.f32.gmra.mrb[130].mxu0 %v192_v28  ;;  %1726 = vmatprep.mubr.f32.mxu1 %v209_v45  ;;  %v262_v26 = vld [vmem:[%s4973_s0 + $0x7c0] sm:$0xff]  ;;  %v264_v45 = vld [vmem:[%s4973_s0 + $0x7d0] sm:$0xff] }
 0x12a   :  { %v2145_v41 = vadd.f32 %v2144_v39, %v2143_v33  ;;  %1871 = vmatprep.mubr.f32.mxu0 %v211_v31  ;;  %v283_v31 = vld [vmem:[%s4973_s0 + $0x868] sm:$0xff] }
 0x12b   :  { %v829_v43 = vadd.f32 %v2065_v38, %v684_v36  ;;  %v2066_v15 = vpop.f32.mrb[26].mxu1  ;;  %v704_v36 = vadd.f32 %v4501_v14, %v4623_v27  ;;  %v299_v14 = vld [vmem:[%s4973_s0 + $0x8e8] sm:$0xff] }
 0x12c   :  { %v2067_v47 = vpop.f32.mrb[27].mxu1  ;;  %1727 = vmatmul.mubr.f32.gmra.mrb[132].mxu1 %v208_v40  ;;  %v2146_v48 = vpop.f32.mrb[26].mxu0 }
 0x12d   :  { %v4714_v51 = vadd.f32 %v2145_v41, %v829_v43  ;;  %v2068_v52 = vadd.f32 %v2067_v47, %v2066_v15  ;;  %v2147_v53 = vpop.f32.mrb[27].mxu0  ;;  %1872 = vmatmul.mubr.f32.gmra.mrb[132].mxu0 %v210_v42  ;;  %1731 = vmatprep.mubr.f32.mxu1 %v227_v55  ;;  %v280_v41 = vld [vmem:[%s4973_s0 + $0x850] sm:$0xff]  ;;  %v282_v55 = vld [vmem:[%s4973_s0 + $0x860] sm:$0xff] }
 0x12e   :  { %v2148_v57 = vadd.f32 %v2147_v53, %v2146_v48  ;;  %1876 = vmatprep.mubr.f32.mxu0 %v229_v46  ;;  %v301_v46 = vld [vmem:[%s4973_s0 + $0x8f8] sm:$0xff] }
 0x12f   :  { %v834_v58 = vadd.f32 %v2068_v52, %v689_v49  ;;  %v2069_v59 = vpop.f32.mrb[28].mxu1  ;;  %v709_v49 = vadd.f32 %v4517_v24, %v4623_v27 }
 0x130   :  { %v2070_v61 = vpop.f32.mrb[29].mxu1  ;;  %1732 = vmatmul.mubr.f32.gmra.mrb[134].mxu1 %v226_v56  ;;  %v2149_v62 = vpop.f32.mrb[28].mxu0 }
 0x131   :  { %v4730_v3 = vadd.f32 %v2148_v57, %v834_v58  ;;  %v2071_v4 = vadd.f32 %v2070_v61, %v2069_v59  ;;  %v2150_v5 = vpop.f32.mrb[29].mxu0  ;;  %1877 = vmatmul.mubr.f32.gmra.mrb[134].mxu0 %v228_v25  ;;  %1736 = vmatprep.mubr.f32.mxu1 %v245_v1  ;;  %v298_v57 = vld [vmem:[%s4973_s0 + $0x8e0] sm:$0xff]  ;;  %v300_v1 = vld [vmem:[%s4973_s0 + $0x8f0] sm:$0xff]  ;;  %v714_v61 = vadd.f32 %v4533_v34, %v4623_v27 }
 0x132   :  { %v2151_v7 = vadd.f32 %v2150_v5, %v2149_v62  ;;  %1881 = vmatprep.mubr.f32.mxu0 %v247_v60 }
 0x133   :  { %v839_v8 = vadd.f32 %v2071_v4, %v694_v63  ;;  %v2072_v9 = vpop.f32.mrb[30].mxu1 }
 0x134   :  { %v2073_v13 = vpop.f32.mrb[31].mxu1  ;;  %1737 = vmatmul.mubr.f32.gmra.mrb[136].mxu1 %v244_v6  ;;  %v2152_v16 = vpop.f32.mrb[30].mxu0 }
 0x135   :  { %v4746_v19 = vadd.f32 %v2151_v7, %v839_v8  ;;  %v2074_v20 = vadd.f32 %v2073_v13, %v2072_v9  ;;  %v2153_v21 = vpop.f32.mrb[31].mxu0  ;;  %1882 = vmatmul.mubr.f32.gmra.mrb[136].mxu0 %v246_v35  ;;  %1741 = vmatprep.mubr.f32.mxu1 %v263_v11  ;;  %v719_v8 = vadd.f32 %v4549_v44, %v4623_v27 }
 0x136   :  { %v2154_v28 = vadd.f32 %v2153_v21, %v2152_v16  ;;  %1886 = vmatprep.mubr.f32.mxu0 %v265_v12 }
 0x137   :  { %v844_v29 = vadd.f32 %v2074_v20, %v699_v17  ;;  %v2075_v30 = vpop.f32.mrb[32].mxu1 }
 0x138   :  { %v2076_v32 = vpop.f32.mrb[33].mxu1  ;;  %1742 = vmatmul.mubr.f32.gmra.mrb[138].mxu1 %v262_v26  ;;  %v2155_v33 = vpop.f32.mrb[32].mxu0  ;;  %v724_v26 = vadd.f32 %v4565_v54, %v4623_v27 }
 0x139   :  { %v4762_v38 = vadd.f32 %v2154_v28, %v844_v29  ;;  %v2077_v39 = vadd.f32 %v2076_v32, %v2075_v30  ;;  %v2156_v40 = vpop.f32.mrb[33].mxu0  ;;  %1887 = vmatmul.mubr.f32.gmra.mrb[138].mxu0 %v264_v45  ;;  %1746 = vmatprep.mubr.f32.mxu1 %v281_v23 }
 0x13a   :  { %v2157_v42 = vadd.f32 %v2156_v40, %v2155_v33  ;;  %1891 = vmatprep.mubr.f32.mxu0 %v283_v31  ;;  %v729_v33 = vadd.f32 %v4581_v0, %v4623_v27 }
 0x13b   :  { %v849_v43 = vadd.f32 %v2077_v39, %v704_v36  ;;  %v2078_v15 = vpop.f32.mrb[34].mxu1 }
 0x13c   :  { %v2079_v47 = vpop.f32.mrb[35].mxu1  ;;  %1747 = vmatmul.mubr.f32.gmra.mrb[140].mxu1 %v280_v41  ;;  %v2158_v48 = vpop.f32.mrb[34].mxu0 }
 0x13d   :  { %v4778_v52 = vadd.f32 %v2157_v42, %v849_v43  ;;  %v2080_v53 = vadd.f32 %v2079_v47, %v2078_v15  ;;  %v2159_v56 = vpop.f32.mrb[35].mxu0  ;;  %1892 = vmatmul.mubr.f32.gmra.mrb[140].mxu0 %v282_v55  ;;  %1751 = vmatprep.mubr.f32.mxu1 %v299_v14  ;;  %v734_v43 = vadd.f32 %v4597_v10, %v4623_v27 }
 0x13e   :  { %v2160_v25 = vadd.f32 %v2159_v56, %v2158_v48  ;;  %1896 = vmatprep.mubr.f32.mxu0 %v301_v46 }
 0x13f   :  { %v854_v58 = vadd.f32 %v2080_v53, %v709_v49  ;;  %v2081_v59 = vpop.f32.mrb[36].mxu1 }
 0x140   :  { %v2082_v60 = vpop.f32.mrb[37].mxu1  ;;  %1752 = vmatmul.mubr.f32.gmra.mrb[142].mxu1 %v298_v57  ;;  %v2161_v24 = vpop.f32.mrb[36].mxu0  ;;  %v739_v57 = vadd.f32 %v4613_v22, %v4623_v27 }
 0x141   :  { %v4788_v62 = vadd.f32 %v2160_v25, %v854_v58  ;;  %v2083_v63 = vadd.f32 %v2082_v60, %v2081_v59  ;;  %v2162_v4 = vpop.f32.mrb[37].mxu0  ;;  %1897 = vmatmul.mubr.f32.gmra.mrb[142].mxu0 %v300_v1 }
 0x142   :  { %v2163_v5 = vadd.f32 %v2162_v4, %v2161_v24 }
 0x143   :  { %v859_v6 = vadd.f32 %v2083_v63, %v714_v61  ;;  %v2084_v7 = vpop.f32.mrb[38].mxu1 }
 0x144   :  { %v2085_v35 = vpop.f32.mrb[39].mxu1  ;;  %v2164_v11 = vpop.f32.mrb[38].mxu0 }
 0x145   :  { %v4792_v9 = vadd.f32 %v2163_v5, %v859_v6  ;;  %v2086_v12 = vadd.f32 %v2085_v35, %v2084_v7  ;;  %v2165_v13 = vpop.f32.mrb[39].mxu0 }
 0x146   :  { %v2166_v16 = vadd.f32 %v2165_v13, %v2164_v11 }
 0x147   :  { %v864_v17 = vadd.f32 %v2086_v12, %v719_v8  ;;  %v2087_v34 = vpop.f32.mrb[40].mxu1 }
 0x148   :  { %v2088_v20 = vpop.f32.mrb[41].mxu1  ;;  %v2167_v21 = vpop.f32.mrb[40].mxu0 }
 0x149   :  { %v4796_v28 = vadd.f32 %v2166_v16, %v864_v17  ;;  %v2089_v45 = vadd.f32 %v2088_v20, %v2087_v34  ;;  %v2168_v23 = vpop.f32.mrb[41].mxu0 }
 0x14a   :  { %v2169_v29 = vadd.f32 %v2168_v23, %v2167_v21 }
 0x14b   :  { %v869_v30 = vadd.f32 %v2089_v45, %v724_v26  ;;  %v2090_v31 = vpop.f32.mrb[42].mxu1 }
 0x14c   :  { %v2091_v44 = vpop.f32.mrb[43].mxu1  ;;  %v2170_v32 = vpop.f32.mrb[42].mxu0 }
 0x14d   :  { %v4800_v36 = vadd.f32 %v2169_v29, %v869_v30  ;;  %v2092_v39 = vadd.f32 %v2091_v44, %v2090_v31  ;;  %v2171_v40 = vpop.f32.mrb[43].mxu0 }
 0x14e   :  { %v2172_v41 = vadd.f32 %v2171_v40, %v2170_v32 }
 0x14f   :  { %v874_v42 = vadd.f32 %v2092_v39, %v729_v33  ;;  %v2093_v55 = vpop.f32.mrb[44].mxu1 }
 0x150   :  { %v2094_v54 = vpop.f32.mrb[45].mxu1  ;;  %v2173_v14 = vpop.f32.mrb[44].mxu0 }
 0x151   :  { %v4804_v15 = vadd.f32 %v2172_v41, %v874_v42  ;;  %v2095_v46 = vadd.f32 %v2094_v54, %v2093_v55  ;;  %v2174_v47 = vpop.f32.mrb[45].mxu0 }
 0x152   :  { %v2175_v48 = vadd.f32 %v2174_v47, %v2173_v14 }
 0x153   :  { %v879_v49 = vadd.f32 %v2095_v46, %v734_v43  ;;  %v2096_v53 = vpop.f32.mrb[46].mxu1 }
 0x154   :  { %v2097_v0 = vpop.f32.mrb[47].mxu1  ;;  %v2176_v56 = vpop.f32.mrb[46].mxu0 }
 0x155   :  { %v4808_v25 = vadd.f32 %v2175_v48, %v879_v49  ;;  %v2098_v1 = vadd.f32 %v2097_v0, %v2096_v53  ;;  %v2177_v58 = vpop.f32.mrb[47].mxu0 }
 0x156   :  { %v2178_v59 = vadd.f32 %v2177_v58, %v2176_v56 }
 0x157   :  { %v884_v60 = vadd.f32 %v2098_v1, %v739_v57  ;;  %v2211_v24 = vpop.f32.mrb[48].mxu1 }
 0x158   :  { %v2212_v10 = vpop.f32.mrb[49].mxu1  ;;  %v2291_v61 = vpop.f32.mrb[48].mxu0 }
 0x159   :  { %v4810_v63 = vadd.f32 %v2178_v59, %v884_v60  ;;  %v2213_v4 = vadd.f32 %v2212_v10, %v2211_v24  ;;  %v2292_v5 = vpop.f32.mrb[49].mxu0 }
 0x15a   :  { %v2293_v6 = vadd.f32 %v2292_v5, %v2291_v61 }
 0x15b   :  { %v1099_v7 = vadd.f32 %v2213_v4, %v4650_v50  ;;  %v2214_v35 = vpop.f32.mrb[50].mxu1 }
 0x15c   :  { %v2215_v11 = vpop.f32.mrb[51].mxu1  ;;  %v2294_v8 = vpop.f32.mrb[50].mxu0 }
 0x15d   :  { %v4813_v22 = vadd.f32 %v2293_v6, %v1099_v7  ;;  %v2216_v27 = vadd.f32 %v2215_v11, %v2214_v35  ;;  %v2295_v12 = vpop.f32.mrb[51].mxu0 }
 0x15e   :  { %v2296_v13 = vadd.f32 %v2295_v12, %v2294_v8 }
 0x15f   :  { %v1104_v16 = vadd.f32 %v2216_v27, %v4666_v2  ;;  %v2217_v17 = vpop.f32.mrb[52].mxu1 }
 0x160   :  { %v2218_v34 = vpop.f32.mrb[53].mxu1  ;;  %v2297_v20 = vpop.f32.mrb[52].mxu0 }
 0x161   :  { %v4816_v21 = vadd.f32 %v2296_v13, %v1104_v16  ;;  %v2219_v26 = vadd.f32 %v2218_v34, %v2217_v17  ;;  %v2298_v45 = vpop.f32.mrb[53].mxu0 }
 0x162   :  { %v2299_v23 = vadd.f32 %v2298_v45, %v2297_v20 }
 0x163   :  { %v1109_v50 = vadd.f32 %v2219_v26, %v4682_v18  ;;  %v2220_v29 = vpop.f32.mrb[54].mxu1 }
 0x164   :  { %v2221_v30 = vpop.f32.mrb[55].mxu1  ;;  %v2300_v31 = vpop.f32.mrb[54].mxu0 }
 0x165   :  { %v4819_v44 = vadd.f32 %v2299_v23, %v1109_v50  ;;  %v2222_v32 = vadd.f32 %v2221_v30, %v2220_v29  ;;  %v2301_v33 = vpop.f32.mrb[55].mxu0 }
 0x166   :  { %v2302_v39 = vadd.f32 %v2301_v33, %v2300_v31 }
 0x167   :  { %v1114_v2 = vadd.f32 %v2222_v32, %v4698_v37  ;;  %v2223_v40 = vpop.f32.mrb[56].mxu1 }
 0x168   :  { %v2224_v41 = vpop.f32.mrb[57].mxu1  ;;  %v2303_v42 = vpop.f32.mrb[56].mxu0 }
 0x169   :  { %v4822_v55 = vadd.f32 %v2302_v39, %v1114_v2  ;;  %v2225_v54 = vadd.f32 %v2224_v41, %v2223_v40  ;;  %v2304_v14 = vpop.f32.mrb[57].mxu0 }
 0x16a   :  { %v2305_v43 = vadd.f32 %v2304_v14, %v2303_v42 }
 0x16b   :  { %v1119_v18 = vadd.f32 %v2225_v54, %v4714_v51  ;;  %v2226_v46 = vpop.f32.mrb[58].mxu1 }
 0x16c   :  { %v2227_v47 = vpop.f32.mrb[59].mxu1  ;;  %v2306_v48 = vpop.f32.mrb[58].mxu0 }
 0x16d   :  { %v4825_v49 = vadd.f32 %v2305_v43, %v1119_v18  ;;  %v2228_v53 = vadd.f32 %v2227_v47, %v2226_v46  ;;  %v2307_v0 = vpop.f32.mrb[59].mxu0 }
 0x16e   :  { %v2308_v56 = vadd.f32 %v2307_v0, %v2306_v48 }
 0x16f   :  { %v1124_v37 = vadd.f32 %v2228_v53, %v4730_v3  ;;  %v2229_v57 = vpop.f32.mrb[60].mxu1 }
 0x170   :  { %v2230_v1 = vpop.f32.mrb[61].mxu1  ;;  %v2309_v58 = vpop.f32.mrb[60].mxu0 }
 0x171   :  { %v4828_v59 = vadd.f32 %v2308_v56, %v1124_v37  ;;  %v2231_v60 = vadd.f32 %v2230_v1, %v2229_v57  ;;  %v2310_v24 = vpop.f32.mrb[61].mxu0 }
 0x172   :  { %v2311_v10 = vadd.f32 %v2310_v24, %v2309_v58 }
 0x173   :  { %v1129_v51 = vadd.f32 %v2231_v60, %v4746_v19  ;;  %v2232_v61 = vpop.f32.mrb[62].mxu1 }
 0x174   :  { %v2233_v4 = vpop.f32.mrb[63].mxu1  ;;  %v2312_v5 = vpop.f32.mrb[62].mxu0 }
 0x175   :  { %v4831_v6 = vadd.f32 %v2311_v10, %v1129_v51  ;;  %v2234_v7 = vadd.f32 %v2233_v4, %v2232_v61  ;;  %v2313_v35 = vpop.f32.mrb[63].mxu0 }
 0x176   :  { %v2314_v11 = vadd.f32 %v2313_v35, %v2312_v5 }
 0x177   :  { %v1134_v3 = vadd.f32 %v2234_v7, %v4762_v38  ;;  %v2235_v8 = vpop.f32.mrb[64].mxu1 }
 0x178   :  { %v2236_v27 = vpop.f32.mrb[65].mxu1  ;;  %v2315_v12 = vpop.f32.mrb[64].mxu0 }
 0x179   :  { %v4834_v13 = vadd.f32 %v2314_v11, %v1134_v3  ;;  %v2237_v16 = vadd.f32 %v2236_v27, %v2235_v8  ;;  %v2316_v17 = vpop.f32.mrb[65].mxu0 }
 0x17a   :  { %v2317_v34 = vadd.f32 %v2316_v17, %v2315_v12 }
 0x17b   :  { %v1139_v19 = vadd.f32 %v2237_v16, %v4778_v52  ;;  %v2238_v20 = vpop.f32.mrb[66].mxu1 }
 0x17c   :  { %v2239_v26 = vpop.f32.mrb[67].mxu1  ;;  %v2318_v45 = vpop.f32.mrb[66].mxu0 }
 0x17d   :  { %v4837_v23 = vadd.f32 %v2317_v34, %v1139_v19  ;;  %v2240_v50 = vadd.f32 %v2239_v26, %v2238_v20  ;;  %v2319_v29 = vpop.f32.mrb[67].mxu0 }
 0x17e   :  { %v2320_v30 = vadd.f32 %v2319_v29, %v2318_v45 }
 0x17f   :  { %v1144_v38 = vadd.f32 %v2240_v50, %v4788_v62  ;;  %v2241_v31 = vpop.f32.mrb[68].mxu1 }
 0x180   :  { %v2242_v32 = vpop.f32.mrb[69].mxu1  ;;  %v2321_v33 = vpop.f32.mrb[68].mxu0 }
 0x181   :  { %v4840_v39 = vadd.f32 %v2320_v30, %v1144_v38  ;;  %v2243_v2 = vadd.f32 %v2242_v32, %v2241_v31  ;;  %v2322_v40 = vpop.f32.mrb[69].mxu0 }
 0x182   :  { %v2323_v41 = vadd.f32 %v2322_v40, %v2321_v33 }
 0x183   :  { %v1149_v52 = vadd.f32 %v2243_v2, %v4792_v9  ;;  %v2244_v42 = vpop.f32.mrb[70].mxu1 }
 0x184   :  { %v2245_v54 = vpop.f32.mrb[71].mxu1  ;;  %v2324_v14 = vpop.f32.mrb[70].mxu0 }
 0x185   :  { %v4843_v43 = vadd.f32 %v2323_v41, %v1149_v52  ;;  %v2246_v18 = vadd.f32 %v2245_v54, %v2244_v42  ;;  %v2325_v46 = vpop.f32.mrb[71].mxu0 }
 0x186   :  { %v2326_v47 = vadd.f32 %v2325_v46, %v2324_v14 }
 0x187   :  { %v1154_v62 = vadd.f32 %v2246_v18, %v4796_v28  ;;  %v2247_v48 = vpop.f32.mrb[72].mxu1 }
 0x188   :  { %v2248_v53 = vpop.f32.mrb[73].mxu1  ;;  %v2327_v0 = vpop.f32.mrb[72].mxu0 }
 0x189   :  { %v4846_v56 = vadd.f32 %v2326_v47, %v1154_v62  ;;  %v2249_v37 = vadd.f32 %v2248_v53, %v2247_v48  ;;  %v2328_v57 = vpop.f32.mrb[73].mxu0 }
 0x18a   :  { %v2329_v1 = vadd.f32 %v2328_v57, %v2327_v0 }
 0x18b   :  { %v1159_v9 = vadd.f32 %v2249_v37, %v4800_v36  ;;  %v2250_v58 = vpop.f32.mrb[74].mxu1 }
 0x18c   :  { %v2251_v60 = vpop.f32.mrb[75].mxu1  ;;  %v2330_v24 = vpop.f32.mrb[74].mxu0 }
 0x18d   :  { %v4849_v10 = vadd.f32 %v2329_v1, %v1159_v9  ;;  %v2252_v51 = vadd.f32 %v2251_v60, %v2250_v58  ;;  %v2331_v61 = vpop.f32.mrb[75].mxu0 }
 0x18e   :  { %v2332_v4 = vadd.f32 %v2331_v61, %v2330_v24 }
 0x18f   :  { %v1164_v28 = vadd.f32 %v2252_v51, %v4804_v15  ;;  %v2253_v5 = vpop.f32.mrb[76].mxu1 }
 0x190   :  { %v2254_v7 = vpop.f32.mrb[77].mxu1  ;;  %v2333_v35 = vpop.f32.mrb[76].mxu0 }
 0x191   :  { %v4852_v11 = vadd.f32 %v2332_v4, %v1164_v28  ;;  %v2255_v3 = vadd.f32 %v2254_v7, %v2253_v5  ;;  %v2334_v8 = vpop.f32.mrb[77].mxu0 }
 0x192   :  { %v2335_v27 = vadd.f32 %v2334_v8, %v2333_v35 }
 0x193   :  { %v1169_v36 = vadd.f32 %v2255_v3, %v4808_v25  ;;  %v2256_v12 = vpop.f32.mrb[78].mxu1 }
 0x194   :  { %v2257_v16 = vpop.f32.mrb[79].mxu1  ;;  %v2336_v17 = vpop.f32.mrb[78].mxu0 }
 0x195   :  { %v4855_v34 = vadd.f32 %v2335_v27, %v1169_v36  ;;  %v2258_v19 = vadd.f32 %v2257_v16, %v2256_v12  ;;  %v2337_v20 = vpop.f32.mrb[79].mxu0 }
 0x196   :  { %v2338_v26 = vadd.f32 %v2337_v20, %v2336_v17 }
 0x197   :  { %v1174_v15 = vadd.f32 %v2258_v19, %v4810_v63  ;;  %v2371_v45 = vpop.f32.mrb[80].mxu1 }
 0x198   :  { %v2372_v50 = vpop.f32.mrb[81].mxu1  ;;  %v2451_v29 = vpop.f32.mrb[80].mxu0 }
 0x199   :  { %v4858_v30 = vadd.f32 %v2338_v26, %v1174_v15  ;;  %v2373_v38 = vadd.f32 %v2372_v50, %v2371_v45  ;;  %v2452_v31 = vpop.f32.mrb[81].mxu0 }
 0x19a   :  { %v2453_v32 = vadd.f32 %v2452_v31, %v2451_v29 }
 0x19b   :  { %v1389_v25 = vadd.f32 %v2373_v38, %v4813_v22  ;;  %v2374_v33 = vpop.f32.mrb[82].mxu1 }
 0x19c   :  { %v2375_v2 = vpop.f32.mrb[83].mxu1  ;;  %v2454_v40 = vpop.f32.mrb[82].mxu0 }
 0x19d   :  { %v4861_v41 = vadd.f32 %v2453_v32, %v1389_v25  ;;  %v2376_v52 = vadd.f32 %v2375_v2, %v2374_v33  ;;  %v2455_v42 = vpop.f32.mrb[83].mxu0 }
 0x19e   :  { %v2456_v54 = vadd.f32 %v2455_v42, %v2454_v40 }
 0x19f   :  { %v1394_v63 = vadd.f32 %v2376_v52, %v4816_v21  ;;  %v2377_v14 = vpop.f32.mrb[84].mxu1 }
 0x1a0   :  { %v2378_v18 = vpop.f32.mrb[85].mxu1  ;;  %v2457_v46 = vpop.f32.mrb[84].mxu0 }
 0x1a1   :  { %v4864_v47 = vadd.f32 %v2456_v54, %v1394_v63  ;;  %v2379_v62 = vadd.f32 %v2378_v18, %v2377_v14  ;;  %v2458_v48 = vpop.f32.mrb[85].mxu0 }
 0x1a2   :  { %v2459_v53 = vadd.f32 %v2458_v48, %v2457_v46 }
 0x1a3   :  { %v1399_v22 = vadd.f32 %v2379_v62, %v4819_v44  ;;  %v2380_v0 = vpop.f32.mrb[86].mxu1 }
 0x1a4   :  { %v2381_v37 = vpop.f32.mrb[87].mxu1  ;;  %v2460_v57 = vpop.f32.mrb[86].mxu0 }
 0x1a5   :  { %v4867_v1 = vadd.f32 %v2459_v53, %v1399_v22  ;;  %v2382_v9 = vadd.f32 %v2381_v37, %v2380_v0  ;;  %v2461_v58 = vpop.f32.mrb[87].mxu0 }
 0x1a6   :  { %v2462_v60 = vadd.f32 %v2461_v58, %v2460_v57 }
 0x1a7   :  { %v1404_v21 = vadd.f32 %v2382_v9, %v4822_v55  ;;  %v2383_v24 = vpop.f32.mrb[88].mxu1 }
 0x1a8   :  { %v2384_v51 = vpop.f32.mrb[89].mxu1  ;;  %v2463_v61 = vpop.f32.mrb[88].mxu0 }
 0x1a9   :  { %v4870_v4 = vadd.f32 %v2462_v60, %v1404_v21  ;;  %v2385_v28 = vadd.f32 %v2384_v51, %v2383_v24  ;;  %v2464_v5 = vpop.f32.mrb[89].mxu0 }
 0x1aa   :  { %v2465_v7 = vadd.f32 %v2464_v5, %v2463_v61 }
 0x1ab   :  { %v1409_v44 = vadd.f32 %v2385_v28, %v4825_v49  ;;  %v2386_v35 = vpop.f32.mrb[90].mxu1 }
 0x1ac   :  { %v2387_v3 = vpop.f32.mrb[91].mxu1  ;;  %v2466_v8 = vpop.f32.mrb[90].mxu0 }
 0x1ad   :  { %v4873_v27 = vadd.f32 %v2465_v7, %v1409_v44  ;;  %v2388_v36 = vadd.f32 %v2387_v3, %v2386_v35  ;;  %v2467_v12 = vpop.f32.mrb[91].mxu0 }
 0x1ae   :  { %v2468_v16 = vadd.f32 %v2467_v12, %v2466_v8 }
 0x1af   :  { %v1414_v55 = vadd.f32 %v2388_v36, %v4828_v59  ;;  %v2389_v17 = vpop.f32.mrb[92].mxu1 }
 0x1b0   :  { %v2390_v19 = vpop.f32.mrb[93].mxu1  ;;  %v2469_v20 = vpop.f32.mrb[92].mxu0 }
 0x1b1   :  { %v4876_v26 = vadd.f32 %v2468_v16, %v1414_v55  ;;  %v2391_v15 = vadd.f32 %v2390_v19, %v2389_v17  ;;  %v2470_v45 = vpop.f32.mrb[93].mxu0 }
 0x1b2   :  { %v2471_v50 = vadd.f32 %v2470_v45, %v2469_v20 }
 0x1b3   :  { %v1419_v49 = vadd.f32 %v2391_v15, %v4831_v6  ;;  %v2392_v29 = vpop.f32.mrb[94].mxu1 }
 0x1b4   :  { %v2393_v38 = vpop.f32.mrb[95].mxu1  ;;  %v2472_v31 = vpop.f32.mrb[94].mxu0 }
 0x1b5   :  { %v4879_v32 = vadd.f32 %v2471_v50, %v1419_v49  ;;  %v2394_v25 = vadd.f32 %v2393_v38, %v2392_v29  ;;  %v2473_v33 = vpop.f32.mrb[95].mxu0 }
 0x1b6   :  { %v2474_v2 = vadd.f32 %v2473_v33, %v2472_v31 }
 0x1b7   :  { %v1424_v59 = vadd.f32 %v2394_v25, %v4834_v13  ;;  %v2395_v40 = vpop.f32.mrb[96].mxu1 }
 0x1b8   :  { %v2396_v52 = vpop.f32.mrb[97].mxu1  ;;  %v2475_v42 = vpop.f32.mrb[96].mxu0 }
 0x1b9   :  { %v4882_v54 = vadd.f32 %v2474_v2, %v1424_v59  ;;  %v2397_v63 = vadd.f32 %v2396_v52, %v2395_v40  ;;  %v2476_v14 = vpop.f32.mrb[97].mxu0 }
 0x1ba   :  { %v2477_v18 = vadd.f32 %v2476_v14, %v2475_v42 }
 0x1bb   :  { %v1429_v6 = vadd.f32 %v2397_v63, %v4837_v23  ;;  %v2398_v46 = vpop.f32.mrb[98].mxu1 }
 0x1bc   :  { %v2399_v62 = vpop.f32.mrb[99].mxu1  ;;  %v2478_v48 = vpop.f32.mrb[98].mxu0 }
 0x1bd   :  { %v4885_v53 = vadd.f32 %v2477_v18, %v1429_v6  ;;  %v2400_v22 = vadd.f32 %v2399_v62, %v2398_v46  ;;  %v2479_v0 = vpop.f32.mrb[99].mxu0 }
 0x1be   :  { %v2480_v37 = vadd.f32 %v2479_v0, %v2478_v48 }
 0x1bf   :  { %v1434_v13 = vadd.f32 %v2400_v22, %v4840_v39  ;;  %v2401_v57 = vpop.f32.mrb[100].mxu1 }
 0x1c0   :  { %v2402_v9 = vpop.f32.mrb[101].mxu1  ;;  %v2481_v58 = vpop.f32.mrb[100].mxu0 }
 0x1c1   :  { %v4888_v60 = vadd.f32 %v2480_v37, %v1434_v13  ;;  %v2403_v21 = vadd.f32 %v2402_v9, %v2401_v57  ;;  %v2482_v24 = vpop.f32.mrb[101].mxu0 }
 0x1c2   :  { %v2483_v51 = vadd.f32 %v2482_v24, %v2481_v58 }
 0x1c3   :  { %v1439_v23 = vadd.f32 %v2403_v21, %v4843_v43  ;;  %v2404_v61 = vpop.f32.mrb[102].mxu1 }
 0x1c4   :  { %v2405_v28 = vpop.f32.mrb[103].mxu1  ;;  %v2484_v5 = vpop.f32.mrb[102].mxu0 }
 0x1c5   :  { %v4891_v7 = vadd.f32 %v2483_v51, %v1439_v23  ;;  %v2406_v44 = vadd.f32 %v2405_v28, %v2404_v61  ;;  %v2485_v35 = vpop.f32.mrb[103].mxu0 }
 0x1c6   :  { %v2486_v3 = vadd.f32 %v2485_v35, %v2484_v5 }
 0x1c7   :  { %v1444_v39 = vadd.f32 %v2406_v44, %v4846_v56  ;;  %v2407_v8 = vpop.f32.mrb[104].mxu1 }
 0x1c8   :  { %v2408_v36 = vpop.f32.mrb[105].mxu1  ;;  %v2487_v12 = vpop.f32.mrb[104].mxu0 }
 0x1c9   :  { %v4894_v16 = vadd.f32 %v2486_v3, %v1444_v39  ;;  %v2409_v55 = vadd.f32 %v2408_v36, %v2407_v8  ;;  %v2488_v17 = vpop.f32.mrb[105].mxu0 }
 0x1ca   :  { %v2489_v19 = vadd.f32 %v2488_v17, %v2487_v12 }
 0x1cb   :  { %v1449_v43 = vadd.f32 %v2409_v55, %v4849_v10  ;;  %v2410_v20 = vpop.f32.mrb[106].mxu1 }
 0x1cc   :  { %v2411_v15 = vpop.f32.mrb[107].mxu1  ;;  %v2490_v45 = vpop.f32.mrb[106].mxu0 }
 0x1cd   :  { %v4897_v50 = vadd.f32 %v2489_v19, %v1449_v43  ;;  %v2412_v49 = vadd.f32 %v2411_v15, %v2410_v20  ;;  %v2491_v29 = vpop.f32.mrb[107].mxu0 }
 0x1ce   :  { %v2492_v38 = vadd.f32 %v2491_v29, %v2490_v45 }
 0x1cf   :  { %v1454_v56 = vadd.f32 %v2412_v49, %v4852_v11  ;;  %v2413_v31 = vpop.f32.mrb[108].mxu1 }
 0x1d0   :  { %v2414_v25 = vpop.f32.mrb[109].mxu1  ;;  %v2493_v33 = vpop.f32.mrb[108].mxu0 }
 0x1d1   :  { %v4900_v2 = vadd.f32 %v2492_v38, %v1454_v56  ;;  %v2415_v59 = vadd.f32 %v2414_v25, %v2413_v31  ;;  %v2494_v40 = vpop.f32.mrb[109].mxu0 }
 0x1d2   :  { %v2495_v52 = vadd.f32 %v2494_v40, %v2493_v33 }
 0x1d3   :  { %v1459_v10 = vadd.f32 %v2415_v59, %v4855_v34  ;;  %v2416_v42 = vpop.f32.mrb[110].mxu1 }
 0x1d4   :  { %v2417_v63 = vpop.f32.mrb[111].mxu1  ;;  %v2496_v14 = vpop.f32.mrb[110].mxu0 }
 0x1d5   :  { %v4903_v18 = vadd.f32 %v2495_v52, %v1459_v10  ;;  %v2418_v6 = vadd.f32 %v2417_v63, %v2416_v42  ;;  %v2497_v46 = vpop.f32.mrb[111].mxu0 }
 0x1d6   :  { %v2498_v62 = vadd.f32 %v2497_v46, %v2496_v14 }
 0x1d7   :  { %v1464_v11 = vadd.f32 %v2418_v6, %v4858_v30  ;;  %v2531_v48 = vpop.f32.mrb[112].mxu1 }
 0x1d8   :  { %v2532_v22 = vpop.f32.mrb[113].mxu1  ;;  %v2611_v0 = vpop.f32.mrb[112].mxu0 }
 0x1d9   :  { %v4906_v37 = vadd.f32 %v2498_v62, %v1464_v11  ;;  %v2533_v13 = vadd.f32 %v2532_v22, %v2531_v48  ;;  %v2612_v57 = vpop.f32.mrb[113].mxu0 }
 0x1da   :  { %v2613_v9 = vadd.f32 %v2612_v57, %v2611_v0 }
 0x1db   :  { %v1679_v34 = vadd.f32 %v2533_v13, %v4861_v41  ;;  %v2534_v58 = vpop.f32.mrb[114].mxu1 }
 0x1dc   :  { %v2535_v21 = vpop.f32.mrb[115].mxu1  ;;  %v2614_v24 = vpop.f32.mrb[114].mxu0 }
 0x1dd   :  { %v1824_v51 = vadd.f32 %v2613_v9, %v1679_v34  ;;  %v2536_v23 = vadd.f32 %v2535_v21, %v2534_v58  ;;  %v2615_v61 = vpop.f32.mrb[115].mxu0 }
 0x1de   :  { %v2616_v28 = vadd.f32 %v2615_v61, %v2614_v24 }
 0x1df   :  { %v1902_v5 = vmax.f32 %v1824_v51, 0.0  ;;  %v1684_v30 = vadd.f32 %v2536_v23, %v4864_v47  ;;  %v2537_v44 = vpop.f32.mrb[116].mxu1 }
 0x1e0   :  { %v2538_v35 = vpop.f32.mrb[117].mxu1  ;;  %v2617_v3 = vpop.f32.mrb[116].mxu0 }
 0x1e1   :  { %1918 = vst [vmem:[%s4975_s3] sm:$0xff] %v1902_v5  ;;  %v1829_v39 = vadd.f32 %v2616_v28, %v1684_v30  ;;  %v2539_v8 = vadd.f32 %v2538_v35, %v2537_v44  ;;  %v2618_v41 = vpop.f32.mrb[117].mxu0 }
 0x1e2   :  { %v2619_v36 = vadd.f32 %v2618_v41, %v2617_v3 }
 0x1e3   :  { %v1903_v12 = vmax.f32 %v1829_v39, 0.0  ;;  %v1689_v55 = vadd.f32 %v2539_v8, %v4867_v1  ;;  %v2540_v17 = vpop.f32.mrb[118].mxu1 }
 0x1e4   :  { %v2541_v19 = vpop.f32.mrb[119].mxu1  ;;  %v2620_v43 = vpop.f32.mrb[118].mxu0 }
 0x1e5   :  { %1919 = vst [vmem:[%s4975_s3 + $0x8] sm:$0xff] %v1903_v12  ;;  %v1834_v47 = vadd.f32 %v2619_v36, %v1689_v55  ;;  %v2542_v20 = vadd.f32 %v2541_v19, %v2540_v17  ;;  %v2621_v15 = vpop.f32.mrb[119].mxu0 }
 0x1e6   :  { %v2622_v45 = vadd.f32 %v2621_v15, %v2620_v43 }
 0x1e7   :  { %v1904_v49 = vmax.f32 %v1834_v47, 0.0  ;;  %v1694_v29 = vadd.f32 %v2542_v20, %v4870_v4  ;;  %v2543_v38 = vpop.f32.mrb[120].mxu1 }
 0x1e8   :  { %v2544_v56 = vpop.f32.mrb[121].mxu1  ;;  %v2623_v31 = vpop.f32.mrb[120].mxu0 }
 0x1e9   :  { %1920 = vst [vmem:[%s4975_s3 + $0x10] sm:$0xff] %v1904_v49  ;;  %v1839_v1 = vadd.f32 %v2622_v45, %v1694_v29  ;;  %v2545_v25 = vadd.f32 %v2544_v56, %v2543_v38  ;;  %v2624_v33 = vpop.f32.mrb[121].mxu0 }
 0x1ea   :  { %v2625_v59 = vadd.f32 %v2624_v33, %v2623_v31 }
 0x1eb   :  { %v1905_v40 = vmax.f32 %v1839_v1, 0.0  ;;  %v1699_v52 = vadd.f32 %v2545_v25, %v4873_v27  ;;  %v2546_v10 = vpop.f32.mrb[122].mxu1 }
 0x1ec   :  { %v2547_v42 = vpop.f32.mrb[123].mxu1  ;;  %v2626_v63 = vpop.f32.mrb[122].mxu0 }
 0x1ed   :  { %1921 = vst [vmem:[%s4975_s3 + $0x18] sm:$0xff] %v1905_v40  ;;  %v1844_v4 = vadd.f32 %v2625_v59, %v1699_v52  ;;  %v2548_v14 = vadd.f32 %v2547_v42, %v2546_v10  ;;  %v2627_v6 = vpop.f32.mrb[123].mxu0 }
 0x1ee   :  { %v2628_v46 = vadd.f32 %v2627_v6, %v2626_v63 }
 0x1ef   :  { %v1906_v62 = vmax.f32 %v1844_v4, 0.0  ;;  %v1704_v11 = vadd.f32 %v2548_v14, %v4876_v26  ;;  %v2549_v48 = vpop.f32.mrb[124].mxu1 }
 0x1f0   :  { %v2550_v22 = vpop.f32.mrb[125].mxu1  ;;  %v2629_v0 = vpop.f32.mrb[124].mxu0 }
 0x1f1   :  { %1922 = vst [vmem:[%s4975_s3 + $0x20] sm:$0xff] %v1906_v62  ;;  %v1849_v27 = vadd.f32 %v2628_v46, %v1704_v11  ;;  %v2551_v13 = vadd.f32 %v2550_v22, %v2549_v48  ;;  %v2630_v57 = vpop.f32.mrb[125].mxu0 }
 0x1f2   :  { %v2631_v9 = vadd.f32 %v2630_v57, %v2629_v0 }
 0x1f3   :  { %v1907_v34 = vmax.f32 %v1849_v27, 0.0  ;;  %v1709_v58 = vadd.f32 %v2551_v13, %v4879_v32  ;;  %v2552_v21 = vpop.f32.mrb[126].mxu1 }
 0x1f4   :  { %v2553_v24 = vpop.f32.mrb[127].mxu1  ;;  %v2632_v51 = vpop.f32.mrb[126].mxu0 }
 0x1f5   :  { %1923 = vst [vmem:[%s4975_s3 + $0x28] sm:$0xff] %v1907_v34  ;;  %v1854_v26 = vadd.f32 %v2631_v9, %v1709_v58  ;;  %v2554_v23 = vadd.f32 %v2553_v24, %v2552_v21  ;;  %v2633_v61 = vpop.f32.mrb[127].mxu0 }
 0x1f6   :  { %v2634_v28 = vadd.f32 %v2633_v61, %v2632_v51 }
 0x1f7   :  { %v1908_v5 = vmax.f32 %v1854_v26, 0.0  ;;  %v1714_v30 = vadd.f32 %v2554_v23, %v4882_v54  ;;  %v2555_v44 = vpop.f32.mrb[128].mxu1 }
 0x1f8   :  { %v2556_v35 = vpop.f32.mrb[129].mxu1  ;;  %v2635_v3 = vpop.f32.mrb[128].mxu0 }
 0x1f9   :  { %1924 = vst [vmem:[%s4975_s3 + $0x30] sm:$0xff] %v1908_v5  ;;  %v1859_v32 = vadd.f32 %v2634_v28, %v1714_v30  ;;  %v2557_v39 = vadd.f32 %v2556_v35, %v2555_v44  ;;  %v2636_v8 = vpop.f32.mrb[129].mxu0 }
 0x1fa   :  { %v2637_v41 = vadd.f32 %v2636_v8, %v2635_v3 }
 0x1fb   :  { %v1909_v36 = vmax.f32 %v1859_v32, 0.0  ;;  %v1719_v12 = vadd.f32 %v2557_v39, %v4885_v53  ;;  %v2558_v55 = vpop.f32.mrb[130].mxu1 }
 0x1fc   :  { %v2559_v17 = vpop.f32.mrb[131].mxu1  ;;  %v2638_v19 = vpop.f32.mrb[130].mxu0 }
 0x1fd   :  { %1925 = vst [vmem:[%s4975_s3 + $0x38] sm:$0xff] %v1909_v36  ;;  %v1864_v54 = vadd.f32 %v2637_v41, %v1719_v12  ;;  %v2560_v43 = vadd.f32 %v2559_v17, %v2558_v55  ;;  %v2639_v47 = vpop.f32.mrb[131].mxu0 }
 0x1fe   :  { %v2640_v20 = vadd.f32 %v2639_v47, %v2638_v19 }
 0x1ff   :  { %v1910_v15 = vmax.f32 %v1864_v54, 0.0  ;;  %v1724_v45 = vadd.f32 %v2560_v43, %v4888_v60  ;;  %v2561_v49 = vpop.f32.mrb[132].mxu1 }
 0x200   :  { %v2562_v29 = vpop.f32.mrb[133].mxu1  ;;  %v2641_v38 = vpop.f32.mrb[132].mxu0 }
 0x201   :  { %1926 = vst [vmem:[%s4975_s3 + $0x40] sm:$0xff] %v1910_v15  ;;  %v1869_v53 = vadd.f32 %v2640_v20, %v1724_v45  ;;  %v2563_v56 = vadd.f32 %v2562_v29, %v2561_v49  ;;  %v2642_v31 = vpop.f32.mrb[133].mxu0 }
 0x202   :  { %v2643_v1 = vadd.f32 %v2642_v31, %v2641_v38 }
 0x203   :  { %v1911_v25 = vmax.f32 %v1869_v53, 0.0  ;;  %v1729_v33 = vadd.f32 %v2563_v56, %v4891_v7  ;;  %v2564_v59 = vpop.f32.mrb[134].mxu1 }
 0x204   :  { %v2565_v40 = vpop.f32.mrb[135].mxu1  ;;  %v2644_v52 = vpop.f32.mrb[134].mxu0 }
 0x205   :  { %1927 = vst [vmem:[%s4975_s3 + $0x48] sm:$0xff] %v1911_v25  ;;  %v1874_v60 = vadd.f32 %v2643_v1, %v1729_v33  ;;  %v2566_v10 = vadd.f32 %v2565_v40, %v2564_v59  ;;  %v2645_v42 = vpop.f32.mrb[135].mxu0 }
 0x206   :  { %v2646_v63 = vadd.f32 %v2645_v42, %v2644_v52 }
 0x207   :  { %v1912_v4 = vmax.f32 %v1874_v60, 0.0  ;;  %v1734_v14 = vadd.f32 %v2566_v10, %v4894_v16  ;;  %v2567_v6 = vpop.f32.mrb[136].mxu1 }
 0x208   :  { %v2568_v46 = vpop.f32.mrb[137].mxu1  ;;  %v2647_v62 = vpop.f32.mrb[136].mxu0 }
 0x209   :  { %1928 = vst [vmem:[%s4975_s3 + $0x50] sm:$0xff] %v1912_v4  ;;  %v1879_v7 = vadd.f32 %v2646_v63, %v1734_v14  ;;  %v2569_v11 = vadd.f32 %v2568_v46, %v2567_v6  ;;  %v2648_v48 = vpop.f32.mrb[137].mxu0 }
 0x20a   :  { %v2649_v22 = vadd.f32 %v2648_v48, %v2647_v62 }
 0x20b   :  { %v1913_v0 = vmax.f32 %v1879_v7, 0.0  ;;  %v1739_v27 = vadd.f32 %v2569_v11, %v4897_v50  ;;  %v2570_v13 = vpop.f32.mrb[138].mxu1 }
 0x20c   :  { %v2571_v57 = vpop.f32.mrb[139].mxu1  ;;  %v2650_v9 = vpop.f32.mrb[138].mxu0 }
 0x20d   :  { %1929 = vst [vmem:[%s4975_s3 + $0x58] sm:$0xff] %v1913_v0  ;;  %v1884_v16 = vadd.f32 %v2649_v22, %v1739_v27  ;;  %v2572_v34 = vadd.f32 %v2571_v57, %v2570_v13  ;;  %v2651_v58 = vpop.f32.mrb[139].mxu0 }
 0x20e   :  { %v2652_v21 = vadd.f32 %v2651_v58, %v2650_v9 }
 0x20f   :  { %v1914_v24 = vmax.f32 %v1884_v16, 0.0  ;;  %v1744_v51 = vadd.f32 %v2572_v34, %v4900_v2  ;;  %v2573_v26 = vpop.f32.mrb[140].mxu1 }
 0x210   :  { %v2574_v23 = vpop.f32.mrb[141].mxu1  ;;  %v2653_v61 = vpop.f32.mrb[140].mxu0 }
 0x211   :  { %1930 = vst [vmem:[%s4975_s3 + $0x60] sm:$0xff] %v1914_v24  ;;  %v1889_v50 = vadd.f32 %v2652_v21, %v1744_v51  ;;  %v2575_v28 = vadd.f32 %v2574_v23, %v2573_v26  ;;  %v2654_v5 = vpop.f32.mrb[141].mxu0 }
 0x212   :  { %v2655_v30 = vadd.f32 %v2654_v5, %v2653_v61 }
 0x213   :  { %v1915_v44 = vmax.f32 %v1889_v50, 0.0  ;;  %v1749_v35 = vadd.f32 %v2575_v28, %v4903_v18  ;;  %v2576_v3 = vpop.f32.mrb[142].mxu1 }
 0x214   :  { %v2577_v32 = vpop.f32.mrb[143].mxu1  ;;  %v2656_v39 = vpop.f32.mrb[142].mxu0 }
 0x215   :  { %1931 = vst [vmem:[%s4975_s3 + $0x68] sm:$0xff] %v1915_v44  ;;  %v1894_v2 = vadd.f32 %v2655_v30, %v1749_v35  ;;  %v2578_v8 = vadd.f32 %v2577_v32, %v2576_v3  ;;  %v2657_v41 = vpop.f32.mrb[143].mxu0 }
 0x216   :  { %v2658_v36 = vadd.f32 %v2657_v41, %v2656_v39 }
 0x217   :  { %v1916_v12 = vmax.f32 %v1894_v2, 0.0  ;;  %v1754_v55 = vadd.f32 %v2578_v8, %v4906_v37 }
 0x219   :  { %1932 = vst [vmem:[%s4975_s3 + $0x70] sm:$0xff] %v1916_v12  ;;  %v1899_v17 = vadd.f32 %v2658_v36, %v1754_v55 }
 0x21b   :  { %v1917_v18 = vmax.f32 %v1899_v17, 0.0 }
 0x21d   :  { %1933 = vst [vmem:[%s4975_s3 + $0x78] sm:$0xff] %v1917_v18 }

// kernel: basic_model_forward.6
= control target key start
LH: loop header
LB: loop body
LE: loop exit
PB: predicated region body
PF: predicated region fallthrough
CT: control target
= control target key end

     0   :  { %s6982_s1 = inlined_call_operand.vmem [shape: f32[3200,128], index: 1, kind: input, shape index: {}]   ;;  %s6983_s0 = inlined_call_operand.vmem [shape: f32[128,3200], index: 0, kind: input, shape index: {}]   ;;  %s6984_s2 = inlined_call_operand.vmem [shape: f32[1,128], index: 2, kind: input, shape index: {}]   ;;  %s6985_s3 = inlined_call_operand.vmem [shape: f32[128,128], index: 3, kind: output, shape index: {}]  }
   0x1   :  { %v430_v0 = vld [vmem:[%s6982_s1 + $0x80] sm:$0xff]  ;;  %v431_v1 = vld [vmem:[%s6982_s1 + $0x88] sm:$0xff]  ;;  %v432_v11 = vld [vmem:[%s6982_s1 + $0x90] sm:$0xff] }
   0x2   :  { %v462_v2 = vld [vmem:[%s6982_s1 + $0x180] sm:$0xff]  ;;  %v3791_v3 = vpack.c.bf16 %v431_v1, %v430_v0  ;;  %v463_v4 = vld [vmem:[%s6982_s1 + $0x188] sm:$0xff]  ;;  %v433_v13 = vld [vmem:[%s6982_s1 + $0x98] sm:$0xff] }
   0x3   :  { %v414_v5 = vld [vmem:[%s6982_s1] sm:$0xff]  ;;  %v415_v6 = vld [vmem:[%s6982_s1 + $0x8] sm:$0xff]  ;;  %v3823_v7 = vpack.c.bf16 %v463_v4, %v462_v2  ;;  %v464_v14 = vld [vmem:[%s6982_s1 + $0x190] sm:$0xff]  ;;  %v3795_v16 = vpack.c.bf16 %v433_v13, %v432_v11 }
   0x4   :  { %v3793_v8 = vpack.c.bf16 %v415_v6, %v414_v5  ;;  %v446_v9 = vld [vmem:[%s6982_s1 + $0x100] sm:$0xff]  ;;  %v447_v10 = vld [vmem:[%s6982_s1 + $0x108] sm:$0xff]  ;;  %3792 = vmatprep.subr.bf16.mxu0 %v3791_v3  ;;  %v465_v15 = vld [vmem:[%s6982_s1 + $0x198] sm:$0xff] }
   0x5   :  { %v3825_v12 = vpack.c.bf16 %v447_v10, %v446_v9  ;;  %3824 = vmatprep.subr.bf16.mxu1 %v3823_v7  ;;  %v3827_v17 = vpack.c.bf16 %v465_v15, %v464_v14  ;;  %v416_v18 = vld [vmem:[%s6982_s1 + $0x10] sm:$0xff]  ;;  %v417_v19 = vld [vmem:[%s6982_s1 + $0x18] sm:$0xff]  ;;  %v434_v23 = vld [vmem:[%s6982_s1 + $0xa0] sm:$0xff] }
   0x6   :  { %3794 = vmatpush3.bf16.msra.mxu0 %v3793_v8  ;;  %v448_v20 = vld [vmem:[%s6982_s1 + $0x110] sm:$0xff]  ;;  %v3797_v21 = vpack.c.bf16 %v417_v19, %v416_v18  ;;  %v449_v22 = vld [vmem:[%s6982_s1 + $0x118] sm:$0xff]  ;;  %v435_v24 = vld [vmem:[%s6982_s1 + $0xa8] sm:$0xff] }
   0x7   :  { %3826 = vmatpush3.bf16.msra.mxu1 %v3825_v12  ;;  %3796 = vmatprep.subr.bf16.mxu0 %v3795_v16  ;;  %v3829_v25 = vpack.c.bf16 %v449_v22, %v448_v20  ;;  %v3799_v26 = vpack.c.bf16 %v435_v24, %v434_v23  ;;  %v466_v27 = vld [vmem:[%s6982_s1 + $0x1a0] sm:$0xff]  ;;  %v467_v28 = vld [vmem:[%s6982_s1 + $0x1a8] sm:$0xff]  ;;  %v436_v35 = vld [vmem:[%s6982_s1 + $0xb0] sm:$0xff] }
   0x8   :  { %3828 = vmatprep.subr.bf16.mxu1 %v3827_v17  ;;  %v418_v29 = vld [vmem:[%s6982_s1 + $0x20] sm:$0xff]  ;;  %v3831_v30 = vpack.c.bf16 %v467_v28, %v466_v27  ;;  %v419_v31 = vld [vmem:[%s6982_s1 + $0x28] sm:$0xff]  ;;  %v437_v36 = vld [vmem:[%s6982_s1 + $0xb8] sm:$0xff] }
   0x9   :  { %v450_v32 = vld [vmem:[%s6982_s1 + $0x120] sm:$0xff]  ;;  %v451_v33 = vld [vmem:[%s6982_s1 + $0x128] sm:$0xff]  ;;  %v3801_v34 = vpack.c.bf16 %v419_v31, %v418_v29  ;;  %v468_v37 = vld [vmem:[%s6982_s1 + $0x1b0] sm:$0xff]  ;;  %v3803_v39 = vpack.c.bf16 %v437_v36, %v436_v35 }
   0xa   :  { %3798 = vmatpush3.bf16.msra.mxu0 %v3797_v21  ;;  %v3833_v38 = vpack.c.bf16 %v451_v33, %v450_v32  ;;  %v469_v40 = vld [vmem:[%s6982_s1 + $0x1b8] sm:$0xff]  ;;  %v420_v41 = vld [vmem:[%s6982_s1 + $0x30] sm:$0xff]  ;;  %v438_v46 = vld [vmem:[%s6982_s1 + $0xc0] sm:$0xff] }
   0xb   :  { %3830 = vmatpush3.bf16.msra.mxu1 %v3829_v25  ;;  %3800 = vmatprep.subr.bf16.mxu0 %v3799_v26  ;;  %v421_v42 = vld [vmem:[%s6982_s1 + $0x38] sm:$0xff]  ;;  %v3835_v43 = vpack.c.bf16 %v469_v40, %v468_v37  ;;  %v452_v44 = vld [vmem:[%s6982_s1 + $0x130] sm:$0xff]  ;;  %v439_v47 = vld [vmem:[%s6982_s1 + $0xc8] sm:$0xff] }
   0xc   :  { %3832 = vmatprep.subr.bf16.mxu1 %v3831_v30  ;;  %v453_v45 = vld [vmem:[%s6982_s1 + $0x138] sm:$0xff]  ;;  %v470_v48 = vld [vmem:[%s6982_s1 + $0x1c0] sm:$0xff]  ;;  %v471_v49 = vld [vmem:[%s6982_s1 + $0x1c8] sm:$0xff]  ;;  %v3805_v50 = vpack.c.bf16 %v421_v42, %v420_v41  ;;  %v3807_v52 = vpack.c.bf16 %v439_v47, %v438_v46 }
   0xd   :  { %v3837_v51 = vpack.c.bf16 %v453_v45, %v452_v44  ;;  %v422_v53 = vld [vmem:[%s6982_s1 + $0x40] sm:$0xff]  ;;  %v423_v54 = vld [vmem:[%s6982_s1 + $0x48] sm:$0xff]  ;;  %v3839_v56 = vpack.c.bf16 %v471_v49, %v470_v48  ;;  %v440_v58 = vld [vmem:[%s6982_s1 + $0xd0] sm:$0xff] }
   0xe   :  { %3802 = vmatpush3.bf16.msra.mxu0 %v3801_v34  ;;  %v454_v55 = vld [vmem:[%s6982_s1 + $0x140] sm:$0xff]  ;;  %v455_v57 = vld [vmem:[%s6982_s1 + $0x148] sm:$0xff]  ;;  %v441_v59 = vld [vmem:[%s6982_s1 + $0xd8] sm:$0xff]  ;;  %v3809_v62 = vpack.c.bf16 %v423_v54, %v422_v53 }
   0xf   :  { %3834 = vmatpush3.bf16.msra.mxu1 %v3833_v38  ;;  %3804 = vmatprep.subr.bf16.mxu0 %v3803_v39  ;;  %v472_v60 = vld [vmem:[%s6982_s1 + $0x1d0] sm:$0xff]  ;;  %v473_v61 = vld [vmem:[%s6982_s1 + $0x1d8] sm:$0xff]  ;;  %v3841_v63 = vpack.c.bf16 %v455_v57, %v454_v55  ;;  %v3811_v0 = vpack.c.bf16 %v441_v59, %v440_v58  ;;  %v442_v6 = vld [vmem:[%s6982_s1 + $0xe0] sm:$0xff] }
  0x10   :  { %3836 = vmatprep.subr.bf16.mxu1 %v3835_v43  ;;  %v424_v1 = vld [vmem:[%s6982_s1 + $0x50] sm:$0xff]  ;;  %v425_v2 = vld [vmem:[%s6982_s1 + $0x58] sm:$0xff]  ;;  %v3843_v4 = vpack.c.bf16 %v473_v61, %v472_v60  ;;  %v443_v7 = vld [vmem:[%s6982_s1 + $0xe8] sm:$0xff] }
  0x11   :  { %v456_v3 = vld [vmem:[%s6982_s1 + $0x150] sm:$0xff]  ;;  %v457_v5 = vld [vmem:[%s6982_s1 + $0x158] sm:$0xff]  ;;  %v474_v8 = vld [vmem:[%s6982_s1 + $0x1e0] sm:$0xff]  ;;  %v3813_v10 = vpack.c.bf16 %v425_v2, %v424_v1  ;;  %v3815_v14 = vpack.c.bf16 %v443_v7, %v442_v6 }
  0x12   :  { %3806 = vmatpush3.bf16.msra.mxu0 %v3805_v50  ;;  %v475_v9 = vld [vmem:[%s6982_s1 + $0x1e8] sm:$0xff]  ;;  %v426_v11 = vld [vmem:[%s6982_s1 + $0x60] sm:$0xff]  ;;  %v3845_v13 = vpack.c.bf16 %v457_v5, %v456_v3  ;;  %v17_v17 = vld [vmem:[%s6983_s0 + $0x18] sm:$0xff] }
  0x13   :  { %3838 = vmatpush3.bf16.msra.mxu1 %v3837_v51  ;;  %3808 = vmatprep.subr.bf16.mxu0 %v3807_v52  ;;  %v427_v12 = vld [vmem:[%s6982_s1 + $0x68] sm:$0xff]  ;;  %v458_v15 = vld [vmem:[%s6982_s1 + $0x160] sm:$0xff]  ;;  %v3847_v18 = vpack.c.bf16 %v475_v9, %v474_v8  ;;  %v444_v20 = vld [vmem:[%s6982_s1 + $0xf0] sm:$0xff] }
  0x14   :  { %3840 = vmatprep.subr.bf16.mxu1 %v3839_v56  ;;  %v15_v16 = vld [vmem:[%s6983_s0 + $0x8] sm:$0xff]  ;;  %v445_v21 = vld [vmem:[%s6982_s1 + $0xf8] sm:$0xff]  ;;  %v476_v22 = vld [vmem:[%s6982_s1 + $0x1f0] sm:$0xff]  ;;  %1030 = vmatprep.mubr.f32.mxu1 %v17_v17  ;;  %v3817_v24 = vpack.c.bf16 %v427_v12, %v426_v11 }
  0x15   :  { %v459_v19 = vld [vmem:[%s6982_s1 + $0x168] sm:$0xff]  ;;  %885 = vmatprep.mubr.f32.mxu0 %v15_v16  ;;  %v477_v23 = vld [vmem:[%s6982_s1 + $0x1f8] sm:$0xff]  ;;  %v3819_v26 = vpack.c.bf16 %v445_v21, %v444_v20  ;;  %v428_v27 = vld [vmem:[%s6982_s1 + $0x70] sm:$0xff] }
  0x16   :  { %3810 = vmatpush3.bf16.msra.mxu0 %v3809_v62  ;;  %v3849_v25 = vpack.c.bf16 %v459_v19, %v458_v15  ;;  %v429_v28 = vld [vmem:[%s6982_s1 + $0x78] sm:$0xff]  ;;  %v460_v29 = vld [vmem:[%s6982_s1 + $0x170] sm:$0xff]  ;;  %v3851_v30 = vpack.c.bf16 %v477_v23, %v476_v22  ;;  %v494_v32 = vld [vmem:[%s6982_s1 + $0x280] sm:$0xff] }
  0x17   :  { %3842 = vmatpush3.bf16.msra.mxu1 %v3841_v63  ;;  %3812 = vmatprep.subr.bf16.mxu0 %v3811_v0  ;;  %v461_v31 = vld [vmem:[%s6982_s1 + $0x178] sm:$0xff]  ;;  %v495_v33 = vld [vmem:[%s6982_s1 + $0x288] sm:$0xff]  ;;  %v526_v34 = vld [vmem:[%s6982_s1 + $0x380] sm:$0xff]  ;;  %v3821_v36 = vpack.c.bf16 %v429_v28, %v428_v27 }
  0x18   :  { %3844 = vmatprep.subr.bf16.mxu1 %v3843_v4  ;;  %v527_v35 = vld [vmem:[%s6982_s1 + $0x388] sm:$0xff]  ;;  %v3853_v37 = vpack.c.bf16 %v461_v31, %v460_v29  ;;  %v3855_v38 = vpack.c.bf16 %v495_v33, %v494_v32  ;;  %v478_v39 = vld [vmem:[%s6982_s1 + $0x200] sm:$0xff]  ;;  %v496_v44 = vld [vmem:[%s6982_s1 + $0x290] sm:$0xff] }
  0x19   :  { %v479_v40 = vld [vmem:[%s6982_s1 + $0x208] sm:$0xff]  ;;  %v3887_v41 = vpack.c.bf16 %v527_v35, %v526_v34  ;;  %v510_v42 = vld [vmem:[%s6982_s1 + $0x300] sm:$0xff]  ;;  %v497_v45 = vld [vmem:[%s6982_s1 + $0x298] sm:$0xff] }
  0x1a   :  { %3814 = vmatpush3.bf16.msra.mxu0 %v3813_v10  ;;  %v511_v43 = vld [vmem:[%s6982_s1 + $0x308] sm:$0xff]  ;;  %v14_v46 = vld [vmem:[%s6983_s0] sm:$0xff]  ;;  %v3857_v47 = vpack.c.bf16 %v479_v40, %v478_v39  ;;  %v528_v48 = vld [vmem:[%s6982_s1 + $0x390] sm:$0xff]  ;;  %v3859_v54 = vpack.c.bf16 %v497_v45, %v496_v44 }
  0x1b   :  { %3846 = vmatpush3.bf16.msra.mxu1 %v3845_v13  ;;  %3816 = vmatprep.subr.bf16.mxu0 %v3815_v14  ;;  %v529_v49 = vld [vmem:[%s6982_s1 + $0x398] sm:$0xff]  ;;  %v16_v50 = vld [vmem:[%s6983_s0 + $0x10] sm:$0xff]  ;;  %v3889_v51 = vpack.c.bf16 %v511_v43, %v510_v42  ;;  %v42_v53 = vld [vmem:[%s6983_s0 + $0xe0] sm:$0xff] }
  0x1c   :  { %3848 = vmatprep.subr.bf16.mxu1 %v3847_v18  ;;  %v40_v52 = vld [vmem:[%s6983_s0 + $0xd0] sm:$0xff]  ;;  %v481_v56 = vld [vmem:[%s6982_s1 + $0x218] sm:$0xff]  ;;  %v3891_v58 = vpack.c.bf16 %v529_v49, %v528_v48  ;;  %v498_v60 = vld [vmem:[%s6982_s1 + $0x2a0] sm:$0xff] }
  0x1d   :  { %v480_v55 = vld [vmem:[%s6982_s1 + $0x210] sm:$0xff]  ;;  %v513_v59 = vld [vmem:[%s6982_s1 + $0x318] sm:$0xff]  ;;  %v499_v61 = vld [vmem:[%s6982_s1 + $0x2a8] sm:$0xff] }
  0x1e   :  { %3818 = vmatpush3.bf16.msra.mxu0 %v3817_v24  ;;  %v512_v57 = vld [vmem:[%s6982_s1 + $0x310] sm:$0xff]  ;;  %v39_v62 = vld [vmem:[%s6983_s0 + $0xc8] sm:$0xff]  ;;  %v530_v63 = vld [vmem:[%s6982_s1 + $0x3a0] sm:$0xff]  ;;  %v3861_v4 = vpack.c.bf16 %v481_v56, %v480_v55  ;;  %v3863_v6 = vpack.c.bf16 %v499_v61, %v498_v60 }
  0x1f   :  { %3850 = vmatpush3.bf16.msra.mxu1 %v3849_v25  ;;  %3820 = vmatprep.subr.bf16.mxu0 %v3819_v26  ;;  %v531_v0 = vld [vmem:[%s6982_s1 + $0x3a8] sm:$0xff]  ;;  %v41_v1 = vld [vmem:[%s6983_s0 + $0xd8] sm:$0xff]  ;;  %v3893_v5 = vpack.c.bf16 %v513_v59, %v512_v57  ;;  %v482_v7 = vld [vmem:[%s6982_s1 + $0x220] sm:$0xff] }
  0x20   :  { %3852 = vmatprep.subr.bf16.mxu1 %v3851_v30  ;;  %v65_v2 = vld [vmem:[%s6983_s0 + $0x198] sm:$0xff]  ;;  %v67_v3 = vld [vmem:[%s6983_s0 + $0x1a8] sm:$0xff]  ;;  %v514_v9 = vld [vmem:[%s6982_s1 + $0x320] sm:$0xff]  ;;  %v3895_v10 = vpack.c.bf16 %v531_v0, %v530_v63 }
  0x21   :  { %v483_v8 = vld [vmem:[%s6982_s1 + $0x228] sm:$0xff]  ;;  %v500_v12 = vld [vmem:[%s6982_s1 + $0x2b0] sm:$0xff]  ;;  %v501_v13 = vld [vmem:[%s6982_s1 + $0x2b8] sm:$0xff] }
  0x22   :  { %3822 = vmatpush3.bf16.msra.mxu0 %v3821_v36  ;;  %v515_v11 = vld [vmem:[%s6982_s1 + $0x328] sm:$0xff]  ;;  %v64_v14 = vld [vmem:[%s6983_s0 + $0x190] sm:$0xff]  ;;  %v533_v16 = vld [vmem:[%s6982_s1 + $0x3b8] sm:$0xff]  ;;  %v3865_v19 = vpack.c.bf16 %v483_v8, %v482_v7  ;;  %v3867_v22 = vpack.c.bf16 %v501_v13, %v500_v12 }
  0x23   :  { %3854 = vmatpush3.bf16.msra.mxu1 %v3853_v37  ;;  %3856 = vmatprep.subr.bf16.mxu0 %v3855_v38  ;;  %v532_v15 = vld [vmem:[%s6982_s1 + $0x3b0] sm:$0xff]  ;;  %v66_v17 = vld [vmem:[%s6983_s0 + $0x1a0] sm:$0xff]  ;;  %v3897_v21 = vpack.c.bf16 %v515_v11, %v514_v9  ;;  %v485_v24 = vld [vmem:[%s6982_s1 + $0x238] sm:$0xff] }
  0x24   :  { %3888 = vmatprep.subr.bf16.mxu1 %v3887_v41  ;;  %v90_v18 = vld [vmem:[%s6983_s0 + $0x260] sm:$0xff]  ;;  %v92_v20 = vld [vmem:[%s6983_s0 + $0x270] sm:$0xff]  ;;  %v89_v25 = vld [vmem:[%s6983_s0 + $0x258] sm:$0xff]  ;;  %v3899_v26 = vpack.c.bf16 %v533_v16, %v532_v15 }
  0x25   :  { %886 = vmatmul.mubr.f32.vlgmr.msra.gmra.mrb[0].mxu0 %v14_v46  ;;  %v484_v23 = vld [vmem:[%s6982_s1 + $0x230] sm:$0xff]  ;;  %v517_v28 = vld [vmem:[%s6982_s1 + $0x338] sm:$0xff]  ;;  %v502_v29 = vld [vmem:[%s6982_s1 + $0x2c0] sm:$0xff] }
  0x26   :  { %1031 = vmatmul.mubr.f32.vlgmr.msra.gmra.mrb[0].mxu1 %v16_v50  ;;  %3858 = vmatpush3.bf16.msra.mxu0 %v3857_v47  ;;  %v516_v27 = vld [vmem:[%s6982_s1 + $0x330] sm:$0xff]  ;;  %v503_v30 = vld [vmem:[%s6982_s1 + $0x2c8] sm:$0xff]  ;;  %v534_v31 = vld [vmem:[%s6982_s1 + $0x3c0] sm:$0xff]  ;;  %v3869_v34 = vpack.c.bf16 %v485_v24, %v484_v23 }
  0x27   :  { %3890 = vmatpush3.bf16.msra.mxu1 %v3889_v51  ;;  %890 = vmatprep.mubr.f32.mxu0 %v40_v52  ;;  %v91_v32 = vld [vmem:[%s6983_s0 + $0x268] sm:$0xff]  ;;  %v117_v36 = vld [vmem:[%s6983_s0 + $0x338] sm:$0xff]  ;;  %v3901_v37 = vpack.c.bf16 %v517_v28, %v516_v27  ;;  %v3871_v38 = vpack.c.bf16 %v503_v30, %v502_v29  ;;  %v486_v39 = vld [vmem:[%s6982_s1 + $0x240] sm:$0xff] }
  0x28   :  { %1035 = vmatprep.mubr.f32.mxu1 %v42_v53  ;;  %3860 = vmatprep.subr.bf16.mxu0 %v3859_v54  ;;  %v115_v33 = vld [vmem:[%s6983_s0 + $0x328] sm:$0xff]  ;;  %v518_v42 = vld [vmem:[%s6982_s1 + $0x340] sm:$0xff]  ;;  %v116_v45 = vld [vmem:[%s6983_s0 + $0x330] sm:$0xff] }
  0x29   :  { %891 = vmatmul.mubr.f32.gmra.mrb[2].mxu0 %v39_v62  ;;  %3892 = vmatprep.subr.bf16.mxu1 %v3891_v58  ;;  %v535_v35 = vld [vmem:[%s6982_s1 + $0x3c8] sm:$0xff]  ;;  %v114_v44 = vld [vmem:[%s6983_s0 + $0x320] sm:$0xff]  ;;  %v140_v46 = vld [vmem:[%s6983_s0 + $0x3f0] sm:$0xff] }
  0x2a   :  { %1036 = vmatmul.mubr.f32.gmra.mrb[2].mxu1 %v41_v1  ;;  %895 = vmatprep.mubr.f32.mxu0 %v65_v2  ;;  %v487_v40 = vld [vmem:[%s6982_s1 + $0x248] sm:$0xff]  ;;  %v3903_v41 = vpack.c.bf16 %v535_v35, %v534_v31  ;;  %v142_v47 = vld [vmem:[%s6983_s0 + $0x400] sm:$0xff]  ;;  %v504_v49 = vld [vmem:[%s6982_s1 + $0x2d0] sm:$0xff] }
  0x2b   :  { %1040 = vmatprep.mubr.f32.mxu1 %v67_v3  ;;  %3862 = vmatpush3.bf16.msra.mxu0 %v3861_v4  ;;  %v519_v43 = vld [vmem:[%s6982_s1 + $0x348] sm:$0xff]  ;;  %v3873_v48 = vpack.c.bf16 %v487_v40, %v486_v39  ;;  %v505_v50 = vld [vmem:[%s6982_s1 + $0x2d8] sm:$0xff]  ;;  %v536_v53 = vld [vmem:[%s6982_s1 + $0x3d0] sm:$0xff] }
  0x2c   :  { %3894 = vmatpush3.bf16.msra.mxu1 %v3893_v5  ;;  %3864 = vmatprep.subr.bf16.mxu0 %v3863_v6  ;;  %v3905_v51 = vpack.c.bf16 %v519_v43, %v518_v42  ;;  %v3875_v52 = vpack.c.bf16 %v505_v50, %v504_v49  ;;  %v537_v54 = vld [vmem:[%s6982_s1 + $0x3d8] sm:$0xff]  ;;  %v488_v55 = vld [vmem:[%s6982_s1 + $0x250] sm:$0xff]  ;;  %v139_v60 = vld [vmem:[%s6983_s0 + $0x3e8] sm:$0xff] }
  0x2d   :  { %896 = vmatmul.mubr.f32.gmra.mrb[4].mxu0 %v64_v14  ;;  %3896 = vmatprep.subr.bf16.mxu1 %v3895_v10  ;;  %v3907_v56 = vpack.c.bf16 %v537_v54, %v536_v53  ;;  %v489_v57 = vld [vmem:[%s6982_s1 + $0x258] sm:$0xff]  ;;  %v520_v58 = vld [vmem:[%s6982_s1 + $0x350] sm:$0xff]  ;;  %v167_v0 = vld [vmem:[%s6983_s0 + $0x4c8] sm:$0xff] }
  0x2e   :  { %1041 = vmatmul.mubr.f32.gmra.mrb[4].mxu1 %v66_v17  ;;  %900 = vmatprep.mubr.f32.mxu0 %v90_v18  ;;  %v521_v59 = vld [vmem:[%s6982_s1 + $0x358] sm:$0xff]  ;;  %v3877_v63 = vpack.c.bf16 %v489_v57, %v488_v55  ;;  %v164_v1 = vld [vmem:[%s6983_s0 + $0x4b0] sm:$0xff]  ;;  %v506_v3 = vld [vmem:[%s6982_s1 + $0x2e0] sm:$0xff] }
  0x2f   :  { %1045 = vmatprep.mubr.f32.mxu1 %v92_v20  ;;  %3866 = vmatpush3.bf16.msra.mxu0 %v3865_v19  ;;  %v141_v61 = vld [vmem:[%s6983_s0 + $0x3f8] sm:$0xff]  ;;  %v3909_v2 = vpack.c.bf16 %v521_v59, %v520_v58  ;;  %v507_v4 = vld [vmem:[%s6982_s1 + $0x2e8] sm:$0xff]  ;;  %v538_v5 = vld [vmem:[%s6982_s1 + $0x3e0] sm:$0xff] }
  0x30   :  { %3898 = vmatpush3.bf16.msra.mxu1 %v3897_v21  ;;  %3868 = vmatprep.subr.bf16.mxu0 %v3867_v22  ;;  %v165_v62 = vld [vmem:[%s6983_s0 + $0x4b8] sm:$0xff]  ;;  %v539_v6 = vld [vmem:[%s6982_s1 + $0x3e8] sm:$0xff]  ;;  %v3879_v7 = vpack.c.bf16 %v507_v4, %v506_v3  ;;  %v490_v9 = vld [vmem:[%s6982_s1 + $0x260] sm:$0xff] }
  0x31   :  { %901 = vmatmul.mubr.f32.gmra.mrb[6].mxu0 %v89_v25  ;;  %3900 = vmatprep.subr.bf16.mxu1 %v3899_v26  ;;  %v3911_v8 = vpack.c.bf16 %v539_v6, %v538_v5  ;;  %v491_v10 = vld [vmem:[%s6982_s1 + $0x268] sm:$0xff]  ;;  %v522_v11 = vld [vmem:[%s6982_s1 + $0x360] sm:$0xff]  ;;  %v192_v16 = vld [vmem:[%s6983_s0 + $0x590] sm:$0xff] }
  0x32   :  { %1046 = vmatmul.mubr.f32.gmra.mrb[6].mxu1 %v91_v32  ;;  %905 = vmatprep.mubr.f32.mxu0 %v115_v33  ;;  %v166_v12 = vld [vmem:[%s6983_s0 + $0x4c0] sm:$0xff]  ;;  %v3881_v14 = vpack.c.bf16 %v491_v10, %v490_v9  ;;  %v523_v15 = vld [vmem:[%s6982_s1 + $0x368] sm:$0xff]  ;;  %v189_v18 = vld [vmem:[%s6983_s0 + $0x578] sm:$0xff] }
  0x33   :  { %1050 = vmatprep.mubr.f32.mxu1 %v117_v36  ;;  %3870 = vmatpush3.bf16.msra.mxu0 %v3869_v34  ;;  %v190_v13 = vld [vmem:[%s6983_s0 + $0x580] sm:$0xff]  ;;  %v3913_v17 = vpack.c.bf16 %v523_v15, %v522_v11  ;;  %v191_v19 = vld [vmem:[%s6983_s0 + $0x588] sm:$0xff]  ;;  %v508_v21 = vld [vmem:[%s6982_s1 + $0x2f0] sm:$0xff] }
  0x34   :  { %3902 = vmatpush3.bf16.msra.mxu1 %v3901_v37  ;;  %3872 = vmatprep.subr.bf16.mxu0 %v3871_v38  ;;  %v215_v20 = vld [vmem:[%s6983_s0 + $0x648] sm:$0xff]  ;;  %v509_v22 = vld [vmem:[%s6982_s1 + $0x2f8] sm:$0xff]  ;;  %v540_v23 = vld [vmem:[%s6982_s1 + $0x3f0] sm:$0xff] }
  0x35   :  { %906 = vmatmul.mubr.f32.gmra.mrb[8].mxu0 %v114_v44  ;;  %3904 = vmatprep.subr.bf16.mxu1 %v3903_v41  ;;  %v3883_v24 = vpack.c.bf16 %v509_v22, %v508_v21  ;;  %v541_v25 = vld [vmem:[%s6982_s1 + $0x3f8] sm:$0xff]  ;;  %v492_v26 = vld [vmem:[%s6982_s1 + $0x270] sm:$0xff]  ;;  %v214_v34 = vld [vmem:[%s6983_s0 + $0x640] sm:$0xff] }
  0x36   :  { %1051 = vmatmul.mubr.f32.gmra.mrb[8].mxu1 %v116_v45  ;;  %910 = vmatprep.mubr.f32.mxu0 %v140_v46  ;;  %v493_v27 = vld [vmem:[%s6982_s1 + $0x278] sm:$0xff]  ;;  %v3915_v29 = vpack.c.bf16 %v541_v25, %v540_v23  ;;  %v524_v31 = vld [vmem:[%s6982_s1 + $0x370] sm:$0xff]  ;;  %v558_v37 = vld [vmem:[%s6982_s1 + $0x480] sm:$0xff] }
  0x37   :  { %1055 = vmatprep.mubr.f32.mxu1 %v142_v47  ;;  %3874 = vmatpush3.bf16.msra.mxu0 %v3873_v48  ;;  %v217_v28 = vld [vmem:[%s6983_s0 + $0x658] sm:$0xff]  ;;  %v3885_v30 = vpack.c.bf16 %v493_v27, %v492_v26  ;;  %v216_v35 = vld [vmem:[%s6983_s0 + $0x650] sm:$0xff]  ;;  %v559_v38 = vld [vmem:[%s6982_s1 + $0x488] sm:$0xff] }
  0x38   :  { %3906 = vmatpush3.bf16.msra.mxu1 %v3905_v51  ;;  %3876 = vmatprep.subr.bf16.mxu0 %v3875_v52  ;;  %v525_v32 = vld [vmem:[%s6982_s1 + $0x378] sm:$0xff]  ;;  %v240_v36 = vld [vmem:[%s6983_s0 + $0x710] sm:$0xff]  ;;  %v242_v39 = vld [vmem:[%s6983_s0 + $0x720] sm:$0xff]  ;;  %v3919_v40 = vpack.c.bf16 %v559_v38, %v558_v37 }
  0x39   :  { %911 = vmatmul.mubr.f32.gmra.mrb[10].mxu0 %v139_v60  ;;  %3908 = vmatprep.subr.bf16.mxu1 %v3907_v56  ;;  %v3917_v33 = vpack.c.bf16 %v525_v32, %v524_v31  ;;  %v590_v41 = vld [vmem:[%s6982_s1 + $0x580] sm:$0xff]  ;;  %v591_v42 = vld [vmem:[%s6982_s1 + $0x588] sm:$0xff]  ;;  %v241_v45 = vld [vmem:[%s6983_s0 + $0x718] sm:$0xff] }
  0x3a   :  { %1056 = vmatmul.mubr.f32.gmra.mrb[10].mxu1 %v141_v61  ;;  %915 = vmatprep.mubr.f32.mxu0 %v165_v62  ;;  %v3951_v43 = vpack.c.bf16 %v591_v42, %v590_v41  ;;  %v239_v44 = vld [vmem:[%s6983_s0 + $0x708] sm:$0xff]  ;;  %v265_v46 = vld [vmem:[%s6983_s0 + $0x7d8] sm:$0xff]  ;;  %v264_v48 = vld [vmem:[%s6983_s0 + $0x7d0] sm:$0xff] }
  0x3b   :  { %1060 = vmatprep.mubr.f32.mxu1 %v167_v0  ;;  %3878 = vmatpush3.bf16.msra.mxu0 %v3877_v63  ;;  %v267_v47 = vld [vmem:[%s6983_s0 + $0x7e8] sm:$0xff]  ;;  %v266_v49 = vld [vmem:[%s6983_s0 + $0x7e0] sm:$0xff]  ;;  %v292_v51 = vld [vmem:[%s6983_s0 + $0x8b0] sm:$0xff] }
  0x3c   :  { %3910 = vmatpush3.bf16.msra.mxu1 %v3909_v2  ;;  %3880 = vmatprep.subr.bf16.mxu0 %v3879_v7  ;;  %v290_v50 = vld [vmem:[%s6983_s0 + $0x8a0] sm:$0xff]  ;;  %v289_v52 = vld [vmem:[%s6983_s0 + $0x898] sm:$0xff]  ;;  %v291_v53 = vld [vmem:[%s6983_s0 + $0x8a8] sm:$0xff] }
  0x3d   :  { %916 = vmatmul.mubr.f32.gmra.mrb[12].mxu0 %v164_v1  ;;  %3912 = vmatprep.subr.bf16.mxu1 %v3911_v8  ;;  %v315_v54 = vld [vmem:[%s6983_s0 + $0x968] sm:$0xff]  ;;  %v317_v55 = vld [vmem:[%s6983_s0 + $0x978] sm:$0xff]  ;;  %v314_v56 = vld [vmem:[%s6983_s0 + $0x960] sm:$0xff] }
  0x3e   :  { %1061 = vmatmul.mubr.f32.gmra.mrb[12].mxu1 %v166_v12  ;;  %920 = vmatprep.mubr.f32.mxu0 %v190_v13  ;;  %v316_v57 = vld [vmem:[%s6983_s0 + $0x970] sm:$0xff]  ;;  %v342_v59 = vld [vmem:[%s6983_s0 + $0xa40] sm:$0xff]  ;;  %v339_v60 = vld [vmem:[%s6983_s0 + $0xa28] sm:$0xff] }
  0x3f   :  { %1065 = vmatprep.mubr.f32.mxu1 %v192_v16  ;;  %3882 = vmatpush3.bf16.msra.mxu0 %v3881_v14  ;;  %v340_v58 = vld [vmem:[%s6983_s0 + $0xa30] sm:$0xff]  ;;  %v341_v61 = vld [vmem:[%s6983_s0 + $0xa38] sm:$0xff]  ;;  %v367_v63 = vld [vmem:[%s6983_s0 + $0xb08] sm:$0xff] }
  0x40   :  { %3914 = vmatpush3.bf16.msra.mxu1 %v3913_v17  ;;  %3884 = vmatprep.subr.bf16.mxu0 %v3883_v24  ;;  %v365_v62 = vld [vmem:[%s6983_s0 + $0xaf8] sm:$0xff]  ;;  %v364_v0 = vld [vmem:[%s6983_s0 + $0xaf0] sm:$0xff]  ;;  %v366_v1 = vld [vmem:[%s6983_s0 + $0xb00] sm:$0xff] }
  0x41   :  { %921 = vmatmul.mubr.f32.gmra.mrb[14].mxu0 %v189_v18  ;;  %3916 = vmatprep.subr.bf16.mxu1 %v3915_v29  ;;  %v390_v2 = vld [vmem:[%s6983_s0 + $0xbc0] sm:$0xff]  ;;  %v392_v3 = vld [vmem:[%s6983_s0 + $0xbd0] sm:$0xff]  ;;  %v389_v4 = vld [vmem:[%s6983_s0 + $0xbb8] sm:$0xff] }
  0x42   :  { %1066 = vmatmul.mubr.f32.gmra.mrb[14].mxu1 %v191_v19  ;;  %925 = vmatprep.mubr.f32.mxu0 %v215_v20  ;;  %v391_v5 = vld [vmem:[%s6983_s0 + $0xbc8] sm:$0xff]  ;;  %v542_v7 = vld [vmem:[%s6982_s1 + $0x400] sm:$0xff]  ;;  %v21_v9 = vld [vmem:[%s6983_s0 + $0x38] sm:$0xff] }
  0x43   :  { %1070 = vmatprep.mubr.f32.mxu1 %v217_v28  ;;  %3886 = vmatpush3.bf16.msra.mxu0 %v3885_v30  ;;  %v19_v6 = vld [vmem:[%s6983_s0 + $0x28] sm:$0xff]  ;;  %v574_v10 = vld [vmem:[%s6982_s1 + $0x500] sm:$0xff]  ;;  %v560_v12 = vld [vmem:[%s6982_s1 + $0x490] sm:$0xff] }
  0x44   :  { %3918 = vmatpush3.bf16.msra.mxu1 %v3917_v33  ;;  %3920 = vmatprep.subr.bf16.mxu0 %v3919_v40  ;;  %v543_v8 = vld [vmem:[%s6982_s1 + $0x408] sm:$0xff]  ;;  %v561_v13 = vld [vmem:[%s6982_s1 + $0x498] sm:$0xff]  ;;  %v18_v14 = vld [vmem:[%s6983_s0 + $0x20] sm:$0xff] }
  0x45   :  { %926 = vmatmul.mubr.f32.gmra.mrb[16].mxu0 %v214_v34  ;;  %3952 = vmatprep.subr.bf16.mxu1 %v3951_v43  ;;  %v575_v11 = vld [vmem:[%s6982_s1 + $0x508] sm:$0xff]  ;;  %v3921_v15 = vpack.c.bf16 %v543_v8, %v542_v7  ;;  %v592_v16 = vld [vmem:[%s6982_s1 + $0x590] sm:$0xff]  ;;  %v593_v17 = vld [vmem:[%s6982_s1 + $0x598] sm:$0xff]  ;;  %v3923_v22 = vpack.c.bf16 %v561_v13, %v560_v12 }
  0x46   :  { %1071 = vmatmul.mubr.f32.gmra.mrb[16].mxu1 %v216_v35  ;;  %930 = vmatprep.mubr.f32.mxu0 %v240_v36  ;;  %v20_v18 = vld [vmem:[%s6983_s0 + $0x30] sm:$0xff]  ;;  %v3953_v19 = vpack.c.bf16 %v575_v11, %v574_v10  ;;  %v46_v21 = vld [vmem:[%s6983_s0 + $0x100] sm:$0xff]  ;;  %v545_v24 = vld [vmem:[%s6982_s1 + $0x418] sm:$0xff]  ;;  %v3955_v26 = vpack.c.bf16 %v593_v17, %v592_v16 }
  0x47   :  { %1075 = vmatprep.mubr.f32.mxu1 %v242_v39  ;;  %v44_v20 = vld [vmem:[%s6983_s0 + $0xf0] sm:$0xff]  ;;  %v577_v27 = vld [vmem:[%s6982_s1 + $0x518] sm:$0xff]  ;;  %v562_v28 = vld [vmem:[%s6982_s1 + $0x4a0] sm:$0xff] }
  0x48   :  { %v544_v23 = vld [vmem:[%s6982_s1 + $0x410] sm:$0xff]  ;;  %v563_v29 = vld [vmem:[%s6982_s1 + $0x4a8] sm:$0xff]  ;;  %v594_v31 = vld [vmem:[%s6982_s1 + $0x5a0] sm:$0xff] }
  0x49   :  { %931 = vmatmul.mubr.f32.gmra.mrb[18].mxu0 %v239_v44  ;;  %v576_v25 = vld [vmem:[%s6982_s1 + $0x510] sm:$0xff]  ;;  %v43_v30 = vld [vmem:[%s6983_s0 + $0xe8] sm:$0xff]  ;;  %v45_v33 = vld [vmem:[%s6983_s0 + $0xf8] sm:$0xff]  ;;  %v3925_v36 = vpack.c.bf16 %v545_v24, %v544_v23  ;;  %v3927_v38 = vpack.c.bf16 %v563_v29, %v562_v28 }
  0x4a   :  { %1076 = vmatmul.mubr.f32.gmra.mrb[18].mxu1 %v241_v45  ;;  %935 = vmatprep.mubr.f32.mxu0 %v265_v46  ;;  %v595_v32 = vld [vmem:[%s6982_s1 + $0x5a8] sm:$0xff]  ;;  %v69_v34 = vld [vmem:[%s6983_s0 + $0x1b8] sm:$0xff]  ;;  %v3957_v37 = vpack.c.bf16 %v577_v27, %v576_v25  ;;  %v546_v39 = vld [vmem:[%s6982_s1 + $0x420] sm:$0xff] }
  0x4b   :  { %1080 = vmatprep.mubr.f32.mxu1 %v267_v47  ;;  %v71_v35 = vld [vmem:[%s6983_s0 + $0x1c8] sm:$0xff]  ;;  %v578_v41 = vld [vmem:[%s6982_s1 + $0x520] sm:$0xff]  ;;  %v3959_v42 = vpack.c.bf16 %v595_v32, %v594_v31  ;;  %v564_v44 = vld [vmem:[%s6982_s1 + $0x4b0] sm:$0xff] }
  0x4c   :  { %v547_v40 = vld [vmem:[%s6982_s1 + $0x428] sm:$0xff]  ;;  %v565_v45 = vld [vmem:[%s6982_s1 + $0x4b8] sm:$0xff]  ;;  %v68_v46 = vld [vmem:[%s6983_s0 + $0x1b0] sm:$0xff] }
  0x4d   :  { %936 = vmatmul.mubr.f32.gmra.mrb[20].mxu0 %v264_v48  ;;  %v579_v43 = vld [vmem:[%s6982_s1 + $0x528] sm:$0xff]  ;;  %v596_v47 = vld [vmem:[%s6982_s1 + $0x5b0] sm:$0xff]  ;;  %v597_v48 = vld [vmem:[%s6982_s1 + $0x5b8] sm:$0xff] }
  0x4e   :  { %1081 = vmatmul.mubr.f32.gmra.mrb[20].mxu1 %v266_v49  ;;  %940 = vmatprep.mubr.f32.mxu0 %v290_v50  ;;  %v70_v49 = vld [vmem:[%s6983_s0 + $0x1c0] sm:$0xff]  ;;  %v551_v8 = vld [vmem:[%s6982_s1 + $0x448] sm:$0xff]  ;;  %v568_v12 = vld [vmem:[%s6982_s1 + $0x4d0] sm:$0xff] }
  0x4f   :  { %1085 = vmatprep.mubr.f32.mxu1 %v292_v51  ;;  %v94_v50 = vld [vmem:[%s6983_s0 + $0x280] sm:$0xff]  ;;  %v96_v51 = vld [vmem:[%s6983_s0 + $0x290] sm:$0xff]  ;;  %v583_v11 = vld [vmem:[%s6982_s1 + $0x548] sm:$0xff] }
  0x50   :  { %v550_v7 = vld [vmem:[%s6982_s1 + $0x440] sm:$0xff]  ;;  %v569_v13 = vld [vmem:[%s6982_s1 + $0x4d8] sm:$0xff]  ;;  %v120_v17 = vld [vmem:[%s6983_s0 + $0x350] sm:$0xff] }
  0x51   :  { %941 = vmatmul.mubr.f32.gmra.mrb[22].mxu0 %v289_v52  ;;  %v3929_v52 = vpack.c.bf16 %v547_v40, %v546_v39  ;;  %v601_v16 = vld [vmem:[%s6982_s1 + $0x5d8] sm:$0xff]  ;;  %v552_v23 = vld [vmem:[%s6982_s1 + $0x450] sm:$0xff]  ;;  %v570_v28 = vld [vmem:[%s6982_s1 + $0x4e0] sm:$0xff] }
  0x52   :  { %1086 = vmatmul.mubr.f32.gmra.mrb[22].mxu1 %v291_v53  ;;  %945 = vmatprep.mubr.f32.mxu0 %v315_v54  ;;  %v3961_v53 = vpack.c.bf16 %v579_v43, %v578_v41  ;;  %v3931_v54 = vpack.c.bf16 %v565_v45, %v564_v44  ;;  %v553_v24 = vld [vmem:[%s6982_s1 + $0x458] sm:$0xff]  ;;  %v584_v25 = vld [vmem:[%s6982_s1 + $0x550] sm:$0xff]  ;;  %v571_v29 = vld [vmem:[%s6982_s1 + $0x4e8] sm:$0xff] }
  0x53   :  { %1090 = vmatprep.mubr.f32.mxu1 %v317_v55  ;;  %v548_v55 = vld [vmem:[%s6982_s1 + $0x430] sm:$0xff]  ;;  %v585_v27 = vld [vmem:[%s6982_s1 + $0x558] sm:$0xff]  ;;  %v602_v31 = vld [vmem:[%s6982_s1 + $0x5e0] sm:$0xff] }
  0x54   :  { %v603_v32 = vld [vmem:[%s6982_s1 + $0x5e8] sm:$0xff]  ;;  %v554_v39 = vld [vmem:[%s6982_s1 + $0x460] sm:$0xff]  ;;  %v572_v44 = vld [vmem:[%s6982_s1 + $0x4f0] sm:$0xff] }
  0x55   :  { %946 = vmatmul.mubr.f32.gmra.mrb[24].mxu0 %v314_v56  ;;  %v549_v56 = vld [vmem:[%s6982_s1 + $0x438] sm:$0xff]  ;;  %v555_v40 = vld [vmem:[%s6982_s1 + $0x468] sm:$0xff]  ;;  %v586_v41 = vld [vmem:[%s6982_s1 + $0x560] sm:$0xff] }
  0x56   :  { %1091 = vmatmul.mubr.f32.gmra.mrb[24].mxu1 %v316_v57  ;;  %950 = vmatprep.mubr.f32.mxu0 %v340_v58  ;;  %v580_v57 = vld [vmem:[%s6982_s1 + $0x530] sm:$0xff]  ;;  %v3963_v58 = vpack.c.bf16 %v597_v48, %v596_v47  ;;  %v587_v43 = vld [vmem:[%s6982_s1 + $0x568] sm:$0xff]  ;;  %v573_v45 = vld [vmem:[%s6982_s1 + $0x4f8] sm:$0xff] }
  0x57   :  { %1095 = vmatprep.mubr.f32.mxu1 %v342_v59  ;;  %v581_v59 = vld [vmem:[%s6982_s1 + $0x538] sm:$0xff]  ;;  %v604_v47 = vld [vmem:[%s6982_s1 + $0x5f0] sm:$0xff] }
  0x58   :  { %v605_v48 = vld [vmem:[%s6982_s1 + $0x5f8] sm:$0xff] }
  0x59   :  { %951 = vmatmul.mubr.f32.gmra.mrb[26].mxu0 %v339_v60  ;;  %v566_v60 = vld [vmem:[%s6982_s1 + $0x4c0] sm:$0xff] }
  0x5a   :  { %1096 = vmatmul.mubr.f32.gmra.mrb[26].mxu1 %v341_v61  ;;  %955 = vmatprep.mubr.f32.mxu0 %v365_v62  ;;  %v567_v61 = vld [vmem:[%s6982_s1 + $0x4c8] sm:$0xff]  ;;  %v93_v62 = vld [vmem:[%s6983_s0 + $0x278] sm:$0xff] }
  0x5b   :  { %1100 = vmatprep.mubr.f32.mxu1 %v367_v63  ;;  %v598_v63 = vld [vmem:[%s6982_s1 + $0x5c0] sm:$0xff] }
  0x5d   :  { %956 = vmatmul.mubr.f32.gmra.mrb[28].mxu0 %v364_v0  ;;  %v599_v0 = vld [vmem:[%s6982_s1 + $0x5c8] sm:$0xff] }
  0x5e   :  { %1101 = vmatmul.mubr.f32.gmra.mrb[28].mxu1 %v366_v1  ;;  %960 = vmatprep.mubr.f32.mxu0 %v390_v2  ;;  %v95_v1 = vld [vmem:[%s6983_s0 + $0x288] sm:$0xff]  ;;  %v3967_v10 = vpack.c.bf16 %v599_v0, %v598_v63  ;;  %v654_v63 = vld [vmem:[%s6982_s1 + $0x780] sm:$0xff] }
  0x5f   :  { %1105 = vmatprep.mubr.f32.mxu1 %v392_v3  ;;  %v119_v2 = vld [vmem:[%s6983_s0 + $0x348] sm:$0xff]  ;;  %v121_v3 = vld [vmem:[%s6983_s0 + $0x358] sm:$0xff] }
  0x60   :  { %v655_v0 = vld [vmem:[%s6982_s1 + $0x788] sm:$0xff] }
  0x61   :  { %961 = vmatmul.mubr.f32.gmra.mrb[30].mxu0 %v389_v4  ;;  %v3933_v4 = vpack.c.bf16 %v549_v56, %v548_v55  ;;  %v556_v55 = vld [vmem:[%s6982_s1 + $0x470] sm:$0xff]  ;;  %v557_v56 = vld [vmem:[%s6982_s1 + $0x478] sm:$0xff] }
  0x62   :  { %1106 = vmatmul.mubr.f32.gmra.mrb[30].mxu1 %v391_v5  ;;  %1175 = vmatprep.mubr.f32.mxu0 %v19_v6  ;;  %v3965_v5 = vpack.c.bf16 %v581_v59, %v580_v57  ;;  %v3935_v6 = vpack.c.bf16 %v567_v61, %v566_v60  ;;  %v588_v57 = vld [vmem:[%s6982_s1 + $0x570] sm:$0xff]  ;;  %v589_v59 = vld [vmem:[%s6982_s1 + $0x578] sm:$0xff]  ;;  %v622_v60 = vld [vmem:[%s6982_s1 + $0x680] sm:$0xff] }
  0x63   :  { %1320 = vmatprep.mubr.f32.mxu1 %v21_v9  ;;  %v582_v9 = vld [vmem:[%s6982_s1 + $0x540] sm:$0xff]  ;;  %v623_v61 = vld [vmem:[%s6982_s1 + $0x688] sm:$0xff] }
  0x65   :  { %1176 = vmatmul.mubr.f32.vlgmr.msra.gmra.mrb[32].mxu0 %v18_v14  ;;  %v118_v14 = vld [vmem:[%s6983_s0 + $0x340] sm:$0xff] }
  0x66   :  { %1321 = vmatmul.mubr.f32.vlgmr.msra.gmra.mrb[32].mxu1 %v20_v18  ;;  %3922 = vmatpush3.bf16.msra.mxu0 %v3921_v15  ;;  %v600_v15 = vld [vmem:[%s6982_s1 + $0x5d0] sm:$0xff] }
  0x67   :  { %3954 = vmatpush3.bf16.msra.mxu1 %v3953_v19  ;;  %1180 = vmatprep.mubr.f32.mxu0 %v44_v20  ;;  %v144_v18 = vld [vmem:[%s6983_s0 + $0x410] sm:$0xff]  ;;  %v146_v19 = vld [vmem:[%s6983_s0 + $0x420] sm:$0xff]  ;;  %v3937_v20 = vpack.c.bf16 %v551_v8, %v550_v7  ;;  %v4015_v7 = vpack.c.bf16 %v655_v0, %v654_v63  ;;  %v659_v0 = vld [vmem:[%s6982_s1 + $0x7a8] sm:$0xff] }
  0x68   :  { %1325 = vmatprep.mubr.f32.mxu1 %v46_v21  ;;  %3924 = vmatprep.subr.bf16.mxu0 %v3923_v22  ;;  %v3969_v21 = vpack.c.bf16 %v583_v11, %v582_v9  ;;  %v3939_v22 = vpack.c.bf16 %v569_v13, %v568_v12  ;;  %v218_v8 = vld [vmem:[%s6983_s0 + $0x660] sm:$0xff]  ;;  %v220_v9 = vld [vmem:[%s6983_s0 + $0x670] sm:$0xff]  ;;  %v243_v12 = vld [vmem:[%s6983_s0 + $0x728] sm:$0xff] }
  0x69   :  { %1181 = vmatmul.mubr.f32.gmra.mrb[34].mxu0 %v43_v30  ;;  %3956 = vmatprep.subr.bf16.mxu1 %v3955_v26  ;;  %v3971_v26 = vpack.c.bf16 %v601_v16, %v600_v15  ;;  %v143_v30 = vld [vmem:[%s6983_s0 + $0x408] sm:$0xff]  ;;  %v246_v11 = vld [vmem:[%s6983_s0 + $0x740] sm:$0xff]  ;;  %v245_v13 = vld [vmem:[%s6983_s0 + $0x738] sm:$0xff] }
  0x6a   :  { %1326 = vmatmul.mubr.f32.gmra.mrb[34].mxu1 %v45_v33  ;;  %1185 = vmatprep.mubr.f32.mxu0 %v69_v34  ;;  %v145_v33 = vld [vmem:[%s6983_s0 + $0x418] sm:$0xff]  ;;  %v271_v15 = vld [vmem:[%s6983_s0 + $0x808] sm:$0xff]  ;;  %v268_v16 = vld [vmem:[%s6983_s0 + $0x7f0] sm:$0xff] }
  0x6b   :  { %1330 = vmatprep.mubr.f32.mxu1 %v71_v35  ;;  %3926 = vmatpush3.bf16.msra.mxu0 %v3925_v36  ;;  %v169_v34 = vld [vmem:[%s6983_s0 + $0x4d8] sm:$0xff]  ;;  %v171_v35 = vld [vmem:[%s6983_s0 + $0x4e8] sm:$0xff]  ;;  %v3941_v36 = vpack.c.bf16 %v553_v24, %v552_v23  ;;  %v318_v24 = vld [vmem:[%s6983_s0 + $0x980] sm:$0xff] }
  0x6c   :  { %3958 = vmatpush3.bf16.msra.mxu1 %v3957_v37  ;;  %3928 = vmatprep.subr.bf16.mxu0 %v3927_v38  ;;  %v3973_v37 = vpack.c.bf16 %v585_v27, %v584_v25  ;;  %v3943_v38 = vpack.c.bf16 %v571_v29, %v570_v28  ;;  %v321_v23 = vld [vmem:[%s6983_s0 + $0x998] sm:$0xff]  ;;  %v320_v25 = vld [vmem:[%s6983_s0 + $0x990] sm:$0xff]  ;;  %v346_v27 = vld [vmem:[%s6983_s0 + $0xa60] sm:$0xff] }
  0x6d   :  { %1186 = vmatmul.mubr.f32.gmra.mrb[36].mxu0 %v68_v46  ;;  %3960 = vmatprep.subr.bf16.mxu1 %v3959_v42  ;;  %v3975_v42 = vpack.c.bf16 %v603_v32, %v602_v31  ;;  %v168_v46 = vld [vmem:[%s6983_s0 + $0x4d0] sm:$0xff]  ;;  %v343_v28 = vld [vmem:[%s6983_s0 + $0xa48] sm:$0xff]  ;;  %v345_v29 = vld [vmem:[%s6983_s0 + $0xa58] sm:$0xff] }
  0x6e   :  { %1331 = vmatmul.mubr.f32.gmra.mrb[36].mxu1 %v70_v49  ;;  %1190 = vmatprep.mubr.f32.mxu0 %v94_v50  ;;  %v170_v49 = vld [vmem:[%s6983_s0 + $0x4e0] sm:$0xff]  ;;  %v371_v31 = vld [vmem:[%s6983_s0 + $0xb28] sm:$0xff]  ;;  %v368_v32 = vld [vmem:[%s6983_s0 + $0xb10] sm:$0xff] }
  0x6f   :  { %1335 = vmatprep.mubr.f32.mxu1 %v96_v51  ;;  %3930 = vmatpush3.bf16.msra.mxu0 %v3929_v52  ;;  %v194_v50 = vld [vmem:[%s6983_s0 + $0x5a0] sm:$0xff]  ;;  %v196_v51 = vld [vmem:[%s6983_s0 + $0x5b0] sm:$0xff]  ;;  %v3945_v52 = vpack.c.bf16 %v555_v40, %v554_v39  ;;  %v607_v40 = vld [vmem:[%s6982_s1 + $0x608] sm:$0xff] }
  0x70   :  { %3962 = vmatpush3.bf16.msra.mxu1 %v3961_v53  ;;  %3932 = vmatprep.subr.bf16.mxu0 %v3931_v54  ;;  %v3977_v53 = vpack.c.bf16 %v587_v43, %v586_v41  ;;  %v3947_v54 = vpack.c.bf16 %v573_v45, %v572_v44  ;;  %v606_v39 = vld [vmem:[%s6982_s1 + $0x600] sm:$0xff]  ;;  %v25_v41 = vld [vmem:[%s6983_s0 + $0x58] sm:$0xff]  ;;  %v639_v43 = vld [vmem:[%s6982_s1 + $0x708] sm:$0xff] }
  0x71   :  { %1191 = vmatmul.mubr.f32.gmra.mrb[38].mxu0 %v93_v62  ;;  %3964 = vmatprep.subr.bf16.mxu1 %v3963_v58  ;;  %v3979_v58 = vpack.c.bf16 %v605_v48, %v604_v47  ;;  %v193_v62 = vld [vmem:[%s6983_s0 + $0x598] sm:$0xff]  ;;  %v624_v44 = vld [vmem:[%s6982_s1 + $0x690] sm:$0xff]  ;;  %v3985_v47 = vpack.c.bf16 %v607_v40, %v606_v39  ;;  %v658_v63 = vld [vmem:[%s6982_s1 + $0x7a0] sm:$0xff] }
  0x72   :  { %1336 = vmatmul.mubr.f32.gmra.mrb[38].mxu1 %v95_v1  ;;  %1195 = vmatprep.mubr.f32.mxu0 %v119_v2  ;;  %v195_v1 = vld [vmem:[%s6983_s0 + $0x5a8] sm:$0xff]  ;;  %v625_v45 = vld [vmem:[%s6982_s1 + $0x698] sm:$0xff]  ;;  %v656_v48 = vld [vmem:[%s6982_s1 + $0x790] sm:$0xff] }
  0x73   :  { %1340 = vmatprep.mubr.f32.mxu1 %v121_v3  ;;  %3934 = vmatpush3.bf16.msra.mxu0 %v3933_v4  ;;  %v219_v2 = vld [vmem:[%s6983_s0 + $0x668] sm:$0xff]  ;;  %v3949_v3 = vpack.c.bf16 %v557_v56, %v556_v55  ;;  %v221_v4 = vld [vmem:[%s6983_s0 + $0x678] sm:$0xff]  ;;  %v608_v55 = vld [vmem:[%s6982_s1 + $0x610] sm:$0xff] }
  0x74   :  { %3966 = vmatpush3.bf16.msra.mxu1 %v3965_v5  ;;  %3936 = vmatprep.subr.bf16.mxu0 %v3935_v6  ;;  %v3981_v5 = vpack.c.bf16 %v589_v59, %v588_v57  ;;  %v3983_v6 = vpack.c.bf16 %v623_v61, %v622_v60  ;;  %v609_v56 = vld [vmem:[%s6982_s1 + $0x618] sm:$0xff]  ;;  %v640_v57 = vld [vmem:[%s6982_s1 + $0x710] sm:$0xff]  ;;  %v626_v60 = vld [vmem:[%s6982_s1 + $0x6a0] sm:$0xff] }
  0x75   :  { %1196 = vmatmul.mubr.f32.gmra.mrb[40].mxu0 %v118_v14  ;;  %3968 = vmatprep.subr.bf16.mxu1 %v3967_v10  ;;  %v244_v10 = vld [vmem:[%s6983_s0 + $0x730] sm:$0xff]  ;;  %v269_v14 = vld [vmem:[%s6983_s0 + $0x7f8] sm:$0xff]  ;;  %v627_v61 = vld [vmem:[%s6982_s1 + $0x6a8] sm:$0xff] }
  0x76   :  { %1341 = vmatmul.mubr.f32.gmra.mrb[40].mxu1 %v120_v17  ;;  %1200 = vmatprep.mubr.f32.mxu0 %v144_v18  ;;  %v270_v17 = vld [vmem:[%s6983_s0 + $0x800] sm:$0xff]  ;;  %v641_v59 = vld [vmem:[%s6982_s1 + $0x718] sm:$0xff]  ;;  %v615_v40 = vld [vmem:[%s6982_s1 + $0x648] sm:$0xff] }
  0x77   :  { %1345 = vmatprep.mubr.f32.mxu1 %v146_v19  ;;  %3938 = vmatpush3.bf16.msra.mxu0 %v3937_v20  ;;  %v294_v18 = vld [vmem:[%s6983_s0 + $0x8c0] sm:$0xff]  ;;  %v296_v19 = vld [vmem:[%s6983_s0 + $0x8d0] sm:$0xff]  ;;  %v293_v20 = vld [vmem:[%s6983_s0 + $0x8b8] sm:$0xff] }
  0x78   :  { %3970 = vmatpush3.bf16.msra.mxu1 %v3969_v21  ;;  %3940 = vmatprep.subr.bf16.mxu0 %v3939_v22  ;;  %v295_v21 = vld [vmem:[%s6983_s0 + $0x8c8] sm:$0xff]  ;;  %v614_v39 = vld [vmem:[%s6982_s1 + $0x640] sm:$0xff] }
  0x79   :  { %1201 = vmatmul.mubr.f32.gmra.mrb[42].mxu0 %v143_v30  ;;  %3972 = vmatprep.subr.bf16.mxu1 %v3971_v26  ;;  %v319_v22 = vld [vmem:[%s6983_s0 + $0x988] sm:$0xff]  ;;  %v344_v26 = vld [vmem:[%s6983_s0 + $0xa50] sm:$0xff]  ;;  %v369_v30 = vld [vmem:[%s6983_s0 + $0xb18] sm:$0xff] }
  0x7a   :  { %1346 = vmatmul.mubr.f32.gmra.mrb[42].mxu1 %v145_v33  ;;  %1205 = vmatprep.mubr.f32.mxu0 %v169_v34  ;;  %v370_v33 = vld [vmem:[%s6983_s0 + $0xb20] sm:$0xff] }
  0x7b   :  { %1350 = vmatprep.mubr.f32.mxu1 %v171_v35  ;;  %3942 = vmatpush3.bf16.msra.mxu0 %v3941_v36  ;;  %v394_v34 = vld [vmem:[%s6983_s0 + $0xbe0] sm:$0xff]  ;;  %v396_v35 = vld [vmem:[%s6983_s0 + $0xbf0] sm:$0xff]  ;;  %v393_v36 = vld [vmem:[%s6983_s0 + $0xbd8] sm:$0xff] }
  0x7c   :  { %3974 = vmatpush3.bf16.msra.mxu1 %v3973_v37  ;;  %3944 = vmatprep.subr.bf16.mxu0 %v3943_v38  ;;  %v395_v37 = vld [vmem:[%s6983_s0 + $0xbe8] sm:$0xff] }
  0x7d   :  { %1206 = vmatmul.mubr.f32.gmra.mrb[44].mxu0 %v168_v46  ;;  %3976 = vmatprep.subr.bf16.mxu1 %v3975_v42  ;;  %v23_v38 = vld [vmem:[%s6983_s0 + $0x48] sm:$0xff]  ;;  %v638_v42 = vld [vmem:[%s6982_s1 + $0x700] sm:$0xff] }
  0x7e   :  { %1351 = vmatmul.mubr.f32.gmra.mrb[44].mxu1 %v170_v49  ;;  %1210 = vmatprep.mubr.f32.mxu0 %v194_v50  ;;  %v22_v46 = vld [vmem:[%s6983_s0 + $0x40] sm:$0xff]  ;;  %v657_v49 = vld [vmem:[%s6982_s1 + $0x798] sm:$0xff]  ;;  %v24_v50 = vld [vmem:[%s6983_s0 + $0x50] sm:$0xff] }
  0x7f   :  { %1355 = vmatprep.mubr.f32.mxu1 %v196_v51  ;;  %3946 = vmatpush3.bf16.msra.mxu0 %v3945_v52  ;;  %v4017_v51 = vpack.c.bf16 %v639_v43, %v638_v42  ;;  %v48_v52 = vld [vmem:[%s6983_s0 + $0x110] sm:$0xff]  ;;  %v647_v43 = vld [vmem:[%s6982_s1 + $0x748] sm:$0xff] }
  0x80   :  { %3978 = vmatpush3.bf16.msra.mxu1 %v3977_v53  ;;  %3948 = vmatprep.subr.bf16.mxu0 %v3947_v54  ;;  %v50_v53 = vld [vmem:[%s6983_s0 + $0x120] sm:$0xff]  ;;  %v3987_v54 = vpack.c.bf16 %v625_v45, %v624_v44  ;;  %v632_v44 = vld [vmem:[%s6982_s1 + $0x6d0] sm:$0xff]  ;;  %v633_v45 = vld [vmem:[%s6982_s1 + $0x6d8] sm:$0xff] }
  0x81   :  { %1211 = vmatmul.mubr.f32.gmra.mrb[46].mxu0 %v193_v62  ;;  %3980 = vmatprep.subr.bf16.mxu1 %v3979_v58  ;;  %v4019_v58 = vpack.c.bf16 %v657_v49, %v656_v48  ;;  %v47_v62 = vld [vmem:[%s6983_s0 + $0x108] sm:$0xff]  ;;  %v665_v48 = vld [vmem:[%s6982_s1 + $0x7d8] sm:$0xff]  ;;  %v124_v49 = vld [vmem:[%s6983_s0 + $0x370] sm:$0xff] }
  0x82   :  { %1356 = vmatmul.mubr.f32.gmra.mrb[46].mxu1 %v195_v1  ;;  %1215 = vmatprep.mubr.f32.mxu0 %v219_v2  ;;  %v49_v1 = vld [vmem:[%s6983_s0 + $0x118] sm:$0xff] }
  0x83   :  { %1360 = vmatprep.mubr.f32.mxu1 %v221_v4  ;;  %3950 = vmatpush3.bf16.msra.mxu0 %v3949_v3  ;;  %v73_v2 = vld [vmem:[%s6983_s0 + $0x1d8] sm:$0xff]  ;;  %v75_v3 = vld [vmem:[%s6983_s0 + $0x1e8] sm:$0xff]  ;;  %v3989_v4 = vpack.c.bf16 %v609_v56, %v608_v55  ;;  %v616_v55 = vld [vmem:[%s6982_s1 + $0x650] sm:$0xff] }
  0x84   :  { %3982 = vmatpush3.bf16.msra.mxu1 %v3981_v5  ;;  %3984 = vmatprep.subr.bf16.mxu0 %v3983_v6  ;;  %v4021_v5 = vpack.c.bf16 %v641_v59, %v640_v57  ;;  %v3991_v6 = vpack.c.bf16 %v627_v61, %v626_v60  ;;  %v617_v56 = vld [vmem:[%s6982_s1 + $0x658] sm:$0xff]  ;;  %v648_v57 = vld [vmem:[%s6982_s1 + $0x750] sm:$0xff]  ;;  %v634_v60 = vld [vmem:[%s6982_s1 + $0x6e0] sm:$0xff] }
  0x85   :  { %1216 = vmatmul.mubr.f32.gmra.mrb[48].mxu0 %v218_v8  ;;  %4016 = vmatprep.subr.bf16.mxu1 %v4015_v7  ;;  %v610_v7 = vld [vmem:[%s6982_s1 + $0x620] sm:$0xff]  ;;  %v611_v8 = vld [vmem:[%s6982_s1 + $0x628] sm:$0xff]  ;;  %v649_v59 = vld [vmem:[%s6982_s1 + $0x758] sm:$0xff] }
  0x86   :  { %1361 = vmatmul.mubr.f32.gmra.mrb[48].mxu1 %v220_v9  ;;  %1220 = vmatprep.mubr.f32.mxu0 %v244_v10  ;;  %v642_v9 = vld [vmem:[%s6982_s1 + $0x720] sm:$0xff]  ;;  %v4023_v10 = vpack.c.bf16 %v659_v0, %v658_v63  ;;  %v635_v61 = vld [vmem:[%s6982_s1 + $0x6e8] sm:$0xff] }
  0x87   :  { %1365 = vmatprep.mubr.f32.mxu1 %v246_v11  ;;  %v643_v11 = vld [vmem:[%s6982_s1 + $0x728] sm:$0xff]  ;;  %v666_v63 = vld [vmem:[%s6982_s1 + $0x7e0] sm:$0xff] }
  0x88   :  { %v667_v0 = vld [vmem:[%s6982_s1 + $0x7e8] sm:$0xff] }
  0x89   :  { %1221 = vmatmul.mubr.f32.gmra.mrb[50].mxu0 %v243_v12  ;;  %v628_v12 = vld [vmem:[%s6982_s1 + $0x6b0] sm:$0xff] }
  0x8a   :  { %1366 = vmatmul.mubr.f32.gmra.mrb[50].mxu1 %v245_v13  ;;  %1225 = vmatprep.mubr.f32.mxu0 %v269_v14  ;;  %v629_v13 = vld [vmem:[%s6982_s1 + $0x6b8] sm:$0xff]  ;;  %v72_v14 = vld [vmem:[%s6983_s0 + $0x1d0] sm:$0xff] }
  0x8b   :  { %1370 = vmatprep.mubr.f32.mxu1 %v271_v15  ;;  %v660_v15 = vld [vmem:[%s6982_s1 + $0x7b0] sm:$0xff] }
  0x8d   :  { %1226 = vmatmul.mubr.f32.gmra.mrb[52].mxu0 %v268_v16  ;;  %v661_v16 = vld [vmem:[%s6982_s1 + $0x7b8] sm:$0xff] }
  0x8e   :  { %1371 = vmatmul.mubr.f32.gmra.mrb[52].mxu1 %v270_v17  ;;  %1230 = vmatprep.mubr.f32.mxu0 %v294_v18  ;;  %v74_v17 = vld [vmem:[%s6983_s0 + $0x1e0] sm:$0xff] }
  0x8f   :  { %1375 = vmatprep.mubr.f32.mxu1 %v296_v19  ;;  %v98_v18 = vld [vmem:[%s6983_s0 + $0x2a0] sm:$0xff]  ;;  %v100_v19 = vld [vmem:[%s6983_s0 + $0x2b0] sm:$0xff] }
  0x91   :  { %1231 = vmatmul.mubr.f32.gmra.mrb[54].mxu0 %v293_v20  ;;  %v3993_v20 = vpack.c.bf16 %v611_v8, %v610_v7  ;;  %v618_v7 = vld [vmem:[%s6982_s1 + $0x660] sm:$0xff]  ;;  %v619_v8 = vld [vmem:[%s6982_s1 + $0x668] sm:$0xff] }
  0x92   :  { %1376 = vmatmul.mubr.f32.gmra.mrb[54].mxu1 %v295_v21  ;;  %1235 = vmatprep.mubr.f32.mxu0 %v319_v22  ;;  %v4025_v21 = vpack.c.bf16 %v643_v11, %v642_v9  ;;  %v3995_v22 = vpack.c.bf16 %v629_v13, %v628_v12  ;;  %v650_v9 = vld [vmem:[%s6982_s1 + $0x760] sm:$0xff]  ;;  %v651_v11 = vld [vmem:[%s6982_s1 + $0x768] sm:$0xff]  ;;  %v636_v12 = vld [vmem:[%s6982_s1 + $0x6f0] sm:$0xff] }
  0x93   :  { %1380 = vmatprep.mubr.f32.mxu1 %v321_v23  ;;  %v612_v23 = vld [vmem:[%s6982_s1 + $0x630] sm:$0xff]  ;;  %v637_v13 = vld [vmem:[%s6982_s1 + $0x6f8] sm:$0xff] }
  0x95   :  { %1236 = vmatmul.mubr.f32.gmra.mrb[56].mxu0 %v318_v24  ;;  %v613_v24 = vld [vmem:[%s6982_s1 + $0x638] sm:$0xff] }
  0x96   :  { %1381 = vmatmul.mubr.f32.gmra.mrb[56].mxu1 %v320_v25  ;;  %1240 = vmatprep.mubr.f32.mxu0 %v344_v26  ;;  %v644_v25 = vld [vmem:[%s6982_s1 + $0x730] sm:$0xff]  ;;  %v4027_v26 = vpack.c.bf16 %v661_v16, %v660_v15  ;;  %v669_v16 = vld [vmem:[%s6982_s1 + $0x7f8] sm:$0xff] }
  0x97   :  { %1385 = vmatprep.mubr.f32.mxu1 %v346_v27  ;;  %v645_v27 = vld [vmem:[%s6982_s1 + $0x738] sm:$0xff]  ;;  %v668_v15 = vld [vmem:[%s6982_s1 + $0x7f0] sm:$0xff] }
  0x99   :  { %1241 = vmatmul.mubr.f32.gmra.mrb[58].mxu0 %v343_v28  ;;  %v630_v28 = vld [vmem:[%s6982_s1 + $0x6c0] sm:$0xff] }
  0x9a   :  { %1386 = vmatmul.mubr.f32.gmra.mrb[58].mxu1 %v345_v29  ;;  %1245 = vmatprep.mubr.f32.mxu0 %v369_v30  ;;  %v631_v29 = vld [vmem:[%s6982_s1 + $0x6c8] sm:$0xff]  ;;  %v97_v30 = vld [vmem:[%s6983_s0 + $0x298] sm:$0xff] }
  0x9b   :  { %1390 = vmatprep.mubr.f32.mxu1 %v371_v31  ;;  %v662_v31 = vld [vmem:[%s6982_s1 + $0x7c0] sm:$0xff] }
  0x9d   :  { %1246 = vmatmul.mubr.f32.gmra.mrb[60].mxu0 %v368_v32  ;;  %v663_v32 = vld [vmem:[%s6982_s1 + $0x7c8] sm:$0xff] }
  0x9e   :  { %1391 = vmatmul.mubr.f32.gmra.mrb[60].mxu1 %v370_v33  ;;  %1250 = vmatprep.mubr.f32.mxu0 %v394_v34  ;;  %v99_v33 = vld [vmem:[%s6983_s0 + $0x2a8] sm:$0xff]  ;;  %v4031_v42 = vpack.c.bf16 %v663_v32, %v662_v31  ;;  %v718_v31 = vld [vmem:[%s6982_s1 + $0x980] sm:$0xff] }
  0x9f   :  { %1395 = vmatprep.mubr.f32.mxu1 %v396_v35  ;;  %v123_v34 = vld [vmem:[%s6983_s0 + $0x368] sm:$0xff]  ;;  %v125_v35 = vld [vmem:[%s6983_s0 + $0x378] sm:$0xff] }
  0xa0   :  { %v719_v32 = vld [vmem:[%s6982_s1 + $0x988] sm:$0xff] }
  0xa1   :  { %1251 = vmatmul.mubr.f32.gmra.mrb[62].mxu0 %v393_v36  ;;  %v3997_v36 = vpack.c.bf16 %v613_v24, %v612_v23  ;;  %v620_v23 = vld [vmem:[%s6982_s1 + $0x670] sm:$0xff]  ;;  %v621_v24 = vld [vmem:[%s6982_s1 + $0x678] sm:$0xff] }
  0xa2   :  { %1396 = vmatmul.mubr.f32.gmra.mrb[62].mxu1 %v395_v37  ;;  %1465 = vmatprep.mubr.f32.mxu0 %v23_v38  ;;  %v4029_v37 = vpack.c.bf16 %v645_v27, %v644_v25  ;;  %v3999_v38 = vpack.c.bf16 %v631_v29, %v630_v28  ;;  %v652_v25 = vld [vmem:[%s6982_s1 + $0x770] sm:$0xff]  ;;  %v653_v27 = vld [vmem:[%s6982_s1 + $0x778] sm:$0xff]  ;;  %v686_v28 = vld [vmem:[%s6982_s1 + $0x880] sm:$0xff] }
  0xa3   :  { %1610 = vmatprep.mubr.f32.mxu1 %v25_v41  ;;  %v646_v41 = vld [vmem:[%s6982_s1 + $0x740] sm:$0xff]  ;;  %v687_v29 = vld [vmem:[%s6982_s1 + $0x888] sm:$0xff] }
  0xa5   :  { %1466 = vmatmul.mubr.f32.vlgmr.msra.gmra.mrb[64].mxu0 %v22_v46  ;;  %v122_v46 = vld [vmem:[%s6983_s0 + $0x360] sm:$0xff] }
  0xa6   :  { %1611 = vmatmul.mubr.f32.vlgmr.msra.gmra.mrb[64].mxu1 %v24_v50  ;;  %3986 = vmatpush3.bf16.msra.mxu0 %v3985_v47  ;;  %v664_v47 = vld [vmem:[%s6982_s1 + $0x7d0] sm:$0xff] }
  0xa7   :  { %4018 = vmatpush3.bf16.msra.mxu1 %v4017_v51  ;;  %1470 = vmatprep.mubr.f32.mxu0 %v48_v52  ;;  %v148_v50 = vld [vmem:[%s6983_s0 + $0x430] sm:$0xff]  ;;  %v150_v51 = vld [vmem:[%s6983_s0 + $0x440] sm:$0xff]  ;;  %v4001_v52 = vpack.c.bf16 %v615_v40, %v614_v39  ;;  %v4079_v39 = vpack.c.bf16 %v719_v32, %v718_v31  ;;  %v723_v32 = vld [vmem:[%s6982_s1 + $0x9a8] sm:$0xff] }
  0xa8   :  { %1615 = vmatprep.mubr.f32.mxu1 %v50_v53  ;;  %3988 = vmatprep.subr.bf16.mxu0 %v3987_v54  ;;  %v4033_v53 = vpack.c.bf16 %v647_v43, %v646_v41  ;;  %v4003_v54 = vpack.c.bf16 %v633_v45, %v632_v44  ;;  %v222_v40 = vld [vmem:[%s6983_s0 + $0x680] sm:$0xff]  ;;  %v224_v41 = vld [vmem:[%s6983_s0 + $0x690] sm:$0xff]  ;;  %v247_v44 = vld [vmem:[%s6983_s0 + $0x748] sm:$0xff] }
  0xa9   :  { %1471 = vmatmul.mubr.f32.gmra.mrb[66].mxu0 %v47_v62  ;;  %4020 = vmatprep.subr.bf16.mxu1 %v4019_v58  ;;  %v4035_v58 = vpack.c.bf16 %v665_v48, %v664_v47  ;;  %v147_v62 = vld [vmem:[%s6983_s0 + $0x428] sm:$0xff]  ;;  %v250_v43 = vld [vmem:[%s6983_s0 + $0x760] sm:$0xff]  ;;  %v249_v45 = vld [vmem:[%s6983_s0 + $0x758] sm:$0xff] }
  0xaa   :  { %1616 = vmatmul.mubr.f32.gmra.mrb[66].mxu1 %v49_v1  ;;  %1475 = vmatprep.mubr.f32.mxu0 %v73_v2  ;;  %v149_v1 = vld [vmem:[%s6983_s0 + $0x438] sm:$0xff]  ;;  %v275_v47 = vld [vmem:[%s6983_s0 + $0x828] sm:$0xff]  ;;  %v272_v48 = vld [vmem:[%s6983_s0 + $0x810] sm:$0xff] }
  0xab   :  { %1620 = vmatprep.mubr.f32.mxu1 %v75_v3  ;;  %3990 = vmatpush3.bf16.msra.mxu0 %v3989_v4  ;;  %v173_v2 = vld [vmem:[%s6983_s0 + $0x4f8] sm:$0xff]  ;;  %v175_v3 = vld [vmem:[%s6983_s0 + $0x508] sm:$0xff]  ;;  %v4005_v4 = vpack.c.bf16 %v617_v56, %v616_v55  ;;  %v322_v56 = vld [vmem:[%s6983_s0 + $0x9a0] sm:$0xff] }
  0xac   :  { %4022 = vmatpush3.bf16.msra.mxu1 %v4021_v5  ;;  %3992 = vmatprep.subr.bf16.mxu0 %v3991_v6  ;;  %v4037_v5 = vpack.c.bf16 %v649_v59, %v648_v57  ;;  %v4007_v6 = vpack.c.bf16 %v635_v61, %v634_v60  ;;  %v325_v55 = vld [vmem:[%s6983_s0 + $0x9b8] sm:$0xff]  ;;  %v324_v57 = vld [vmem:[%s6983_s0 + $0x9b0] sm:$0xff]  ;;  %v350_v59 = vld [vmem:[%s6983_s0 + $0xa80] sm:$0xff] }
  0xad   :  { %1476 = vmatmul.mubr.f32.gmra.mrb[68].mxu0 %v72_v14  ;;  %4024 = vmatprep.subr.bf16.mxu1 %v4023_v10  ;;  %v4039_v10 = vpack.c.bf16 %v667_v0, %v666_v63  ;;  %v172_v14 = vld [vmem:[%s6983_s0 + $0x4f0] sm:$0xff]  ;;  %v347_v60 = vld [vmem:[%s6983_s0 + $0xa68] sm:$0xff]  ;;  %v349_v61 = vld [vmem:[%s6983_s0 + $0xa78] sm:$0xff] }
  0xae   :  { %1621 = vmatmul.mubr.f32.gmra.mrb[68].mxu1 %v74_v17  ;;  %1480 = vmatprep.mubr.f32.mxu0 %v98_v18  ;;  %v174_v17 = vld [vmem:[%s6983_s0 + $0x500] sm:$0xff]  ;;  %v375_v63 = vld [vmem:[%s6983_s0 + $0xb48] sm:$0xff]  ;;  %v372_v0 = vld [vmem:[%s6983_s0 + $0xb30] sm:$0xff] }
  0xaf   :  { %1625 = vmatprep.mubr.f32.mxu1 %v100_v19  ;;  %3994 = vmatpush3.bf16.msra.mxu0 %v3993_v20  ;;  %v198_v18 = vld [vmem:[%s6983_s0 + $0x5c0] sm:$0xff]  ;;  %v200_v19 = vld [vmem:[%s6983_s0 + $0x5d0] sm:$0xff]  ;;  %v4009_v20 = vpack.c.bf16 %v619_v8, %v618_v7  ;;  %v671_v8 = vld [vmem:[%s6982_s1 + $0x808] sm:$0xff] }
  0xb0   :  { %4026 = vmatpush3.bf16.msra.mxu1 %v4025_v21  ;;  %3996 = vmatprep.subr.bf16.mxu0 %v3995_v22  ;;  %v4041_v21 = vpack.c.bf16 %v651_v11, %v650_v9  ;;  %v4011_v22 = vpack.c.bf16 %v637_v13, %v636_v12  ;;  %v670_v7 = vld [vmem:[%s6982_s1 + $0x800] sm:$0xff]  ;;  %v29_v9 = vld [vmem:[%s6983_s0 + $0x78] sm:$0xff]  ;;  %v703_v11 = vld [vmem:[%s6982_s1 + $0x908] sm:$0xff] }
  0xb1   :  { %1481 = vmatmul.mubr.f32.gmra.mrb[70].mxu0 %v97_v30  ;;  %4028 = vmatprep.subr.bf16.mxu1 %v4027_v26  ;;  %v4043_v26 = vpack.c.bf16 %v669_v16, %v668_v15  ;;  %v197_v30 = vld [vmem:[%s6983_s0 + $0x5b8] sm:$0xff]  ;;  %v688_v12 = vld [vmem:[%s6982_s1 + $0x890] sm:$0xff]  ;;  %v4049_v15 = vpack.c.bf16 %v671_v8, %v670_v7  ;;  %v722_v31 = vld [vmem:[%s6982_s1 + $0x9a0] sm:$0xff] }
  0xb2   :  { %1626 = vmatmul.mubr.f32.gmra.mrb[70].mxu1 %v99_v33  ;;  %1485 = vmatprep.mubr.f32.mxu0 %v123_v34  ;;  %v199_v33 = vld [vmem:[%s6983_s0 + $0x5c8] sm:$0xff]  ;;  %v689_v13 = vld [vmem:[%s6982_s1 + $0x898] sm:$0xff]  ;;  %v720_v16 = vld [vmem:[%s6982_s1 + $0x990] sm:$0xff] }
  0xb3   :  { %1630 = vmatprep.mubr.f32.mxu1 %v125_v35  ;;  %3998 = vmatpush3.bf16.msra.mxu0 %v3997_v36  ;;  %v223_v34 = vld [vmem:[%s6983_s0 + $0x688] sm:$0xff]  ;;  %v4013_v35 = vpack.c.bf16 %v621_v24, %v620_v23  ;;  %v225_v36 = vld [vmem:[%s6983_s0 + $0x698] sm:$0xff]  ;;  %v672_v23 = vld [vmem:[%s6982_s1 + $0x810] sm:$0xff] }
  0xb4   :  { %4030 = vmatpush3.bf16.msra.mxu1 %v4029_v37  ;;  %4000 = vmatprep.subr.bf16.mxu0 %v3999_v38  ;;  %v4045_v37 = vpack.c.bf16 %v653_v27, %v652_v25  ;;  %v4047_v38 = vpack.c.bf16 %v687_v29, %v686_v28  ;;  %v673_v24 = vld [vmem:[%s6982_s1 + $0x818] sm:$0xff]  ;;  %v704_v25 = vld [vmem:[%s6982_s1 + $0x910] sm:$0xff]  ;;  %v690_v28 = vld [vmem:[%s6982_s1 + $0x8a0] sm:$0xff] }
  0xb5   :  { %1486 = vmatmul.mubr.f32.gmra.mrb[72].mxu0 %v122_v46  ;;  %4032 = vmatprep.subr.bf16.mxu1 %v4031_v42  ;;  %v248_v42 = vld [vmem:[%s6983_s0 + $0x750] sm:$0xff]  ;;  %v273_v46 = vld [vmem:[%s6983_s0 + $0x818] sm:$0xff]  ;;  %v691_v29 = vld [vmem:[%s6982_s1 + $0x8a8] sm:$0xff] }
  0xb6   :  { %1631 = vmatmul.mubr.f32.gmra.mrb[72].mxu1 %v124_v49  ;;  %1490 = vmatprep.mubr.f32.mxu0 %v148_v50  ;;  %v274_v49 = vld [vmem:[%s6983_s0 + $0x820] sm:$0xff]  ;;  %v705_v27 = vld [vmem:[%s6982_s1 + $0x918] sm:$0xff]  ;;  %v679_v8 = vld [vmem:[%s6982_s1 + $0x848] sm:$0xff] }
  0xb7   :  { %1635 = vmatprep.mubr.f32.mxu1 %v150_v51  ;;  %4002 = vmatpush3.bf16.msra.mxu0 %v4001_v52  ;;  %v298_v50 = vld [vmem:[%s6983_s0 + $0x8e0] sm:$0xff]  ;;  %v300_v51 = vld [vmem:[%s6983_s0 + $0x8f0] sm:$0xff]  ;;  %v297_v52 = vld [vmem:[%s6983_s0 + $0x8d8] sm:$0xff] }
  0xb8   :  { %4034 = vmatpush3.bf16.msra.mxu1 %v4033_v53  ;;  %4004 = vmatprep.subr.bf16.mxu0 %v4003_v54  ;;  %v299_v53 = vld [vmem:[%s6983_s0 + $0x8e8] sm:$0xff]  ;;  %v678_v7 = vld [vmem:[%s6982_s1 + $0x840] sm:$0xff] }
  0xb9   :  { %1491 = vmatmul.mubr.f32.gmra.mrb[74].mxu0 %v147_v62  ;;  %4036 = vmatprep.subr.bf16.mxu1 %v4035_v58  ;;  %v323_v54 = vld [vmem:[%s6983_s0 + $0x9a8] sm:$0xff]  ;;  %v348_v58 = vld [vmem:[%s6983_s0 + $0xa70] sm:$0xff]  ;;  %v373_v62 = vld [vmem:[%s6983_s0 + $0xb38] sm:$0xff] }
  0xba   :  { %1636 = vmatmul.mubr.f32.gmra.mrb[74].mxu1 %v149_v1  ;;  %1495 = vmatprep.mubr.f32.mxu0 %v173_v2  ;;  %v374_v1 = vld [vmem:[%s6983_s0 + $0xb40] sm:$0xff] }
  0xbb   :  { %1640 = vmatprep.mubr.f32.mxu1 %v175_v3  ;;  %4006 = vmatpush3.bf16.msra.mxu0 %v4005_v4  ;;  %v398_v2 = vld [vmem:[%s6983_s0 + $0xc00] sm:$0xff]  ;;  %v400_v3 = vld [vmem:[%s6983_s0 + $0xc10] sm:$0xff]  ;;  %v397_v4 = vld [vmem:[%s6983_s0 + $0xbf8] sm:$0xff] }
  0xbc   :  { %4038 = vmatpush3.bf16.msra.mxu1 %v4037_v5  ;;  %4008 = vmatprep.subr.bf16.mxu0 %v4007_v6  ;;  %v399_v5 = vld [vmem:[%s6983_s0 + $0xc08] sm:$0xff] }
  0xbd   :  { %1496 = vmatmul.mubr.f32.gmra.mrb[76].mxu0 %v172_v14  ;;  %4040 = vmatprep.subr.bf16.mxu1 %v4039_v10  ;;  %v27_v6 = vld [vmem:[%s6983_s0 + $0x68] sm:$0xff]  ;;  %v702_v10 = vld [vmem:[%s6982_s1 + $0x900] sm:$0xff] }
  0xbe   :  { %1641 = vmatmul.mubr.f32.gmra.mrb[76].mxu1 %v174_v17  ;;  %1500 = vmatprep.mubr.f32.mxu0 %v198_v18  ;;  %v26_v14 = vld [vmem:[%s6983_s0 + $0x60] sm:$0xff]  ;;  %v721_v17 = vld [vmem:[%s6982_s1 + $0x998] sm:$0xff]  ;;  %v28_v18 = vld [vmem:[%s6983_s0 + $0x70] sm:$0xff] }
  0xbf   :  { %1645 = vmatprep.mubr.f32.mxu1 %v200_v19  ;;  %4010 = vmatpush3.bf16.msra.mxu0 %v4009_v20  ;;  %v4081_v19 = vpack.c.bf16 %v703_v11, %v702_v10  ;;  %v52_v20 = vld [vmem:[%s6983_s0 + $0x130] sm:$0xff]  ;;  %v711_v11 = vld [vmem:[%s6982_s1 + $0x948] sm:$0xff] }
  0xc0   :  { %4042 = vmatpush3.bf16.msra.mxu1 %v4041_v21  ;;  %4012 = vmatprep.subr.bf16.mxu0 %v4011_v22  ;;  %v54_v21 = vld [vmem:[%s6983_s0 + $0x140] sm:$0xff]  ;;  %v4051_v22 = vpack.c.bf16 %v689_v13, %v688_v12  ;;  %v696_v12 = vld [vmem:[%s6982_s1 + $0x8d0] sm:$0xff]  ;;  %v697_v13 = vld [vmem:[%s6982_s1 + $0x8d8] sm:$0xff] }
  0xc1   :  { %1501 = vmatmul.mubr.f32.gmra.mrb[78].mxu0 %v197_v30  ;;  %4044 = vmatprep.subr.bf16.mxu1 %v4043_v26  ;;  %v4083_v26 = vpack.c.bf16 %v721_v17, %v720_v16  ;;  %v51_v30 = vld [vmem:[%s6983_s0 + $0x128] sm:$0xff]  ;;  %v729_v16 = vld [vmem:[%s6982_s1 + $0x9d8] sm:$0xff]  ;;  %v128_v17 = vld [vmem:[%s6983_s0 + $0x390] sm:$0xff] }
  0xc2   :  { %1646 = vmatmul.mubr.f32.gmra.mrb[78].mxu1 %v199_v33  ;;  %1505 = vmatprep.mubr.f32.mxu0 %v223_v34  ;;  %v53_v33 = vld [vmem:[%s6983_s0 + $0x138] sm:$0xff] }
  0xc3   :  { %1650 = vmatprep.mubr.f32.mxu1 %v225_v36  ;;  %4014 = vmatpush3.bf16.msra.mxu0 %v4013_v35  ;;  %v77_v34 = vld [vmem:[%s6983_s0 + $0x1f8] sm:$0xff]  ;;  %v79_v35 = vld [vmem:[%s6983_s0 + $0x208] sm:$0xff]  ;;  %v4053_v36 = vpack.c.bf16 %v673_v24, %v672_v23  ;;  %v680_v23 = vld [vmem:[%s6982_s1 + $0x850] sm:$0xff] }
  0xc4   :  { %4046 = vmatpush3.bf16.msra.mxu1 %v4045_v37  ;;  %4048 = vmatprep.subr.bf16.mxu0 %v4047_v38  ;;  %v4085_v37 = vpack.c.bf16 %v705_v27, %v704_v25  ;;  %v4055_v38 = vpack.c.bf16 %v691_v29, %v690_v28  ;;  %v681_v24 = vld [vmem:[%s6982_s1 + $0x858] sm:$0xff]  ;;  %v712_v25 = vld [vmem:[%s6982_s1 + $0x950] sm:$0xff]  ;;  %v698_v28 = vld [vmem:[%s6982_s1 + $0x8e0] sm:$0xff] }
  0xc5   :  { %1506 = vmatmul.mubr.f32.gmra.mrb[80].mxu0 %v222_v40  ;;  %4080 = vmatprep.subr.bf16.mxu1 %v4079_v39  ;;  %v674_v39 = vld [vmem:[%s6982_s1 + $0x820] sm:$0xff]  ;;  %v675_v40 = vld [vmem:[%s6982_s1 + $0x828] sm:$0xff]  ;;  %v713_v27 = vld [vmem:[%s6982_s1 + $0x958] sm:$0xff] }
  0xc6   :  { %1651 = vmatmul.mubr.f32.gmra.mrb[80].mxu1 %v224_v41  ;;  %1510 = vmatprep.mubr.f32.mxu0 %v248_v42  ;;  %v706_v41 = vld [vmem:[%s6982_s1 + $0x920] sm:$0xff]  ;;  %v4087_v42 = vpack.c.bf16 %v723_v32, %v722_v31  ;;  %v699_v29 = vld [vmem:[%s6982_s1 + $0x8e8] sm:$0xff] }
  0xc7   :  { %1655 = vmatprep.mubr.f32.mxu1 %v250_v43  ;;  %v707_v43 = vld [vmem:[%s6982_s1 + $0x928] sm:$0xff]  ;;  %v730_v31 = vld [vmem:[%s6982_s1 + $0x9e0] sm:$0xff] }
  0xc8   :  { %v731_v32 = vld [vmem:[%s6982_s1 + $0x9e8] sm:$0xff] }
  0xc9   :  { %1511 = vmatmul.mubr.f32.gmra.mrb[82].mxu0 %v247_v44  ;;  %v692_v44 = vld [vmem:[%s6982_s1 + $0x8b0] sm:$0xff] }
  0xca   :  { %1656 = vmatmul.mubr.f32.gmra.mrb[82].mxu1 %v249_v45  ;;  %1515 = vmatprep.mubr.f32.mxu0 %v273_v46  ;;  %v693_v45 = vld [vmem:[%s6982_s1 + $0x8b8] sm:$0xff]  ;;  %v76_v46 = vld [vmem:[%s6983_s0 + $0x1f0] sm:$0xff] }
  0xcb   :  { %1660 = vmatprep.mubr.f32.mxu1 %v275_v47  ;;  %v724_v47 = vld [vmem:[%s6982_s1 + $0x9b0] sm:$0xff] }
  0xcd   :  { %1516 = vmatmul.mubr.f32.gmra.mrb[84].mxu0 %v272_v48  ;;  %v725_v48 = vld [vmem:[%s6982_s1 + $0x9b8] sm:$0xff] }
  0xce   :  { %1661 = vmatmul.mubr.f32.gmra.mrb[84].mxu1 %v274_v49  ;;  %1520 = vmatprep.mubr.f32.mxu0 %v298_v50  ;;  %v78_v49 = vld [vmem:[%s6983_s0 + $0x200] sm:$0xff] }
  0xcf   :  { %1665 = vmatprep.mubr.f32.mxu1 %v300_v51  ;;  %v102_v50 = vld [vmem:[%s6983_s0 + $0x2c0] sm:$0xff]  ;;  %v104_v51 = vld [vmem:[%s6983_s0 + $0x2d0] sm:$0xff] }
  0xd1   :  { %1521 = vmatmul.mubr.f32.gmra.mrb[86].mxu0 %v297_v52  ;;  %v4057_v52 = vpack.c.bf16 %v675_v40, %v674_v39  ;;  %v4101_v39 = vpack.c.bf16 %v713_v27, %v712_v25  ;;  %v4071_v40 = vpack.c.bf16 %v699_v29, %v698_v28 }
  0xd2   :  { %1666 = vmatmul.mubr.f32.gmra.mrb[86].mxu1 %v299_v53  ;;  %1525 = vmatprep.mubr.f32.mxu0 %v323_v54  ;;  %v4089_v53 = vpack.c.bf16 %v707_v43, %v706_v41  ;;  %v4059_v54 = vpack.c.bf16 %v693_v45, %v692_v44  ;;  %v682_v41 = vld [vmem:[%s6982_s1 + $0x860] sm:$0xff] }
  0xd3   :  { %1670 = vmatprep.mubr.f32.mxu1 %v325_v55  ;;  %v676_v55 = vld [vmem:[%s6982_s1 + $0x830] sm:$0xff]  ;;  %v714_v43 = vld [vmem:[%s6982_s1 + $0x960] sm:$0xff] }
  0xd5   :  { %1526 = vmatmul.mubr.f32.gmra.mrb[88].mxu0 %v322_v56  ;;  %v677_v56 = vld [vmem:[%s6982_s1 + $0x838] sm:$0xff] }
  0xd6   :  { %1671 = vmatmul.mubr.f32.gmra.mrb[88].mxu1 %v324_v57  ;;  %1530 = vmatprep.mubr.f32.mxu0 %v348_v58  ;;  %v708_v57 = vld [vmem:[%s6982_s1 + $0x930] sm:$0xff]  ;;  %v4091_v58 = vpack.c.bf16 %v725_v48, %v724_v47  ;;  %v715_v47 = vld [vmem:[%s6982_s1 + $0x968] sm:$0xff] }
  0xd7   :  { %1675 = vmatprep.mubr.f32.mxu1 %v350_v59  ;;  %v709_v59 = vld [vmem:[%s6982_s1 + $0x938] sm:$0xff]  ;;  %v700_v48 = vld [vmem:[%s6982_s1 + $0x8f0] sm:$0xff] }
  0xd9   :  { %1531 = vmatmul.mubr.f32.gmra.mrb[90].mxu0 %v347_v60  ;;  %v694_v60 = vld [vmem:[%s6982_s1 + $0x8c0] sm:$0xff] }
  0xda   :  { %1676 = vmatmul.mubr.f32.gmra.mrb[90].mxu1 %v349_v61  ;;  %1535 = vmatprep.mubr.f32.mxu0 %v373_v62  ;;  %v695_v61 = vld [vmem:[%s6982_s1 + $0x8c8] sm:$0xff]  ;;  %v101_v62 = vld [vmem:[%s6983_s0 + $0x2b8] sm:$0xff] }
  0xdb   :  { %1680 = vmatprep.mubr.f32.mxu1 %v375_v63  ;;  %v726_v63 = vld [vmem:[%s6982_s1 + $0x9c0] sm:$0xff] }
  0xdd   :  { %1536 = vmatmul.mubr.f32.gmra.mrb[92].mxu0 %v372_v0  ;;  %v727_v0 = vld [vmem:[%s6982_s1 + $0x9c8] sm:$0xff] }
  0xde   :  { %1681 = vmatmul.mubr.f32.gmra.mrb[92].mxu1 %v374_v1  ;;  %1540 = vmatprep.mubr.f32.mxu0 %v398_v2  ;;  %v103_v1 = vld [vmem:[%s6983_s0 + $0x2c8] sm:$0xff]  ;;  %v4095_v10 = vpack.c.bf16 %v727_v0, %v726_v63  ;;  %v684_v0 = vld [vmem:[%s6982_s1 + $0x870] sm:$0xff] }
  0xdf   :  { %1685 = vmatprep.mubr.f32.mxu1 %v400_v3  ;;  %v127_v2 = vld [vmem:[%s6983_s0 + $0x388] sm:$0xff]  ;;  %v129_v3 = vld [vmem:[%s6983_s0 + $0x398] sm:$0xff] }
  0xe1   :  { %1541 = vmatmul.mubr.f32.gmra.mrb[94].mxu0 %v397_v4  ;;  %v4061_v4 = vpack.c.bf16 %v677_v56, %v676_v55  ;;  %v178_v56 = vld [vmem:[%s6983_s0 + $0x520] sm:$0xff] }
  0xe2   :  { %1686 = vmatmul.mubr.f32.gmra.mrb[94].mxu1 %v399_v5  ;;  %1755 = vmatprep.mubr.f32.mxu0 %v27_v6  ;;  %v4093_v5 = vpack.c.bf16 %v709_v59, %v708_v57  ;;  %v4063_v6 = vpack.c.bf16 %v695_v61, %v694_v60  ;;  %v202_v57 = vld [vmem:[%s6983_s0 + $0x5e0] sm:$0xff] }
  0xe3   :  { %1900 = vmatprep.mubr.f32.mxu1 %v29_v9  ;;  %v710_v9 = vld [vmem:[%s6982_s1 + $0x940] sm:$0xff] }
  0xe5   :  { %1756 = vmatmul.mubr.f32.vlgmr.msra.gmra.mrb[96].mxu0 %v26_v14  ;;  %v126_v14 = vld [vmem:[%s6983_s0 + $0x380] sm:$0xff] }
  0xe6   :  { %1901 = vmatmul.mubr.f32.vlgmr.msra.gmra.mrb[96].mxu1 %v28_v18  ;;  %4050 = vmatpush3.bf16.msra.mxu0 %v4049_v15  ;;  %v728_v15 = vld [vmem:[%s6982_s1 + $0x9d0] sm:$0xff] }
  0xe7   :  { %4082 = vmatpush3.bf16.msra.mxu1 %v4081_v19  ;;  %1760 = vmatprep.mubr.f32.mxu0 %v52_v20  ;;  %v152_v18 = vld [vmem:[%s6983_s0 + $0x450] sm:$0xff]  ;;  %v154_v19 = vld [vmem:[%s6983_s0 + $0x460] sm:$0xff]  ;;  %v4065_v20 = vpack.c.bf16 %v679_v8, %v678_v7  ;;  %v751_v8 = vld [vmem:[%s6982_s1 + $0xa88] sm:$0xff] }
  0xe8   :  { %1905 = vmatprep.mubr.f32.mxu1 %v54_v21  ;;  %4052 = vmatprep.subr.bf16.mxu0 %v4051_v22  ;;  %v4097_v21 = vpack.c.bf16 %v711_v11, %v710_v9  ;;  %v4067_v22 = vpack.c.bf16 %v697_v13, %v696_v12  ;;  %v750_v7 = vld [vmem:[%s6982_s1 + $0xa80] sm:$0xff]  ;;  %v201_v12 = vld [vmem:[%s6983_s0 + $0x5d8] sm:$0xff] }
  0xe9   :  { %1761 = vmatmul.mubr.f32.gmra.mrb[98].mxu0 %v51_v30  ;;  %4084 = vmatprep.subr.bf16.mxu1 %v4083_v26  ;;  %v4099_v26 = vpack.c.bf16 %v729_v16, %v728_v15  ;;  %v151_v30 = vld [vmem:[%s6983_s0 + $0x448] sm:$0xff]  ;;  %v782_v13 = vld [vmem:[%s6982_s1 + $0xb80] sm:$0xff] }
  0xea   :  { %1906 = vmatmul.mubr.f32.gmra.mrb[98].mxu1 %v53_v33  ;;  %1765 = vmatprep.mubr.f32.mxu0 %v77_v34  ;;  %v5815_v33 = vld [vmem:[%s6984_s2] ss:$0 sm:$0xff]  ;;  %v153_v34 = vld [vmem:[%s6983_s0 + $0x458] sm:$0xff]  ;;  %v203_v16 = vld [vmem:[%s6983_s0 + $0x5e8] sm:$0xff] }
  0xeb   :  { %1910 = vmatprep.mubr.f32.mxu1 %v79_v35  ;;  %4054 = vmatpush3.bf16.msra.mxu0 %v4053_v36  ;;  %v177_v35 = vld [vmem:[%s6983_s0 + $0x518] sm:$0xff]  ;;  %v179_v36 = vld [vmem:[%s6983_s0 + $0x528] sm:$0xff] }
  0xec   :  { %4086 = vmatpush3.bf16.msra.mxu1 %v4085_v37  ;;  %4056 = vmatprep.subr.bf16.mxu0 %v4055_v38  ;;  %v4069_v37 = vpack.c.bf16 %v681_v24, %v680_v23  ;;  %v4111_v23 = vpack.c.bf16 %v751_v8, %v750_v7 }
  0xed   :  { %1766 = vmatmul.mubr.f32.gmra.mrb[100].mxu0 %v76_v46  ;;  %4088 = vmatprep.subr.bf16.mxu1 %v4087_v42  ;;  %v683_v42 = vld [vmem:[%s6982_s1 + $0x868] sm:$0xff]  ;;  %v4103_v46 = vpack.c.bf16 %v731_v32, %v730_v31  ;;  %v228_v32 = vld [vmem:[%s6983_s0 + $0x6b0] sm:$0xff] }
  0xee   :  { %1911 = vmatmul.mubr.f32.gmra.mrb[100].mxu1 %v78_v49  ;;  %1770 = vmatprep.mubr.f32.mxu0 %v102_v50  ;;  %v701_v49 = vld [vmem:[%s6982_s1 + $0x8f8] sm:$0xff]  ;;  %v4073_v59 = vpack.c.bf16 %v683_v42, %v682_v41 }
  0xef   :  { %1915 = vmatprep.mubr.f32.mxu1 %v104_v51  ;;  %4058 = vmatpush3.bf16.msra.mxu0 %v4057_v52  ;;  %v176_v52 = vld [vmem:[%s6983_s0 + $0x510] sm:$0xff]  ;;  %v4075_v63 = vpack.c.bf16 %v701_v49, %v700_v48  ;;  %v279_v49 = vld [vmem:[%s6983_s0 + $0x848] sm:$0xff] }
  0xf0   :  { %4090 = vmatpush3.bf16.msra.mxu1 %v4089_v53  ;;  %4060 = vmatprep.subr.bf16.mxu0 %v4059_v54  ;;  %v732_v53 = vld [vmem:[%s6982_s1 + $0x9f0] sm:$0xff]  ;;  %v733_v54 = vld [vmem:[%s6982_s1 + $0x9f8] sm:$0xff] }
  0xf1   :  { %1771 = vmatmul.mubr.f32.gmra.mrb[102].mxu0 %v101_v62  ;;  %4092 = vmatprep.subr.bf16.mxu1 %v4091_v58  ;;  %v204_v58 = vld [vmem:[%s6983_s0 + $0x5f0] sm:$0xff]  ;;  %v4105_v62 = vpack.c.bf16 %v715_v47, %v714_v43  ;;  %v251_v43 = vld [vmem:[%s6983_s0 + $0x768] sm:$0xff] }
  0xf2   :  { %1916 = vmatmul.mubr.f32.gmra.mrb[102].mxu1 %v103_v1  ;;  %1775 = vmatprep.mubr.f32.mxu0 %v127_v2  ;;  %v685_v1 = vld [vmem:[%s6982_s1 + $0x878] sm:$0xff]  ;;  %v716_v2 = vld [vmem:[%s6982_s1 + $0x970] sm:$0xff] }
  0xf3   :  { %1920 = vmatprep.mubr.f32.mxu1 %v129_v3  ;;  %4062 = vmatpush3.bf16.msra.mxu0 %v4061_v4 }
  0xf4   :  { %4094 = vmatpush3.bf16.msra.mxu1 %v4093_v5  ;;  %4064 = vmatprep.subr.bf16.mxu0 %v4063_v6  ;;  %v4107_v5 = vpack.c.bf16 %v733_v54, %v732_v53  ;;  %v717_v6 = vld [vmem:[%s6982_s1 + $0x978] sm:$0xff] }
  0xf5   :  { %1776 = vmatmul.mubr.f32.gmra.mrb[104].mxu0 %v126_v14  ;;  %4096 = vmatprep.subr.bf16.mxu1 %v4095_v10  ;;  %v783_v14 = vld [vmem:[%s6982_s1 + $0xb88] sm:$0xff] }
  0xf6   :  { %1921 = vmatmul.mubr.f32.gmra.mrb[104].mxu1 %v128_v17  ;;  %1780 = vmatprep.mubr.f32.mxu0 %v152_v18  ;;  %v227_v17 = vld [vmem:[%s6983_s0 + $0x6a8] sm:$0xff]  ;;  %v4077_v18 = vpack.c.bf16 %v685_v1, %v684_v0 }
  0xf7   :  { %1925 = vmatprep.mubr.f32.mxu1 %v154_v19  ;;  %4066 = vmatpush3.bf16.msra.mxu0 %v4065_v20 }
  0xf8   :  { %v2775_v38 = vpop.f32.mrb[0].mxu0  ;;  %4098 = vmatpush3.bf16.msra.mxu1 %v4097_v21  ;;  %4068 = vmatprep.subr.bf16.mxu0 %v4067_v22  ;;  %v229_v21 = vld [vmem:[%s6983_s0 + $0x6b8] sm:$0xff]  ;;  %v4109_v22 = vpack.c.bf16 %v717_v6, %v716_v2  ;;  %v327_v6 = vld [vmem:[%s6983_s0 + $0x9c8] sm:$0xff] }
  0xf9   :  { %v2855_v44 = vpop.f32.mrb[0].mxu1  ;;  %v2776_v45 = vpop.f32.mrb[1].mxu0  ;;  %1781 = vmatmul.mubr.f32.gmra.mrb[106].mxu0 %v151_v30  ;;  %4100 = vmatprep.subr.bf16.mxu1 %v4099_v26  ;;  %v4143_v26 = vpack.c.bf16 %v783_v14, %v782_v13  ;;  %v226_v30 = vld [vmem:[%s6983_s0 + $0x6a0] sm:$0xff] }
  0xfa   :  { %v2777_v50 = vadd.f32 %v2776_v45, %v2775_v38  ;;  %v2856_v51 = vpop.f32.mrb[1].mxu1  ;;  %1926 = vmatmul.mubr.f32.gmra.mrb[106].mxu1 %v153_v34  ;;  %1785 = vmatprep.mubr.f32.mxu0 %v177_v35  ;;  %v252_v34 = vld [vmem:[%s6983_s0 + $0x770] sm:$0xff]  ;;  %v253_v45 = vld [vmem:[%s6983_s0 + $0x778] sm:$0xff] }
  0xfb   :  { %v2857_v55 = vadd.f32 %v2856_v51, %v2855_v44  ;;  %1930 = vmatprep.mubr.f32.mxu1 %v179_v36  ;;  %4070 = vmatpush3.bf16.msra.mxu0 %v4069_v37  ;;  %v254_v37 = vld [vmem:[%s6983_s0 + $0x780] sm:$0xff] }
  0xfc   :  { %v888_v60 = vadd.f32 %v2777_v50, %v5815_v33  ;;  %v2778_v61 = vpop.f32.mrb[2].mxu0  ;;  %4102 = vmatpush3.bf16.msra.mxu1 %v4101_v39  ;;  %4072 = vmatprep.subr.bf16.mxu0 %v4071_v40 }
  0xfd   :  { %v2858_v3 = vpop.f32.mrb[2].mxu1  ;;  %v2779_v4 = vpop.f32.mrb[3].mxu0  ;;  %1786 = vmatmul.mubr.f32.gmra.mrb[108].mxu0 %v176_v52  ;;  %4104 = vmatprep.subr.bf16.mxu1 %v4103_v46  ;;  %v277_v46 = vld [vmem:[%s6983_s0 + $0x838] sm:$0xff] }
  0xfe   :  { %v5881_v9 = vadd.f32 %v2857_v55, %v888_v60  ;;  %v2780_v10 = vadd.f32 %v2779_v4, %v2778_v61  ;;  %v2859_v11 = vpop.f32.mrb[3].mxu1  ;;  %1931 = vmatmul.mubr.f32.gmra.mrb[108].mxu1 %v178_v56  ;;  %1790 = vmatprep.mubr.f32.mxu0 %v202_v57  ;;  %v276_v55 = vld [vmem:[%s6983_s0 + $0x830] sm:$0xff]  ;;  %v278_v57 = vld [vmem:[%s6983_s0 + $0x840] sm:$0xff] }
  0xff   :  { %v2860_v15 = vadd.f32 %v2859_v11, %v2858_v3  ;;  %1935 = vmatprep.mubr.f32.mxu1 %v204_v58  ;;  %4074 = vmatpush3.bf16.msra.mxu0 %v4073_v59  ;;  %v302_v58 = vld [vmem:[%s6983_s0 + $0x900] sm:$0xff]  ;;  %v304_v61 = vld [vmem:[%s6983_s0 + $0x910] sm:$0xff]  ;;  %v301_v3 = vld [vmem:[%s6983_s0 + $0x8f8] sm:$0xff] }
 0x100   :  { %v893_v19 = vadd.f32 %v2780_v10, %v5815_v33  ;;  %v2781_v20 = vpop.f32.mrb[4].mxu0  ;;  %4106 = vmatpush3.bf16.msra.mxu1 %v4105_v62  ;;  %4076 = vmatprep.subr.bf16.mxu0 %v4075_v63  ;;  %v329_v10 = vld [vmem:[%s6983_s0 + $0x9d8] sm:$0xff] }
 0x101   :  { %v2861_v24 = vpop.f32.mrb[4].mxu1  ;;  %v2782_v25 = vpop.f32.mrb[5].mxu0  ;;  %1791 = vmatmul.mubr.f32.gmra.mrb[110].mxu0 %v201_v12  ;;  %4108 = vmatprep.subr.bf16.mxu1 %v4107_v5  ;;  %v303_v5 = vld [vmem:[%s6983_s0 + $0x908] sm:$0xff] }
 0x102   :  { %v5902_v27 = vadd.f32 %v2860_v15, %v893_v19  ;;  %v2783_v28 = vadd.f32 %v2782_v25, %v2781_v20  ;;  %v2862_v29 = vpop.f32.mrb[5].mxu1  ;;  %1936 = vmatmul.mubr.f32.gmra.mrb[110].mxu1 %v203_v16  ;;  %1795 = vmatprep.mubr.f32.mxu0 %v227_v17  ;;  %v326_v16 = vld [vmem:[%s6983_s0 + $0x9c0] sm:$0xff]  ;;  %v352_v19 = vld [vmem:[%s6983_s0 + $0xa90] sm:$0xff] }
 0x103   :  { %v2863_v31 = vadd.f32 %v2862_v29, %v2861_v24  ;;  %1940 = vmatprep.mubr.f32.mxu1 %v229_v21  ;;  %4078 = vmatpush3.bf16.msra.mxu0 %v4077_v18  ;;  %v328_v18 = vld [vmem:[%s6983_s0 + $0x9d0] sm:$0xff]  ;;  %v351_v29 = vld [vmem:[%s6983_s0 + $0xa88] sm:$0xff] }
 0x104   :  { %v898_v35 = vadd.f32 %v2783_v28, %v5815_v33  ;;  %v2784_v36 = vpop.f32.mrb[6].mxu0  ;;  %4110 = vmatpush3.bf16.msra.mxu1 %v4109_v22  ;;  %4112 = vmatprep.subr.bf16.mxu0 %v4111_v23  ;;  %v354_v22 = vld [vmem:[%s6983_s0 + $0xaa0] sm:$0xff] }
 0x105   :  { %v2864_v38 = vpop.f32.mrb[6].mxu1  ;;  %v2785_v39 = vpop.f32.mrb[7].mxu0  ;;  %1796 = vmatmul.mubr.f32.gmra.mrb[112].mxu0 %v226_v30  ;;  %4144 = vmatprep.subr.bf16.mxu1 %v4143_v26 }
 0x106   :  { %v5917_v40 = vadd.f32 %v2863_v31, %v898_v35  ;;  %v2786_v41 = vadd.f32 %v2785_v39, %v2784_v36  ;;  %v2865_v42 = vpop.f32.mrb[7].mxu1  ;;  %1941 = vmatmul.mubr.f32.gmra.mrb[112].mxu1 %v228_v32  ;;  %1800 = vmatprep.mubr.f32.mxu0 %v252_v34  ;;  %v353_v31 = vld [vmem:[%s6983_s0 + $0xa98] sm:$0xff]  ;;  %v379_v36 = vld [vmem:[%s6983_s0 + $0xb68] sm:$0xff] }
 0x107   :  { %v2866_v44 = vadd.f32 %v2865_v42, %v2864_v38  ;;  %1945 = vmatprep.mubr.f32.mxu1 %v254_v37  ;;  %v377_v32 = vld [vmem:[%s6983_s0 + $0xb58] sm:$0xff] }
 0x108   :  { %v903_v47 = vadd.f32 %v2786_v41, %v5815_v33  ;;  %v2787_v48 = vpop.f32.mrb[8].mxu0 }
 0x109   :  { %v2867_v50 = vpop.f32.mrb[8].mxu1  ;;  %v2788_v51 = vpop.f32.mrb[9].mxu0  ;;  %1801 = vmatmul.mubr.f32.gmra.mrb[114].mxu0 %v251_v43  ;;  %v376_v43 = vld [vmem:[%s6983_s0 + $0xb50] sm:$0xff] }
 0x10a   :  { %v5932_v52 = vadd.f32 %v2866_v44, %v903_v47  ;;  %v2789_v53 = vadd.f32 %v2788_v51, %v2787_v48  ;;  %v2868_v54 = vpop.f32.mrb[9].mxu1  ;;  %1946 = vmatmul.mubr.f32.gmra.mrb[114].mxu1 %v253_v45  ;;  %1805 = vmatprep.mubr.f32.mxu0 %v277_v46  ;;  %v378_v45 = vld [vmem:[%s6983_s0 + $0xb60] sm:$0xff] }
 0x10b   :  { %v2869_v56 = vadd.f32 %v2868_v54, %v2867_v50  ;;  %1950 = vmatprep.mubr.f32.mxu1 %v279_v49  ;;  %v402_v46 = vld [vmem:[%s6983_s0 + $0xc20] sm:$0xff]  ;;  %v404_v49 = vld [vmem:[%s6983_s0 + $0xc30] sm:$0xff] }
 0x10c   :  { %v908_v59 = vadd.f32 %v2789_v53, %v5815_v33  ;;  %v2790_v60 = vpop.f32.mrb[10].mxu0 }
 0x10d   :  { %v2870_v62 = vpop.f32.mrb[10].mxu1  ;;  %v2791_v63 = vpop.f32.mrb[11].mxu0  ;;  %1806 = vmatmul.mubr.f32.gmra.mrb[116].mxu0 %v276_v55 }
 0x10e   :  { %v5947_v0 = vadd.f32 %v2869_v56, %v908_v59  ;;  %v2792_v1 = vadd.f32 %v2791_v63, %v2790_v60  ;;  %v2871_v2 = vpop.f32.mrb[11].mxu1  ;;  %1951 = vmatmul.mubr.f32.gmra.mrb[116].mxu1 %v278_v57  ;;  %1810 = vmatprep.mubr.f32.mxu0 %v302_v58  ;;  %v401_v56 = vld [vmem:[%s6983_s0 + $0xc18] sm:$0xff]  ;;  %v403_v57 = vld [vmem:[%s6983_s0 + $0xc28] sm:$0xff]  ;;  %v734_v60 = vld [vmem:[%s6982_s1 + $0xa00] sm:$0xff] }
 0x10f   :  { %v2872_v4 = vadd.f32 %v2871_v2, %v2870_v62  ;;  %1955 = vmatprep.mubr.f32.mxu1 %v304_v61  ;;  %v31_v59 = vld [vmem:[%s6983_s0 + $0x88] sm:$0xff]  ;;  %v766_v2 = vld [vmem:[%s6982_s1 + $0xb00] sm:$0xff] }
 0x110   :  { %v913_v7 = vadd.f32 %v2792_v1, %v5815_v33  ;;  %v2793_v8 = vpop.f32.mrb[12].mxu0  ;;  %v735_v61 = vld [vmem:[%s6982_s1 + $0xa08] sm:$0xff]  ;;  %v33_v1 = vld [vmem:[%s6983_s0 + $0x98] sm:$0xff] }
 0x111   :  { %v2873_v11 = vpop.f32.mrb[12].mxu1  ;;  %v2794_v12 = vpop.f32.mrb[13].mxu0  ;;  %1811 = vmatmul.mubr.f32.gmra.mrb[118].mxu0 %v301_v3  ;;  %v767_v3 = vld [vmem:[%s6982_s1 + $0xb08] sm:$0xff] }
 0x112   :  { %v5962_v13 = vadd.f32 %v2872_v4, %v913_v7  ;;  %v2795_v14 = vadd.f32 %v2794_v12, %v2793_v8  ;;  %v2874_v15 = vpop.f32.mrb[13].mxu1  ;;  %1956 = vmatmul.mubr.f32.gmra.mrb[118].mxu1 %v303_v5  ;;  %1815 = vmatprep.mubr.f32.mxu0 %v327_v6  ;;  %v752_v6 = vld [vmem:[%s6982_s1 + $0xa90] sm:$0xff]  ;;  %v753_v7 = vld [vmem:[%s6982_s1 + $0xa98] sm:$0xff]  ;;  %v30_v12 = vld [vmem:[%s6983_s0 + $0x80] sm:$0xff] }
 0x113   :  { %v2875_v17 = vadd.f32 %v2874_v15, %v2873_v11  ;;  %1960 = vmatprep.mubr.f32.mxu1 %v329_v10  ;;  %v784_v15 = vld [vmem:[%s6982_s1 + $0xb90] sm:$0xff] }
 0x114   :  { %v918_v20 = vadd.f32 %v2795_v14, %v5815_v33  ;;  %v2796_v21 = vpop.f32.mrb[14].mxu0  ;;  %v4113_v14 = vpack.c.bf16 %v735_v61, %v734_v60 }
 0x115   :  { %v2876_v23 = vpop.f32.mrb[14].mxu1  ;;  %v2797_v24 = vpop.f32.mrb[15].mxu0  ;;  %1816 = vmatmul.mubr.f32.gmra.mrb[120].mxu0 %v326_v16  ;;  %v785_v16 = vld [vmem:[%s6982_s1 + $0xb98] sm:$0xff] }
 0x116   :  { %v5977_v25 = vadd.f32 %v2875_v17, %v918_v20  ;;  %v2798_v26 = vadd.f32 %v2797_v24, %v2796_v21  ;;  %v2877_v28 = vpop.f32.mrb[15].mxu1  ;;  %1961 = vmatmul.mubr.f32.gmra.mrb[120].mxu1 %v328_v18  ;;  %1820 = vmatprep.mubr.f32.mxu0 %v352_v19  ;;  %v32_v18 = vld [vmem:[%s6983_s0 + $0x90] sm:$0xff]  ;;  %v4145_v19 = vpack.c.bf16 %v767_v3, %v766_v2  ;;  %v58_v21 = vld [vmem:[%s6983_s0 + $0x160] sm:$0xff] }
 0x117   :  { %v2878_v30 = vadd.f32 %v2877_v28, %v2876_v23  ;;  %1965 = vmatprep.mubr.f32.mxu1 %v354_v22  ;;  %v56_v20 = vld [vmem:[%s6983_s0 + $0x150] sm:$0xff]  ;;  %v4115_v24 = vpack.c.bf16 %v753_v7, %v752_v6  ;;  %v737_v28 = vld [vmem:[%s6982_s1 + $0xa18] sm:$0xff] }
 0x118   :  { %v923_v34 = vadd.f32 %v2798_v26, %v5815_v33  ;;  %v2799_v35 = vpop.f32.mrb[16].mxu0  ;;  %v736_v26 = vld [vmem:[%s6982_s1 + $0xa10] sm:$0xff]  ;;  %v789_v7 = vld [vmem:[%s6982_s1 + $0xbb8] sm:$0xff] }
 0x119   :  { %v2879_v37 = vpop.f32.mrb[16].mxu1  ;;  %v2800_v38 = vpop.f32.mrb[17].mxu0  ;;  %1821 = vmatmul.mubr.f32.gmra.mrb[122].mxu0 %v351_v29  ;;  %v768_v29 = vld [vmem:[%s6982_s1 + $0xb10] sm:$0xff] }
 0x11a   :  { %v5992_v39 = vadd.f32 %v2878_v30, %v923_v34  ;;  %v2801_v41 = vadd.f32 %v2800_v38, %v2799_v35  ;;  %v2880_v42 = vpop.f32.mrb[17].mxu1  ;;  %1966 = vmatmul.mubr.f32.gmra.mrb[122].mxu1 %v353_v31  ;;  %1825 = vmatprep.mubr.f32.mxu0 %v377_v32  ;;  %v4147_v32 = vpack.c.bf16 %v785_v16, %v784_v15  ;;  %v769_v34 = vld [vmem:[%s6982_s1 + $0xb18] sm:$0xff]  ;;  %v754_v35 = vld [vmem:[%s6982_s1 + $0xaa0] sm:$0xff]  ;;  %v788_v6 = vld [vmem:[%s6982_s1 + $0xbb0] sm:$0xff] }
 0x11b   :  { %v2881_v44 = vadd.f32 %v2880_v42, %v2879_v37  ;;  %1970 = vmatprep.mubr.f32.mxu1 %v379_v36  ;;  %v755_v36 = vld [vmem:[%s6982_s1 + $0xaa8] sm:$0xff] }
 0x11c   :  { %v928_v47 = vadd.f32 %v2801_v41, %v5815_v33  ;;  %v2802_v48 = vpop.f32.mrb[18].mxu0  ;;  %v55_v42 = vld [vmem:[%s6983_s0 + $0x148] sm:$0xff] }
 0x11d   :  { %v2882_v50 = vpop.f32.mrb[18].mxu1  ;;  %v2803_v51 = vpop.f32.mrb[19].mxu0  ;;  %1826 = vmatmul.mubr.f32.gmra.mrb[124].mxu0 %v376_v43  ;;  %v786_v43 = vld [vmem:[%s6982_s1 + $0xba0] sm:$0xff] }
 0x11e   :  { %v6007_v53 = vadd.f32 %v2881_v44, %v928_v47  ;;  %v2804_v54 = vadd.f32 %v2803_v51, %v2802_v48  ;;  %v2883_v55 = vpop.f32.mrb[19].mxu1  ;;  %1971 = vmatmul.mubr.f32.gmra.mrb[124].mxu1 %v378_v45  ;;  %1830 = vmatprep.mubr.f32.mxu0 %v402_v46  ;;  %v787_v44 = vld [vmem:[%s6982_s1 + $0xba8] sm:$0xff]  ;;  %v57_v46 = vld [vmem:[%s6983_s0 + $0x158] sm:$0xff] }
 0x11f   :  { %v2884_v58 = vadd.f32 %v2883_v55, %v2882_v50  ;;  %1975 = vmatprep.mubr.f32.mxu1 %v404_v49  ;;  %v81_v47 = vld [vmem:[%s6983_s0 + $0x218] sm:$0xff]  ;;  %v83_v48 = vld [vmem:[%s6983_s0 + $0x228] sm:$0xff]  ;;  %v4117_v49 = vpack.c.bf16 %v737_v28, %v736_v26  ;;  %v4119_v55 = vpack.c.bf16 %v755_v36, %v754_v35  ;;  %v4151_v61 = vpack.c.bf16 %v787_v44, %v786_v43  ;;  %v790_v36 = vld [vmem:[%s6982_s1 + $0xbc0] sm:$0xff] }
 0x120   :  { %v933_v62 = vadd.f32 %v2804_v54, %v5815_v33  ;;  %v2805_v63 = vpop.f32.mrb[20].mxu0  ;;  %v4149_v54 = vpack.c.bf16 %v769_v34, %v768_v29  ;;  %v4155_v26 = vpack.c.bf16 %v789_v7, %v788_v6  ;;  %v773_v28 = vld [vmem:[%s6982_s1 + $0xb38] sm:$0xff]  ;;  %v758_v29 = vld [vmem:[%s6982_s1 + $0xac0] sm:$0xff]  ;;  %v131_v43 = vld [vmem:[%s6983_s0 + $0x3a8] sm:$0xff] }
 0x121   :  { %v2885_v4 = vpop.f32.mrb[20].mxu1  ;;  %v2806_v5 = vpop.f32.mrb[21].mxu0  ;;  %1831 = vmatmul.mubr.f32.gmra.mrb[126].mxu0 %v401_v56  ;;  %v738_v56 = vld [vmem:[%s6982_s1 + $0xa20] sm:$0xff]  ;;  %v105_v35 = vld [vmem:[%s6983_s0 + $0x2d8] sm:$0xff]  ;;  %v132_v6 = vld [vmem:[%s6983_s0 + $0x3b0] sm:$0xff] }
 0x122   :  { %v6040_v8 = vadd.f32 %v2884_v58, %v933_v62  ;;  %v2807_v10 = vadd.f32 %v2806_v5, %v2805_v63  ;;  %v2886_v11 = vpop.f32.mrb[21].mxu1  ;;  %1976 = vmatmul.mubr.f32.gmra.mrb[126].mxu1 %v403_v57  ;;  %2045 = vmatprep.mubr.f32.mxu0 %v31_v59  ;;  %v739_v57 = vld [vmem:[%s6982_s1 + $0xa28] sm:$0xff]  ;;  %v770_v58 = vld [vmem:[%s6982_s1 + $0xb20] sm:$0xff]  ;;  %v756_v63 = vld [vmem:[%s6982_s1 + $0xab0] sm:$0xff] }
 0x123   :  { %v2887_v17 = vadd.f32 %v2886_v11, %v2885_v4  ;;  %2190 = vmatprep.mubr.f32.mxu1 %v33_v1  ;;  %v771_v62 = vld [vmem:[%s6982_s1 + $0xb28] sm:$0xff]  ;;  %v757_v1 = vld [vmem:[%s6982_s1 + $0xab8] sm:$0xff]  ;;  %v80_v5 = vld [vmem:[%s6983_s0 + $0x210] sm:$0xff]  ;;  %v4121_v15 = vpack.c.bf16 %v739_v57, %v738_v56 }
 0x124   :  { %v938_v22 = vadd.f32 %v2807_v10, %v5815_v33  ;;  %v2808_v23 = vpop.f32.mrb[22].mxu0  ;;  %v82_v11 = vld [vmem:[%s6983_s0 + $0x220] sm:$0xff]  ;;  %v133_v44 = vld [vmem:[%s6983_s0 + $0x3b8] sm:$0xff]  ;;  %v156_v7 = vld [vmem:[%s6983_s0 + $0x470] sm:$0xff] }
 0x125   :  { %v2888_v30 = vpop.f32.mrb[22].mxu1  ;;  %v2809_v31 = vpop.f32.mrb[23].mxu0  ;;  %2046 = vmatmul.mubr.f32.vlgmr.msra.gmra.mrb[128].mxu0 %v30_v12  ;;  %v106_v12 = vld [vmem:[%s6983_s0 + $0x2e0] sm:$0xff] }
 0x126   :  { %v6079_v37 = vadd.f32 %v2887_v17, %v938_v22  ;;  %v2810_v38 = vadd.f32 %v2809_v31, %v2808_v23  ;;  %v2889_v41 = vpop.f32.mrb[23].mxu1  ;;  %2191 = vmatmul.mubr.f32.vlgmr.msra.gmra.mrb[128].mxu1 %v32_v18  ;;  %4114 = vmatpush3.bf16.msra.mxu0 %v4113_v14  ;;  %v108_v14 = vld [vmem:[%s6983_s0 + $0x2f0] sm:$0xff]  ;;  %v4153_v18 = vpack.c.bf16 %v771_v62, %v770_v58  ;;  %v775_v58 = vld [vmem:[%s6982_s1 + $0xb48] sm:$0xff] }
 0x127   :  { %v2890_v45 = vadd.f32 %v2889_v41, %v2888_v30  ;;  %4146 = vmatpush3.bf16.msra.mxu1 %v4145_v19  ;;  %2050 = vmatprep.mubr.f32.mxu0 %v56_v20  ;;  %v4123_v19 = vpack.c.bf16 %v757_v1, %v756_v63  ;;  %v740_v20 = vld [vmem:[%s6982_s1 + $0xa30] sm:$0xff]  ;;  %v759_v30 = vld [vmem:[%s6982_s1 + $0xac8] sm:$0xff]  ;;  %v130_v1 = vld [vmem:[%s6983_s0 + $0x3a0] sm:$0xff] }
 0x128   :  { %v943_v50 = vadd.f32 %v2810_v38, %v5815_v33  ;;  %v2811_v51 = vpop.f32.mrb[24].mxu0  ;;  %2195 = vmatprep.mubr.f32.mxu1 %v58_v21  ;;  %4116 = vmatprep.subr.bf16.mxu0 %v4115_v24  ;;  %v741_v21 = vld [vmem:[%s6982_s1 + $0xa38] sm:$0xff]  ;;  %v772_v22 = vld [vmem:[%s6982_s1 + $0xb30] sm:$0xff]  ;;  %v791_v38 = vld [vmem:[%s6982_s1 + $0xbc8] sm:$0xff] }
 0x129   :  { %v2891_v59 = vpop.f32.mrb[24].mxu1  ;;  %v2812_v60 = vpop.f32.mrb[25].mxu0  ;;  %2051 = vmatmul.mubr.f32.gmra.mrb[130].mxu0 %v55_v42  ;;  %4148 = vmatprep.subr.bf16.mxu1 %v4147_v32  ;;  %v107_v42 = vld [vmem:[%s6983_s0 + $0x2e8] sm:$0xff]  ;;  %v4159_v57 = vpack.c.bf16 %v791_v38, %v790_v36  ;;  %v157_v38 = vld [vmem:[%s6983_s0 + $0x478] sm:$0xff] }
 0x12a   :  { %v6118_v2 = vadd.f32 %v2890_v45, %v943_v50  ;;  %v2813_v3 = vadd.f32 %v2812_v60, %v2811_v51  ;;  %v2892_v4 = vpop.f32.mrb[25].mxu1  ;;  %2196 = vmatmul.mubr.f32.gmra.mrb[130].mxu1 %v57_v46  ;;  %2055 = vmatprep.mubr.f32.mxu0 %v81_v47  ;;  %v4125_v45 = vpack.c.bf16 %v741_v21, %v740_v20  ;;  %v742_v50 = vld [vmem:[%s6982_s1 + $0xa40] sm:$0xff]  ;;  %v743_v51 = vld [vmem:[%s6982_s1 + $0xa48] sm:$0xff]  ;;  %v761_v60 = vld [vmem:[%s6982_s1 + $0xad8] sm:$0xff] }
 0x12b   :  { %v2893_v10 = vadd.f32 %v2892_v4, %v2891_v59  ;;  %2200 = vmatprep.mubr.f32.mxu1 %v83_v48  ;;  %4118 = vmatpush3.bf16.msra.mxu0 %v4117_v49  ;;  %v4157_v48 = vpack.c.bf16 %v773_v28, %v772_v22  ;;  %v4127_v49 = vpack.c.bf16 %v759_v30, %v758_v29  ;;  %v760_v59 = vld [vmem:[%s6982_s1 + $0xad0] sm:$0xff]  ;;  %v793_v4 = vld [vmem:[%s6982_s1 + $0xbd8] sm:$0xff] }
 0x12c   :  { %v948_v16 = vadd.f32 %v2813_v3, %v5815_v33  ;;  %v2814_v17 = vpop.f32.mrb[26].mxu0  ;;  %4150 = vmatpush3.bf16.msra.mxu1 %v4149_v54  ;;  %4120 = vmatprep.subr.bf16.mxu0 %v4119_v55  ;;  %v774_v54 = vld [vmem:[%s6982_s1 + $0xb40] sm:$0xff]  ;;  %v792_v3 = vld [vmem:[%s6982_s1 + $0xbd0] sm:$0xff] }
 0x12d   :  { %v2894_v23 = vpop.f32.mrb[26].mxu1  ;;  %v2815_v24 = vpop.f32.mrb[27].mxu0  ;;  %2056 = vmatmul.mubr.f32.gmra.mrb[132].mxu0 %v80_v5  ;;  %4152 = vmatprep.subr.bf16.mxu1 %v4151_v61  ;;  %v4163_v22 = vpack.c.bf16 %v793_v4, %v792_v3  ;;  %v182_v4 = vld [vmem:[%s6983_s0 + $0x540] sm:$0xff] }
 0x12e   :  { %v6157_v31 = vadd.f32 %v2893_v10, %v948_v16  ;;  %v2816_v32 = vadd.f32 %v2815_v24, %v2814_v17  ;;  %v2895_v34 = vpop.f32.mrb[27].mxu1  ;;  %2201 = vmatmul.mubr.f32.gmra.mrb[132].mxu1 %v82_v11  ;;  %2060 = vmatprep.mubr.f32.mxu0 %v106_v12  ;;  %v158_v10 = vld [vmem:[%s6983_s0 + $0x480] sm:$0xff]  ;;  %v4129_v11 = vpack.c.bf16 %v743_v51, %v742_v50  ;;  %v744_v17 = vld [vmem:[%s6982_s1 + $0xa50] sm:$0xff] }
 0x12f   :  { %v2896_v41 = vadd.f32 %v2895_v34, %v2894_v23  ;;  %2205 = vmatprep.mubr.f32.mxu1 %v108_v14  ;;  %4122 = vmatpush3.bf16.msra.mxu0 %v4121_v15  ;;  %v4161_v15 = vpack.c.bf16 %v775_v58, %v774_v54  ;;  %v4131_v16 = vpack.c.bf16 %v761_v60, %v760_v59  ;;  %v777_v23 = vld [vmem:[%s6982_s1 + $0xb58] sm:$0xff]  ;;  %v762_v24 = vld [vmem:[%s6982_s1 + $0xae0] sm:$0xff] }
 0x130   :  { %v953_v46 = vadd.f32 %v2816_v32, %v5815_v33  ;;  %v2817_v47 = vpop.f32.mrb[28].mxu0  ;;  %4154 = vmatpush3.bf16.msra.mxu1 %v4153_v18  ;;  %4124 = vmatprep.subr.bf16.mxu0 %v4123_v19  ;;  %v745_v18 = vld [vmem:[%s6982_s1 + $0xa58] sm:$0xff]  ;;  %v776_v19 = vld [vmem:[%s6982_s1 + $0xb50] sm:$0xff]  ;;  %v155_v32 = vld [vmem:[%s6983_s0 + $0x468] sm:$0xff] }
 0x131   :  { %v2897_v55 = vpop.f32.mrb[28].mxu1  ;;  %v2818_v56 = vpop.f32.mrb[29].mxu0  ;;  %2061 = vmatmul.mubr.f32.gmra.mrb[134].mxu0 %v105_v35  ;;  %4156 = vmatprep.subr.bf16.mxu1 %v4155_v26  ;;  %v763_v26 = vld [vmem:[%s6982_s1 + $0xae8] sm:$0xff]  ;;  %v794_v34 = vld [vmem:[%s6982_s1 + $0xbe0] sm:$0xff] }
 0x132   :  { %v6196_v61 = vadd.f32 %v2896_v41, %v953_v46  ;;  %v2819_v62 = vadd.f32 %v2818_v56, %v2817_v47  ;;  %v2898_v63 = vpop.f32.mrb[29].mxu1  ;;  %2206 = vmatmul.mubr.f32.gmra.mrb[134].mxu1 %v107_v42  ;;  %2065 = vmatprep.mubr.f32.mxu0 %v131_v43  ;;  %v795_v35 = vld [vmem:[%s6982_s1 + $0xbe8] sm:$0xff]  ;;  %v181_v41 = vld [vmem:[%s6983_s0 + $0x538] sm:$0xff]  ;;  %v4133_v43 = vpack.c.bf16 %v745_v18, %v744_v17  ;;  %v778_v50 = vld [vmem:[%s6982_s1 + $0xb60] sm:$0xff] }
 0x133   :  { %v2899_v5 = vadd.f32 %v2898_v63, %v2897_v55  ;;  %2210 = vmatprep.mubr.f32.mxu1 %v133_v44  ;;  %4126 = vmatpush3.bf16.msra.mxu0 %v4125_v45  ;;  %v183_v42 = vld [vmem:[%s6983_s0 + $0x548] sm:$0xff]  ;;  %v4165_v46 = vpack.c.bf16 %v777_v23, %v776_v19  ;;  %v4135_v47 = vpack.c.bf16 %v763_v26, %v762_v24  ;;  %v764_v56 = vld [vmem:[%s6982_s1 + $0xaf0] sm:$0xff] }
 0x134   :  { %v958_v12 = vadd.f32 %v2819_v62, %v5815_v33  ;;  %v2820_v14 = vpop.f32.mrb[30].mxu0  ;;  %4158 = vmatpush3.bf16.msra.mxu1 %v4157_v48  ;;  %4128 = vmatprep.subr.bf16.mxu0 %v4127_v49  ;;  %v746_v48 = vld [vmem:[%s6982_s1 + $0xa60] sm:$0xff]  ;;  %v747_v49 = vld [vmem:[%s6982_s1 + $0xa68] sm:$0xff]  ;;  %v180_v62 = vld [vmem:[%s6983_s0 + $0x530] sm:$0xff] }
 0x135   :  { %v2900_v20 = vpop.f32.mrb[30].mxu1  ;;  %v2821_v21 = vpop.f32.mrb[31].mxu0  ;;  %2066 = vmatmul.mubr.f32.gmra.mrb[136].mxu0 %v130_v1  ;;  %4160 = vmatprep.subr.bf16.mxu1 %v4159_v57  ;;  %v779_v55 = vld [vmem:[%s6982_s1 + $0xb68] sm:$0xff]  ;;  %v765_v57 = vld [vmem:[%s6982_s1 + $0xaf8] sm:$0xff]  ;;  %v796_v63 = vld [vmem:[%s6982_s1 + $0xbf0] sm:$0xff] }
 0x136   :  { %v6235_v28 = vadd.f32 %v2899_v5, %v958_v12  ;;  %v2822_v29 = vadd.f32 %v2821_v21, %v2820_v14  ;;  %v2901_v30 = vpop.f32.mrb[31].mxu1  ;;  %2211 = vmatmul.mubr.f32.gmra.mrb[136].mxu1 %v132_v6  ;;  %2070 = vmatprep.mubr.f32.mxu0 %v156_v7  ;;  %v797_v1 = vld [vmem:[%s6982_s1 + $0xbf8] sm:$0xff]  ;;  %v206_v5 = vld [vmem:[%s6983_s0 + $0x600] sm:$0xff]  ;;  %v208_v6 = vld [vmem:[%s6983_s0 + $0x610] sm:$0xff]  ;;  %v4137_v7 = vpack.c.bf16 %v747_v49, %v746_v48 }
 0x137   :  { %v2902_v36 = vadd.f32 %v2901_v30, %v2900_v20  ;;  %2215 = vmatprep.mubr.f32.mxu1 %v158_v10  ;;  %4130 = vmatpush3.bf16.msra.mxu0 %v4129_v11  ;;  %v4169_v12 = vpack.c.bf16 %v779_v55, %v778_v50  ;;  %v4139_v14 = vpack.c.bf16 %v765_v57, %v764_v56  ;;  %v780_v17 = vld [vmem:[%s6982_s1 + $0xb70] sm:$0xff]  ;;  %v781_v20 = vld [vmem:[%s6982_s1 + $0xb78] sm:$0xff]  ;;  %v798_v21 = vld [vmem:[%s6982_s1 + $0xc00] sm:$0xff] }
 0x138   :  { %v963_v44 = vadd.f32 %v2822_v29, %v5815_v33  ;;  %v2935_v45 = vpop.f32.mrb[32].mxu0  ;;  %4162 = vmatpush3.bf16.msra.mxu1 %v4161_v15  ;;  %4132 = vmatprep.subr.bf16.mxu0 %v4131_v16  ;;  %v4167_v33 = vpack.c.bf16 %v795_v35, %v794_v34  ;;  %v748_v15 = vld [vmem:[%s6982_s1 + $0xa70] sm:$0xff]  ;;  %v749_v16 = vld [vmem:[%s6982_s1 + $0xa78] sm:$0xff]  ;;  %v231_v34 = vld [vmem:[%s6983_s0 + $0x6c8] sm:$0xff] }
 0x139   :  { %v3015_v51 = vpop.f32.mrb[32].mxu1  ;;  %v2936_v54 = vpop.f32.mrb[33].mxu0  ;;  %2071 = vmatmul.mubr.f32.gmra.mrb[138].mxu0 %v155_v32  ;;  %4164 = vmatprep.subr.bf16.mxu1 %v4163_v22  ;;  %v799_v22 = vld [vmem:[%s6982_s1 + $0xc08] sm:$0xff]  ;;  %v205_v29 = vld [vmem:[%s6983_s0 + $0x5f8] sm:$0xff]  ;;  %v4141_v35 = vpack.c.bf16 %v749_v16, %v748_v15  ;;  %v232_v50 = vld [vmem:[%s6983_s0 + $0x6d0] sm:$0xff] }
 0x13a   :  { %v6274_v58 = vadd.f32 %v2902_v36, %v963_v44  ;;  %v2937_v59 = vadd.f32 %v2936_v54, %v2935_v45  ;;  %v3016_v60 = vpop.f32.mrb[33].mxu1  ;;  %2216 = vmatmul.mubr.f32.gmra.mrb[138].mxu1 %v157_v38  ;;  %2075 = vmatprep.mubr.f32.mxu0 %v181_v41  ;;  %v207_v32 = vld [vmem:[%s6983_s0 + $0x608] sm:$0xff]  ;;  %v233_v41 = vld [vmem:[%s6983_s0 + $0x6d8] sm:$0xff]  ;;  %v258_v55 = vld [vmem:[%s6983_s0 + $0x7a0] sm:$0xff] }
 0x13b   :  { %v3017_v3 = vadd.f32 %v3016_v60, %v3015_v51  ;;  %2220 = vmatprep.mubr.f32.mxu1 %v183_v42  ;;  %4134 = vmatpush3.bf16.msra.mxu0 %v4133_v43  ;;  %v4173_v42 = vpack.c.bf16 %v781_v20, %v780_v17  ;;  %v6328_v43 = vpack.c.bf16 %v799_v22, %v798_v21  ;;  %v256_v51 = vld [vmem:[%s6983_s0 + $0x790] sm:$0xff]  ;;  %v306_v17 = vld [vmem:[%s6983_s0 + $0x920] sm:$0xff] }
 0x13c   :  { %v1178_v10 = vadd.f32 %v2937_v59, %v5881_v9  ;;  %v2938_v11 = vpop.f32.mrb[34].mxu0  ;;  %4166 = vmatpush3.bf16.msra.mxu1 %v4165_v46  ;;  %4136 = vmatprep.subr.bf16.mxu0 %v4135_v47  ;;  %v4171_v9 = vpack.c.bf16 %v797_v1, %v796_v63  ;;  %v257_v1 = vld [vmem:[%s6983_s0 + $0x798] sm:$0xff]  ;;  %v280_v15 = vld [vmem:[%s6983_s0 + $0x850] sm:$0xff] }
 0x13d   :  { %v3018_v18 = vpop.f32.mrb[34].mxu1  ;;  %v2939_v19 = vpop.f32.mrb[35].mxu0  ;;  %2076 = vmatmul.mubr.f32.gmra.mrb[140].mxu0 %v180_v62  ;;  %4168 = vmatprep.subr.bf16.mxu1 %v4167_v33 }
 0x13e   :  { %v6313_v23 = vadd.f32 %v3017_v3, %v1178_v10  ;;  %v2940_v24 = vadd.f32 %v2939_v19, %v2938_v11  ;;  %v3019_v26 = vpop.f32.mrb[35].mxu1  ;;  %2221 = vmatmul.mubr.f32.gmra.mrb[140].mxu1 %v182_v4  ;;  %2080 = vmatprep.mubr.f32.mxu0 %v206_v5  ;;  %v281_v3 = vld [vmem:[%s6983_s0 + $0x858] sm:$0xff] }
 0x13f   :  { %v3020_v30 = vadd.f32 %v3019_v26, %v3018_v18  ;;  %2225 = vmatprep.mubr.f32.mxu1 %v208_v6  ;;  %4138 = vmatpush3.bf16.msra.mxu0 %v4137_v7  ;;  %v283_v6 = vld [vmem:[%s6983_s0 + $0x868] sm:$0xff] }
 0x140   :  { %v1183_v36 = vadd.f32 %v2940_v24, %v5902_v27  ;;  %v2941_v38 = vpop.f32.mrb[36].mxu0  ;;  %4170 = vmatpush3.bf16.msra.mxu1 %v4169_v12  ;;  %4140 = vmatprep.subr.bf16.mxu0 %v4139_v14  ;;  %v230_v27 = vld [vmem:[%s6983_s0 + $0x6c0] sm:$0xff] }
 0x141   :  { %v3021_v44 = vpop.f32.mrb[36].mxu1  ;;  %v2942_v45 = vpop.f32.mrb[37].mxu0  ;;  %2081 = vmatmul.mubr.f32.gmra.mrb[142].mxu0 %v205_v29  ;;  %4172 = vmatprep.subr.bf16.mxu1 %v4171_v9  ;;  %v308_v9 = vld [vmem:[%s6983_s0 + $0x930] sm:$0xff]  ;;  %v305_v29 = vld [vmem:[%s6983_s0 + $0x918] sm:$0xff] }
 0x142   :  { %v6330_v46 = vadd.f32 %v3020_v30, %v1183_v36  ;;  %v2943_v47 = vadd.f32 %v2942_v45, %v2941_v38  ;;  %v3022_v48 = vpop.f32.mrb[37].mxu1  ;;  %2226 = vmatmul.mubr.f32.gmra.mrb[142].mxu1 %v207_v32  ;;  %2085 = vmatprep.mubr.f32.mxu0 %v231_v34  ;;  %v331_v32 = vld [vmem:[%s6983_s0 + $0x9e8] sm:$0xff]  ;;  %v333_v36 = vld [vmem:[%s6983_s0 + $0x9f8] sm:$0xff] }
 0x143   :  { %v3023_v49 = vadd.f32 %v3022_v48, %v3021_v44  ;;  %2230 = vmatprep.mubr.f32.mxu1 %v233_v41  ;;  %4142 = vmatpush3.bf16.msra.mxu0 %v4141_v35 }
 0x144   :  { %v1188_v54 = vadd.f32 %v2943_v47, %v5917_v40  ;;  %v2944_v33 = vpop.f32.mrb[38].mxu0  ;;  %4174 = vmatpush3.bf16.msra.mxu1 %v4173_v42  ;;  %4176 = vmatprep.subr.bf16.mxu0 %v6328_v43  ;;  %v255_v40 = vld [vmem:[%s6983_s0 + $0x788] sm:$0xff]  ;;  %v330_v47 = vld [vmem:[%s6983_s0 + $0x9e0] sm:$0xff] }
 0x145   :  { %v3024_v56 = vpop.f32.mrb[38].mxu1  ;;  %v2945_v57 = vpop.f32.mrb[39].mxu0  ;;  %2086 = vmatmul.mubr.f32.gmra.mrb[144].mxu0 %v230_v27  ;;  %4207 = vmatprep.subr.bf16.mxu1 %v6328_v43  ;;  %v356_v27 = vld [vmem:[%s6983_s0 + $0xab0] sm:$0xff] }
 0x146   :  { %v6347_v59 = vadd.f32 %v3023_v49, %v1188_v54  ;;  %v2946_v60 = vadd.f32 %v2945_v57, %v2944_v33  ;;  %v3025_v62 = vpop.f32.mrb[39].mxu1  ;;  %2231 = vmatmul.mubr.f32.gmra.mrb[144].mxu1 %v232_v50  ;;  %2090 = vmatprep.mubr.f32.mxu0 %v256_v51  ;;  %v358_v51 = vld [vmem:[%s6983_s0 + $0xac0] sm:$0xff] }
 0x147   :  { %v3026_v63 = vadd.f32 %v3025_v62, %v3024_v56  ;;  %2235 = vmatprep.mubr.f32.mxu1 %v258_v55 }
 0x148   :  { %v1193_v4 = vadd.f32 %v2946_v60, %v5932_v52  ;;  %v2947_v5 = vpop.f32.mrb[40].mxu0  ;;  %v282_v52 = vld [vmem:[%s6983_s0 + $0x860] sm:$0xff]  ;;  %v355_v60 = vld [vmem:[%s6983_s0 + $0xaa8] sm:$0xff] }
 0x149   :  { %v3027_v7 = vpop.f32.mrb[40].mxu1  ;;  %v2948_v10 = vpop.f32.mrb[41].mxu0  ;;  %2091 = vmatmul.mubr.f32.gmra.mrb[146].mxu0 %v255_v40  ;;  %v381_v40 = vld [vmem:[%s6983_s0 + $0xb78] sm:$0xff] }
 0x14a   :  { %v6362_v11 = vadd.f32 %v3026_v63, %v1193_v4  ;;  %v2949_v12 = vadd.f32 %v2948_v10, %v2947_v5  ;;  %v3028_v14 = vpop.f32.mrb[41].mxu1  ;;  %2236 = vmatmul.mubr.f32.gmra.mrb[146].mxu1 %v257_v1  ;;  %2095 = vmatprep.mubr.f32.mxu0 %v281_v3  ;;  %v383_v3 = vld [vmem:[%s6983_s0 + $0xb88] sm:$0xff] }
 0x14b   :  { %v3029_v16 = vadd.f32 %v3028_v14, %v3027_v7  ;;  %2240 = vmatprep.mubr.f32.mxu1 %v283_v6 }
 0x14c   :  { %v1198_v18 = vadd.f32 %v2949_v12, %v5947_v0  ;;  %v2950_v19 = vpop.f32.mrb[42].mxu0  ;;  %v307_v0 = vld [vmem:[%s6983_s0 + $0x928] sm:$0xff]  ;;  %v380_v12 = vld [vmem:[%s6983_s0 + $0xb70] sm:$0xff] }
 0x14d   :  { %v3030_v20 = vpop.f32.mrb[42].mxu1  ;;  %v2951_v21 = vpop.f32.mrb[43].mxu0  ;;  %2096 = vmatmul.mubr.f32.gmra.mrb[148].mxu0 %v280_v15  ;;  %v406_v15 = vld [vmem:[%s6983_s0 + $0xc40] sm:$0xff] }
 0x14e   :  { %v6377_v22 = vadd.f32 %v3029_v16, %v1198_v18  ;;  %v2952_v24 = vadd.f32 %v2951_v21, %v2950_v19  ;;  %v3031_v26 = vpop.f32.mrb[43].mxu1  ;;  %2241 = vmatmul.mubr.f32.gmra.mrb[148].mxu1 %v282_v52  ;;  %2100 = vmatprep.mubr.f32.mxu0 %v306_v17  ;;  %v408_v17 = vld [vmem:[%s6983_s0 + $0xc50] sm:$0xff] }
 0x14f   :  { %v3032_v30 = vadd.f32 %v3031_v26, %v3030_v20  ;;  %2245 = vmatprep.mubr.f32.mxu1 %v308_v9 }
 0x150   :  { %v1203_v34 = vadd.f32 %v2952_v24, %v5962_v13  ;;  %v2953_v35 = vpop.f32.mrb[44].mxu0  ;;  %v332_v13 = vld [vmem:[%s6983_s0 + $0x9f0] sm:$0xff]  ;;  %v405_v24 = vld [vmem:[%s6983_s0 + $0xc38] sm:$0xff] }
 0x151   :  { %v3033_v38 = vpop.f32.mrb[44].mxu1  ;;  %v2954_v41 = vpop.f32.mrb[45].mxu0  ;;  %2101 = vmatmul.mubr.f32.gmra.mrb[150].mxu0 %v305_v29  ;;  %v35_v29 = vld [vmem:[%s6983_s0 + $0xa8] sm:$0xff] }
 0x152   :  { %v6392_v42 = vadd.f32 %v3032_v30, %v1203_v34  ;;  %v2955_v44 = vadd.f32 %v2954_v41, %v2953_v35  ;;  %v3034_v45 = vpop.f32.mrb[45].mxu1  ;;  %2246 = vmatmul.mubr.f32.gmra.mrb[150].mxu1 %v307_v0  ;;  %2105 = vmatprep.mubr.f32.mxu0 %v331_v32  ;;  %v37_v32 = vld [vmem:[%s6983_s0 + $0xb8] sm:$0xff] }
 0x153   :  { %v3035_v48 = vadd.f32 %v3034_v45, %v3033_v38  ;;  %2250 = vmatprep.mubr.f32.mxu1 %v333_v36  ;;  %v800_v36 = vld [vmem:[%s6982_s1 + $0xc10] sm:$0xff]  ;;  %v801_v38 = vld [vmem:[%s6982_s1 + $0xc18] sm:$0xff]  ;;  %v34_v45 = vld [vmem:[%s6983_s0 + $0xa0] sm:$0xff] }
 0x154   :  { %v1208_v49 = vadd.f32 %v2955_v44, %v5977_v25  ;;  %v2956_v50 = vpop.f32.mrb[46].mxu0  ;;  %v357_v25 = vld [vmem:[%s6983_s0 + $0xab8] sm:$0xff] }
 0x155   :  { %v3036_v54 = vpop.f32.mrb[46].mxu1  ;;  %v2957_v33 = vpop.f32.mrb[47].mxu0  ;;  %2106 = vmatmul.mubr.f32.gmra.mrb[152].mxu0 %v330_v47 }
 0x156   :  { %v6407_v55 = vadd.f32 %v3035_v48, %v1208_v49  ;;  %v2958_v56 = vadd.f32 %v2957_v33, %v2956_v50  ;;  %v3037_v57 = vpop.f32.mrb[47].mxu1  ;;  %2251 = vmatmul.mubr.f32.gmra.mrb[152].mxu1 %v332_v13  ;;  %2110 = vmatprep.mubr.f32.mxu0 %v356_v27  ;;  %v36_v48 = vld [vmem:[%s6983_s0 + $0xb0] sm:$0xff]  ;;  %v4179_v50 = vpack.c.bf16 %v801_v38, %v800_v36  ;;  %v62_v33 = vld [vmem:[%s6983_s0 + $0x180] sm:$0xff]  ;;  %v111_v36 = vld [vmem:[%s6983_s0 + $0x308] sm:$0xff] }
 0x157   :  { %v3038_v62 = vadd.f32 %v3037_v57, %v3036_v54  ;;  %2255 = vmatprep.mubr.f32.mxu1 %v358_v51  ;;  %v60_v49 = vld [vmem:[%s6983_s0 + $0x170] sm:$0xff]  ;;  %v135_v38 = vld [vmem:[%s6983_s0 + $0x3c8] sm:$0xff] }
 0x158   :  { %v1213_v63 = vadd.f32 %v2958_v56, %v5992_v39  ;;  %v2959_v1 = vpop.f32.mrb[48].mxu0  ;;  %v382_v39 = vld [vmem:[%s6983_s0 + $0xb80] sm:$0xff] }
 0x159   :  { %v3039_v4 = vpop.f32.mrb[48].mxu1  ;;  %v2960_v5 = vpop.f32.mrb[49].mxu0  ;;  %2111 = vmatmul.mubr.f32.gmra.mrb[154].mxu0 %v355_v60  ;;  %v802_v56 = vld [vmem:[%s6982_s1 + $0xc20] sm:$0xff] }
 0x15a   :  { %v6422_v6 = vadd.f32 %v3038_v62, %v1213_v63  ;;  %v2961_v7 = vadd.f32 %v2960_v5, %v2959_v1  ;;  %v3040_v10 = vpop.f32.mrb[49].mxu1  ;;  %2256 = vmatmul.mubr.f32.gmra.mrb[154].mxu1 %v357_v25  ;;  %2115 = vmatprep.mubr.f32.mxu0 %v381_v40  ;;  %v59_v25 = vld [vmem:[%s6983_s0 + $0x168] sm:$0xff]  ;;  %v61_v63 = vld [vmem:[%s6983_s0 + $0x178] sm:$0xff] }
 0x15b   :  { %v3041_v14 = vadd.f32 %v3040_v10, %v3039_v4  ;;  %2260 = vmatprep.mubr.f32.mxu1 %v383_v3  ;;  %v85_v1 = vld [vmem:[%s6983_s0 + $0x238] sm:$0xff]  ;;  %v87_v5 = vld [vmem:[%s6983_s0 + $0x248] sm:$0xff] }
 0x15c   :  { %v1218_v16 = vadd.f32 %v2961_v7, %v6007_v53  ;;  %v2962_v52 = vpop.f32.mrb[50].mxu0  ;;  %v407_v53 = vld [vmem:[%s6983_s0 + $0xc48] sm:$0xff] }
 0x15d   :  { %v3042_v18 = vpop.f32.mrb[50].mxu1  ;;  %v2963_v19 = vpop.f32.mrb[51].mxu0  ;;  %2116 = vmatmul.mubr.f32.gmra.mrb[156].mxu0 %v380_v12  ;;  %v804_v12 = vld [vmem:[%s6982_s1 + $0xc30] sm:$0xff] }
 0x15e   :  { %v6437_v9 = vadd.f32 %v3041_v14, %v1218_v16  ;;  %v2964_v20 = vadd.f32 %v2963_v19, %v2962_v52  ;;  %v3043_v21 = vpop.f32.mrb[51].mxu1  ;;  %2261 = vmatmul.mubr.f32.gmra.mrb[156].mxu1 %v382_v39  ;;  %2120 = vmatprep.mubr.f32.mxu0 %v406_v15  ;;  %v84_v16 = vld [vmem:[%s6983_s0 + $0x230] sm:$0xff] }
 0x15f   :  { %v3044_v26 = vadd.f32 %v3043_v21, %v3042_v18  ;;  %2265 = vmatprep.mubr.f32.mxu1 %v408_v17  ;;  %v86_v17 = vld [vmem:[%s6983_s0 + $0x240] sm:$0xff]  ;;  %v112_v21 = vld [vmem:[%s6983_s0 + $0x310] sm:$0xff] }
 0x160   :  { %v1223_v30 = vadd.f32 %v2964_v20, %v6040_v8  ;;  %v2965_v0 = vpop.f32.mrb[52].mxu0  ;;  %v110_v18 = vld [vmem:[%s6983_s0 + $0x300] sm:$0xff] }
 0x161   :  { %v3045_v34 = vpop.f32.mrb[52].mxu1  ;;  %v2966_v35 = vpop.f32.mrb[53].mxu0  ;;  %2121 = vmatmul.mubr.f32.gmra.mrb[158].mxu0 %v405_v24 }
 0x162   :  { %v6458_v41 = vadd.f32 %v3044_v26, %v1223_v30  ;;  %v2967_v44 = vadd.f32 %v2966_v35, %v2965_v0  ;;  %v3046_v8 = vpop.f32.mrb[53].mxu1  ;;  %2266 = vmatmul.mubr.f32.gmra.mrb[158].mxu1 %v407_v53  ;;  %2335 = vmatprep.mubr.f32.mxu0 %v35_v29  ;;  %v806_v29 = vld [vmem:[%s6982_s1 + $0xc40] sm:$0xff] }
 0x163   :  { %v3047_v47 = vadd.f32 %v3046_v8, %v3045_v34  ;;  %2480 = vmatprep.mubr.f32.mxu1 %v37_v32  ;;  %v109_v34 = vld [vmem:[%s6983_s0 + $0x2f8] sm:$0xff] }
 0x164   :  { %v1228_v13 = vadd.f32 %v2967_v44, %v6079_v37  ;;  %v2968_v27 = vpop.f32.mrb[54].mxu0  ;;  %v803_v37 = vld [vmem:[%s6982_s1 + $0xc28] sm:$0xff] }
 0x165   :  { %v3048_v51 = vpop.f32.mrb[54].mxu1  ;;  %v2969_v54 = vpop.f32.mrb[55].mxu0  ;;  %2336 = vmatmul.mubr.f32.vlgmr.msra.gmra.mrb[160].mxu0 %v34_v45  ;;  %v4183_v7 = vpack.c.bf16 %v803_v37, %v802_v56  ;;  %v137_v45 = vld [vmem:[%s6983_s0 + $0x3d8] sm:$0xff]  ;;  %v136_v56 = vld [vmem:[%s6983_s0 + $0x3d0] sm:$0xff] }
 0x166   :  { %v6479_v57 = vadd.f32 %v3047_v47, %v1228_v13  ;;  %v2970_v60 = vadd.f32 %v2969_v54, %v2968_v27  ;;  %v3049_v62 = vpop.f32.mrb[55].mxu1  ;;  %2481 = vmatmul.mubr.f32.vlgmr.msra.gmra.mrb[160].mxu1 %v36_v48  ;;  %4178 = vmatpush3.bf16.msra.mxu0 %v6328_v43  ;;  %v808_v27 = vld [vmem:[%s6982_s1 + $0xc50] sm:$0xff]  ;;  %v134_v54 = vld [vmem:[%s6983_s0 + $0x3c0] sm:$0xff] }
 0x167   :  { %v3050_v40 = vadd.f32 %v3049_v62, %v3048_v51  ;;  %4215 = vmatpush3.bf16.msra.mxu1 %v6328_v43  ;;  %2340 = vmatprep.mubr.f32.mxu0 %v60_v49  ;;  %v160_v37 = vld [vmem:[%s6983_s0 + $0x490] sm:$0xff] }
 0x168   :  { %v1233_v3 = vadd.f32 %v2970_v60, %v6118_v2  ;;  %v2971_v4 = vpop.f32.mrb[56].mxu0  ;;  %2485 = vmatprep.mubr.f32.mxu1 %v62_v33  ;;  %4180 = vmatprep.subr.bf16.mxu0 %v4179_v50  ;;  %v805_v2 = vld [vmem:[%s6982_s1 + $0xc38] sm:$0xff] }
 0x169   :  { %v3051_v43 = vpop.f32.mrb[56].mxu1  ;;  %v2972_v10 = vpop.f32.mrb[57].mxu0  ;;  %2341 = vmatmul.mubr.f32.gmra.mrb[162].mxu0 %v59_v25  ;;  %4208 = vmatprep.subr.bf16.mxu1 %v4179_v50  ;;  %v4187_v24 = vpack.c.bf16 %v805_v2, %v804_v12  ;;  %v162_v25 = vld [vmem:[%s6983_s0 + $0x4a0] sm:$0xff]  ;;  %v161_v12 = vld [vmem:[%s6983_s0 + $0x498] sm:$0xff] }
 0x16a   :  { %v6502_v14 = vadd.f32 %v3050_v40, %v1233_v3  ;;  %v2973_v39 = vadd.f32 %v2972_v10, %v2971_v4  ;;  %v3052_v15 = vpop.f32.mrb[57].mxu1  ;;  %2486 = vmatmul.mubr.f32.gmra.mrb[162].mxu1 %v61_v63  ;;  %2345 = vmatprep.mubr.f32.mxu0 %v85_v1  ;;  %v810_v3 = vld [vmem:[%s6982_s1 + $0xc60] sm:$0xff]  ;;  %v185_v2 = vld [vmem:[%s6983_s0 + $0x558] sm:$0xff] }
 0x16b   :  { %v3053_v52 = vadd.f32 %v3052_v15, %v3051_v43  ;;  %2490 = vmatprep.mubr.f32.mxu1 %v87_v5  ;;  %4182 = vmatpush3.bf16.msra.mxu0 %v4179_v50  ;;  %v159_v43 = vld [vmem:[%s6983_s0 + $0x488] sm:$0xff] }
 0x16c   :  { %v1238_v19 = vadd.f32 %v2973_v39, %v6157_v31  ;;  %v2974_v20 = vpop.f32.mrb[58].mxu0  ;;  %4216 = vmatpush3.bf16.msra.mxu1 %v4179_v50  ;;  %4184 = vmatprep.subr.bf16.mxu0 %v4183_v7  ;;  %v807_v31 = vld [vmem:[%s6982_s1 + $0xc48] sm:$0xff] }
 0x16d   :  { %v3054_v26 = vpop.f32.mrb[58].mxu1  ;;  %v2975_v53 = vpop.f32.mrb[59].mxu0  ;;  %2346 = vmatmul.mubr.f32.gmra.mrb[164].mxu0 %v84_v16  ;;  %4209 = vmatprep.subr.bf16.mxu1 %v4183_v7  ;;  %v4191_v47 = vpack.c.bf16 %v807_v31, %v806_v29  ;;  %v187_v16 = vld [vmem:[%s6983_s0 + $0x568] sm:$0xff]  ;;  %v186_v29 = vld [vmem:[%s6983_s0 + $0x560] sm:$0xff] }
 0x16e   :  { %v6523_v30 = vadd.f32 %v3053_v52, %v1238_v19  ;;  %v2976_v0 = vadd.f32 %v2975_v53, %v2974_v20  ;;  %v3055_v32 = vpop.f32.mrb[59].mxu1  ;;  %2491 = vmatmul.mubr.f32.gmra.mrb[164].mxu1 %v86_v17  ;;  %2350 = vmatprep.mubr.f32.mxu0 %v110_v18  ;;  %v812_v19 = vld [vmem:[%s6982_s1 + $0xc70] sm:$0xff]  ;;  %v210_v31 = vld [vmem:[%s6983_s0 + $0x620] sm:$0xff] }
 0x16f   :  { %v3056_v35 = vadd.f32 %v3055_v32, %v3054_v26  ;;  %2495 = vmatprep.mubr.f32.mxu1 %v112_v21  ;;  %4186 = vmatpush3.bf16.msra.mxu0 %v4183_v7  ;;  %v184_v26 = vld [vmem:[%s6983_s0 + $0x550] sm:$0xff] }
 0x170   :  { %v1243_v44 = vadd.f32 %v2976_v0, %v6196_v61  ;;  %v2977_v8 = vpop.f32.mrb[60].mxu0  ;;  %4217 = vmatpush3.bf16.msra.mxu1 %v4183_v7  ;;  %4188 = vmatprep.subr.bf16.mxu0 %v4187_v24  ;;  %v809_v61 = vld [vmem:[%s6982_s1 + $0xc58] sm:$0xff] }
 0x171   :  { %v3057_v48 = vpop.f32.mrb[60].mxu1  ;;  %v2978_v13 = vpop.f32.mrb[61].mxu0  ;;  %2351 = vmatmul.mubr.f32.gmra.mrb[166].mxu0 %v109_v34  ;;  %4210 = vmatprep.subr.bf16.mxu1 %v4187_v24  ;;  %v4195_v40 = vpack.c.bf16 %v809_v61, %v808_v27  ;;  %v212_v34 = vld [vmem:[%s6983_s0 + $0x630] sm:$0xff] }
 0x172   :  { %v6544_v49 = vadd.f32 %v3056_v35, %v1243_v44  ;;  %v2979_v50 = vadd.f32 %v2978_v13, %v2977_v8  ;;  %v3058_v51 = vpop.f32.mrb[61].mxu1  ;;  %2496 = vmatmul.mubr.f32.gmra.mrb[166].mxu1 %v111_v36  ;;  %2355 = vmatprep.mubr.f32.mxu0 %v135_v38  ;;  %v235_v13 = vld [vmem:[%s6983_s0 + $0x6e8] sm:$0xff] }
 0x173   :  { %v3059_v33 = vadd.f32 %v3058_v51, %v3057_v48  ;;  %2500 = vmatprep.mubr.f32.mxu1 %v137_v45  ;;  %4190 = vmatpush3.bf16.msra.mxu0 %v4187_v24  ;;  %v211_v48 = vld [vmem:[%s6983_s0 + $0x628] sm:$0xff] }
 0x174   :  { %v1248_v60 = vadd.f32 %v2979_v50, %v6235_v28  ;;  %v2980_v62 = vpop.f32.mrb[62].mxu0  ;;  %4218 = vmatpush3.bf16.msra.mxu1 %v4187_v24  ;;  %4192 = vmatprep.subr.bf16.mxu0 %v4191_v47  ;;  %v811_v28 = vld [vmem:[%s6982_s1 + $0xc68] sm:$0xff]  ;;  %v237_v50 = vld [vmem:[%s6983_s0 + $0x6f8] sm:$0xff] }
 0x175   :  { %v3060_v63 = vpop.f32.mrb[62].mxu1  ;;  %v2981_v1 = vpop.f32.mrb[63].mxu0  ;;  %2356 = vmatmul.mubr.f32.gmra.mrb[168].mxu0 %v134_v54  ;;  %4211 = vmatprep.subr.bf16.mxu1 %v4191_v47  ;;  %v4199_v52 = vpack.c.bf16 %v811_v28, %v810_v3 }
 0x176   :  { %v6565_v4 = vadd.f32 %v3059_v33, %v1248_v60  ;;  %v2982_v5 = vadd.f32 %v2981_v1, %v2980_v62  ;;  %v3061_v7 = vpop.f32.mrb[63].mxu1  ;;  %2501 = vmatmul.mubr.f32.gmra.mrb[168].mxu1 %v136_v56  ;;  %2360 = vmatprep.mubr.f32.mxu0 %v160_v37  ;;  %v236_v62 = vld [vmem:[%s6983_s0 + $0x6f0] sm:$0xff]  ;;  %v262_v1 = vld [vmem:[%s6983_s0 + $0x7c0] sm:$0xff] }
 0x177   :  { %v3062_v10 = vadd.f32 %v3061_v7, %v3060_v63  ;;  %2505 = vmatprep.mubr.f32.mxu1 %v162_v25  ;;  %4194 = vmatpush3.bf16.msra.mxu0 %v4191_v47  ;;  %v260_v25 = vld [vmem:[%s6983_s0 + $0x7b0] sm:$0xff] }
 0x178   :  { %v1253_v39 = vadd.f32 %v2982_v5, %v6274_v58  ;;  %v3095_v15 = vpop.f32.mrb[64].mxu0  ;;  %4219 = vmatpush3.bf16.msra.mxu1 %v4191_v47  ;;  %4196 = vmatprep.subr.bf16.mxu0 %v4195_v40  ;;  %v813_v58 = vld [vmem:[%s6982_s1 + $0xc78] sm:$0xff] }
 0x179   :  { %v3175_v17 = vpop.f32.mrb[64].mxu1  ;;  %v3096_v18 = vpop.f32.mrb[65].mxu0  ;;  %2361 = vmatmul.mubr.f32.gmra.mrb[170].mxu0 %v159_v43  ;;  %4212 = vmatprep.subr.bf16.mxu1 %v4195_v40  ;;  %v4203_v35 = vpack.c.bf16 %v813_v58, %v812_v19 }
 0x17a   :  { %v6586_v20 = vadd.f32 %v3062_v10, %v1253_v39  ;;  %v3097_v21 = vadd.f32 %v3096_v18, %v3095_v15  ;;  %v3176_v24 = vpop.f32.mrb[65].mxu1  ;;  %2506 = vmatmul.mubr.f32.gmra.mrb[170].mxu1 %v161_v12  ;;  %2365 = vmatprep.mubr.f32.mxu0 %v185_v2  ;;  %v259_v10 = vld [vmem:[%s6983_s0 + $0x7a8] sm:$0xff]  ;;  %v261_v12 = vld [vmem:[%s6983_s0 + $0x7b8] sm:$0xff] }
 0x17b   :  { %v3177_v53 = vadd.f32 %v3176_v24, %v3175_v17  ;;  %2510 = vmatprep.mubr.f32.mxu1 %v187_v16  ;;  %4198 = vmatpush3.bf16.msra.mxu0 %v4195_v40  ;;  %v285_v2 = vld [vmem:[%s6983_s0 + $0x878] sm:$0xff]  ;;  %v287_v16 = vld [vmem:[%s6983_s0 + $0x888] sm:$0xff] }
 0x17c   :  { %v1468_v0 = vadd.f32 %v3097_v21, %v6313_v23  ;;  %v3098_v32 = vpop.f32.mrb[66].mxu0  ;;  %4220 = vmatpush3.bf16.msra.mxu1 %v4195_v40  ;;  %4200 = vmatprep.subr.bf16.mxu0 %v4199_v52  ;;  %v209_v23 = vld [vmem:[%s6983_s0 + $0x618] sm:$0xff]  ;;  %v284_v21 = vld [vmem:[%s6983_s0 + $0x870] sm:$0xff] }
 0x17d   :  { %v3178_v36 = vpop.f32.mrb[66].mxu1  ;;  %v3099_v38 = vpop.f32.mrb[67].mxu0  ;;  %2366 = vmatmul.mubr.f32.gmra.mrb[172].mxu0 %v184_v26  ;;  %4213 = vmatprep.subr.bf16.mxu1 %v4199_v52  ;;  %v310_v26 = vld [vmem:[%s6983_s0 + $0x940] sm:$0xff] }
 0x17e   :  { %v6601_v44 = vadd.f32 %v3177_v53, %v1468_v0  ;;  %v3100_v8 = vadd.f32 %v3099_v38, %v3098_v32  ;;  %v3179_v45 = vpop.f32.mrb[67].mxu1  ;;  %2511 = vmatmul.mubr.f32.gmra.mrb[172].mxu1 %v186_v29  ;;  %2370 = vmatprep.mubr.f32.mxu0 %v210_v31  ;;  %v312_v31 = vld [vmem:[%s6983_s0 + $0x950] sm:$0xff]  ;;  %v309_v38 = vld [vmem:[%s6983_s0 + $0x938] sm:$0xff] }
 0x17f   :  { %v3180_v47 = vadd.f32 %v3179_v45, %v3178_v36  ;;  %2515 = vmatprep.mubr.f32.mxu1 %v212_v34  ;;  %4202 = vmatpush3.bf16.msra.mxu0 %v4199_v52  ;;  %v335_v45 = vld [vmem:[%s6983_s0 + $0xa08] sm:$0xff] }
 0x180   :  { %v1473_v27 = vadd.f32 %v3100_v8, %v6330_v46  ;;  %v3101_v61 = vpop.f32.mrb[68].mxu0  ;;  %4221 = vmatpush3.bf16.msra.mxu1 %v4199_v52  ;;  %4204 = vmatprep.subr.bf16.mxu0 %v4203_v35  ;;  %v234_v46 = vld [vmem:[%s6983_s0 + $0x6e0] sm:$0xff] }
 0x181   :  { %v3181_v51 = vpop.f32.mrb[68].mxu1  ;;  %v3102_v54 = vpop.f32.mrb[69].mxu0  ;;  %2371 = vmatmul.mubr.f32.gmra.mrb[174].mxu0 %v209_v23  ;;  %4214 = vmatprep.subr.bf16.mxu1 %v4203_v35 }
 0x182   :  { %v6616_v33 = vadd.f32 %v3180_v47, %v1473_v27  ;;  %v3103_v56 = vadd.f32 %v3102_v54, %v3101_v61  ;;  %v3182_v37 = vpop.f32.mrb[69].mxu1  ;;  %2516 = vmatmul.mubr.f32.gmra.mrb[174].mxu1 %v211_v48  ;;  %2375 = vmatprep.mubr.f32.mxu0 %v235_v13  ;;  %v337_v48 = vld [vmem:[%s6983_s0 + $0xa18] sm:$0xff]  ;;  %v334_v54 = vld [vmem:[%s6983_s0 + $0xa00] sm:$0xff] }
 0x183   :  { %v3183_v60 = vadd.f32 %v3182_v37, %v3181_v51  ;;  %2520 = vmatprep.mubr.f32.mxu1 %v237_v50  ;;  %4206 = vmatpush3.bf16.msra.mxu0 %v4203_v35  ;;  %v360_v37 = vld [vmem:[%s6983_s0 + $0xad0] sm:$0xff] }
 0x184   :  { %v1478_v40 = vadd.f32 %v3103_v56, %v6347_v59  ;;  %v3104_v63 = vpop.f32.mrb[70].mxu0  ;;  %4222 = vmatpush3.bf16.msra.mxu1 %v4203_v35 }
 0x185   :  { %v3184_v3 = vpop.f32.mrb[70].mxu1  ;;  %v3105_v28 = vpop.f32.mrb[71].mxu0  ;;  %2376 = vmatmul.mubr.f32.gmra.mrb[176].mxu0 %v234_v46 }
 0x186   :  { %v6631_v5 = vadd.f32 %v3183_v60, %v1478_v40  ;;  %v3106_v7 = vadd.f32 %v3105_v28, %v3104_v63  ;;  %v3185_v43 = vpop.f32.mrb[71].mxu1  ;;  %2521 = vmatmul.mubr.f32.gmra.mrb[176].mxu1 %v236_v62  ;;  %2380 = vmatprep.mubr.f32.mxu0 %v260_v25  ;;  %v362_v62 = vld [vmem:[%s6983_s0 + $0xae0] sm:$0xff]  ;;  %v359_v28 = vld [vmem:[%s6983_s0 + $0xac8] sm:$0xff] }
 0x187   :  { %v3186_v59 = vadd.f32 %v3185_v43, %v3184_v3  ;;  %2525 = vmatprep.mubr.f32.mxu1 %v262_v1  ;;  %v385_v43 = vld [vmem:[%s6983_s0 + $0xb98] sm:$0xff] }
 0x188   :  { %v1483_v39 = vadd.f32 %v3106_v7, %v6362_v11  ;;  %v3107_v15 = vpop.f32.mrb[72].mxu0  ;;  %v286_v11 = vld [vmem:[%s6983_s0 + $0x880] sm:$0xff] }
 0x189   :  { %v3187_v52 = vpop.f32.mrb[72].mxu1  ;;  %v3108_v17 = vpop.f32.mrb[73].mxu0  ;;  %2381 = vmatmul.mubr.f32.gmra.mrb[178].mxu0 %v259_v10 }
 0x18a   :  { %v6646_v18 = vadd.f32 %v3186_v59, %v1483_v39  ;;  %v3109_v19 = vadd.f32 %v3108_v17, %v3107_v15  ;;  %v3188_v58 = vpop.f32.mrb[73].mxu1  ;;  %2526 = vmatmul.mubr.f32.gmra.mrb[178].mxu1 %v261_v12  ;;  %2385 = vmatprep.mubr.f32.mxu0 %v285_v2  ;;  %v387_v12 = vld [vmem:[%s6983_s0 + $0xba8] sm:$0xff]  ;;  %v384_v17 = vld [vmem:[%s6983_s0 + $0xb90] sm:$0xff] }
 0x18b   :  { %v3189_v24 = vadd.f32 %v3188_v58, %v3187_v52  ;;  %2530 = vmatprep.mubr.f32.mxu1 %v287_v16  ;;  %v410_v58 = vld [vmem:[%s6983_s0 + $0xc60] sm:$0xff] }
 0x18c   :  { %v1488_v53 = vadd.f32 %v3109_v19, %v6377_v22  ;;  %v3110_v29 = vpop.f32.mrb[74].mxu0  ;;  %v311_v22 = vld [vmem:[%s6983_s0 + $0x948] sm:$0xff] }
 0x18d   :  { %v3190_v0 = vpop.f32.mrb[74].mxu1  ;;  %v3111_v32 = vpop.f32.mrb[75].mxu0  ;;  %2386 = vmatmul.mubr.f32.gmra.mrb[180].mxu0 %v284_v21 }
 0x18e   :  { %v6661_v34 = vadd.f32 %v3189_v24, %v1488_v53  ;;  %v3112_v35 = vadd.f32 %v3111_v32, %v3110_v29  ;;  %v3191_v36 = vpop.f32.mrb[75].mxu1  ;;  %2531 = vmatmul.mubr.f32.gmra.mrb[180].mxu1 %v286_v11  ;;  %2390 = vmatprep.mubr.f32.mxu0 %v310_v26  ;;  %v412_v11 = vld [vmem:[%s6983_s0 + $0xc70] sm:$0xff]  ;;  %v409_v32 = vld [vmem:[%s6983_s0 + $0xc58] sm:$0xff] }
 0x18f   :  { %v3192_v8 = vadd.f32 %v3191_v36, %v3190_v0  ;;  %2535 = vmatprep.mubr.f32.mxu1 %v312_v31  ;;  %v38_v36 = vld [vmem:[%s6983_s0 + $0xc0] sm:$0xff] }
 0x190   :  { %v1493_v23 = vadd.f32 %v3112_v35, %v6392_v42  ;;  %v3113_v47 = vpop.f32.mrb[76].mxu0  ;;  %v336_v42 = vld [vmem:[%s6983_s0 + $0xa10] sm:$0xff] }
 0x191   :  { %v3193_v13 = vpop.f32.mrb[76].mxu1  ;;  %v3114_v27 = vpop.f32.mrb[77].mxu0  ;;  %2391 = vmatmul.mubr.f32.gmra.mrb[182].mxu0 %v309_v38 }
 0x192   :  { %v6676_v61 = vadd.f32 %v3192_v8, %v1493_v23  ;;  %v3115_v50 = vadd.f32 %v3114_v27, %v3113_v47  ;;  %v3194_v51 = vpop.f32.mrb[77].mxu1  ;;  %2536 = vmatmul.mubr.f32.gmra.mrb[182].mxu1 %v311_v22  ;;  %2395 = vmatprep.mubr.f32.mxu0 %v335_v45  ;;  %v238_v22 = vld [vmem:[%s6983_s0 + $0x700] sm:$0xff]  ;;  %v63_v27 = vld [vmem:[%s6983_s0 + $0x188] sm:$0xff] }
 0x193   :  { %v3195_v56 = vadd.f32 %v3194_v51, %v3193_v13  ;;  %2540 = vmatprep.mubr.f32.mxu1 %v337_v48  ;;  %v88_v51 = vld [vmem:[%s6983_s0 + $0x250] sm:$0xff] }
 0x194   :  { %v1498_v46 = vadd.f32 %v3115_v50, %v6407_v55  ;;  %v3116_v60 = vpop.f32.mrb[78].mxu0  ;;  %v361_v55 = vld [vmem:[%s6983_s0 + $0xad8] sm:$0xff] }
 0x195   :  { %v3196_v25 = vpop.f32.mrb[78].mxu1  ;;  %v3117_v40 = vpop.f32.mrb[79].mxu0  ;;  %2396 = vmatmul.mubr.f32.gmra.mrb[184].mxu0 %v334_v54 }
 0x196   :  { %v6691_v63 = vadd.f32 %v3195_v56, %v1498_v46  ;;  %v3118_v1 = vadd.f32 %v3117_v40, %v3116_v60  ;;  %v3197_v3 = vpop.f32.mrb[79].mxu1  ;;  %2541 = vmatmul.mubr.f32.gmra.mrb[184].mxu1 %v336_v42  ;;  %2400 = vmatprep.mubr.f32.mxu0 %v360_v37  ;;  %v288_v42 = vld [vmem:[%s6983_s0 + $0x890] sm:$0xff]  ;;  %v113_v40 = vld [vmem:[%s6983_s0 + $0x318] sm:$0xff] }
 0x197   :  { %v3198_v7 = vadd.f32 %v3197_v3, %v3196_v25  ;;  %2545 = vmatprep.mubr.f32.mxu1 %v362_v62  ;;  %v138_v3 = vld [vmem:[%s6983_s0 + $0x3e0] sm:$0xff] }
 0x198   :  { %v1503_v10 = vadd.f32 %v3118_v1, %v6422_v6  ;;  %v3119_v59 = vpop.f32.mrb[80].mxu0  ;;  %v386_v6 = vld [vmem:[%s6983_s0 + $0xba0] sm:$0xff] }
 0x199   :  { %v3199_v2 = vpop.f32.mrb[80].mxu1  ;;  %v3120_v39 = vpop.f32.mrb[81].mxu0  ;;  %2401 = vmatmul.mubr.f32.gmra.mrb[186].mxu0 %v359_v28 }
 0x19a   :  { %v6706_v15 = vadd.f32 %v3198_v7, %v1503_v10  ;;  %v3121_v16 = vadd.f32 %v3120_v39, %v3119_v59  ;;  %v3200_v52 = vpop.f32.mrb[81].mxu1  ;;  %2546 = vmatmul.mubr.f32.gmra.mrb[186].mxu1 %v361_v55  ;;  %2405 = vmatprep.mubr.f32.mxu0 %v385_v43  ;;  %v338_v55 = vld [vmem:[%s6983_s0 + $0xa20] sm:$0xff]  ;;  %v163_v39 = vld [vmem:[%s6983_s0 + $0x4a8] sm:$0xff] }
 0x19b   :  { %v3201_v19 = vadd.f32 %v3200_v52, %v3199_v2  ;;  %2550 = vmatprep.mubr.f32.mxu1 %v387_v12  ;;  %v188_v52 = vld [vmem:[%s6983_s0 + $0x570] sm:$0xff] }
 0x19c   :  { %v1508_v21 = vadd.f32 %v3121_v16, %v6437_v9  ;;  %v3122_v24 = vpop.f32.mrb[82].mxu0  ;;  %v411_v9 = vld [vmem:[%s6983_s0 + $0xc68] sm:$0xff] }
 0x19d   :  { %v3202_v26 = vpop.f32.mrb[82].mxu1  ;;  %v3123_v53 = vpop.f32.mrb[83].mxu0  ;;  %2406 = vmatmul.mubr.f32.gmra.mrb[188].mxu0 %v384_v17 }
 0x19e   :  { %v6721_v29 = vadd.f32 %v3201_v19, %v1508_v21  ;;  %v3124_v31 = vadd.f32 %v3123_v53, %v3122_v24  ;;  %v3203_v0 = vpop.f32.mrb[83].mxu1  ;;  %2551 = vmatmul.mubr.f32.gmra.mrb[188].mxu1 %v386_v6  ;;  %2410 = vmatprep.mubr.f32.mxu0 %v410_v58  ;;  %v388_v6 = vld [vmem:[%s6983_s0 + $0xbb0] sm:$0xff]  ;;  %v213_v53 = vld [vmem:[%s6983_s0 + $0x638] sm:$0xff] }
 0x19f   :  { %v3204_v35 = vadd.f32 %v3203_v0, %v3202_v26  ;;  %2555 = vmatprep.mubr.f32.mxu1 %v412_v11 }
 0x1a0   :  { %v1513_v38 = vadd.f32 %v3124_v31, %v6458_v41  ;;  %v3125_v8 = vpop.f32.mrb[84].mxu0  ;;  %v263_v41 = vld [vmem:[%s6983_s0 + $0x7c8] sm:$0xff] }
 0x1a1   :  { %v3205_v45 = vpop.f32.mrb[84].mxu1  ;;  %v3126_v23 = vpop.f32.mrb[85].mxu0  ;;  %2411 = vmatmul.mubr.f32.gmra.mrb[190].mxu0 %v409_v32 }
 0x1a2   :  { %v6736_v47 = vadd.f32 %v3204_v35, %v1513_v38  ;;  %v3127_v48 = vadd.f32 %v3126_v23, %v3125_v8  ;;  %v3206_v13 = vpop.f32.mrb[85].mxu1  ;;  %2556 = vmatmul.mubr.f32.gmra.mrb[190].mxu1 %v411_v9  ;;  %3767 = vmatprep.mubr.f32.mxu0 %v38_v36 }
 0x1a3   :  { %v3207_v50 = vadd.f32 %v3206_v13, %v3205_v45  ;;  %3779 = vmatprep.mubr.f32.mxu1 %v238_v22 }
 0x1a4   :  { %v1518_v54 = vadd.f32 %v3127_v48, %v6479_v57  ;;  %v3128_v56 = vpop.f32.mrb[86].mxu0  ;;  %v313_v57 = vld [vmem:[%s6983_s0 + $0x958] sm:$0xff] }
 0x1a5   :  { %v3208_v37 = vpop.f32.mrb[86].mxu1  ;;  %v3129_v46 = vpop.f32.mrb[87].mxu0  ;;  %3768 = vmatmul.mubr.f32.vlgmr.msra.gmra.mrb[192].mxu0 %v63_v27 }
 0x1a6   :  { %v6751_v60 = vadd.f32 %v3207_v50, %v1518_v54  ;;  %v3130_v62 = vadd.f32 %v3129_v46, %v3128_v56  ;;  %v3209_v25 = vpop.f32.mrb[87].mxu1  ;;  %3780 = vmatmul.mubr.f32.vlgmr.msra.gmra.mrb[192].mxu1 %v263_v41  ;;  %3770 = vmatprep.mubr.f32.mxu0 %v88_v51 }
 0x1a7   :  { %v3210_v1 = vadd.f32 %v3209_v25, %v3208_v37  ;;  %3782 = vmatprep.mubr.f32.mxu1 %v288_v42 }
 0x1a8   :  { %v1523_v28 = vadd.f32 %v3130_v62, %v6502_v14  ;;  %v3131_v7 = vpop.f32.mrb[88].mxu0  ;;  %v363_v14 = vld [vmem:[%s6983_s0 + $0xae8] sm:$0xff] }
 0x1a9   :  { %v3211_v43 = vpop.f32.mrb[88].mxu1  ;;  %v3132_v10 = vpop.f32.mrb[89].mxu0  ;;  %3771 = vmatmul.mubr.f32.gmra.mrb[194].mxu0 %v113_v40 }
 0x1aa   :  { %v6766_v59 = vadd.f32 %v3210_v1, %v1523_v28  ;;  %v3133_v12 = vadd.f32 %v3132_v10, %v3131_v7  ;;  %v3212_v2 = vpop.f32.mrb[89].mxu1  ;;  %3783 = vmatmul.mubr.f32.gmra.mrb[194].mxu1 %v313_v57  ;;  %3773 = vmatprep.mubr.f32.mxu0 %v138_v3 }
 0x1ab   :  { %v3213_v16 = vadd.f32 %v3212_v2, %v3211_v43  ;;  %3785 = vmatprep.mubr.f32.mxu1 %v338_v55 }
 0x1ac   :  { %v1528_v17 = vadd.f32 %v3133_v12, %v6523_v30  ;;  %v3134_v19 = vpop.f32.mrb[90].mxu0  ;;  %v413_v30 = vld [vmem:[%s6983_s0 + $0xc78] sm:$0xff] }
 0x1ad   :  { %v3214_v58 = vpop.f32.mrb[90].mxu1  ;;  %v3135_v21 = vpop.f32.mrb[91].mxu0  ;;  %3774 = vmatmul.mubr.f32.gmra.mrb[196].mxu0 %v163_v39 }
 0x1ae   :  { %v6781_v24 = vadd.f32 %v3213_v16, %v1528_v17  ;;  %v3136_v11 = vadd.f32 %v3135_v21, %v3134_v19  ;;  %v3215_v26 = vpop.f32.mrb[91].mxu1  ;;  %3786 = vmatmul.mubr.f32.gmra.mrb[196].mxu1 %v363_v14  ;;  %3776 = vmatprep.mubr.f32.mxu0 %v188_v52 }
 0x1af   :  { %v3216_v31 = vadd.f32 %v3215_v26, %v3214_v58  ;;  %3788 = vmatprep.mubr.f32.mxu1 %v388_v6 }
 0x1b0   :  { %v1533_v0 = vadd.f32 %v3136_v11, %v6544_v49  ;;  %v3137_v32 = vpop.f32.mrb[92].mxu0 }
 0x1b1   :  { %v3217_v35 = vpop.f32.mrb[92].mxu1  ;;  %v3138_v9 = vpop.f32.mrb[93].mxu0  ;;  %3777 = vmatmul.mubr.f32.gmra.mrb[198].mxu0 %v213_v53 }
 0x1b2   :  { %v6790_v36 = vadd.f32 %v3216_v31, %v1533_v0  ;;  %v3139_v38 = vadd.f32 %v3138_v9, %v3137_v32  ;;  %v3218_v8 = vpop.f32.mrb[93].mxu1  ;;  %3789 = vmatmul.mubr.f32.gmra.mrb[198].mxu1 %v413_v30 }
 0x1b3   :  { %v3219_v22 = vadd.f32 %v3218_v8, %v3217_v35 }
 0x1b4   :  { %v1538_v45 = vadd.f32 %v3139_v38, %v6565_v4  ;;  %v3140_v23 = vpop.f32.mrb[94].mxu0 }
 0x1b5   :  { %v3220_v48 = vpop.f32.mrb[94].mxu1  ;;  %v3141_v13 = vpop.f32.mrb[95].mxu0 }
 0x1b6   :  { %v6793_v27 = vadd.f32 %v3219_v22, %v1538_v45  ;;  %v3142_v50 = vadd.f32 %v3141_v13, %v3140_v23  ;;  %v3221_v41 = vpop.f32.mrb[95].mxu1 }
 0x1b7   :  { %v3222_v49 = vadd.f32 %v3221_v41, %v3220_v48 }
 0x1b8   :  { %v1543_v51 = vadd.f32 %v3142_v50, %v6586_v20  ;;  %v3255_v54 = vpop.f32.mrb[96].mxu0 }
 0x1b9   :  { %v3335_v56 = vpop.f32.mrb[96].mxu1  ;;  %v3256_v42 = vpop.f32.mrb[97].mxu0 }
 0x1ba   :  { %v6796_v37 = vadd.f32 %v3222_v49, %v1543_v51  ;;  %v3257_v46 = vadd.f32 %v3256_v42, %v3255_v54  ;;  %v3336_v62 = vpop.f32.mrb[97].mxu1 }
 0x1bb   :  { %v3337_v25 = vadd.f32 %v3336_v62, %v3335_v56 }
 0x1bc   :  { %v1758_v4 = vadd.f32 %v3257_v46, %v6601_v44  ;;  %v3258_v40 = vpop.f32.mrb[98].mxu0 }
 0x1bd   :  { %v3338_v1 = vpop.f32.mrb[98].mxu1  ;;  %v3259_v57 = vpop.f32.mrb[99].mxu0 }
 0x1be   :  { %v6799_v3 = vadd.f32 %v3337_v25, %v1758_v4  ;;  %v3260_v28 = vadd.f32 %v3259_v57, %v3258_v40  ;;  %v3339_v7 = vpop.f32.mrb[99].mxu1 }
 0x1bf   :  { %v3340_v55 = vadd.f32 %v3339_v7, %v3338_v1 }
 0x1c0   :  { %v1763_v20 = vadd.f32 %v3260_v28, %v6616_v33  ;;  %v3261_v43 = vpop.f32.mrb[100].mxu0 }
 0x1c1   :  { %v3341_v10 = vpop.f32.mrb[100].mxu1  ;;  %v3262_v12 = vpop.f32.mrb[101].mxu0 }
 0x1c2   :  { %v6802_v2 = vadd.f32 %v3340_v55, %v1763_v20  ;;  %v3263_v39 = vadd.f32 %v3262_v12, %v3261_v43  ;;  %v3342_v16 = vpop.f32.mrb[101].mxu1 }
 0x1c3   :  { %v3343_v14 = vadd.f32 %v3342_v16, %v3341_v10 }
 0x1c4   :  { %v1768_v44 = vadd.f32 %v3263_v39, %v6631_v5  ;;  %v3264_v52 = vpop.f32.mrb[102].mxu0 }
 0x1c5   :  { %v3344_v17 = vpop.f32.mrb[102].mxu1  ;;  %v3265_v19 = vpop.f32.mrb[103].mxu0 }
 0x1c6   :  { %v6805_v6 = vadd.f32 %v3343_v14, %v1768_v44  ;;  %v3266_v58 = vadd.f32 %v3265_v19, %v3264_v52  ;;  %v3345_v21 = vpop.f32.mrb[103].mxu1 }
 0x1c7   :  { %v3346_v11 = vadd.f32 %v3345_v21, %v3344_v17 }
 0x1c8   :  { %v1773_v33 = vadd.f32 %v3266_v58, %v6646_v18  ;;  %v3267_v26 = vpop.f32.mrb[104].mxu0 }
 0x1c9   :  { %v3347_v53 = vpop.f32.mrb[104].mxu1  ;;  %v3268_v31 = vpop.f32.mrb[105].mxu0 }
 0x1ca   :  { %v6808_v30 = vadd.f32 %v3346_v11, %v1773_v33  ;;  %v3269_v0 = vadd.f32 %v3268_v31, %v3267_v26  ;;  %v3348_v32 = vpop.f32.mrb[105].mxu1 }
 0x1cb   :  { %v3349_v35 = vadd.f32 %v3348_v32, %v3347_v53 }
 0x1cc   :  { %v1778_v5 = vadd.f32 %v3269_v0, %v6661_v34  ;;  %v3270_v9 = vpop.f32.mrb[106].mxu0 }
 0x1cd   :  { %v3350_v38 = vpop.f32.mrb[106].mxu1  ;;  %v3271_v8 = vpop.f32.mrb[107].mxu0 }
 0x1ce   :  { %v6811_v22 = vadd.f32 %v3349_v35, %v1778_v5  ;;  %v3272_v45 = vadd.f32 %v3271_v8, %v3270_v9  ;;  %v3351_v23 = vpop.f32.mrb[107].mxu1 }
 0x1cf   :  { %v3352_v48 = vadd.f32 %v3351_v23, %v3350_v38 }
 0x1d0   :  { %v1783_v18 = vadd.f32 %v3272_v45, %v6676_v61  ;;  %v3273_v13 = vpop.f32.mrb[108].mxu0 }
 0x1d1   :  { %v3353_v50 = vpop.f32.mrb[108].mxu1  ;;  %v3274_v41 = vpop.f32.mrb[109].mxu0 }
 0x1d2   :  { %v6814_v49 = vadd.f32 %v3352_v48, %v1783_v18  ;;  %v3275_v51 = vadd.f32 %v3274_v41, %v3273_v13  ;;  %v3354_v54 = vpop.f32.mrb[109].mxu1 }
 0x1d3   :  { %v3355_v56 = vadd.f32 %v3354_v54, %v3353_v50 }
 0x1d4   :  { %v1788_v34 = vadd.f32 %v3275_v51, %v6691_v63  ;;  %v3276_v42 = vpop.f32.mrb[110].mxu0 }
 0x1d5   :  { %v3356_v46 = vpop.f32.mrb[110].mxu1  ;;  %v3277_v62 = vpop.f32.mrb[111].mxu0 }
 0x1d6   :  { %v6817_v25 = vadd.f32 %v3355_v56, %v1788_v34  ;;  %v3278_v4 = vadd.f32 %v3277_v62, %v3276_v42  ;;  %v3357_v40 = vpop.f32.mrb[111].mxu1 }
 0x1d7   :  { %v3358_v1 = vadd.f32 %v3357_v40, %v3356_v46 }
 0x1d8   :  { %v1793_v61 = vadd.f32 %v3278_v4, %v6706_v15  ;;  %v3279_v57 = vpop.f32.mrb[112].mxu0 }
 0x1d9   :  { %v3359_v28 = vpop.f32.mrb[112].mxu1  ;;  %v3280_v7 = vpop.f32.mrb[113].mxu0 }
 0x1da   :  { %v6820_v55 = vadd.f32 %v3358_v1, %v1793_v61  ;;  %v3281_v20 = vadd.f32 %v3280_v7, %v3279_v57  ;;  %v3360_v43 = vpop.f32.mrb[113].mxu1 }
 0x1db   :  { %v3361_v10 = vadd.f32 %v3360_v43, %v3359_v28 }
 0x1dc   :  { %v1798_v63 = vadd.f32 %v3281_v20, %v6721_v29  ;;  %v3282_v12 = vpop.f32.mrb[114].mxu0 }
 0x1dd   :  { %v3362_v39 = vpop.f32.mrb[114].mxu1  ;;  %v3283_v16 = vpop.f32.mrb[115].mxu0 }
 0x1de   :  { %v6823_v14 = vadd.f32 %v3361_v10, %v1798_v63  ;;  %v3284_v44 = vadd.f32 %v3283_v16, %v3282_v12  ;;  %v3363_v52 = vpop.f32.mrb[115].mxu1 }
 0x1df   :  { %v3364_v17 = vadd.f32 %v3363_v52, %v3362_v39 }
 0x1e0   :  { %v1803_v15 = vadd.f32 %v3284_v44, %v6736_v47  ;;  %v3285_v19 = vpop.f32.mrb[116].mxu0 }
 0x1e1   :  { %v3365_v58 = vpop.f32.mrb[116].mxu1  ;;  %v3286_v21 = vpop.f32.mrb[117].mxu0 }
 0x1e2   :  { %v6826_v11 = vadd.f32 %v3364_v17, %v1803_v15  ;;  %v3287_v33 = vadd.f32 %v3286_v21, %v3285_v19  ;;  %v3366_v26 = vpop.f32.mrb[117].mxu1 }
 0x1e3   :  { %v3367_v53 = vadd.f32 %v3366_v26, %v3365_v58 }
 0x1e4   :  { %v1808_v29 = vadd.f32 %v3287_v33, %v6751_v60  ;;  %v3288_v31 = vpop.f32.mrb[118].mxu0 }
 0x1e5   :  { %v3368_v0 = vpop.f32.mrb[118].mxu1  ;;  %v3289_v32 = vpop.f32.mrb[119].mxu0 }
 0x1e6   :  { %v6829_v35 = vadd.f32 %v3367_v53, %v1808_v29  ;;  %v3290_v5 = vadd.f32 %v3289_v32, %v3288_v31  ;;  %v3369_v9 = vpop.f32.mrb[119].mxu1 }
 0x1e7   :  { %v3370_v38 = vadd.f32 %v3369_v9, %v3368_v0 }
 0x1e8   :  { %v1813_v47 = vadd.f32 %v3290_v5, %v6766_v59  ;;  %v3291_v8 = vpop.f32.mrb[120].mxu0 }
 0x1e9   :  { %v3371_v45 = vpop.f32.mrb[120].mxu1  ;;  %v3292_v23 = vpop.f32.mrb[121].mxu0 }
 0x1ea   :  { %v6832_v48 = vadd.f32 %v3370_v38, %v1813_v47  ;;  %v3293_v18 = vadd.f32 %v3292_v23, %v3291_v8  ;;  %v3372_v13 = vpop.f32.mrb[121].mxu1 }
 0x1eb   :  { %v3373_v50 = vadd.f32 %v3372_v13, %v3371_v45 }
 0x1ec   :  { %v1818_v60 = vadd.f32 %v3293_v18, %v6781_v24  ;;  %v3294_v41 = vpop.f32.mrb[122].mxu0 }
 0x1ed   :  { %v3374_v51 = vpop.f32.mrb[122].mxu1  ;;  %v3295_v54 = vpop.f32.mrb[123].mxu0 }
 0x1ee   :  { %v6835_v56 = vadd.f32 %v3373_v50, %v1818_v60  ;;  %v3296_v34 = vadd.f32 %v3295_v54, %v3294_v41  ;;  %v3375_v42 = vpop.f32.mrb[123].mxu1 }
 0x1ef   :  { %v3376_v46 = vadd.f32 %v3375_v42, %v3374_v51 }
 0x1f0   :  { %v1823_v59 = vadd.f32 %v3296_v34, %v6790_v36  ;;  %v3297_v62 = vpop.f32.mrb[124].mxu0 }
 0x1f1   :  { %v3377_v4 = vpop.f32.mrb[124].mxu1  ;;  %v3298_v40 = vpop.f32.mrb[125].mxu0 }
 0x1f2   :  { %v6838_v1 = vadd.f32 %v3376_v46, %v1823_v59  ;;  %v3299_v61 = vadd.f32 %v3298_v40, %v3297_v62  ;;  %v3378_v57 = vpop.f32.mrb[125].mxu1 }
 0x1f3   :  { %v3379_v28 = vadd.f32 %v3378_v57, %v3377_v4 }
 0x1f4   :  { %v1828_v24 = vadd.f32 %v3299_v61, %v6793_v27  ;;  %v3300_v7 = vpop.f32.mrb[126].mxu0 }
 0x1f5   :  { %v3380_v20 = vpop.f32.mrb[126].mxu1  ;;  %v3301_v43 = vpop.f32.mrb[127].mxu0 }
 0x1f6   :  { %v6841_v10 = vadd.f32 %v3379_v28, %v1828_v24  ;;  %v3302_v63 = vadd.f32 %v3301_v43, %v3300_v7  ;;  %v3381_v12 = vpop.f32.mrb[127].mxu1 }
 0x1f7   :  { %v3382_v39 = vadd.f32 %v3381_v12, %v3380_v20 }
 0x1f8   :  { %v1833_v36 = vadd.f32 %v3302_v63, %v6796_v37  ;;  %v3415_v16 = vpop.f32.mrb[128].mxu0 }
 0x1f9   :  { %v3495_v44 = vpop.f32.mrb[128].mxu1  ;;  %v3416_v52 = vpop.f32.mrb[129].mxu0 }
 0x1fa   :  { %v6844_v17 = vadd.f32 %v3382_v39, %v1833_v36  ;;  %v3417_v15 = vadd.f32 %v3416_v52, %v3415_v16  ;;  %v3496_v19 = vpop.f32.mrb[129].mxu1 }
 0x1fb   :  { %v3497_v58 = vadd.f32 %v3496_v19, %v3495_v44 }
 0x1fc   :  { %v2048_v27 = vadd.f32 %v3417_v15, %v6799_v3  ;;  %v3418_v21 = vpop.f32.mrb[130].mxu0 }
 0x1fd   :  { %v3498_v33 = vpop.f32.mrb[130].mxu1  ;;  %v3419_v26 = vpop.f32.mrb[131].mxu0 }
 0x1fe   :  { %v6847_v53 = vadd.f32 %v3497_v58, %v2048_v27  ;;  %v3420_v29 = vadd.f32 %v3419_v26, %v3418_v21  ;;  %v3499_v31 = vpop.f32.mrb[131].mxu1 }
 0x1ff   :  { %v3500_v0 = vadd.f32 %v3499_v31, %v3498_v33 }
 0x200   :  { %v2053_v37 = vadd.f32 %v3420_v29, %v6802_v2  ;;  %v3421_v32 = vpop.f32.mrb[132].mxu0 }
 0x201   :  { %v3501_v5 = vpop.f32.mrb[132].mxu1  ;;  %v3422_v9 = vpop.f32.mrb[133].mxu0 }
 0x202   :  { %v6850_v38 = vadd.f32 %v3500_v0, %v2053_v37  ;;  %v3423_v47 = vadd.f32 %v3422_v9, %v3421_v32  ;;  %v3502_v8 = vpop.f32.mrb[133].mxu1 }
 0x203   :  { %v3503_v45 = vadd.f32 %v3502_v8, %v3501_v5 }
 0x204   :  { %v2058_v3 = vadd.f32 %v3423_v47, %v6805_v6  ;;  %v3424_v23 = vpop.f32.mrb[134].mxu0 }
 0x205   :  { %v3504_v18 = vpop.f32.mrb[134].mxu1  ;;  %v3425_v13 = vpop.f32.mrb[135].mxu0 }
 0x206   :  { %v6853_v50 = vadd.f32 %v3503_v45, %v2058_v3  ;;  %v3426_v60 = vadd.f32 %v3425_v13, %v3424_v23  ;;  %v3505_v41 = vpop.f32.mrb[135].mxu1 }
 0x207   :  { %v3506_v51 = vadd.f32 %v3505_v41, %v3504_v18 }
 0x208   :  { %v2063_v2 = vadd.f32 %v3426_v60, %v6808_v30  ;;  %v3427_v54 = vpop.f32.mrb[136].mxu0 }
 0x209   :  { %v3507_v34 = vpop.f32.mrb[136].mxu1  ;;  %v3428_v42 = vpop.f32.mrb[137].mxu0 }
 0x20a   :  { %v6856_v46 = vadd.f32 %v3506_v51, %v2063_v2  ;;  %v3429_v59 = vadd.f32 %v3428_v42, %v3427_v54  ;;  %v3508_v62 = vpop.f32.mrb[137].mxu1 }
 0x20b   :  { %v3509_v4 = vadd.f32 %v3508_v62, %v3507_v34 }
 0x20c   :  { %v2068_v6 = vadd.f32 %v3429_v59, %v6811_v22  ;;  %v3430_v40 = vpop.f32.mrb[138].mxu0 }
 0x20d   :  { %v3510_v61 = vpop.f32.mrb[138].mxu1  ;;  %v3431_v57 = vpop.f32.mrb[139].mxu0 }
 0x20e   :  { %v6859_v28 = vadd.f32 %v3509_v4, %v2068_v6  ;;  %v3432_v24 = vadd.f32 %v3431_v57, %v3430_v40  ;;  %v3511_v7 = vpop.f32.mrb[139].mxu1 }
 0x20f   :  { %v3512_v20 = vadd.f32 %v3511_v7, %v3510_v61 }
 0x210   :  { %v2073_v30 = vadd.f32 %v3432_v24, %v6814_v49  ;;  %v3433_v43 = vpop.f32.mrb[140].mxu0 }
 0x211   :  { %v3513_v63 = vpop.f32.mrb[140].mxu1  ;;  %v3434_v12 = vpop.f32.mrb[141].mxu0 }
 0x212   :  { %v6862_v39 = vadd.f32 %v3512_v20, %v2073_v30  ;;  %v3435_v36 = vadd.f32 %v3434_v12, %v3433_v43  ;;  %v3514_v16 = vpop.f32.mrb[141].mxu1 }
 0x213   :  { %v3515_v44 = vadd.f32 %v3514_v16, %v3513_v63 }
 0x214   :  { %v2078_v22 = vadd.f32 %v3435_v36, %v6817_v25  ;;  %v3436_v52 = vpop.f32.mrb[142].mxu0 }
 0x215   :  { %v3516_v15 = vpop.f32.mrb[142].mxu1  ;;  %v3437_v19 = vpop.f32.mrb[143].mxu0 }
 0x216   :  { %v6865_v58 = vadd.f32 %v3515_v44, %v2078_v22  ;;  %v3438_v27 = vadd.f32 %v3437_v19, %v3436_v52  ;;  %v3517_v21 = vpop.f32.mrb[143].mxu1 }
 0x217   :  { %v3518_v33 = vadd.f32 %v3517_v21, %v3516_v15 }
 0x218   :  { %v2083_v49 = vadd.f32 %v3438_v27, %v6820_v55  ;;  %v3439_v26 = vpop.f32.mrb[144].mxu0 }
 0x219   :  { %v3519_v29 = vpop.f32.mrb[144].mxu1  ;;  %v3440_v31 = vpop.f32.mrb[145].mxu0 }
 0x21a   :  { %v6868_v0 = vadd.f32 %v3518_v33, %v2083_v49  ;;  %v3441_v37 = vadd.f32 %v3440_v31, %v3439_v26  ;;  %v3520_v32 = vpop.f32.mrb[145].mxu1 }
 0x21b   :  { %v3521_v5 = vadd.f32 %v3520_v32, %v3519_v29 }
 0x21c   :  { %v2088_v25 = vadd.f32 %v3441_v37, %v6823_v14  ;;  %v3442_v9 = vpop.f32.mrb[146].mxu0 }
 0x21d   :  { %v3522_v47 = vpop.f32.mrb[146].mxu1  ;;  %v3443_v8 = vpop.f32.mrb[147].mxu0 }
 0x21e   :  { %v6871_v45 = vadd.f32 %v3521_v5, %v2088_v25  ;;  %v3444_v3 = vadd.f32 %v3443_v8, %v3442_v9  ;;  %v3523_v23 = vpop.f32.mrb[147].mxu1 }
 0x21f   :  { %v3524_v18 = vadd.f32 %v3523_v23, %v3522_v47 }
 0x220   :  { %v2093_v55 = vadd.f32 %v3444_v3, %v6826_v11  ;;  %v3445_v13 = vpop.f32.mrb[148].mxu0 }
 0x221   :  { %v3525_v60 = vpop.f32.mrb[148].mxu1  ;;  %v3446_v41 = vpop.f32.mrb[149].mxu0 }
 0x222   :  { %v6874_v51 = vadd.f32 %v3524_v18, %v2093_v55  ;;  %v3447_v2 = vadd.f32 %v3446_v41, %v3445_v13  ;;  %v3526_v54 = vpop.f32.mrb[149].mxu1 }
 0x223   :  { %v3527_v34 = vadd.f32 %v3526_v54, %v3525_v60 }
 0x224   :  { %v2098_v14 = vadd.f32 %v3447_v2, %v6829_v35  ;;  %v3448_v42 = vpop.f32.mrb[150].mxu0 }
 0x225   :  { %v3528_v59 = vpop.f32.mrb[150].mxu1  ;;  %v3449_v62 = vpop.f32.mrb[151].mxu0 }
 0x226   :  { %v6877_v4 = vadd.f32 %v3527_v34, %v2098_v14  ;;  %v3450_v6 = vadd.f32 %v3449_v62, %v3448_v42  ;;  %v3529_v40 = vpop.f32.mrb[151].mxu1 }
 0x227   :  { %v3530_v61 = vadd.f32 %v3529_v40, %v3528_v59 }
 0x228   :  { %v2103_v11 = vadd.f32 %v3450_v6, %v6832_v48  ;;  %v3451_v57 = vpop.f32.mrb[152].mxu0 }
 0x229   :  { %v3531_v24 = vpop.f32.mrb[152].mxu1  ;;  %v3452_v7 = vpop.f32.mrb[153].mxu0 }
 0x22a   :  { %v6880_v20 = vadd.f32 %v3530_v61, %v2103_v11  ;;  %v3453_v30 = vadd.f32 %v3452_v7, %v3451_v57  ;;  %v3532_v43 = vpop.f32.mrb[153].mxu1 }
 0x22b   :  { %v3533_v63 = vadd.f32 %v3532_v43, %v3531_v24 }
 0x22c   :  { %v2108_v35 = vadd.f32 %v3453_v30, %v6835_v56  ;;  %v3454_v12 = vpop.f32.mrb[154].mxu0 }
 0x22d   :  { %v3534_v36 = vpop.f32.mrb[154].mxu1  ;;  %v3455_v16 = vpop.f32.mrb[155].mxu0 }
 0x22e   :  { %v6883_v44 = vadd.f32 %v3533_v63, %v2108_v35  ;;  %v3456_v22 = vadd.f32 %v3455_v16, %v3454_v12  ;;  %v3535_v52 = vpop.f32.mrb[155].mxu1 }
 0x22f   :  { %v3536_v15 = vadd.f32 %v3535_v52, %v3534_v36 }
 0x230   :  { %v2113_v48 = vadd.f32 %v3456_v22, %v6838_v1  ;;  %v3457_v19 = vpop.f32.mrb[156].mxu0 }
 0x231   :  { %v3537_v27 = vpop.f32.mrb[156].mxu1  ;;  %v3458_v21 = vpop.f32.mrb[157].mxu0 }
 0x232   :  { %v6886_v33 = vadd.f32 %v3536_v15, %v2113_v48  ;;  %v3459_v49 = vadd.f32 %v3458_v21, %v3457_v19  ;;  %v3538_v26 = vpop.f32.mrb[157].mxu1 }
 0x233   :  { %v3539_v29 = vadd.f32 %v3538_v26, %v3537_v27 }
 0x234   :  { %v2118_v56 = vadd.f32 %v3459_v49, %v6841_v10  ;;  %v3460_v31 = vpop.f32.mrb[158].mxu0 }
 0x235   :  { %v3540_v37 = vpop.f32.mrb[158].mxu1  ;;  %v3461_v32 = vpop.f32.mrb[159].mxu0 }
 0x236   :  { %v6889_v5 = vadd.f32 %v3539_v29, %v2118_v56  ;;  %v3462_v25 = vadd.f32 %v3461_v32, %v3460_v31  ;;  %v3541_v9 = vpop.f32.mrb[159].mxu1 }
 0x237   :  { %v3542_v47 = vadd.f32 %v3541_v9, %v3540_v37 }
 0x238   :  { %v2123_v1 = vadd.f32 %v3462_v25, %v6844_v17  ;;  %v3575_v8 = vpop.f32.mrb[160].mxu0 }
 0x239   :  { %v3655_v3 = vpop.f32.mrb[160].mxu1  ;;  %v3576_v23 = vpop.f32.mrb[161].mxu0 }
 0x23a   :  { %v6892_v18 = vadd.f32 %v3542_v47, %v2123_v1  ;;  %v3577_v55 = vadd.f32 %v3576_v23, %v3575_v8  ;;  %v3656_v13 = vpop.f32.mrb[161].mxu1 }
 0x23b   :  { %v3657_v60 = vadd.f32 %v3656_v13, %v3655_v3 }
 0x23c   :  { %v2338_v10 = vadd.f32 %v3577_v55, %v6847_v53  ;;  %v3578_v41 = vpop.f32.mrb[162].mxu0 }
 0x23d   :  { %v3658_v2 = vpop.f32.mrb[162].mxu1  ;;  %v3579_v54 = vpop.f32.mrb[163].mxu0 }
 0x23e   :  { %v3580_v34 = vadd.f32 %v3579_v54, %v3578_v41  ;;  %v3659_v14 = vpop.f32.mrb[163].mxu1  ;;  %v6895_v42 = vadd.f32 %v3657_v60, %v2338_v10 }
 0x23f   :  { %v3660_v59 = vadd.f32 %v3659_v14, %v3658_v2 }
 0x240   :  { %v2343_v17 = vadd.f32 %v3580_v34, %v6850_v38  ;;  %v3581_v62 = vpop.f32.mrb[164].mxu0 }
 0x241   :  { %v3661_v6 = vpop.f32.mrb[164].mxu1  ;;  %v3582_v40 = vpop.f32.mrb[165].mxu0 }
 0x242   :  { %v3583_v61 = vadd.f32 %v3582_v40, %v3581_v62  ;;  %v3662_v11 = vpop.f32.mrb[165].mxu1  ;;  %v6898_v57 = vadd.f32 %v3660_v59, %v2343_v17 }
 0x243   :  { %v3663_v24 = vadd.f32 %v3662_v11, %v3661_v6 }
 0x244   :  { %v2348_v53 = vadd.f32 %v3583_v61, %v6853_v50  ;;  %v3584_v7 = vpop.f32.mrb[166].mxu0 }
 0x245   :  { %v3664_v30 = vpop.f32.mrb[166].mxu1  ;;  %v3585_v43 = vpop.f32.mrb[167].mxu0 }
 0x246   :  { %v3586_v63 = vadd.f32 %v3585_v43, %v3584_v7  ;;  %v3665_v35 = vpop.f32.mrb[167].mxu1  ;;  %v6901_v12 = vadd.f32 %v3663_v24, %v2348_v53 }
 0x247   :  { %v3666_v36 = vadd.f32 %v3665_v35, %v3664_v30 }
 0x248   :  { %v2353_v38 = vadd.f32 %v3586_v63, %v6856_v46  ;;  %v3587_v16 = vpop.f32.mrb[168].mxu0 }
 0x249   :  { %v3667_v22 = vpop.f32.mrb[168].mxu1  ;;  %v3588_v52 = vpop.f32.mrb[169].mxu0 }
 0x24a   :  { %v3589_v15 = vadd.f32 %v3588_v52, %v3587_v16  ;;  %v3668_v48 = vpop.f32.mrb[169].mxu1  ;;  %v6904_v19 = vadd.f32 %v3666_v36, %v2353_v38 }
 0x24b   :  { %v3669_v27 = vadd.f32 %v3668_v48, %v3667_v22 }
 0x24c   :  { %v2358_v50 = vadd.f32 %v3589_v15, %v6859_v28  ;;  %v3590_v21 = vpop.f32.mrb[170].mxu0 }
 0x24d   :  { %v3670_v49 = vpop.f32.mrb[170].mxu1  ;;  %v3591_v26 = vpop.f32.mrb[171].mxu0 }
 0x24e   :  { %v3592_v29 = vadd.f32 %v3591_v26, %v3590_v21  ;;  %v3671_v56 = vpop.f32.mrb[171].mxu1  ;;  %v6907_v31 = vadd.f32 %v3669_v27, %v2358_v50 }
 0x24f   :  { %v3672_v37 = vadd.f32 %v3671_v56, %v3670_v49 }
 0x250   :  { %v2363_v46 = vadd.f32 %v3592_v29, %v6862_v39  ;;  %v3593_v32 = vpop.f32.mrb[172].mxu0 }
 0x251   :  { %v3673_v25 = vpop.f32.mrb[172].mxu1  ;;  %v3594_v9 = vpop.f32.mrb[173].mxu0 }
 0x252   :  { %v3595_v47 = vadd.f32 %v3594_v9, %v3593_v32  ;;  %v3674_v1 = vpop.f32.mrb[173].mxu1  ;;  %v6910_v8 = vadd.f32 %v3672_v37, %v2363_v46 }
 0x253   :  { %v3675_v3 = vadd.f32 %v3674_v1, %v3673_v25 }
 0x254   :  { %v2368_v28 = vadd.f32 %v3595_v47, %v6865_v58  ;;  %v3596_v23 = vpop.f32.mrb[174].mxu0 }
 0x255   :  { %v3676_v55 = vpop.f32.mrb[174].mxu1  ;;  %v3597_v13 = vpop.f32.mrb[175].mxu0 }
 0x256   :  { %v3598_v60 = vadd.f32 %v3597_v13, %v3596_v23  ;;  %v3677_v10 = vpop.f32.mrb[175].mxu1  ;;  %v6913_v41 = vadd.f32 %v3675_v3, %v2368_v28 }
 0x257   :  { %v3678_v2 = vadd.f32 %v3677_v10, %v3676_v55 }
 0x258   :  { %v2373_v39 = vadd.f32 %v3598_v60, %v6868_v0  ;;  %v3599_v54 = vpop.f32.mrb[176].mxu0 }
 0x259   :  { %v3679_v34 = vpop.f32.mrb[176].mxu1  ;;  %v3600_v14 = vpop.f32.mrb[177].mxu0 }
 0x25a   :  { %v3601_v59 = vadd.f32 %v3600_v14, %v3599_v54  ;;  %v3680_v17 = vpop.f32.mrb[177].mxu1  ;;  %v6916_v62 = vadd.f32 %v3678_v2, %v2373_v39 }
 0x25b   :  { %v3681_v6 = vadd.f32 %v3680_v17, %v3679_v34 }
 0x25c   :  { %v2378_v58 = vadd.f32 %v3601_v59, %v6871_v45  ;;  %v3602_v40 = vpop.f32.mrb[178].mxu0 }
 0x25d   :  { %v3682_v61 = vpop.f32.mrb[178].mxu1  ;;  %v3603_v11 = vpop.f32.mrb[179].mxu0 }
 0x25e   :  { %v3604_v24 = vadd.f32 %v3603_v11, %v3602_v40  ;;  %v3683_v53 = vpop.f32.mrb[179].mxu1  ;;  %v2523_v7 = vadd.f32 %v3681_v6, %v2378_v58 }
 0x25f   :  { %v3684_v30 = vadd.f32 %v3683_v53, %v3682_v61 }
 0x260   :  { %v2383_v43 = vadd.f32 %v3604_v24, %v6874_v51  ;;  %v3605_v0 = vpop.f32.mrb[180].mxu0 }
 0x261   :  { %v3685_v63 = vpop.f32.mrb[180].mxu1  ;;  %v3606_v35 = vpop.f32.mrb[181].mxu0 }
 0x262   :  { %v3607_v36 = vadd.f32 %v3606_v35, %v3605_v0  ;;  %v3686_v38 = vpop.f32.mrb[181].mxu1  ;;  %v2528_v16 = vadd.f32 %v3684_v30, %v2383_v43 }
 0x263   :  { %v3687_v22 = vadd.f32 %v3686_v38, %v3685_v63 }
 0x264   :  { %v2388_v52 = vadd.f32 %v3607_v36, %v6877_v4  ;;  %v3608_v15 = vpop.f32.mrb[182].mxu0 }
 0x265   :  { %v3688_v45 = vpop.f32.mrb[182].mxu1  ;;  %v3609_v48 = vpop.f32.mrb[183].mxu0 }
 0x266   :  { %v3610_v27 = vadd.f32 %v3609_v48, %v3608_v15  ;;  %v3689_v50 = vpop.f32.mrb[183].mxu1  ;;  %v2533_v21 = vadd.f32 %v3687_v22, %v2388_v52 }
 0x267   :  { %v3690_v49 = vadd.f32 %v3689_v50, %v3688_v45 }
 0x268   :  { %v2393_v26 = vadd.f32 %v3610_v27, %v6880_v20  ;;  %v3611_v29 = vpop.f32.mrb[184].mxu0 }
 0x269   :  { %v3691_v51 = vpop.f32.mrb[184].mxu1  ;;  %v3612_v56 = vpop.f32.mrb[185].mxu0 }
 0x26a   :  { %v3613_v37 = vadd.f32 %v3612_v56, %v3611_v29  ;;  %v3692_v46 = vpop.f32.mrb[185].mxu1  ;;  %v2538_v32 = vadd.f32 %v3690_v49, %v2393_v26 }
 0x26b   :  { %v3693_v25 = vadd.f32 %v3692_v46, %v3691_v51 }
 0x26c   :  { %v2398_v9 = vadd.f32 %v3613_v37, %v6883_v44  ;;  %v3614_v47 = vpop.f32.mrb[186].mxu0 }
 0x26d   :  { %v3694_v4 = vpop.f32.mrb[186].mxu1  ;;  %v3615_v1 = vpop.f32.mrb[187].mxu0 }
 0x26e   :  { %v3616_v3 = vadd.f32 %v3615_v1, %v3614_v47  ;;  %v3695_v28 = vpop.f32.mrb[187].mxu1  ;;  %v2543_v23 = vadd.f32 %v3693_v25, %v2398_v9 }
 0x26f   :  { %v3696_v55 = vadd.f32 %v3695_v28, %v3694_v4 }
 0x270   :  { %v2403_v13 = vadd.f32 %v3616_v3, %v6886_v33  ;;  %v3617_v60 = vpop.f32.mrb[188].mxu0 }
 0x271   :  { %v3697_v20 = vpop.f32.mrb[188].mxu1  ;;  %v3618_v10 = vpop.f32.mrb[189].mxu0 }
 0x272   :  { %v3619_v2 = vadd.f32 %v3618_v10, %v3617_v60  ;;  %v3698_v39 = vpop.f32.mrb[189].mxu1  ;;  %v2548_v54 = vadd.f32 %v3696_v55, %v2403_v13 }
 0x273   :  { %v3699_v34 = vadd.f32 %v3698_v39, %v3697_v20 }
 0x274   :  { %v2408_v14 = vadd.f32 %v3619_v2, %v6889_v5  ;;  %v3620_v59 = vpop.f32.mrb[190].mxu0 }
 0x275   :  { %v3700_v44 = vpop.f32.mrb[190].mxu1  ;;  %v3621_v17 = vpop.f32.mrb[191].mxu0 }
 0x276   :  { %v3622_v6 = vadd.f32 %v3621_v17, %v3620_v59  ;;  %v3701_v58 = vpop.f32.mrb[191].mxu1  ;;  %v2553_v40 = vadd.f32 %v3699_v34, %v2408_v14 }
 0x277   :  { %v3702_v61 = vadd.f32 %v3701_v58, %v3700_v44 }
 0x278   :  { %v2413_v11 = vadd.f32 %v3622_v6, %v6892_v18  ;;  %v3769_v24 = vpop.f32.mrb[192].mxu0 }
 0x279   :  { %v2633_v33 = vadd.f32 %v3769_v24, %v6898_v57  ;;  %v3781_v53 = vpop.f32.mrb[192].mxu1  ;;  %v2627_v30 = vpop.f32.mrb[193].mxu0 }
 0x27a   :  { %v2673_v43 = vadd.f32 %v3781_v53, %v2528_v16  ;;  %v2628_v0 = vadd.f32 %v2627_v30, %v6895_v42  ;;  %v2667_v63 = vpop.f32.mrb[193].mxu1  ;;  %v2558_v35 = vadd.f32 %v3702_v61, %v2413_v11 }
 0x27b   :  { %v2707_v5 = vmax.f32 %v2633_v33, 0.0  ;;  %v2668_v36 = vadd.f32 %v2667_v63, %v2523_v7 }
 0x27c   :  { %v2715_v38 = vmax.f32 %v2673_v43, 0.0  ;;  %v2706_v22 = vmax.f32 %v2628_v0, 0.0  ;;  %v3772_v52 = vpop.f32.mrb[194].mxu0 }
 0x27d   :  { %2723 = vst [vmem:[%s6985_s3 + $0x8] sm:$0xff] %v2707_v5  ;;  %v2714_v18 = vmax.f32 %v2668_v36, 0.0  ;;  %v2643_v15 = vadd.f32 %v3772_v52, %v6904_v19  ;;  %v3784_v57 = vpop.f32.mrb[194].mxu1  ;;  %v2637_v45 = vpop.f32.mrb[195].mxu0 }
 0x27e   :  { %2731 = vst [vmem:[%s6985_s3 + $0x48] sm:$0xff] %v2715_v38  ;;  %2722 = vst [vmem:[%s6985_s3] sm:$0xff] %v2706_v22  ;;  %v2683_v42 = vadd.f32 %v3784_v57, %v2538_v32  ;;  %v2638_v7 = vadd.f32 %v2637_v45, %v6901_v12  ;;  %v2677_v16 = vpop.f32.mrb[195].mxu1 }
 0x27f   :  { %2730 = vst [vmem:[%s6985_s3 + $0x40] sm:$0xff] %v2714_v18  ;;  %v2709_v48 = vmax.f32 %v2643_v15, 0.0  ;;  %v2678_v19 = vadd.f32 %v2677_v16, %v2533_v21 }
 0x280   :  { %v2717_v27 = vmax.f32 %v2683_v42, 0.0  ;;  %v2708_v50 = vmax.f32 %v2638_v7, 0.0  ;;  %v3775_v49 = vpop.f32.mrb[196].mxu0 }
 0x281   :  { %2725 = vst [vmem:[%s6985_s3 + $0x18] sm:$0xff] %v2709_v48  ;;  %v2716_v26 = vmax.f32 %v2678_v19, 0.0  ;;  %v2653_v29 = vadd.f32 %v3775_v49, %v6910_v8  ;;  %v3787_v51 = vpop.f32.mrb[196].mxu1  ;;  %v2647_v56 = vpop.f32.mrb[197].mxu0 }
 0x282   :  { %2733 = vst [vmem:[%s6985_s3 + $0x58] sm:$0xff] %v2717_v27  ;;  %2724 = vst [vmem:[%s6985_s3 + $0x10] sm:$0xff] %v2708_v50  ;;  %v2693_v12 = vadd.f32 %v3787_v51, %v2548_v54  ;;  %v2648_v21 = vadd.f32 %v2647_v56, %v6907_v31  ;;  %v2687_v37 = vpop.f32.mrb[197].mxu1 }
 0x283   :  { %2732 = vst [vmem:[%s6985_s3 + $0x50] sm:$0xff] %v2716_v26  ;;  %v2711_v46 = vmax.f32 %v2653_v29, 0.0  ;;  %v2688_v8 = vadd.f32 %v2687_v37, %v2543_v23 }
 0x284   :  { %v2719_v32 = vmax.f32 %v2693_v12, 0.0  ;;  %v2710_v25 = vmax.f32 %v2648_v21, 0.0  ;;  %v3778_v9 = vpop.f32.mrb[198].mxu0 }
 0x285   :  { %2727 = vst [vmem:[%s6985_s3 + $0x28] sm:$0xff] %v2711_v46  ;;  %v2718_v47 = vmax.f32 %v2688_v8, 0.0  ;;  %v2663_v4 = vadd.f32 %v3778_v9, %v6916_v62  ;;  %v3790_v1 = vpop.f32.mrb[198].mxu1  ;;  %v2657_v3 = vpop.f32.mrb[199].mxu0 }
 0x286   :  { %2735 = vst [vmem:[%s6985_s3 + $0x68] sm:$0xff] %v2719_v32  ;;  %2726 = vst [vmem:[%s6985_s3 + $0x20] sm:$0xff] %v2710_v25  ;;  %v2703_v31 = vadd.f32 %v3790_v1, %v2558_v35  ;;  %v2658_v28 = vadd.f32 %v2657_v3, %v6913_v41  ;;  %v2697_v23 = vpop.f32.mrb[199].mxu1 }
 0x287   :  { %2734 = vst [vmem:[%s6985_s3 + $0x60] sm:$0xff] %v2718_v47  ;;  %v2713_v55 = vmax.f32 %v2663_v4, 0.0  ;;  %v2698_v62 = vadd.f32 %v2697_v23, %v2553_v40 }
 0x288   :  { %v2721_v13 = vmax.f32 %v2703_v31, 0.0  ;;  %v2712_v60 = vmax.f32 %v2658_v28, 0.0 }
 0x289   :  { %2729 = vst [vmem:[%s6985_s3 + $0x38] sm:$0xff] %v2713_v55  ;;  %v2720_v20 = vmax.f32 %v2698_v62, 0.0 }
 0x28a   :  { %2737 = vst [vmem:[%s6985_s3 + $0x78] sm:$0xff] %v2721_v13  ;;  %2728 = vst [vmem:[%s6985_s3 + $0x30] sm:$0xff] %v2712_v60 }
 0x28b   :  { %2736 = vst [vmem:[%s6985_s3 + $0x70] sm:$0xff] %v2720_v20 }

// kernel: basic_model_forward.7
= control target key start
LH: loop header
LB: loop body
LE: loop exit
PB: predicated region body
PF: predicated region fallthrough
CT: control target
= control target key end

     0   :  { %s4379_s1 = inlined_call_operand.vmem [shape: f32[2048,128], index: 1, kind: input, shape index: {}]   ;;  %s4380_s0 = inlined_call_operand.vmem [shape: f32[128,2048], index: 0, kind: input, shape index: {}]   ;;  %s4381_s2 = inlined_call_operand.vmem [shape: f32[1,128], index: 2, kind: input, shape index: {}]   ;;  %s4382_s3 = inlined_call_operand.vmem [shape: f32[128,128], index: 3, kind: output, shape index: {}]  }
   0x1   :  { %v286_v0 = vld [vmem:[%s4379_s1 + $0x80] sm:$0xff]  ;;  %v287_v1 = vld [vmem:[%s4379_s1 + $0x88] sm:$0xff]  ;;  %v288_v11 = vld [vmem:[%s4379_s1 + $0x90] sm:$0xff] }
   0x2   :  { %v270_v2 = vld [vmem:[%s4379_s1] sm:$0xff]  ;;  %v2354_v3 = vpack.c.bf16 %v287_v1, %v286_v0  ;;  %v271_v4 = vld [vmem:[%s4379_s1 + $0x8] sm:$0xff]  ;;  %v289_v13 = vld [vmem:[%s4379_s1 + $0x98] sm:$0xff] }
   0x3   :  { %v318_v5 = vld [vmem:[%s4379_s1 + $0x180] sm:$0xff]  ;;  %v319_v6 = vld [vmem:[%s4379_s1 + $0x188] sm:$0xff]  ;;  %v2356_v7 = vpack.c.bf16 %v271_v4, %v270_v2  ;;  %v272_v14 = vld [vmem:[%s4379_s1 + $0x10] sm:$0xff]  ;;  %v2358_v16 = vpack.c.bf16 %v289_v13, %v288_v11 }
   0x4   :  { %v2386_v8 = vpack.c.bf16 %v319_v6, %v318_v5  ;;  %v302_v9 = vld [vmem:[%s4379_s1 + $0x100] sm:$0xff]  ;;  %v303_v10 = vld [vmem:[%s4379_s1 + $0x108] sm:$0xff]  ;;  %2355 = vmatprep.subr.bf16.mxu0 %v2354_v3  ;;  %v273_v15 = vld [vmem:[%s4379_s1 + $0x18] sm:$0xff] }
   0x5   :  { %v2388_v12 = vpack.c.bf16 %v303_v10, %v302_v9  ;;  %2357 = vmatpush3.bf16.msra.mxu0 %v2356_v7  ;;  %v2360_v17 = vpack.c.bf16 %v273_v15, %v272_v14  ;;  %v320_v18 = vld [vmem:[%s4379_s1 + $0x190] sm:$0xff]  ;;  %v321_v19 = vld [vmem:[%s4379_s1 + $0x198] sm:$0xff]  ;;  %v290_v23 = vld [vmem:[%s4379_s1 + $0xa0] sm:$0xff] }
   0x6   :  { %2387 = vmatprep.subr.bf16.mxu1 %v2386_v8  ;;  %v304_v20 = vld [vmem:[%s4379_s1 + $0x110] sm:$0xff]  ;;  %v2390_v21 = vpack.c.bf16 %v321_v19, %v320_v18  ;;  %v305_v22 = vld [vmem:[%s4379_s1 + $0x118] sm:$0xff]  ;;  %v291_v24 = vld [vmem:[%s4379_s1 + $0xa8] sm:$0xff]  ;;  %2359 = vmatprep.subr.bf16.mxu0 %v2358_v16 }
   0x7   :  { %2389 = vmatpush3.bf16.msra.mxu1 %v2388_v12  ;;  %v2392_v25 = vpack.c.bf16 %v305_v22, %v304_v20  ;;  %v2362_v26 = vpack.c.bf16 %v291_v24, %v290_v23  ;;  %v274_v27 = vld [vmem:[%s4379_s1 + $0x20] sm:$0xff]  ;;  %v275_v28 = vld [vmem:[%s4379_s1 + $0x28] sm:$0xff]  ;;  %v292_v35 = vld [vmem:[%s4379_s1 + $0xb0] sm:$0xff] }
   0x8   :  { %v322_v29 = vld [vmem:[%s4379_s1 + $0x1a0] sm:$0xff]  ;;  %2391 = vmatprep.subr.bf16.mxu1 %v2390_v21  ;;  %v323_v30 = vld [vmem:[%s4379_s1 + $0x1a8] sm:$0xff]  ;;  %v2364_v33 = vpack.c.bf16 %v275_v28, %v274_v27  ;;  %v293_v36 = vld [vmem:[%s4379_s1 + $0xb8] sm:$0xff] }
   0x9   :  { %v306_v31 = vld [vmem:[%s4379_s1 + $0x120] sm:$0xff]  ;;  %v307_v32 = vld [vmem:[%s4379_s1 + $0x128] sm:$0xff]  ;;  %2361 = vmatpush3.bf16.msra.mxu0 %v2360_v17  ;;  %v2394_v34 = vpack.c.bf16 %v323_v30, %v322_v29  ;;  %v276_v37 = vld [vmem:[%s4379_s1 + $0x30] sm:$0xff]  ;;  %v2366_v39 = vpack.c.bf16 %v293_v36, %v292_v35 }
   0xa   :  { %2363 = vmatprep.subr.bf16.mxu0 %v2362_v26  ;;  %v2396_v38 = vpack.c.bf16 %v307_v32, %v306_v31  ;;  %v277_v40 = vld [vmem:[%s4379_s1 + $0x38] sm:$0xff]  ;;  %v324_v41 = vld [vmem:[%s4379_s1 + $0x1b0] sm:$0xff]  ;;  %v294_v46 = vld [vmem:[%s4379_s1 + $0xc0] sm:$0xff] }
   0xb   :  { %2393 = vmatpush3.bf16.msra.mxu1 %v2392_v25  ;;  %v325_v42 = vld [vmem:[%s4379_s1 + $0x1b8] sm:$0xff]  ;;  %v308_v44 = vld [vmem:[%s4379_s1 + $0x130] sm:$0xff]  ;;  %v295_v47 = vld [vmem:[%s4379_s1 + $0xc8] sm:$0xff]  ;;  %v2368_v48 = vpack.c.bf16 %v277_v40, %v276_v37 }
   0xc   :  { %2395 = vmatprep.subr.bf16.mxu1 %v2394_v34  ;;  %v2398_v43 = vpack.c.bf16 %v325_v42, %v324_v41  ;;  %v309_v45 = vld [vmem:[%s4379_s1 + $0x138] sm:$0xff]  ;;  %v326_v49 = vld [vmem:[%s4379_s1 + $0x1c0] sm:$0xff]  ;;  %v327_v50 = vld [vmem:[%s4379_s1 + $0x1c8] sm:$0xff]  ;;  %v2370_v52 = vpack.c.bf16 %v295_v47, %v294_v46 }
   0xd   :  { %2365 = vmatpush3.bf16.msra.mxu0 %v2364_v33  ;;  %v2400_v51 = vpack.c.bf16 %v309_v45, %v308_v44  ;;  %v278_v53 = vld [vmem:[%s4379_s1 + $0x40] sm:$0xff]  ;;  %v279_v54 = vld [vmem:[%s4379_s1 + $0x48] sm:$0xff]  ;;  %v2402_v56 = vpack.c.bf16 %v327_v50, %v326_v49  ;;  %v296_v58 = vld [vmem:[%s4379_s1 + $0xd0] sm:$0xff] }
   0xe   :  { %2367 = vmatprep.subr.bf16.mxu0 %v2366_v39  ;;  %v310_v55 = vld [vmem:[%s4379_s1 + $0x140] sm:$0xff]  ;;  %v311_v57 = vld [vmem:[%s4379_s1 + $0x148] sm:$0xff]  ;;  %v297_v59 = vld [vmem:[%s4379_s1 + $0xd8] sm:$0xff]  ;;  %v2372_v62 = vpack.c.bf16 %v279_v54, %v278_v53 }
   0xf   :  { %2397 = vmatpush3.bf16.msra.mxu1 %v2396_v38  ;;  %v328_v60 = vld [vmem:[%s4379_s1 + $0x1d0] sm:$0xff]  ;;  %v329_v61 = vld [vmem:[%s4379_s1 + $0x1d8] sm:$0xff]  ;;  %v2404_v63 = vpack.c.bf16 %v311_v57, %v310_v55  ;;  %v2374_v0 = vpack.c.bf16 %v297_v59, %v296_v58  ;;  %v298_v6 = vld [vmem:[%s4379_s1 + $0xe0] sm:$0xff] }
  0x10   :  { %2399 = vmatprep.subr.bf16.mxu1 %v2398_v43  ;;  %v280_v1 = vld [vmem:[%s4379_s1 + $0x50] sm:$0xff]  ;;  %v281_v2 = vld [vmem:[%s4379_s1 + $0x58] sm:$0xff]  ;;  %v2406_v4 = vpack.c.bf16 %v329_v61, %v328_v60  ;;  %v299_v7 = vld [vmem:[%s4379_s1 + $0xe8] sm:$0xff] }
  0x11   :  { %2369 = vmatpush3.bf16.msra.mxu0 %v2368_v48  ;;  %v312_v3 = vld [vmem:[%s4379_s1 + $0x150] sm:$0xff]  ;;  %v313_v5 = vld [vmem:[%s4379_s1 + $0x158] sm:$0xff]  ;;  %v330_v8 = vld [vmem:[%s4379_s1 + $0x1e0] sm:$0xff]  ;;  %v2376_v10 = vpack.c.bf16 %v281_v2, %v280_v1  ;;  %v2378_v14 = vpack.c.bf16 %v299_v7, %v298_v6 }
  0x12   :  { %2371 = vmatprep.subr.bf16.mxu0 %v2370_v52  ;;  %v331_v9 = vld [vmem:[%s4379_s1 + $0x1e8] sm:$0xff]  ;;  %v282_v11 = vld [vmem:[%s4379_s1 + $0x60] sm:$0xff]  ;;  %v2408_v13 = vpack.c.bf16 %v313_v5, %v312_v3  ;;  %v300_v19 = vld [vmem:[%s4379_s1 + $0xf0] sm:$0xff] }
  0x13   :  { %2401 = vmatpush3.bf16.msra.mxu1 %v2400_v51  ;;  %v15_v12 = vld [vmem:[%s4380_s0 + $0x8] sm:$0xff]  ;;  %v314_v16 = vld [vmem:[%s4379_s1 + $0x160] sm:$0xff]  ;;  %v2410_v18 = vpack.c.bf16 %v331_v9, %v330_v8  ;;  %v301_v20 = vld [vmem:[%s4379_s1 + $0xf8] sm:$0xff] }
  0x14   :  { %2403 = vmatprep.subr.bf16.mxu1 %v2402_v56  ;;  %v283_v15 = vld [vmem:[%s4379_s1 + $0x68] sm:$0xff]  ;;  %597 = vmatprep.mubr.f32.mxu0 %v15_v12  ;;  %v17_v21 = vld [vmem:[%s4380_s0 + $0x18] sm:$0xff]  ;;  %v332_v22 = vld [vmem:[%s4379_s1 + $0x1f0] sm:$0xff]  ;;  %v2382_v26 = vpack.c.bf16 %v301_v20, %v300_v19 }
  0x15   :  { %2373 = vmatpush3.bf16.msra.mxu0 %v2372_v62  ;;  %v315_v17 = vld [vmem:[%s4379_s1 + $0x168] sm:$0xff]  ;;  %v333_v23 = vld [vmem:[%s4379_s1 + $0x1f8] sm:$0xff]  ;;  %742 = vmatprep.mubr.f32.mxu1 %v17_v21  ;;  %v2380_v24 = vpack.c.bf16 %v283_v15, %v282_v11  ;;  %v284_v27 = vld [vmem:[%s4379_s1 + $0x70] sm:$0xff] }
  0x16   :  { %2375 = vmatprep.subr.bf16.mxu0 %v2374_v0  ;;  %v2412_v25 = vpack.c.bf16 %v315_v17, %v314_v16  ;;  %v285_v28 = vld [vmem:[%s4379_s1 + $0x78] sm:$0xff]  ;;  %v316_v29 = vld [vmem:[%s4379_s1 + $0x170] sm:$0xff]  ;;  %v2414_v30 = vpack.c.bf16 %v333_v23, %v332_v22  ;;  %v350_v32 = vld [vmem:[%s4379_s1 + $0x280] sm:$0xff] }
  0x17   :  { %2405 = vmatpush3.bf16.msra.mxu1 %v2404_v63  ;;  %v317_v31 = vld [vmem:[%s4379_s1 + $0x178] sm:$0xff]  ;;  %v351_v33 = vld [vmem:[%s4379_s1 + $0x288] sm:$0xff]  ;;  %v382_v34 = vld [vmem:[%s4379_s1 + $0x380] sm:$0xff]  ;;  %v2384_v36 = vpack.c.bf16 %v285_v28, %v284_v27 }
  0x18   :  { %2407 = vmatprep.subr.bf16.mxu1 %v2406_v4  ;;  %v383_v35 = vld [vmem:[%s4379_s1 + $0x388] sm:$0xff]  ;;  %v2416_v37 = vpack.c.bf16 %v317_v31, %v316_v29  ;;  %v2418_v38 = vpack.c.bf16 %v351_v33, %v350_v32  ;;  %v334_v39 = vld [vmem:[%s4379_s1 + $0x200] sm:$0xff]  ;;  %v352_v44 = vld [vmem:[%s4379_s1 + $0x290] sm:$0xff] }
  0x19   :  { %2377 = vmatpush3.bf16.msra.mxu0 %v2376_v10  ;;  %v335_v40 = vld [vmem:[%s4379_s1 + $0x208] sm:$0xff]  ;;  %v2450_v41 = vpack.c.bf16 %v383_v35, %v382_v34  ;;  %v366_v42 = vld [vmem:[%s4379_s1 + $0x300] sm:$0xff]  ;;  %v353_v45 = vld [vmem:[%s4379_s1 + $0x298] sm:$0xff] }
  0x1a   :  { %2379 = vmatprep.subr.bf16.mxu0 %v2378_v14  ;;  %v367_v43 = vld [vmem:[%s4379_s1 + $0x308] sm:$0xff]  ;;  %v14_v46 = vld [vmem:[%s4380_s0] sm:$0xff]  ;;  %v2420_v47 = vpack.c.bf16 %v335_v40, %v334_v39  ;;  %v384_v48 = vld [vmem:[%s4379_s1 + $0x390] sm:$0xff]  ;;  %v2422_v54 = vpack.c.bf16 %v353_v45, %v352_v44 }
  0x1b   :  { %2409 = vmatpush3.bf16.msra.mxu1 %v2408_v13  ;;  %v385_v49 = vld [vmem:[%s4379_s1 + $0x398] sm:$0xff]  ;;  %v16_v50 = vld [vmem:[%s4380_s0 + $0x10] sm:$0xff]  ;;  %v31_v51 = vld [vmem:[%s4380_s0 + $0x88] sm:$0xff]  ;;  %v2452_v52 = vpack.c.bf16 %v367_v43, %v366_v42 }
  0x1c   :  { %2411 = vmatprep.subr.bf16.mxu1 %v2410_v18  ;;  %v33_v53 = vld [vmem:[%s4380_s0 + $0x98] sm:$0xff]  ;;  %v336_v55 = vld [vmem:[%s4379_s1 + $0x210] sm:$0xff]  ;;  %v2454_v58 = vpack.c.bf16 %v385_v49, %v384_v48  ;;  %v354_v60 = vld [vmem:[%s4379_s1 + $0x2a0] sm:$0xff] }
  0x1d   :  { %2381 = vmatpush3.bf16.msra.mxu0 %v2380_v24  ;;  %v337_v56 = vld [vmem:[%s4379_s1 + $0x218] sm:$0xff]  ;;  %v368_v57 = vld [vmem:[%s4379_s1 + $0x310] sm:$0xff]  ;;  %v355_v61 = vld [vmem:[%s4379_s1 + $0x2a8] sm:$0xff] }
  0x1e   :  { %2383 = vmatprep.subr.bf16.mxu0 %v2382_v26  ;;  %v369_v59 = vld [vmem:[%s4379_s1 + $0x318] sm:$0xff]  ;;  %v30_v62 = vld [vmem:[%s4380_s0 + $0x80] sm:$0xff]  ;;  %v387_v0 = vld [vmem:[%s4379_s1 + $0x3a8] sm:$0xff]  ;;  %v2424_v4 = vpack.c.bf16 %v337_v56, %v336_v55  ;;  %v2426_v6 = vpack.c.bf16 %v355_v61, %v354_v60 }
  0x1f   :  { %2413 = vmatpush3.bf16.msra.mxu1 %v2412_v25  ;;  %v386_v63 = vld [vmem:[%s4379_s1 + $0x3a0] sm:$0xff]  ;;  %v32_v1 = vld [vmem:[%s4380_s0 + $0x90] sm:$0xff]  ;;  %v47_v2 = vld [vmem:[%s4380_s0 + $0x108] sm:$0xff]  ;;  %v2456_v5 = vpack.c.bf16 %v369_v59, %v368_v57 }
  0x20   :  { %2415 = vmatprep.subr.bf16.mxu1 %v2414_v30  ;;  %v49_v3 = vld [vmem:[%s4380_s0 + $0x118] sm:$0xff]  ;;  %v338_v7 = vld [vmem:[%s4379_s1 + $0x220] sm:$0xff]  ;;  %v339_v8 = vld [vmem:[%s4379_s1 + $0x228] sm:$0xff]  ;;  %v2458_v10 = vpack.c.bf16 %v387_v0, %v386_v63 }
  0x21   :  { %2385 = vmatpush3.bf16.msra.mxu0 %v2384_v36  ;;  %v370_v9 = vld [vmem:[%s4379_s1 + $0x320] sm:$0xff]  ;;  %v371_v11 = vld [vmem:[%s4379_s1 + $0x328] sm:$0xff]  ;;  %v356_v12 = vld [vmem:[%s4379_s1 + $0x2b0] sm:$0xff]  ;;  %v2428_v20 = vpack.c.bf16 %v339_v8, %v338_v7 }
  0x22   :  { %2419 = vmatprep.subr.bf16.mxu0 %v2418_v38  ;;  %v357_v13 = vld [vmem:[%s4379_s1 + $0x2b8] sm:$0xff]  ;;  %v46_v14 = vld [vmem:[%s4380_s0 + $0x100] sm:$0xff]  ;;  %v388_v15 = vld [vmem:[%s4379_s1 + $0x3b0] sm:$0xff]  ;;  %v2460_v21 = vpack.c.bf16 %v371_v11, %v370_v9 }
  0x23   :  { %2417 = vmatpush3.bf16.msra.mxu1 %v2416_v37  ;;  %v389_v16 = vld [vmem:[%s4379_s1 + $0x3b8] sm:$0xff]  ;;  %v48_v17 = vld [vmem:[%s4380_s0 + $0x110] sm:$0xff]  ;;  %v63_v18 = vld [vmem:[%s4380_s0 + $0x188] sm:$0xff]  ;;  %v2430_v22 = vpack.c.bf16 %v357_v13, %v356_v12 }
  0x24   :  { %2451 = vmatprep.subr.bf16.mxu1 %v2450_v41  ;;  %598 = vmatmul.mubr.f32.vlgmr.msra.gmra.mrb[0].mxu0 %v14_v46  ;;  %v65_v19 = vld [vmem:[%s4380_s0 + $0x198] sm:$0xff]  ;;  %v340_v23 = vld [vmem:[%s4379_s1 + $0x230] sm:$0xff]  ;;  %v2462_v26 = vpack.c.bf16 %v389_v16, %v388_v15  ;;  %v358_v28 = vld [vmem:[%s4379_s1 + $0x2c0] sm:$0xff] }
  0x25   :  { %2421 = vmatpush3.bf16.msra.mxu0 %v2420_v47  ;;  %602 = vmatprep.mubr.f32.mxu0 %v31_v51  ;;  %v341_v24 = vld [vmem:[%s4379_s1 + $0x238] sm:$0xff]  ;;  %v372_v25 = vld [vmem:[%s4379_s1 + $0x330] sm:$0xff]  ;;  %v359_v29 = vld [vmem:[%s4379_s1 + $0x2c8] sm:$0xff] }
  0x26   :  { %743 = vmatmul.mubr.f32.vlgmr.msra.gmra.mrb[0].mxu1 %v16_v50  ;;  %2423 = vmatprep.subr.bf16.mxu0 %v2422_v54  ;;  %v373_v27 = vld [vmem:[%s4379_s1 + $0x338] sm:$0xff]  ;;  %v62_v30 = vld [vmem:[%s4380_s0 + $0x180] sm:$0xff]  ;;  %v64_v31 = vld [vmem:[%s4380_s0 + $0x190] sm:$0xff]  ;;  %v2432_v33 = vpack.c.bf16 %v341_v24, %v340_v23  ;;  %v2434_v38 = vpack.c.bf16 %v359_v29, %v358_v28 }
  0x27   :  { %2453 = vmatpush3.bf16.msra.mxu1 %v2452_v52  ;;  %747 = vmatprep.mubr.f32.mxu1 %v33_v53  ;;  %v79_v32 = vld [vmem:[%s4380_s0 + $0x208] sm:$0xff]  ;;  %v390_v34 = vld [vmem:[%s4379_s1 + $0x3c0] sm:$0xff]  ;;  %v81_v36 = vld [vmem:[%s4380_s0 + $0x218] sm:$0xff]  ;;  %v2464_v37 = vpack.c.bf16 %v373_v27, %v372_v25 }
  0x28   :  { %603 = vmatmul.mubr.f32.gmra.mrb[2].mxu0 %v30_v62  ;;  %2455 = vmatprep.subr.bf16.mxu1 %v2454_v58  ;;  %v391_v35 = vld [vmem:[%s4379_s1 + $0x3c8] sm:$0xff]  ;;  %v342_v39 = vld [vmem:[%s4379_s1 + $0x240] sm:$0xff]  ;;  %v80_v45 = vld [vmem:[%s4380_s0 + $0x210] sm:$0xff] }
  0x29   :  { %607 = vmatprep.mubr.f32.mxu0 %v47_v2  ;;  %2425 = vmatpush3.bf16.msra.mxu0 %v2424_v4  ;;  %v343_v40 = vld [vmem:[%s4379_s1 + $0x248] sm:$0xff]  ;;  %v2466_v41 = vpack.c.bf16 %v391_v35, %v390_v34  ;;  %v374_v42 = vld [vmem:[%s4379_s1 + $0x340] sm:$0xff]  ;;  %v360_v46 = vld [vmem:[%s4379_s1 + $0x2d0] sm:$0xff] }
  0x2a   :  { %748 = vmatmul.mubr.f32.gmra.mrb[2].mxu1 %v32_v1  ;;  %2427 = vmatprep.subr.bf16.mxu0 %v2426_v6  ;;  %v375_v43 = vld [vmem:[%s4379_s1 + $0x348] sm:$0xff]  ;;  %v78_v44 = vld [vmem:[%s4380_s0 + $0x200] sm:$0xff]  ;;  %v97_v48 = vld [vmem:[%s4380_s0 + $0x298] sm:$0xff]  ;;  %v2436_v49 = vpack.c.bf16 %v343_v40, %v342_v39 }
  0x2b   :  { %752 = vmatprep.mubr.f32.mxu1 %v49_v3  ;;  %2457 = vmatpush3.bf16.msra.mxu1 %v2456_v5  ;;  %v95_v47 = vld [vmem:[%s4380_s0 + $0x288] sm:$0xff]  ;;  %v361_v50 = vld [vmem:[%s4379_s1 + $0x2d8] sm:$0xff]  ;;  %v2468_v51 = vpack.c.bf16 %v375_v43, %v374_v42  ;;  %v344_v53 = vld [vmem:[%s4379_s1 + $0x250] sm:$0xff] }
  0x2c   :  { %608 = vmatmul.mubr.f32.gmra.mrb[4].mxu0 %v46_v14  ;;  %2459 = vmatprep.subr.bf16.mxu1 %v2458_v10  ;;  %v2438_v52 = vpack.c.bf16 %v361_v50, %v360_v46  ;;  %v345_v54 = vld [vmem:[%s4379_s1 + $0x258] sm:$0xff]  ;;  %v392_v55 = vld [vmem:[%s4379_s1 + $0x3d0] sm:$0xff]  ;;  %v94_v58 = vld [vmem:[%s4380_s0 + $0x280] sm:$0xff] }
  0x2d   :  { %612 = vmatprep.mubr.f32.mxu0 %v63_v18  ;;  %2429 = vmatpush3.bf16.msra.mxu0 %v2428_v20  ;;  %v393_v56 = vld [vmem:[%s4379_s1 + $0x3d8] sm:$0xff]  ;;  %v376_v57 = vld [vmem:[%s4379_s1 + $0x350] sm:$0xff]  ;;  %v111_v62 = vld [vmem:[%s4380_s0 + $0x308] sm:$0xff]  ;;  %v2440_v63 = vpack.c.bf16 %v345_v54, %v344_v53 }
  0x2e   :  { %753 = vmatmul.mubr.f32.gmra.mrb[4].mxu1 %v48_v17  ;;  %2431 = vmatprep.subr.bf16.mxu0 %v2430_v22  ;;  %v2470_v59 = vpack.c.bf16 %v393_v56, %v392_v55  ;;  %v377_v60 = vld [vmem:[%s4379_s1 + $0x358] sm:$0xff]  ;;  %v96_v61 = vld [vmem:[%s4380_s0 + $0x290] sm:$0xff]  ;;  %v362_v2 = vld [vmem:[%s4379_s1 + $0x2e0] sm:$0xff] }
  0x2f   :  { %757 = vmatprep.mubr.f32.mxu1 %v65_v19  ;;  %2461 = vmatpush3.bf16.msra.mxu1 %v2460_v21  ;;  %v113_v0 = vld [vmem:[%s4380_s0 + $0x318] sm:$0xff]  ;;  %v2472_v1 = vpack.c.bf16 %v377_v60, %v376_v57  ;;  %v363_v3 = vld [vmem:[%s4379_s1 + $0x2e8] sm:$0xff]  ;;  %v110_v4 = vld [vmem:[%s4380_s0 + $0x300] sm:$0xff] }
  0x30   :  { %613 = vmatmul.mubr.f32.gmra.mrb[6].mxu0 %v62_v30  ;;  %2463 = vmatprep.subr.bf16.mxu1 %v2462_v26  ;;  %v2442_v5 = vpack.c.bf16 %v363_v3, %v362_v2  ;;  %v346_v6 = vld [vmem:[%s4379_s1 + $0x260] sm:$0xff]  ;;  %v347_v7 = vld [vmem:[%s4379_s1 + $0x268] sm:$0xff]  ;;  %v112_v8 = vld [vmem:[%s4380_s0 + $0x310] sm:$0xff] }
  0x31   :  { %617 = vmatprep.mubr.f32.mxu0 %v79_v32  ;;  %2433 = vmatpush3.bf16.msra.mxu0 %v2432_v33  ;;  %v394_v9 = vld [vmem:[%s4379_s1 + $0x3e0] sm:$0xff]  ;;  %v395_v10 = vld [vmem:[%s4379_s1 + $0x3e8] sm:$0xff]  ;;  %v2444_v12 = vpack.c.bf16 %v347_v7, %v346_v6  ;;  %v129_v16 = vld [vmem:[%s4380_s0 + $0x398] sm:$0xff] }
  0x32   :  { %758 = vmatmul.mubr.f32.gmra.mrb[6].mxu1 %v64_v31  ;;  %2435 = vmatprep.subr.bf16.mxu0 %v2434_v38  ;;  %v127_v11 = vld [vmem:[%s4380_s0 + $0x388] sm:$0xff]  ;;  %v2474_v13 = vpack.c.bf16 %v395_v10, %v394_v9  ;;  %v378_v14 = vld [vmem:[%s4379_s1 + $0x360] sm:$0xff]  ;;  %v364_v19 = vld [vmem:[%s4379_s1 + $0x2f0] sm:$0xff] }
  0x33   :  { %762 = vmatprep.mubr.f32.mxu1 %v81_v36  ;;  %2465 = vmatpush3.bf16.msra.mxu1 %v2464_v37  ;;  %v379_v15 = vld [vmem:[%s4379_s1 + $0x368] sm:$0xff]  ;;  %v126_v18 = vld [vmem:[%s4380_s0 + $0x380] sm:$0xff]  ;;  %v365_v20 = vld [vmem:[%s4379_s1 + $0x2f8] sm:$0xff] }
  0x34   :  { %618 = vmatmul.mubr.f32.gmra.mrb[8].mxu0 %v78_v44  ;;  %2467 = vmatprep.subr.bf16.mxu1 %v2466_v41  ;;  %v2476_v17 = vpack.c.bf16 %v379_v15, %v378_v14  ;;  %v128_v21 = vld [vmem:[%s4380_s0 + $0x390] sm:$0xff]  ;;  %v2446_v22 = vpack.c.bf16 %v365_v20, %v364_v19  ;;  %v349_v24 = vld [vmem:[%s4379_s1 + $0x278] sm:$0xff]  ;;  %v143_v25 = vld [vmem:[%s4380_s0 + $0x408] sm:$0xff] }
  0x35   :  { %622 = vmatprep.mubr.f32.mxu0 %v95_v47  ;;  %2437 = vmatpush3.bf16.msra.mxu0 %v2436_v49  ;;  %v348_v23 = vld [vmem:[%s4379_s1 + $0x270] sm:$0xff]  ;;  %v397_v28 = vld [vmem:[%s4379_s1 + $0x3f8] sm:$0xff]  ;;  %v142_v34 = vld [vmem:[%s4380_s0 + $0x400] sm:$0xff] }
  0x36   :  { %763 = vmatmul.mubr.f32.gmra.mrb[8].mxu1 %v80_v45  ;;  %2439 = vmatprep.subr.bf16.mxu0 %v2438_v52  ;;  %v2448_v26 = vpack.c.bf16 %v349_v24, %v348_v23  ;;  %v396_v27 = vld [vmem:[%s4379_s1 + $0x3f0] sm:$0xff]  ;;  %v145_v29 = vld [vmem:[%s4380_s0 + $0x418] sm:$0xff]  ;;  %v414_v35 = vld [vmem:[%s4379_s1 + $0x480] sm:$0xff] }
  0x37   :  { %767 = vmatprep.mubr.f32.mxu1 %v97_v48  ;;  %2469 = vmatpush3.bf16.msra.mxu1 %v2468_v51  ;;  %v2478_v30 = vpack.c.bf16 %v397_v28, %v396_v27  ;;  %v380_v31 = vld [vmem:[%s4379_s1 + $0x370] sm:$0xff]  ;;  %v381_v32 = vld [vmem:[%s4379_s1 + $0x378] sm:$0xff]  ;;  %v159_v37 = vld [vmem:[%s4380_s0 + $0x488] sm:$0xff] }
  0x38   :  { %623 = vmatmul.mubr.f32.gmra.mrb[10].mxu0 %v94_v58  ;;  %2471 = vmatprep.subr.bf16.mxu1 %v2470_v59  ;;  %v2480_v33 = vpack.c.bf16 %v381_v32, %v380_v31  ;;  %v144_v36 = vld [vmem:[%s4380_s0 + $0x410] sm:$0xff]  ;;  %v415_v38 = vld [vmem:[%s4379_s1 + $0x488] sm:$0xff]  ;;  %v161_v39 = vld [vmem:[%s4380_s0 + $0x498] sm:$0xff] }
  0x39   :  { %627 = vmatprep.mubr.f32.mxu0 %v111_v62  ;;  %2441 = vmatpush3.bf16.msra.mxu0 %v2440_v63  ;;  %v2482_v40 = vpack.c.bf16 %v415_v38, %v414_v35  ;;  %v446_v41 = vld [vmem:[%s4379_s1 + $0x580] sm:$0xff]  ;;  %v447_v42 = vld [vmem:[%s4379_s1 + $0x588] sm:$0xff]  ;;  %v160_v45 = vld [vmem:[%s4380_s0 + $0x490] sm:$0xff] }
  0x3a   :  { %768 = vmatmul.mubr.f32.gmra.mrb[10].mxu1 %v96_v61  ;;  %2443 = vmatprep.subr.bf16.mxu0 %v2442_v5  ;;  %v158_v43 = vld [vmem:[%s4380_s0 + $0x480] sm:$0xff]  ;;  %v2514_v44 = vpack.c.bf16 %v447_v42, %v446_v41  ;;  %v175_v46 = vld [vmem:[%s4380_s0 + $0x508] sm:$0xff]  ;;  %v177_v47 = vld [vmem:[%s4380_s0 + $0x518] sm:$0xff] }
  0x3b   :  { %772 = vmatprep.mubr.f32.mxu1 %v113_v0  ;;  %2473 = vmatpush3.bf16.msra.mxu1 %v2472_v1  ;;  %v174_v48 = vld [vmem:[%s4380_s0 + $0x500] sm:$0xff]  ;;  %v176_v49 = vld [vmem:[%s4380_s0 + $0x510] sm:$0xff]  ;;  %v191_v50 = vld [vmem:[%s4380_s0 + $0x588] sm:$0xff] }
  0x3c   :  { %628 = vmatmul.mubr.f32.gmra.mrb[12].mxu0 %v110_v4  ;;  %2475 = vmatprep.subr.bf16.mxu1 %v2474_v13  ;;  %v193_v51 = vld [vmem:[%s4380_s0 + $0x598] sm:$0xff]  ;;  %v190_v52 = vld [vmem:[%s4380_s0 + $0x580] sm:$0xff]  ;;  %v192_v53 = vld [vmem:[%s4380_s0 + $0x590] sm:$0xff] }
  0x3d   :  { %632 = vmatprep.mubr.f32.mxu0 %v127_v11  ;;  %2445 = vmatpush3.bf16.msra.mxu0 %v2444_v12  ;;  %v207_v54 = vld [vmem:[%s4380_s0 + $0x608] sm:$0xff]  ;;  %v209_v55 = vld [vmem:[%s4380_s0 + $0x618] sm:$0xff]  ;;  %v206_v56 = vld [vmem:[%s4380_s0 + $0x600] sm:$0xff] }
  0x3e   :  { %773 = vmatmul.mubr.f32.gmra.mrb[12].mxu1 %v112_v8  ;;  %2447 = vmatprep.subr.bf16.mxu0 %v2446_v22  ;;  %v208_v57 = vld [vmem:[%s4380_s0 + $0x610] sm:$0xff]  ;;  %v223_v58 = vld [vmem:[%s4380_s0 + $0x688] sm:$0xff]  ;;  %v225_v59 = vld [vmem:[%s4380_s0 + $0x698] sm:$0xff] }
  0x3f   :  { %777 = vmatprep.mubr.f32.mxu1 %v129_v16  ;;  %2477 = vmatpush3.bf16.msra.mxu1 %v2476_v17  ;;  %v222_v60 = vld [vmem:[%s4380_s0 + $0x680] sm:$0xff]  ;;  %v224_v61 = vld [vmem:[%s4380_s0 + $0x690] sm:$0xff]  ;;  %v239_v62 = vld [vmem:[%s4380_s0 + $0x708] sm:$0xff] }
  0x40   :  { %633 = vmatmul.mubr.f32.gmra.mrb[14].mxu0 %v126_v18  ;;  %2479 = vmatprep.subr.bf16.mxu1 %v2478_v30  ;;  %v241_v63 = vld [vmem:[%s4380_s0 + $0x718] sm:$0xff]  ;;  %v238_v0 = vld [vmem:[%s4380_s0 + $0x700] sm:$0xff]  ;;  %v240_v1 = vld [vmem:[%s4380_s0 + $0x710] sm:$0xff] }
  0x41   :  { %637 = vmatprep.mubr.f32.mxu0 %v143_v25  ;;  %2449 = vmatpush3.bf16.msra.mxu0 %v2448_v26  ;;  %v255_v2 = vld [vmem:[%s4380_s0 + $0x788] sm:$0xff]  ;;  %v257_v3 = vld [vmem:[%s4380_s0 + $0x798] sm:$0xff]  ;;  %v254_v4 = vld [vmem:[%s4380_s0 + $0x780] sm:$0xff] }
  0x42   :  { %778 = vmatmul.mubr.f32.gmra.mrb[14].mxu1 %v128_v21  ;;  %2483 = vmatprep.subr.bf16.mxu0 %v2482_v40  ;;  %v256_v5 = vld [vmem:[%s4380_s0 + $0x790] sm:$0xff]  ;;  %v19_v6 = vld [vmem:[%s4380_s0 + $0x28] sm:$0xff]  ;;  %v398_v7 = vld [vmem:[%s4379_s1 + $0x400] sm:$0xff] }
  0x43   :  { %782 = vmatprep.mubr.f32.mxu1 %v145_v29  ;;  %2481 = vmatpush3.bf16.msra.mxu1 %v2480_v33  ;;  %v399_v8 = vld [vmem:[%s4379_s1 + $0x408] sm:$0xff]  ;;  %v21_v9 = vld [vmem:[%s4380_s0 + $0x38] sm:$0xff]  ;;  %v430_v10 = vld [vmem:[%s4379_s1 + $0x500] sm:$0xff] }
  0x44   :  { %638 = vmatmul.mubr.f32.gmra.mrb[16].mxu0 %v142_v34  ;;  %2515 = vmatprep.subr.bf16.mxu1 %v2514_v44  ;;  %v431_v11 = vld [vmem:[%s4379_s1 + $0x508] sm:$0xff]  ;;  %v416_v12 = vld [vmem:[%s4379_s1 + $0x490] sm:$0xff]  ;;  %v417_v13 = vld [vmem:[%s4379_s1 + $0x498] sm:$0xff]  ;;  %v2484_v15 = vpack.c.bf16 %v399_v8, %v398_v7 }
  0x45   :  { %642 = vmatprep.mubr.f32.mxu0 %v159_v37  ;;  %v18_v14 = vld [vmem:[%s4380_s0 + $0x20] sm:$0xff]  ;;  %v448_v16 = vld [vmem:[%s4379_s1 + $0x590] sm:$0xff]  ;;  %v449_v17 = vld [vmem:[%s4379_s1 + $0x598] sm:$0xff]  ;;  %v2516_v20 = vpack.c.bf16 %v431_v11, %v430_v10  ;;  %v2486_v22 = vpack.c.bf16 %v417_v13, %v416_v12 }
  0x46   :  { %783 = vmatmul.mubr.f32.gmra.mrb[16].mxu1 %v144_v36  ;;  %v20_v18 = vld [vmem:[%s4380_s0 + $0x30] sm:$0xff]  ;;  %v35_v19 = vld [vmem:[%s4380_s0 + $0xa8] sm:$0xff]  ;;  %v37_v21 = vld [vmem:[%s4380_s0 + $0xb8] sm:$0xff]  ;;  %v2518_v26 = vpack.c.bf16 %v449_v17, %v448_v16 }
  0x47   :  { %787 = vmatprep.mubr.f32.mxu1 %v161_v39  ;;  %v400_v23 = vld [vmem:[%s4379_s1 + $0x410] sm:$0xff]  ;;  %v401_v24 = vld [vmem:[%s4379_s1 + $0x418] sm:$0xff]  ;;  %v418_v28 = vld [vmem:[%s4379_s1 + $0x4a0] sm:$0xff] }
  0x48   :  { %643 = vmatmul.mubr.f32.gmra.mrb[18].mxu0 %v158_v43  ;;  %v432_v25 = vld [vmem:[%s4379_s1 + $0x510] sm:$0xff]  ;;  %v433_v27 = vld [vmem:[%s4379_s1 + $0x518] sm:$0xff]  ;;  %v419_v29 = vld [vmem:[%s4379_s1 + $0x4a8] sm:$0xff]  ;;  %v2488_v36 = vpack.c.bf16 %v401_v24, %v400_v23 }
  0x49   :  { %647 = vmatprep.mubr.f32.mxu0 %v175_v46  ;;  %v34_v30 = vld [vmem:[%s4380_s0 + $0xa0] sm:$0xff]  ;;  %v451_v32 = vld [vmem:[%s4379_s1 + $0x5a8] sm:$0xff]  ;;  %v36_v33 = vld [vmem:[%s4380_s0 + $0xb0] sm:$0xff]  ;;  %v2520_v37 = vpack.c.bf16 %v433_v27, %v432_v25  ;;  %v2490_v38 = vpack.c.bf16 %v419_v29, %v418_v28 }
  0x4a   :  { %788 = vmatmul.mubr.f32.gmra.mrb[18].mxu1 %v160_v45  ;;  %v450_v31 = vld [vmem:[%s4379_s1 + $0x5a0] sm:$0xff]  ;;  %v51_v34 = vld [vmem:[%s4380_s0 + $0x128] sm:$0xff]  ;;  %v53_v35 = vld [vmem:[%s4380_s0 + $0x138] sm:$0xff] }
  0x4b   :  { %792 = vmatprep.mubr.f32.mxu1 %v177_v47  ;;  %v402_v39 = vld [vmem:[%s4379_s1 + $0x420] sm:$0xff]  ;;  %v403_v40 = vld [vmem:[%s4379_s1 + $0x428] sm:$0xff]  ;;  %v2522_v42 = vpack.c.bf16 %v451_v32, %v450_v31  ;;  %v420_v44 = vld [vmem:[%s4379_s1 + $0x4b0] sm:$0xff] }
  0x4c   :  { %648 = vmatmul.mubr.f32.gmra.mrb[20].mxu0 %v174_v48  ;;  %v434_v41 = vld [vmem:[%s4379_s1 + $0x520] sm:$0xff]  ;;  %v435_v43 = vld [vmem:[%s4379_s1 + $0x528] sm:$0xff]  ;;  %v421_v45 = vld [vmem:[%s4379_s1 + $0x4b8] sm:$0xff] }
  0x4d   :  { %652 = vmatprep.mubr.f32.mxu0 %v191_v50  ;;  %v50_v46 = vld [vmem:[%s4380_s0 + $0x120] sm:$0xff]  ;;  %v452_v47 = vld [vmem:[%s4379_s1 + $0x5b0] sm:$0xff]  ;;  %v453_v48 = vld [vmem:[%s4379_s1 + $0x5b8] sm:$0xff] }
  0x4e   :  { %793 = vmatmul.mubr.f32.gmra.mrb[20].mxu1 %v176_v49  ;;  %v52_v49 = vld [vmem:[%s4380_s0 + $0x130] sm:$0xff]  ;;  %v67_v50 = vld [vmem:[%s4380_s0 + $0x1a8] sm:$0xff]  ;;  %v406_v7 = vld [vmem:[%s4379_s1 + $0x440] sm:$0xff] }
  0x4f   :  { %797 = vmatprep.mubr.f32.mxu1 %v193_v51  ;;  %v69_v51 = vld [vmem:[%s4380_s0 + $0x1b8] sm:$0xff]  ;;  %v407_v8 = vld [vmem:[%s4379_s1 + $0x448] sm:$0xff]  ;;  %v424_v12 = vld [vmem:[%s4379_s1 + $0x4d0] sm:$0xff] }
  0x50   :  { %653 = vmatmul.mubr.f32.gmra.mrb[22].mxu0 %v190_v52  ;;  %v2492_v52 = vpack.c.bf16 %v403_v40, %v402_v39  ;;  %v439_v11 = vld [vmem:[%s4379_s1 + $0x548] sm:$0xff]  ;;  %v425_v13 = vld [vmem:[%s4379_s1 + $0x4d8] sm:$0xff]  ;;  %v84_v17 = vld [vmem:[%s4380_s0 + $0x230] sm:$0xff] }
  0x51   :  { %657 = vmatprep.mubr.f32.mxu0 %v207_v54  ;;  %v2494_v54 = vpack.c.bf16 %v421_v45, %v420_v44  ;;  %v457_v16 = vld [vmem:[%s4379_s1 + $0x5d8] sm:$0xff]  ;;  %v408_v23 = vld [vmem:[%s4379_s1 + $0x450] sm:$0xff]  ;;  %v426_v28 = vld [vmem:[%s4379_s1 + $0x4e0] sm:$0xff] }
  0x52   :  { %798 = vmatmul.mubr.f32.gmra.mrb[22].mxu1 %v192_v53  ;;  %v2524_v53 = vpack.c.bf16 %v435_v43, %v434_v41  ;;  %v409_v24 = vld [vmem:[%s4379_s1 + $0x458] sm:$0xff]  ;;  %v440_v25 = vld [vmem:[%s4379_s1 + $0x550] sm:$0xff]  ;;  %v427_v29 = vld [vmem:[%s4379_s1 + $0x4e8] sm:$0xff] }
  0x53   :  { %802 = vmatprep.mubr.f32.mxu1 %v209_v55  ;;  %v404_v55 = vld [vmem:[%s4379_s1 + $0x430] sm:$0xff]  ;;  %v441_v27 = vld [vmem:[%s4379_s1 + $0x558] sm:$0xff]  ;;  %v458_v31 = vld [vmem:[%s4379_s1 + $0x5e0] sm:$0xff] }
  0x54   :  { %658 = vmatmul.mubr.f32.gmra.mrb[24].mxu0 %v206_v56  ;;  %v405_v56 = vld [vmem:[%s4379_s1 + $0x438] sm:$0xff]  ;;  %v459_v32 = vld [vmem:[%s4379_s1 + $0x5e8] sm:$0xff]  ;;  %v410_v39 = vld [vmem:[%s4379_s1 + $0x460] sm:$0xff] }
  0x55   :  { %662 = vmatprep.mubr.f32.mxu0 %v223_v58  ;;  %v2526_v58 = vpack.c.bf16 %v453_v48, %v452_v47  ;;  %v411_v40 = vld [vmem:[%s4379_s1 + $0x468] sm:$0xff]  ;;  %v442_v41 = vld [vmem:[%s4379_s1 + $0x560] sm:$0xff]  ;;  %v428_v44 = vld [vmem:[%s4379_s1 + $0x4f0] sm:$0xff] }
  0x56   :  { %803 = vmatmul.mubr.f32.gmra.mrb[24].mxu1 %v208_v57  ;;  %v436_v57 = vld [vmem:[%s4379_s1 + $0x530] sm:$0xff]  ;;  %v443_v43 = vld [vmem:[%s4379_s1 + $0x568] sm:$0xff]  ;;  %v429_v45 = vld [vmem:[%s4379_s1 + $0x4f8] sm:$0xff] }
  0x57   :  { %807 = vmatprep.mubr.f32.mxu1 %v225_v59  ;;  %v437_v59 = vld [vmem:[%s4379_s1 + $0x538] sm:$0xff]  ;;  %v460_v47 = vld [vmem:[%s4379_s1 + $0x5f0] sm:$0xff] }
  0x58   :  { %663 = vmatmul.mubr.f32.gmra.mrb[26].mxu0 %v222_v60  ;;  %v422_v60 = vld [vmem:[%s4379_s1 + $0x4c0] sm:$0xff]  ;;  %v461_v48 = vld [vmem:[%s4379_s1 + $0x5f8] sm:$0xff] }
  0x59   :  { %667 = vmatprep.mubr.f32.mxu0 %v239_v62  ;;  %v66_v62 = vld [vmem:[%s4380_s0 + $0x1a0] sm:$0xff] }
  0x5a   :  { %808 = vmatmul.mubr.f32.gmra.mrb[26].mxu1 %v224_v61  ;;  %v423_v61 = vld [vmem:[%s4379_s1 + $0x4c8] sm:$0xff] }
  0x5b   :  { %812 = vmatprep.mubr.f32.mxu1 %v241_v63  ;;  %v454_v63 = vld [vmem:[%s4379_s1 + $0x5c0] sm:$0xff] }
  0x5c   :  { %668 = vmatmul.mubr.f32.gmra.mrb[28].mxu0 %v238_v0  ;;  %v455_v0 = vld [vmem:[%s4379_s1 + $0x5c8] sm:$0xff] }
  0x5d   :  { %672 = vmatprep.mubr.f32.mxu0 %v255_v2  ;;  %v83_v2 = vld [vmem:[%s4380_s0 + $0x228] sm:$0xff]  ;;  %v2530_v10 = vpack.c.bf16 %v455_v0, %v454_v63  ;;  %v510_v63 = vld [vmem:[%s4379_s1 + $0x780] sm:$0xff] }
  0x5e   :  { %813 = vmatmul.mubr.f32.gmra.mrb[28].mxu1 %v240_v1  ;;  %v68_v1 = vld [vmem:[%s4380_s0 + $0x1b0] sm:$0xff]  ;;  %v511_v0 = vld [vmem:[%s4379_s1 + $0x788] sm:$0xff] }
  0x5f   :  { %817 = vmatprep.mubr.f32.mxu1 %v257_v3  ;;  %v85_v3 = vld [vmem:[%s4380_s0 + $0x238] sm:$0xff] }
  0x60   :  { %673 = vmatmul.mubr.f32.gmra.mrb[30].mxu0 %v254_v4  ;;  %v2496_v4 = vpack.c.bf16 %v405_v56, %v404_v55  ;;  %v412_v55 = vld [vmem:[%s4379_s1 + $0x470] sm:$0xff]  ;;  %v413_v56 = vld [vmem:[%s4379_s1 + $0x478] sm:$0xff] }
  0x61   :  { %887 = vmatprep.mubr.f32.mxu0 %v19_v6  ;;  %v2498_v6 = vpack.c.bf16 %v423_v61, %v422_v60  ;;  %v478_v60 = vld [vmem:[%s4379_s1 + $0x680] sm:$0xff]  ;;  %v479_v61 = vld [vmem:[%s4379_s1 + $0x688] sm:$0xff] }
  0x62   :  { %818 = vmatmul.mubr.f32.gmra.mrb[30].mxu1 %v256_v5  ;;  %v2528_v5 = vpack.c.bf16 %v437_v59, %v436_v57  ;;  %v444_v57 = vld [vmem:[%s4379_s1 + $0x570] sm:$0xff]  ;;  %v445_v59 = vld [vmem:[%s4379_s1 + $0x578] sm:$0xff] }
  0x63   :  { %1032 = vmatprep.mubr.f32.mxu1 %v21_v9  ;;  %v438_v9 = vld [vmem:[%s4379_s1 + $0x540] sm:$0xff] }
  0x64   :  { %888 = vmatmul.mubr.f32.vlgmr.msra.gmra.mrb[32].mxu0 %v18_v14  ;;  %v82_v14 = vld [vmem:[%s4380_s0 + $0x220] sm:$0xff] }
  0x65   :  { %2485 = vmatpush3.bf16.msra.mxu0 %v2484_v15  ;;  %892 = vmatprep.mubr.f32.mxu0 %v35_v19  ;;  %v456_v15 = vld [vmem:[%s4379_s1 + $0x5d0] sm:$0xff]  ;;  %v101_v19 = vld [vmem:[%s4380_s0 + $0x2b8] sm:$0xff] }
  0x66   :  { %1033 = vmatmul.mubr.f32.vlgmr.msra.gmra.mrb[32].mxu1 %v20_v18  ;;  %2487 = vmatprep.subr.bf16.mxu0 %v2486_v22  ;;  %v99_v18 = vld [vmem:[%s4380_s0 + $0x2a8] sm:$0xff]  ;;  %v2502_v22 = vpack.c.bf16 %v425_v13, %v424_v12  ;;  %v162_v12 = vld [vmem:[%s4380_s0 + $0x4a0] sm:$0xff]  ;;  %v164_v13 = vld [vmem:[%s4380_s0 + $0x4b0] sm:$0xff] }
  0x67   :  { %2517 = vmatpush3.bf16.msra.mxu1 %v2516_v20  ;;  %1037 = vmatprep.mubr.f32.mxu1 %v37_v21  ;;  %v2500_v20 = vpack.c.bf16 %v407_v8, %v406_v7  ;;  %v2532_v21 = vpack.c.bf16 %v439_v11, %v438_v9  ;;  %v2578_v7 = vpack.c.bf16 %v511_v0, %v510_v63  ;;  %v146_v8 = vld [vmem:[%s4380_s0 + $0x420] sm:$0xff]  ;;  %v148_v9 = vld [vmem:[%s4380_s0 + $0x430] sm:$0xff]  ;;  %v165_v11 = vld [vmem:[%s4380_s0 + $0x4b8] sm:$0xff] }
  0x68   :  { %893 = vmatmul.mubr.f32.gmra.mrb[34].mxu0 %v34_v30  ;;  %2519 = vmatprep.subr.bf16.mxu1 %v2518_v26  ;;  %v2534_v26 = vpack.c.bf16 %v457_v16, %v456_v15  ;;  %v98_v30 = vld [vmem:[%s4380_s0 + $0x2a0] sm:$0xff]  ;;  %v181_v15 = vld [vmem:[%s4380_s0 + $0x538] sm:$0xff]  ;;  %v515_v0 = vld [vmem:[%s4379_s1 + $0x7a8] sm:$0xff] }
  0x69   :  { %897 = vmatprep.mubr.f32.mxu0 %v51_v34  ;;  %2489 = vmatpush3.bf16.msra.mxu0 %v2488_v36  ;;  %v115_v34 = vld [vmem:[%s4380_s0 + $0x328] sm:$0xff]  ;;  %v2504_v36 = vpack.c.bf16 %v409_v24, %v408_v23  ;;  %v178_v16 = vld [vmem:[%s4380_s0 + $0x520] sm:$0xff]  ;;  %v213_v23 = vld [vmem:[%s4380_s0 + $0x638] sm:$0xff] }
  0x6a   :  { %1038 = vmatmul.mubr.f32.gmra.mrb[34].mxu1 %v36_v33  ;;  %2491 = vmatprep.subr.bf16.mxu0 %v2490_v38  ;;  %v100_v33 = vld [vmem:[%s4380_s0 + $0x2b0] sm:$0xff]  ;;  %v2506_v38 = vpack.c.bf16 %v427_v29, %v426_v28  ;;  %v210_v24 = vld [vmem:[%s4380_s0 + $0x620] sm:$0xff] }
  0x6b   :  { %1042 = vmatprep.mubr.f32.mxu1 %v53_v35  ;;  %2521 = vmatpush3.bf16.msra.mxu1 %v2520_v37  ;;  %v117_v35 = vld [vmem:[%s4380_s0 + $0x338] sm:$0xff]  ;;  %v2536_v37 = vpack.c.bf16 %v441_v27, %v440_v25  ;;  %v212_v25 = vld [vmem:[%s4380_s0 + $0x630] sm:$0xff]  ;;  %v226_v28 = vld [vmem:[%s4380_s0 + $0x6a0] sm:$0xff] }
  0x6c   :  { %898 = vmatmul.mubr.f32.gmra.mrb[36].mxu0 %v50_v46  ;;  %2523 = vmatprep.subr.bf16.mxu1 %v2522_v42  ;;  %v2538_v42 = vpack.c.bf16 %v459_v32, %v458_v31  ;;  %v114_v46 = vld [vmem:[%s4380_s0 + $0x320] sm:$0xff]  ;;  %v229_v27 = vld [vmem:[%s4380_s0 + $0x6b8] sm:$0xff]  ;;  %v228_v29 = vld [vmem:[%s4380_s0 + $0x6b0] sm:$0xff] }
  0x6d   :  { %902 = vmatprep.mubr.f32.mxu0 %v67_v50  ;;  %2493 = vmatpush3.bf16.msra.mxu0 %v2492_v52  ;;  %v131_v50 = vld [vmem:[%s4380_s0 + $0x3a8] sm:$0xff]  ;;  %v2508_v52 = vpack.c.bf16 %v411_v40, %v410_v39  ;;  %v245_v31 = vld [vmem:[%s4380_s0 + $0x738] sm:$0xff]  ;;  %v242_v32 = vld [vmem:[%s4380_s0 + $0x720] sm:$0xff] }
  0x6e   :  { %1043 = vmatmul.mubr.f32.gmra.mrb[36].mxu1 %v52_v49  ;;  %2495 = vmatprep.subr.bf16.mxu0 %v2494_v54  ;;  %v116_v49 = vld [vmem:[%s4380_s0 + $0x330] sm:$0xff]  ;;  %v2510_v54 = vpack.c.bf16 %v429_v45, %v428_v44  ;;  %v462_v39 = vld [vmem:[%s4379_s1 + $0x600] sm:$0xff]  ;;  %v463_v40 = vld [vmem:[%s4379_s1 + $0x608] sm:$0xff] }
  0x6f   :  { %1047 = vmatprep.mubr.f32.mxu1 %v69_v51  ;;  %2525 = vmatpush3.bf16.msra.mxu1 %v2524_v53  ;;  %v133_v51 = vld [vmem:[%s4380_s0 + $0x3b8] sm:$0xff]  ;;  %v2540_v53 = vpack.c.bf16 %v443_v43, %v442_v41  ;;  %v495_v43 = vld [vmem:[%s4379_s1 + $0x708] sm:$0xff]  ;;  %v480_v44 = vld [vmem:[%s4379_s1 + $0x690] sm:$0xff] }
  0x70   :  { %903 = vmatmul.mubr.f32.gmra.mrb[38].mxu0 %v66_v62  ;;  %2527 = vmatprep.subr.bf16.mxu1 %v2526_v58  ;;  %v2542_v58 = vpack.c.bf16 %v461_v48, %v460_v47  ;;  %v130_v62 = vld [vmem:[%s4380_s0 + $0x3a0] sm:$0xff]  ;;  %v25_v41 = vld [vmem:[%s4380_s0 + $0x58] sm:$0xff]  ;;  %v2548_v47 = vpack.c.bf16 %v463_v40, %v462_v39  ;;  %v512_v48 = vld [vmem:[%s4379_s1 + $0x790] sm:$0xff] }
  0x71   :  { %907 = vmatprep.mubr.f32.mxu0 %v83_v2  ;;  %2497 = vmatpush3.bf16.msra.mxu0 %v2496_v4  ;;  %v147_v2 = vld [vmem:[%s4380_s0 + $0x428] sm:$0xff]  ;;  %v149_v4 = vld [vmem:[%s4380_s0 + $0x438] sm:$0xff]  ;;  %v514_v63 = vld [vmem:[%s4379_s1 + $0x7a0] sm:$0xff] }
  0x72   :  { %1048 = vmatmul.mubr.f32.gmra.mrb[38].mxu1 %v68_v1  ;;  %2499 = vmatprep.subr.bf16.mxu0 %v2498_v6  ;;  %v132_v1 = vld [vmem:[%s4380_s0 + $0x3b0] sm:$0xff]  ;;  %v2546_v6 = vpack.c.bf16 %v479_v61, %v478_v60  ;;  %v481_v45 = vld [vmem:[%s4379_s1 + $0x698] sm:$0xff]  ;;  %v482_v60 = vld [vmem:[%s4379_s1 + $0x6a0] sm:$0xff] }
  0x73   :  { %1052 = vmatprep.mubr.f32.mxu1 %v85_v3  ;;  %2529 = vmatpush3.bf16.msra.mxu1 %v2528_v5  ;;  %v2512_v3 = vpack.c.bf16 %v413_v56, %v412_v55  ;;  %v2544_v5 = vpack.c.bf16 %v445_v59, %v444_v57  ;;  %v464_v55 = vld [vmem:[%s4379_s1 + $0x610] sm:$0xff]  ;;  %v465_v56 = vld [vmem:[%s4379_s1 + $0x618] sm:$0xff]  ;;  %v483_v61 = vld [vmem:[%s4379_s1 + $0x6a8] sm:$0xff] }
  0x74   :  { %908 = vmatmul.mubr.f32.gmra.mrb[40].mxu0 %v82_v14  ;;  %2531 = vmatprep.subr.bf16.mxu1 %v2530_v10  ;;  %v163_v10 = vld [vmem:[%s4380_s0 + $0x4a8] sm:$0xff]  ;;  %v496_v57 = vld [vmem:[%s4379_s1 + $0x710] sm:$0xff]  ;;  %v497_v59 = vld [vmem:[%s4379_s1 + $0x718] sm:$0xff] }
  0x75   :  { %912 = vmatprep.mubr.f32.mxu0 %v99_v18  ;;  %2501 = vmatpush3.bf16.msra.mxu0 %v2500_v20  ;;  %v179_v14 = vld [vmem:[%s4380_s0 + $0x528] sm:$0xff]  ;;  %v194_v20 = vld [vmem:[%s4380_s0 + $0x5a0] sm:$0xff] }
  0x76   :  { %1053 = vmatmul.mubr.f32.gmra.mrb[40].mxu1 %v84_v17  ;;  %2503 = vmatprep.subr.bf16.mxu0 %v2502_v22  ;;  %v180_v17 = vld [vmem:[%s4380_s0 + $0x530] sm:$0xff]  ;;  %v195_v18 = vld [vmem:[%s4380_s0 + $0x5a8] sm:$0xff]  ;;  %v470_v39 = vld [vmem:[%s4379_s1 + $0x640] sm:$0xff] }
  0x77   :  { %1057 = vmatprep.mubr.f32.mxu1 %v101_v19  ;;  %2533 = vmatpush3.bf16.msra.mxu1 %v2532_v21  ;;  %v197_v19 = vld [vmem:[%s4380_s0 + $0x5b8] sm:$0xff]  ;;  %v196_v21 = vld [vmem:[%s4380_s0 + $0x5b0] sm:$0xff]  ;;  %v211_v22 = vld [vmem:[%s4380_s0 + $0x628] sm:$0xff] }
  0x78   :  { %913 = vmatmul.mubr.f32.gmra.mrb[42].mxu0 %v98_v30  ;;  %2535 = vmatprep.subr.bf16.mxu1 %v2534_v26  ;;  %v227_v26 = vld [vmem:[%s4380_s0 + $0x6a8] sm:$0xff] }
  0x79   :  { %917 = vmatprep.mubr.f32.mxu0 %v115_v34  ;;  %2505 = vmatpush3.bf16.msra.mxu0 %v2504_v36  ;;  %v243_v30 = vld [vmem:[%s4380_s0 + $0x728] sm:$0xff]  ;;  %v258_v36 = vld [vmem:[%s4380_s0 + $0x7a0] sm:$0xff] }
  0x7a   :  { %1058 = vmatmul.mubr.f32.gmra.mrb[42].mxu1 %v100_v33  ;;  %2507 = vmatprep.subr.bf16.mxu0 %v2506_v38  ;;  %v244_v33 = vld [vmem:[%s4380_s0 + $0x730] sm:$0xff]  ;;  %v259_v34 = vld [vmem:[%s4380_s0 + $0x7a8] sm:$0xff] }
  0x7b   :  { %1062 = vmatprep.mubr.f32.mxu1 %v117_v35  ;;  %2537 = vmatpush3.bf16.msra.mxu1 %v2536_v37  ;;  %v261_v35 = vld [vmem:[%s4380_s0 + $0x7b8] sm:$0xff]  ;;  %v260_v37 = vld [vmem:[%s4380_s0 + $0x7b0] sm:$0xff]  ;;  %v23_v38 = vld [vmem:[%s4380_s0 + $0x48] sm:$0xff] }
  0x7c   :  { %918 = vmatmul.mubr.f32.gmra.mrb[44].mxu0 %v114_v46  ;;  %2539 = vmatprep.subr.bf16.mxu1 %v2538_v42  ;;  %v494_v42 = vld [vmem:[%s4379_s1 + $0x700] sm:$0xff]  ;;  %v471_v40 = vld [vmem:[%s4379_s1 + $0x648] sm:$0xff] }
  0x7d   :  { %922 = vmatprep.mubr.f32.mxu0 %v131_v50  ;;  %2509 = vmatpush3.bf16.msra.mxu0 %v2508_v52  ;;  %v22_v46 = vld [vmem:[%s4380_s0 + $0x40] sm:$0xff]  ;;  %v24_v50 = vld [vmem:[%s4380_s0 + $0x50] sm:$0xff]  ;;  %v2580_v52 = vpack.c.bf16 %v495_v43, %v494_v42  ;;  %v503_v43 = vld [vmem:[%s4379_s1 + $0x748] sm:$0xff] }
  0x7e   :  { %1063 = vmatmul.mubr.f32.gmra.mrb[44].mxu1 %v116_v49  ;;  %2511 = vmatprep.subr.bf16.mxu0 %v2510_v54  ;;  %v513_v49 = vld [vmem:[%s4379_s1 + $0x798] sm:$0xff]  ;;  %v2550_v54 = vpack.c.bf16 %v481_v45, %v480_v44  ;;  %v488_v44 = vld [vmem:[%s4379_s1 + $0x6d0] sm:$0xff] }
  0x7f   :  { %1067 = vmatprep.mubr.f32.mxu1 %v133_v51  ;;  %2541 = vmatpush3.bf16.msra.mxu1 %v2540_v53  ;;  %v39_v51 = vld [vmem:[%s4380_s0 + $0xc8] sm:$0xff]  ;;  %v41_v53 = vld [vmem:[%s4380_s0 + $0xd8] sm:$0xff] }
  0x80   :  { %923 = vmatmul.mubr.f32.gmra.mrb[46].mxu0 %v130_v62  ;;  %2543 = vmatprep.subr.bf16.mxu1 %v2542_v58  ;;  %v2582_v58 = vpack.c.bf16 %v513_v49, %v512_v48  ;;  %v38_v62 = vld [vmem:[%s4380_s0 + $0xc0] sm:$0xff]  ;;  %v489_v45 = vld [vmem:[%s4379_s1 + $0x6d8] sm:$0xff]  ;;  %v88_v49 = vld [vmem:[%s4380_s0 + $0x250] sm:$0xff] }
  0x81   :  { %927 = vmatprep.mubr.f32.mxu0 %v147_v2  ;;  %2513 = vmatpush3.bf16.msra.mxu0 %v2512_v3  ;;  %v55_v2 = vld [vmem:[%s4380_s0 + $0x148] sm:$0xff]  ;;  %v57_v3 = vld [vmem:[%s4380_s0 + $0x158] sm:$0xff] }
  0x82   :  { %1068 = vmatmul.mubr.f32.gmra.mrb[46].mxu1 %v132_v1  ;;  %2547 = vmatprep.subr.bf16.mxu0 %v2546_v6  ;;  %v40_v1 = vld [vmem:[%s4380_s0 + $0xd0] sm:$0xff]  ;;  %v2554_v6 = vpack.c.bf16 %v483_v61, %v482_v60  ;;  %v521_v48 = vld [vmem:[%s4379_s1 + $0x7d8] sm:$0xff]  ;;  %v490_v60 = vld [vmem:[%s4379_s1 + $0x6e0] sm:$0xff] }
  0x83   :  { %1072 = vmatprep.mubr.f32.mxu1 %v149_v4  ;;  %2545 = vmatpush3.bf16.msra.mxu1 %v2544_v5  ;;  %v2552_v4 = vpack.c.bf16 %v465_v56, %v464_v55  ;;  %v2584_v5 = vpack.c.bf16 %v497_v59, %v496_v57  ;;  %v472_v55 = vld [vmem:[%s4379_s1 + $0x650] sm:$0xff]  ;;  %v473_v56 = vld [vmem:[%s4379_s1 + $0x658] sm:$0xff]  ;;  %v491_v61 = vld [vmem:[%s4379_s1 + $0x6e8] sm:$0xff] }
  0x84   :  { %928 = vmatmul.mubr.f32.gmra.mrb[48].mxu0 %v146_v8  ;;  %2579 = vmatprep.subr.bf16.mxu1 %v2578_v7  ;;  %v466_v7 = vld [vmem:[%s4379_s1 + $0x620] sm:$0xff]  ;;  %v467_v8 = vld [vmem:[%s4379_s1 + $0x628] sm:$0xff]  ;;  %v504_v57 = vld [vmem:[%s4379_s1 + $0x750] sm:$0xff] }
  0x85   :  { %932 = vmatprep.mubr.f32.mxu0 %v163_v10  ;;  %v2586_v10 = vpack.c.bf16 %v515_v0, %v514_v63  ;;  %v505_v59 = vld [vmem:[%s4379_s1 + $0x758] sm:$0xff]  ;;  %v522_v63 = vld [vmem:[%s4379_s1 + $0x7e0] sm:$0xff]  ;;  %v523_v0 = vld [vmem:[%s4379_s1 + $0x7e8] sm:$0xff] }
  0x86   :  { %1073 = vmatmul.mubr.f32.gmra.mrb[48].mxu1 %v148_v9  ;;  %v498_v9 = vld [vmem:[%s4379_s1 + $0x720] sm:$0xff] }
  0x87   :  { %1077 = vmatprep.mubr.f32.mxu1 %v165_v11  ;;  %v499_v11 = vld [vmem:[%s4379_s1 + $0x728] sm:$0xff] }
  0x88   :  { %933 = vmatmul.mubr.f32.gmra.mrb[50].mxu0 %v162_v12  ;;  %v484_v12 = vld [vmem:[%s4379_s1 + $0x6b0] sm:$0xff] }
  0x89   :  { %937 = vmatprep.mubr.f32.mxu0 %v179_v14  ;;  %v54_v14 = vld [vmem:[%s4380_s0 + $0x140] sm:$0xff] }
  0x8a   :  { %1078 = vmatmul.mubr.f32.gmra.mrb[50].mxu1 %v164_v13  ;;  %v485_v13 = vld [vmem:[%s4379_s1 + $0x6b8] sm:$0xff] }
  0x8b   :  { %1082 = vmatprep.mubr.f32.mxu1 %v181_v15  ;;  %v516_v15 = vld [vmem:[%s4379_s1 + $0x7b0] sm:$0xff] }
  0x8c   :  { %938 = vmatmul.mubr.f32.gmra.mrb[52].mxu0 %v178_v16  ;;  %v517_v16 = vld [vmem:[%s4379_s1 + $0x7b8] sm:$0xff] }
  0x8d   :  { %942 = vmatprep.mubr.f32.mxu0 %v195_v18  ;;  %v71_v18 = vld [vmem:[%s4380_s0 + $0x1c8] sm:$0xff] }
  0x8e   :  { %1083 = vmatmul.mubr.f32.gmra.mrb[52].mxu1 %v180_v17  ;;  %v56_v17 = vld [vmem:[%s4380_s0 + $0x150] sm:$0xff] }
  0x8f   :  { %1087 = vmatprep.mubr.f32.mxu1 %v197_v19  ;;  %v73_v19 = vld [vmem:[%s4380_s0 + $0x1d8] sm:$0xff] }
  0x90   :  { %943 = vmatmul.mubr.f32.gmra.mrb[54].mxu0 %v194_v20  ;;  %v2556_v20 = vpack.c.bf16 %v467_v8, %v466_v7  ;;  %v474_v7 = vld [vmem:[%s4379_s1 + $0x660] sm:$0xff]  ;;  %v475_v8 = vld [vmem:[%s4379_s1 + $0x668] sm:$0xff] }
  0x91   :  { %947 = vmatprep.mubr.f32.mxu0 %v211_v22  ;;  %v2558_v22 = vpack.c.bf16 %v485_v13, %v484_v12  ;;  %v492_v12 = vld [vmem:[%s4379_s1 + $0x6f0] sm:$0xff]  ;;  %v493_v13 = vld [vmem:[%s4379_s1 + $0x6f8] sm:$0xff] }
  0x92   :  { %1088 = vmatmul.mubr.f32.gmra.mrb[54].mxu1 %v196_v21  ;;  %v2588_v21 = vpack.c.bf16 %v499_v11, %v498_v9  ;;  %v506_v9 = vld [vmem:[%s4379_s1 + $0x760] sm:$0xff]  ;;  %v507_v11 = vld [vmem:[%s4379_s1 + $0x768] sm:$0xff] }
  0x93   :  { %1092 = vmatprep.mubr.f32.mxu1 %v213_v23  ;;  %v468_v23 = vld [vmem:[%s4379_s1 + $0x630] sm:$0xff] }
  0x94   :  { %948 = vmatmul.mubr.f32.gmra.mrb[56].mxu0 %v210_v24  ;;  %v469_v24 = vld [vmem:[%s4379_s1 + $0x638] sm:$0xff] }
  0x95   :  { %952 = vmatprep.mubr.f32.mxu0 %v227_v26  ;;  %v2590_v26 = vpack.c.bf16 %v517_v16, %v516_v15  ;;  %v524_v15 = vld [vmem:[%s4379_s1 + $0x7f0] sm:$0xff]  ;;  %v525_v16 = vld [vmem:[%s4379_s1 + $0x7f8] sm:$0xff] }
  0x96   :  { %1093 = vmatmul.mubr.f32.gmra.mrb[56].mxu1 %v212_v25  ;;  %v500_v25 = vld [vmem:[%s4379_s1 + $0x730] sm:$0xff] }
  0x97   :  { %1097 = vmatprep.mubr.f32.mxu1 %v229_v27  ;;  %v501_v27 = vld [vmem:[%s4379_s1 + $0x738] sm:$0xff] }
  0x98   :  { %953 = vmatmul.mubr.f32.gmra.mrb[58].mxu0 %v226_v28  ;;  %v486_v28 = vld [vmem:[%s4379_s1 + $0x6c0] sm:$0xff] }
  0x99   :  { %957 = vmatprep.mubr.f32.mxu0 %v243_v30  ;;  %v70_v30 = vld [vmem:[%s4380_s0 + $0x1c0] sm:$0xff] }
  0x9a   :  { %1098 = vmatmul.mubr.f32.gmra.mrb[58].mxu1 %v228_v29  ;;  %v487_v29 = vld [vmem:[%s4379_s1 + $0x6c8] sm:$0xff] }
  0x9b   :  { %1102 = vmatprep.mubr.f32.mxu1 %v245_v31  ;;  %v518_v31 = vld [vmem:[%s4379_s1 + $0x7c0] sm:$0xff] }
  0x9c   :  { %958 = vmatmul.mubr.f32.gmra.mrb[60].mxu0 %v242_v32  ;;  %v519_v32 = vld [vmem:[%s4379_s1 + $0x7c8] sm:$0xff] }
  0x9d   :  { %962 = vmatprep.mubr.f32.mxu0 %v259_v34  ;;  %v87_v34 = vld [vmem:[%s4380_s0 + $0x248] sm:$0xff]  ;;  %v2594_v42 = vpack.c.bf16 %v519_v32, %v518_v31  ;;  %v153_v32 = vld [vmem:[%s4380_s0 + $0x458] sm:$0xff] }
  0x9e   :  { %1103 = vmatmul.mubr.f32.gmra.mrb[60].mxu1 %v244_v33  ;;  %v72_v33 = vld [vmem:[%s4380_s0 + $0x1d0] sm:$0xff] }
  0x9f   :  { %1107 = vmatprep.mubr.f32.mxu1 %v261_v35  ;;  %v89_v35 = vld [vmem:[%s4380_s0 + $0x258] sm:$0xff] }
  0xa0   :  { %963 = vmatmul.mubr.f32.gmra.mrb[62].mxu0 %v258_v36  ;;  %v2560_v36 = vpack.c.bf16 %v469_v24, %v468_v23  ;;  %v476_v23 = vld [vmem:[%s4379_s1 + $0x670] sm:$0xff]  ;;  %v477_v24 = vld [vmem:[%s4379_s1 + $0x678] sm:$0xff] }
  0xa1   :  { %1177 = vmatprep.mubr.f32.mxu0 %v23_v38  ;;  %v2562_v38 = vpack.c.bf16 %v487_v29, %v486_v28  ;;  %v134_v28 = vld [vmem:[%s4380_s0 + $0x3c0] sm:$0xff]  ;;  %v136_v29 = vld [vmem:[%s4380_s0 + $0x3d0] sm:$0xff]  ;;  %v2576_v31 = vpack.c.bf16 %v477_v24, %v476_v23  ;;  %v123_v24 = vld [vmem:[%s4380_s0 + $0x368] sm:$0xff] }
  0xa2   :  { %1108 = vmatmul.mubr.f32.gmra.mrb[62].mxu1 %v260_v37  ;;  %v2592_v37 = vpack.c.bf16 %v501_v27, %v500_v25  ;;  %v2606_v25 = vpack.c.bf16 %v525_v16, %v524_v15  ;;  %v509_v27 = vld [vmem:[%s4379_s1 + $0x778] sm:$0xff]  ;;  %v76_v15 = vld [vmem:[%s4380_s0 + $0x1f0] sm:$0xff]  ;;  %v91_v16 = vld [vmem:[%s4380_s0 + $0x268] sm:$0xff] }
  0xa3   :  { %1322 = vmatprep.mubr.f32.mxu1 %v25_v41  ;;  %v502_v41 = vld [vmem:[%s4379_s1 + $0x740] sm:$0xff]  ;;  %v108_v23 = vld [vmem:[%s4380_s0 + $0x2f0] sm:$0xff] }
  0xa4   :  { %1178 = vmatmul.mubr.f32.vlgmr.msra.gmra.mrb[64].mxu0 %v22_v46  ;;  %v86_v46 = vld [vmem:[%s4380_s0 + $0x240] sm:$0xff] }
  0xa5   :  { %2549 = vmatpush3.bf16.msra.mxu0 %v2548_v47  ;;  %1182 = vmatprep.mubr.f32.mxu0 %v39_v51  ;;  %v520_v47 = vld [vmem:[%s4379_s1 + $0x7d0] sm:$0xff]  ;;  %v105_v51 = vld [vmem:[%s4380_s0 + $0x2d8] sm:$0xff] }
  0xa6   :  { %1323 = vmatmul.mubr.f32.vlgmr.msra.gmra.mrb[64].mxu1 %v24_v50  ;;  %2551 = vmatprep.subr.bf16.mxu0 %v2550_v54  ;;  %v103_v50 = vld [vmem:[%s4380_s0 + $0x2c8] sm:$0xff]  ;;  %v2566_v54 = vpack.c.bf16 %v489_v45, %v488_v44  ;;  %v201_v45 = vld [vmem:[%s4380_s0 + $0x5d8] sm:$0xff] }
  0xa7   :  { %2581 = vmatpush3.bf16.msra.mxu1 %v2580_v52  ;;  %1327 = vmatprep.mubr.f32.mxu1 %v41_v53  ;;  %v2564_v52 = vpack.c.bf16 %v471_v40, %v470_v39  ;;  %v2596_v53 = vpack.c.bf16 %v503_v43, %v502_v41  ;;  %v168_v39 = vld [vmem:[%s4380_s0 + $0x4d0] sm:$0xff]  ;;  %v183_v40 = vld [vmem:[%s4380_s0 + $0x548] sm:$0xff]  ;;  %v185_v41 = vld [vmem:[%s4380_s0 + $0x558] sm:$0xff] }
  0xa8   :  { %1183 = vmatmul.mubr.f32.gmra.mrb[66].mxu0 %v38_v62  ;;  %2583 = vmatprep.subr.bf16.mxu1 %v2582_v58  ;;  %v2598_v58 = vpack.c.bf16 %v521_v48, %v520_v47  ;;  %v102_v62 = vld [vmem:[%s4380_s0 + $0x2c0] sm:$0xff]  ;;  %v184_v43 = vld [vmem:[%s4380_s0 + $0x550] sm:$0xff]  ;;  %v199_v44 = vld [vmem:[%s4380_s0 + $0x5c8] sm:$0xff] }
  0xa9   :  { %1187 = vmatprep.mubr.f32.mxu0 %v55_v2  ;;  %2553 = vmatpush3.bf16.msra.mxu0 %v2552_v4  ;;  %v119_v2 = vld [vmem:[%s4380_s0 + $0x348] sm:$0xff]  ;;  %v2568_v4 = vpack.c.bf16 %v473_v56, %v472_v55  ;;  %v200_v47 = vld [vmem:[%s4380_s0 + $0x5d0] sm:$0xff] }
  0xaa   :  { %1328 = vmatmul.mubr.f32.gmra.mrb[66].mxu1 %v40_v1  ;;  %2555 = vmatprep.subr.bf16.mxu0 %v2554_v6  ;;  %v104_v1 = vld [vmem:[%s4380_s0 + $0x2d0] sm:$0xff]  ;;  %v2570_v6 = vpack.c.bf16 %v491_v61, %v490_v60  ;;  %v215_v48 = vld [vmem:[%s4380_s0 + $0x648] sm:$0xff]  ;;  %v265_v61 = vld [vmem:[%s4380_s0 + $0x7d8] sm:$0xff] }
  0xab   :  { %1332 = vmatprep.mubr.f32.mxu1 %v57_v3  ;;  %2585 = vmatpush3.bf16.msra.mxu1 %v2584_v5  ;;  %v121_v3 = vld [vmem:[%s4380_s0 + $0x358] sm:$0xff]  ;;  %v2600_v5 = vpack.c.bf16 %v505_v59, %v504_v57  ;;  %v232_v55 = vld [vmem:[%s4380_s0 + $0x6d0] sm:$0xff]  ;;  %v247_v56 = vld [vmem:[%s4380_s0 + $0x748] sm:$0xff] }
  0xac   :  { %1188 = vmatmul.mubr.f32.gmra.mrb[68].mxu0 %v54_v14  ;;  %2587 = vmatprep.subr.bf16.mxu1 %v2586_v10  ;;  %v2602_v10 = vpack.c.bf16 %v523_v0, %v522_v63  ;;  %v118_v14 = vld [vmem:[%s4380_s0 + $0x340] sm:$0xff]  ;;  %v249_v57 = vld [vmem:[%s4380_s0 + $0x758] sm:$0xff]  ;;  %v248_v59 = vld [vmem:[%s4380_s0 + $0x750] sm:$0xff] }
  0xad   :  { %1192 = vmatprep.mubr.f32.mxu0 %v71_v18  ;;  %2557 = vmatpush3.bf16.msra.mxu0 %v2556_v20  ;;  %v135_v18 = vld [vmem:[%s4380_s0 + $0x3c8] sm:$0xff]  ;;  %v137_v20 = vld [vmem:[%s4380_s0 + $0x3d8] sm:$0xff]  ;;  %v264_v63 = vld [vmem:[%s4380_s0 + $0x7d0] sm:$0xff] }
  0xae   :  { %1333 = vmatmul.mubr.f32.gmra.mrb[68].mxu1 %v56_v17  ;;  %2559 = vmatprep.subr.bf16.mxu0 %v2558_v22  ;;  %v120_v17 = vld [vmem:[%s4380_s0 + $0x350] sm:$0xff]  ;;  %v2574_v22 = vpack.c.bf16 %v493_v13, %v492_v12  ;;  %v263_v60 = vld [vmem:[%s4380_s0 + $0x7c8] sm:$0xff]  ;;  %v77_v13 = vld [vmem:[%s4380_s0 + $0x1f8] sm:$0xff] }
  0xaf   :  { %1337 = vmatprep.mubr.f32.mxu1 %v73_v19  ;;  %2589 = vmatpush3.bf16.msra.mxu1 %v2588_v21  ;;  %v2572_v19 = vpack.c.bf16 %v475_v8, %v474_v7  ;;  %v2604_v21 = vpack.c.bf16 %v507_v11, %v506_v9  ;;  %v27_v0 = vld [vmem:[%s4380_s0 + $0x68] sm:$0xff]  ;;  %v44_v7 = vld [vmem:[%s4380_s0 + $0xf0] sm:$0xff]  ;;  %v61_v9 = vld [vmem:[%s4380_s0 + $0x178] sm:$0xff] }
  0xb0   :  { %1193 = vmatmul.mubr.f32.gmra.mrb[70].mxu0 %v70_v30  ;;  %2591 = vmatprep.subr.bf16.mxu1 %v2590_v26  ;;  %v508_v26 = vld [vmem:[%s4379_s1 + $0x770] sm:$0xff]  ;;  %v151_v30 = vld [vmem:[%s4380_s0 + $0x448] sm:$0xff] }
  0xb1   :  { %1197 = vmatprep.mubr.f32.mxu0 %v87_v34  ;;  %2561 = vmatpush3.bf16.msra.mxu0 %v2560_v36  ;;  %v150_v34 = vld [vmem:[%s4380_s0 + $0x440] sm:$0xff]  ;;  %v167_v36 = vld [vmem:[%s4380_s0 + $0x4c8] sm:$0xff]  ;;  %v60_v11 = vld [vmem:[%s4380_s0 + $0x170] sm:$0xff] }
  0xb2   :  { %1338 = vmatmul.mubr.f32.gmra.mrb[70].mxu1 %v72_v33  ;;  %2563 = vmatprep.subr.bf16.mxu0 %v2562_v38  ;;  %v2608_v33 = vpack.c.bf16 %v509_v27, %v508_v26  ;;  %v166_v38 = vld [vmem:[%s4380_s0 + $0x4c0] sm:$0xff]  ;;  %v59_v8 = vld [vmem:[%s4380_s0 + $0x168] sm:$0xff]  ;;  %v125_v26 = vld [vmem:[%s4380_s0 + $0x378] sm:$0xff] }
  0xb3   :  { %1342 = vmatprep.mubr.f32.mxu1 %v89_v35  ;;  %2593 = vmatpush3.bf16.msra.mxu1 %v2592_v37  ;;  %v152_v35 = vld [vmem:[%s4380_s0 + $0x450] sm:$0xff]  ;;  %v169_v37 = vld [vmem:[%s4380_s0 + $0x4d8] sm:$0xff]  ;;  %v75_v12 = vld [vmem:[%s4380_s0 + $0x1e8] sm:$0xff] }
  0xb4   :  { %1198 = vmatmul.mubr.f32.gmra.mrb[72].mxu0 %v86_v46  ;;  %2595 = vmatprep.subr.bf16.mxu1 %v2594_v42  ;;  %v182_v42 = vld [vmem:[%s4380_s0 + $0x540] sm:$0xff] }
  0xb5   :  { %1202 = vmatprep.mubr.f32.mxu0 %v103_v50  ;;  %2565 = vmatpush3.bf16.msra.mxu0 %v2564_v52  ;;  %v198_v46 = vld [vmem:[%s4380_s0 + $0x5c0] sm:$0xff]  ;;  %v231_v52 = vld [vmem:[%s4380_s0 + $0x6c8] sm:$0xff] }
  0xb6   :  { %1343 = vmatmul.mubr.f32.gmra.mrb[72].mxu1 %v88_v49  ;;  %2567 = vmatprep.subr.bf16.mxu0 %v2566_v54  ;;  %v217_v49 = vld [vmem:[%s4380_s0 + $0x658] sm:$0xff]  ;;  %v214_v50 = vld [vmem:[%s4380_s0 + $0x640] sm:$0xff] }
  0xb7   :  { %1347 = vmatprep.mubr.f32.mxu1 %v105_v51  ;;  %2597 = vmatpush3.bf16.msra.mxu1 %v2596_v53  ;;  %v216_v51 = vld [vmem:[%s4380_s0 + $0x650] sm:$0xff]  ;;  %v233_v53 = vld [vmem:[%s4380_s0 + $0x6d8] sm:$0xff]  ;;  %v230_v54 = vld [vmem:[%s4380_s0 + $0x6c0] sm:$0xff] }
  0xb8   :  { %1203 = vmatmul.mubr.f32.gmra.mrb[74].mxu0 %v102_v62  ;;  %2599 = vmatprep.subr.bf16.mxu1 %v2598_v58  ;;  %v246_v58 = vld [vmem:[%s4380_s0 + $0x740] sm:$0xff] }
  0xb9   :  { %1207 = vmatprep.mubr.f32.mxu0 %v119_v2  ;;  %2569 = vmatpush3.bf16.msra.mxu0 %v2568_v4  ;;  %v262_v62 = vld [vmem:[%s4380_s0 + $0x7c0] sm:$0xff]  ;;  %v43_v4 = vld [vmem:[%s4380_s0 + $0xe8] sm:$0xff] }
  0xba   :  { %1348 = vmatmul.mubr.f32.gmra.mrb[74].mxu1 %v104_v1  ;;  %2571 = vmatprep.subr.bf16.mxu0 %v2570_v6  ;;  %v29_v1 = vld [vmem:[%s4380_s0 + $0x78] sm:$0xff]  ;;  %v26_v2 = vld [vmem:[%s4380_s0 + $0x60] sm:$0xff] }
  0xbb   :  { %1352 = vmatprep.mubr.f32.mxu1 %v121_v3  ;;  %2601 = vmatpush3.bf16.msra.mxu1 %v2600_v5  ;;  %v28_v3 = vld [vmem:[%s4380_s0 + $0x70] sm:$0xff]  ;;  %v45_v5 = vld [vmem:[%s4380_s0 + $0xf8] sm:$0xff]  ;;  %v42_v6 = vld [vmem:[%s4380_s0 + $0xe0] sm:$0xff] }
  0xbc   :  { %1208 = vmatmul.mubr.f32.gmra.mrb[76].mxu0 %v118_v14  ;;  %2603 = vmatprep.subr.bf16.mxu1 %v2602_v10  ;;  %v58_v10 = vld [vmem:[%s4380_s0 + $0x160] sm:$0xff] }
  0xbd   :  { %1212 = vmatprep.mubr.f32.mxu0 %v135_v18  ;;  %2573 = vmatpush3.bf16.msra.mxu0 %v2572_v19  ;;  %v74_v14 = vld [vmem:[%s4380_s0 + $0x1e0] sm:$0xff]  ;;  %v92_v19 = vld [vmem:[%s4380_s0 + $0x270] sm:$0xff] }
  0xbe   :  { %1353 = vmatmul.mubr.f32.gmra.mrb[76].mxu1 %v120_v17  ;;  %2575 = vmatprep.subr.bf16.mxu0 %v2574_v22  ;;  %v93_v17 = vld [vmem:[%s4380_s0 + $0x278] sm:$0xff]  ;;  %v90_v18 = vld [vmem:[%s4380_s0 + $0x260] sm:$0xff] }
  0xbf   :  { %1357 = vmatprep.mubr.f32.mxu1 %v137_v20  ;;  %2605 = vmatpush3.bf16.msra.mxu1 %v2604_v21  ;;  %v107_v20 = vld [vmem:[%s4380_s0 + $0x2e8] sm:$0xff]  ;;  %v109_v21 = vld [vmem:[%s4380_s0 + $0x2f8] sm:$0xff]  ;;  %v106_v22 = vld [vmem:[%s4380_s0 + $0x2e0] sm:$0xff] }
  0xc0   :  { %1213 = vmatmul.mubr.f32.gmra.mrb[78].mxu0 %v134_v28  ;;  %2607 = vmatprep.subr.bf16.mxu1 %v2606_v25  ;;  %v4055_v27 = vld [vmem:[%s4381_s2] ss:$0 sm:$0xff] }
  0xc1   :  { %1217 = vmatprep.mubr.f32.mxu0 %v151_v30  ;;  %2577 = vmatpush3.bf16.msra.mxu0 %v2576_v31 }
  0xc2   :  { %1358 = vmatmul.mubr.f32.gmra.mrb[78].mxu1 %v136_v29 }
  0xc3   :  { %1362 = vmatprep.mubr.f32.mxu1 %v153_v32  ;;  %2609 = vmatpush3.bf16.msra.mxu1 %v2608_v33  ;;  %v122_v32 = vld [vmem:[%s4380_s0 + $0x360] sm:$0xff] }
  0xc4   :  { %1218 = vmatmul.mubr.f32.gmra.mrb[80].mxu0 %v150_v34  ;;  %v124_v34 = vld [vmem:[%s4380_s0 + $0x370] sm:$0xff] }
  0xc5   :  { %1222 = vmatprep.mubr.f32.mxu0 %v167_v36 }
  0xc6   :  { %1363 = vmatmul.mubr.f32.gmra.mrb[80].mxu1 %v152_v35  ;;  %v139_v35 = vld [vmem:[%s4380_s0 + $0x3e8] sm:$0xff] }
  0xc7   :  { %1367 = vmatprep.mubr.f32.mxu1 %v169_v37 }
  0xc8   :  { %1223 = vmatmul.mubr.f32.gmra.mrb[82].mxu0 %v166_v38  ;;  %v141_v38 = vld [vmem:[%s4380_s0 + $0x3f8] sm:$0xff] }
  0xc9   :  { %1227 = vmatprep.mubr.f32.mxu0 %v183_v40 }
  0xca   :  { %1368 = vmatmul.mubr.f32.gmra.mrb[82].mxu1 %v168_v39 }
  0xcb   :  { %1372 = vmatprep.mubr.f32.mxu1 %v185_v41 }
  0xcc   :  { %1228 = vmatmul.mubr.f32.gmra.mrb[84].mxu0 %v182_v42 }
  0xcd   :  { %1232 = vmatprep.mubr.f32.mxu0 %v199_v44  ;;  %v138_v44 = vld [vmem:[%s4380_s0 + $0x3e0] sm:$0xff] }
  0xce   :  { %1373 = vmatmul.mubr.f32.gmra.mrb[84].mxu1 %v184_v43 }
  0xcf   :  { %1377 = vmatprep.mubr.f32.mxu1 %v201_v45 }
  0xd0   :  { %1233 = vmatmul.mubr.f32.gmra.mrb[86].mxu0 %v198_v46  ;;  %v140_v46 = vld [vmem:[%s4380_s0 + $0x3f0] sm:$0xff] }
  0xd1   :  { %1237 = vmatprep.mubr.f32.mxu0 %v215_v48 }
  0xd2   :  { %1378 = vmatmul.mubr.f32.gmra.mrb[86].mxu1 %v200_v47  ;;  %v155_v47 = vld [vmem:[%s4380_s0 + $0x468] sm:$0xff] }
  0xd3   :  { %1382 = vmatprep.mubr.f32.mxu1 %v217_v49 }
  0xd4   :  { %1238 = vmatmul.mubr.f32.gmra.mrb[88].mxu0 %v214_v50  ;;  %v157_v50 = vld [vmem:[%s4380_s0 + $0x478] sm:$0xff] }
  0xd5   :  { %1242 = vmatprep.mubr.f32.mxu0 %v231_v52 }
  0xd6   :  { %1383 = vmatmul.mubr.f32.gmra.mrb[88].mxu1 %v216_v51 }
  0xd7   :  { %1387 = vmatprep.mubr.f32.mxu1 %v233_v53 }
  0xd8   :  { %1243 = vmatmul.mubr.f32.gmra.mrb[90].mxu0 %v230_v54 }
  0xd9   :  { %1247 = vmatprep.mubr.f32.mxu0 %v247_v56  ;;  %v154_v56 = vld [vmem:[%s4380_s0 + $0x460] sm:$0xff] }
  0xda   :  { %1388 = vmatmul.mubr.f32.gmra.mrb[90].mxu1 %v232_v55 }
  0xdb   :  { %1392 = vmatprep.mubr.f32.mxu1 %v249_v57 }
  0xdc   :  { %1248 = vmatmul.mubr.f32.gmra.mrb[92].mxu0 %v246_v58  ;;  %v156_v58 = vld [vmem:[%s4380_s0 + $0x470] sm:$0xff] }
  0xdd   :  { %1252 = vmatprep.mubr.f32.mxu0 %v263_v60 }
  0xde   :  { %1393 = vmatmul.mubr.f32.gmra.mrb[92].mxu1 %v248_v59  ;;  %v171_v59 = vld [vmem:[%s4380_s0 + $0x4e8] sm:$0xff] }
  0xdf   :  { %1397 = vmatprep.mubr.f32.mxu1 %v265_v61 }
  0xe0   :  { %1253 = vmatmul.mubr.f32.gmra.mrb[94].mxu0 %v262_v62  ;;  %v173_v62 = vld [vmem:[%s4380_s0 + $0x4f8] sm:$0xff] }
  0xe1   :  { %1467 = vmatprep.mubr.f32.mxu0 %v27_v0 }
  0xe2   :  { %1398 = vmatmul.mubr.f32.gmra.mrb[94].mxu1 %v264_v63 }
  0xe3   :  { %1612 = vmatprep.mubr.f32.mxu1 %v29_v1 }
  0xe4   :  { %1468 = vmatmul.mubr.f32.vlgmr.msra.gmra.mrb[96].mxu0 %v26_v2 }
  0xe5   :  { %1472 = vmatprep.mubr.f32.mxu0 %v43_v4  ;;  %v170_v4 = vld [vmem:[%s4380_s0 + $0x4e0] sm:$0xff] }
  0xe6   :  { %1613 = vmatmul.mubr.f32.vlgmr.msra.gmra.mrb[96].mxu1 %v28_v3 }
  0xe7   :  { %1617 = vmatprep.mubr.f32.mxu1 %v45_v5 }
  0xe8   :  { %1473 = vmatmul.mubr.f32.gmra.mrb[98].mxu0 %v42_v6  ;;  %v172_v6 = vld [vmem:[%s4380_s0 + $0x4f0] sm:$0xff] }
  0xe9   :  { %1477 = vmatprep.mubr.f32.mxu0 %v59_v8 }
  0xea   :  { %1618 = vmatmul.mubr.f32.gmra.mrb[98].mxu1 %v44_v7  ;;  %v187_v7 = vld [vmem:[%s4380_s0 + $0x568] sm:$0xff] }
  0xeb   :  { %1622 = vmatprep.mubr.f32.mxu1 %v61_v9 }
  0xec   :  { %1478 = vmatmul.mubr.f32.gmra.mrb[100].mxu0 %v58_v10  ;;  %v189_v10 = vld [vmem:[%s4380_s0 + $0x578] sm:$0xff] }
  0xed   :  { %1482 = vmatprep.mubr.f32.mxu0 %v75_v12 }
  0xee   :  { %1623 = vmatmul.mubr.f32.gmra.mrb[100].mxu1 %v60_v11 }
  0xef   :  { %1627 = vmatprep.mubr.f32.mxu1 %v77_v13 }
  0xf0   :  { %1483 = vmatmul.mubr.f32.gmra.mrb[102].mxu0 %v74_v14 }
  0xf1   :  { %1487 = vmatprep.mubr.f32.mxu0 %v91_v16  ;;  %v186_v16 = vld [vmem:[%s4380_s0 + $0x560] sm:$0xff] }
  0xf2   :  { %1628 = vmatmul.mubr.f32.gmra.mrb[102].mxu1 %v76_v15 }
  0xf3   :  { %1632 = vmatprep.mubr.f32.mxu1 %v93_v17 }
  0xf4   :  { %1488 = vmatmul.mubr.f32.gmra.mrb[104].mxu0 %v90_v18  ;;  %v188_v18 = vld [vmem:[%s4380_s0 + $0x570] sm:$0xff] }
  0xf5   :  { %1492 = vmatprep.mubr.f32.mxu0 %v107_v20 }
  0xf6   :  { %1633 = vmatmul.mubr.f32.gmra.mrb[104].mxu1 %v92_v19  ;;  %v203_v19 = vld [vmem:[%s4380_s0 + $0x5e8] sm:$0xff] }
  0xf7   :  { %1637 = vmatprep.mubr.f32.mxu1 %v109_v21  ;;  %v1746_v25 = vpop.f32.mrb[0].mxu0 }
  0xf8   :  { %v1747_v28 = vpop.f32.mrb[1].mxu0  ;;  %1493 = vmatmul.mubr.f32.gmra.mrb[106].mxu0 %v106_v22  ;;  %v205_v22 = vld [vmem:[%s4380_s0 + $0x5f8] sm:$0xff] }
  0xf9   :  { %v1826_v29 = vpop.f32.mrb[0].mxu1  ;;  %v1748_v30 = vadd.f32 %v1747_v28, %v1746_v25  ;;  %1497 = vmatprep.mubr.f32.mxu0 %v123_v24 }
  0xfa   :  { %v1827_v31 = vpop.f32.mrb[1].mxu1  ;;  %1638 = vmatmul.mubr.f32.gmra.mrb[106].mxu1 %v108_v23 }
  0xfb   :  { %v1828_v33 = vadd.f32 %v1827_v31, %v1826_v29  ;;  %1642 = vmatprep.mubr.f32.mxu1 %v125_v26  ;;  %v600_v36 = vadd.f32 %v1748_v30, %v4055_v27  ;;  %v1749_v37 = vpop.f32.mrb[2].mxu0  ;;  %v202_v29 = vld [vmem:[%s4380_s0 + $0x5e0] sm:$0xff]  ;;  %v204_v31 = vld [vmem:[%s4380_s0 + $0x5f0] sm:$0xff] }
  0xfc   :  { %v1750_v39 = vpop.f32.mrb[3].mxu0  ;;  %1498 = vmatmul.mubr.f32.gmra.mrb[108].mxu0 %v122_v32  ;;  %v219_v32 = vld [vmem:[%s4380_s0 + $0x668] sm:$0xff] }
  0xfd   :  { %v1829_v40 = vpop.f32.mrb[2].mxu1  ;;  %v4070_v41 = vadd.f32 %v1828_v33, %v600_v36  ;;  %v1751_v42 = vadd.f32 %v1750_v39, %v1749_v37  ;;  %1502 = vmatprep.mubr.f32.mxu0 %v139_v35  ;;  %v221_v35 = vld [vmem:[%s4380_s0 + $0x678] sm:$0xff] }
  0xfe   :  { %v1830_v43 = vpop.f32.mrb[3].mxu1  ;;  %1643 = vmatmul.mubr.f32.gmra.mrb[108].mxu1 %v124_v34 }
  0xff   :  { %v1831_v45 = vadd.f32 %v1830_v43, %v1829_v40  ;;  %1647 = vmatprep.mubr.f32.mxu1 %v141_v38  ;;  %v605_v48 = vadd.f32 %v1751_v42, %v4055_v27  ;;  %v1752_v49 = vpop.f32.mrb[4].mxu0  ;;  %v218_v42 = vld [vmem:[%s4380_s0 + $0x660] sm:$0xff] }
 0x100   :  { %v1753_v51 = vpop.f32.mrb[5].mxu0  ;;  %1503 = vmatmul.mubr.f32.gmra.mrb[110].mxu0 %v138_v44  ;;  %v220_v44 = vld [vmem:[%s4380_s0 + $0x670] sm:$0xff] }
 0x101   :  { %v1832_v52 = vpop.f32.mrb[4].mxu1  ;;  %v4085_v53 = vadd.f32 %v1831_v45, %v605_v48  ;;  %v1754_v54 = vadd.f32 %v1753_v51, %v1752_v49  ;;  %1507 = vmatprep.mubr.f32.mxu0 %v155_v47  ;;  %v235_v45 = vld [vmem:[%s4380_s0 + $0x6e8] sm:$0xff]  ;;  %v237_v48 = vld [vmem:[%s4380_s0 + $0x6f8] sm:$0xff] }
 0x102   :  { %v1833_v55 = vpop.f32.mrb[5].mxu1  ;;  %1648 = vmatmul.mubr.f32.gmra.mrb[110].mxu1 %v140_v46 }
 0x103   :  { %v1834_v57 = vadd.f32 %v1833_v55, %v1832_v52  ;;  %1652 = vmatprep.mubr.f32.mxu1 %v157_v50  ;;  %v610_v60 = vadd.f32 %v1754_v54, %v4055_v27  ;;  %v1755_v61 = vpop.f32.mrb[6].mxu0  ;;  %v234_v55 = vld [vmem:[%s4380_s0 + $0x6e0] sm:$0xff] }
 0x104   :  { %v1756_v63 = vpop.f32.mrb[7].mxu0  ;;  %1508 = vmatmul.mubr.f32.gmra.mrb[112].mxu0 %v154_v56 }
 0x105   :  { %v1835_v0 = vpop.f32.mrb[6].mxu1  ;;  %v4100_v1 = vadd.f32 %v1834_v57, %v610_v60  ;;  %v1757_v2 = vadd.f32 %v1756_v63, %v1755_v61  ;;  %1512 = vmatprep.mubr.f32.mxu0 %v171_v59  ;;  %v236_v57 = vld [vmem:[%s4380_s0 + $0x6f0] sm:$0xff]  ;;  %v253_v61 = vld [vmem:[%s4380_s0 + $0x778] sm:$0xff] }
 0x106   :  { %v1836_v3 = vpop.f32.mrb[7].mxu1  ;;  %1653 = vmatmul.mubr.f32.gmra.mrb[112].mxu1 %v156_v58  ;;  %v251_v58 = vld [vmem:[%s4380_s0 + $0x768] sm:$0xff] }
 0x107   :  { %v1837_v5 = vadd.f32 %v1836_v3, %v1835_v0  ;;  %1657 = vmatprep.mubr.f32.mxu1 %v173_v62  ;;  %v615_v8 = vadd.f32 %v1757_v2, %v4055_v27  ;;  %v1758_v9 = vpop.f32.mrb[8].mxu0 }
 0x108   :  { %v1759_v11 = vpop.f32.mrb[9].mxu0  ;;  %1513 = vmatmul.mubr.f32.gmra.mrb[114].mxu0 %v170_v4  ;;  %v250_v4 = vld [vmem:[%s4380_s0 + $0x760] sm:$0xff] }
 0x109   :  { %v1838_v12 = vpop.f32.mrb[8].mxu1  ;;  %v4115_v13 = vadd.f32 %v1837_v5, %v615_v8  ;;  %v1760_v14 = vadd.f32 %v1759_v11, %v1758_v9  ;;  %1517 = vmatprep.mubr.f32.mxu0 %v187_v7  ;;  %v267_v7 = vld [vmem:[%s4380_s0 + $0x7e8] sm:$0xff] }
 0x10a   :  { %v1839_v15 = vpop.f32.mrb[9].mxu1  ;;  %1658 = vmatmul.mubr.f32.gmra.mrb[114].mxu1 %v172_v6  ;;  %v252_v6 = vld [vmem:[%s4380_s0 + $0x770] sm:$0xff] }
 0x10b   :  { %v1840_v17 = vadd.f32 %v1839_v15, %v1838_v12  ;;  %1662 = vmatprep.mubr.f32.mxu1 %v189_v10  ;;  %v620_v20 = vadd.f32 %v1760_v14, %v4055_v27  ;;  %v1761_v21 = vpop.f32.mrb[10].mxu0  ;;  %v269_v10 = vld [vmem:[%s4380_s0 + $0x7f8] sm:$0xff] }
 0x10c   :  { %v1762_v23 = vpop.f32.mrb[11].mxu0  ;;  %1518 = vmatmul.mubr.f32.gmra.mrb[116].mxu0 %v186_v16 }
 0x10d   :  { %v1841_v24 = vpop.f32.mrb[10].mxu1  ;;  %v4130_v25 = vadd.f32 %v1840_v17, %v620_v20  ;;  %v1763_v26 = vadd.f32 %v1762_v23, %v1761_v21  ;;  %1522 = vmatprep.mubr.f32.mxu0 %v203_v19  ;;  %v266_v17 = vld [vmem:[%s4380_s0 + $0x7e0] sm:$0xff]  ;;  %v268_v19 = vld [vmem:[%s4380_s0 + $0x7f0] sm:$0xff] }
 0x10e   :  { %v1842_v28 = vpop.f32.mrb[11].mxu1  ;;  %1663 = vmatmul.mubr.f32.gmra.mrb[116].mxu1 %v188_v18 }
 0x10f   :  { %v1843_v30 = vadd.f32 %v1842_v28, %v1841_v24  ;;  %1667 = vmatprep.mubr.f32.mxu1 %v205_v22  ;;  %v625_v33 = vadd.f32 %v1763_v26, %v4055_v27  ;;  %v1764_v34 = vpop.f32.mrb[12].mxu0 }
 0x110   :  { %v1765_v36 = vpop.f32.mrb[13].mxu0  ;;  %1523 = vmatmul.mubr.f32.gmra.mrb[118].mxu0 %v202_v29 }
 0x111   :  { %v1844_v37 = vpop.f32.mrb[12].mxu1  ;;  %v4145_v38 = vadd.f32 %v1843_v30, %v625_v33  ;;  %v1766_v39 = vadd.f32 %v1765_v36, %v1764_v34  ;;  %1527 = vmatprep.mubr.f32.mxu0 %v219_v32 }
 0x112   :  { %v1845_v40 = vpop.f32.mrb[13].mxu1  ;;  %1668 = vmatmul.mubr.f32.gmra.mrb[118].mxu1 %v204_v31 }
 0x113   :  { %v1846_v43 = vadd.f32 %v1845_v40, %v1844_v37  ;;  %1672 = vmatprep.mubr.f32.mxu1 %v221_v35  ;;  %v630_v46 = vadd.f32 %v1766_v39, %v4055_v27  ;;  %v1767_v47 = vpop.f32.mrb[14].mxu0 }
 0x114   :  { %v1768_v49 = vpop.f32.mrb[15].mxu0  ;;  %1528 = vmatmul.mubr.f32.gmra.mrb[120].mxu0 %v218_v42 }
 0x115   :  { %v1847_v50 = vpop.f32.mrb[14].mxu1  ;;  %v4160_v51 = vadd.f32 %v1846_v43, %v630_v46  ;;  %v1769_v52 = vadd.f32 %v1768_v49, %v1767_v47  ;;  %1532 = vmatprep.mubr.f32.mxu0 %v235_v45 }
 0x116   :  { %v1848_v54 = vpop.f32.mrb[15].mxu1  ;;  %1673 = vmatmul.mubr.f32.gmra.mrb[120].mxu1 %v220_v44 }
 0x117   :  { %v1849_v56 = vadd.f32 %v1848_v54, %v1847_v50  ;;  %1677 = vmatprep.mubr.f32.mxu1 %v237_v48  ;;  %v635_v59 = vadd.f32 %v1769_v52, %v4055_v27  ;;  %v1770_v60 = vpop.f32.mrb[16].mxu0 }
 0x118   :  { %v1771_v62 = vpop.f32.mrb[17].mxu0  ;;  %1533 = vmatmul.mubr.f32.gmra.mrb[122].mxu0 %v234_v55 }
 0x119   :  { %v1850_v63 = vpop.f32.mrb[16].mxu1  ;;  %v4175_v0 = vadd.f32 %v1849_v56, %v635_v59  ;;  %v1772_v2 = vadd.f32 %v1771_v62, %v1770_v60  ;;  %1537 = vmatprep.mubr.f32.mxu0 %v251_v58 }
 0x11a   :  { %v1851_v3 = vpop.f32.mrb[17].mxu1  ;;  %1678 = vmatmul.mubr.f32.gmra.mrb[122].mxu1 %v236_v57 }
 0x11b   :  { %v1852_v5 = vadd.f32 %v1851_v3, %v1850_v63  ;;  %1682 = vmatprep.mubr.f32.mxu1 %v253_v61  ;;  %v640_v8 = vadd.f32 %v1772_v2, %v4055_v27  ;;  %v1773_v9 = vpop.f32.mrb[18].mxu0 }
 0x11c   :  { %v1774_v11 = vpop.f32.mrb[19].mxu0  ;;  %1538 = vmatmul.mubr.f32.gmra.mrb[124].mxu0 %v250_v4 }
 0x11d   :  { %v1853_v12 = vpop.f32.mrb[18].mxu1  ;;  %v4190_v14 = vadd.f32 %v1852_v5, %v640_v8  ;;  %v1775_v15 = vadd.f32 %v1774_v11, %v1773_v9  ;;  %1542 = vmatprep.mubr.f32.mxu0 %v267_v7 }
 0x11e   :  { %v1854_v16 = vpop.f32.mrb[19].mxu1  ;;  %1683 = vmatmul.mubr.f32.gmra.mrb[124].mxu1 %v252_v6 }
 0x11f   :  { %v1855_v18 = vadd.f32 %v1854_v16, %v1853_v12  ;;  %1687 = vmatprep.mubr.f32.mxu1 %v269_v10  ;;  %v645_v20 = vadd.f32 %v1775_v15, %v4055_v27  ;;  %v1776_v21 = vpop.f32.mrb[20].mxu0 }
 0x120   :  { %v1777_v22 = vpop.f32.mrb[21].mxu0  ;;  %1543 = vmatmul.mubr.f32.gmra.mrb[126].mxu0 %v266_v17 }
 0x121   :  { %v1856_v23 = vpop.f32.mrb[20].mxu1  ;;  %v4199_v24 = vadd.f32 %v1855_v18, %v645_v20  ;;  %v1778_v26 = vadd.f32 %v1777_v22, %v1776_v21 }
 0x122   :  { %v1857_v28 = vpop.f32.mrb[21].mxu1  ;;  %1688 = vmatmul.mubr.f32.gmra.mrb[126].mxu1 %v268_v19 }
 0x123   :  { %v1858_v29 = vadd.f32 %v1857_v28, %v1856_v23  ;;  %v650_v30 = vadd.f32 %v1778_v26, %v4055_v27  ;;  %v1779_v31 = vpop.f32.mrb[22].mxu0 }
 0x124   :  { %v1780_v32 = vpop.f32.mrb[23].mxu0 }
 0x125   :  { %v1859_v33 = vpop.f32.mrb[22].mxu1  ;;  %v4202_v34 = vadd.f32 %v1858_v29, %v650_v30  ;;  %v1781_v35 = vadd.f32 %v1780_v32, %v1779_v31 }
 0x126   :  { %v1860_v36 = vpop.f32.mrb[23].mxu1 }
 0x127   :  { %v1861_v37 = vadd.f32 %v1860_v36, %v1859_v33  ;;  %v655_v39 = vadd.f32 %v1781_v35, %v4055_v27  ;;  %v1782_v40 = vpop.f32.mrb[24].mxu0 }
 0x128   :  { %v1783_v42 = vpop.f32.mrb[25].mxu0 }
 0x129   :  { %v1862_v43 = vpop.f32.mrb[24].mxu1  ;;  %v4205_v44 = vadd.f32 %v1861_v37, %v655_v39  ;;  %v1784_v45 = vadd.f32 %v1783_v42, %v1782_v40 }
 0x12a   :  { %v1863_v46 = vpop.f32.mrb[25].mxu1 }
 0x12b   :  { %v1864_v47 = vadd.f32 %v1863_v46, %v1862_v43  ;;  %v660_v48 = vadd.f32 %v1784_v45, %v4055_v27  ;;  %v1785_v49 = vpop.f32.mrb[26].mxu0 }
 0x12c   :  { %v1786_v50 = vpop.f32.mrb[27].mxu0 }
 0x12d   :  { %v1865_v52 = vpop.f32.mrb[26].mxu1  ;;  %v4208_v54 = vadd.f32 %v1864_v47, %v660_v48  ;;  %v1787_v55 = vadd.f32 %v1786_v50, %v1785_v49 }
 0x12e   :  { %v1866_v56 = vpop.f32.mrb[27].mxu1 }
 0x12f   :  { %v1867_v57 = vadd.f32 %v1866_v56, %v1865_v52  ;;  %v665_v58 = vadd.f32 %v1787_v55, %v4055_v27  ;;  %v1788_v59 = vpop.f32.mrb[28].mxu0 }
 0x130   :  { %v1789_v60 = vpop.f32.mrb[29].mxu0 }
 0x131   :  { %v1868_v61 = vpop.f32.mrb[28].mxu1  ;;  %v4211_v62 = vadd.f32 %v1867_v57, %v665_v58  ;;  %v1790_v63 = vadd.f32 %v1789_v60, %v1788_v59 }
 0x132   :  { %v1869_v2 = vpop.f32.mrb[29].mxu1 }
 0x133   :  { %v1870_v3 = vadd.f32 %v1869_v2, %v1868_v61  ;;  %v670_v4 = vadd.f32 %v1790_v63, %v4055_v27  ;;  %v1791_v5 = vpop.f32.mrb[30].mxu0 }
 0x134   :  { %v1792_v6 = vpop.f32.mrb[31].mxu0 }
 0x135   :  { %v1871_v7 = vpop.f32.mrb[30].mxu1  ;;  %v4214_v8 = vadd.f32 %v1870_v3, %v670_v4  ;;  %v1793_v9 = vadd.f32 %v1792_v6, %v1791_v5 }
 0x136   :  { %v1872_v10 = vpop.f32.mrb[31].mxu1 }
 0x137   :  { %v1873_v11 = vadd.f32 %v1872_v10, %v1871_v7  ;;  %v675_v12 = vadd.f32 %v1793_v9, %v4055_v27  ;;  %v1906_v15 = vpop.f32.mrb[32].mxu0 }
 0x138   :  { %v1907_v16 = vpop.f32.mrb[33].mxu0 }
 0x139   :  { %v1986_v17 = vpop.f32.mrb[32].mxu1  ;;  %v4217_v18 = vadd.f32 %v1873_v11, %v675_v12  ;;  %v1908_v19 = vadd.f32 %v1907_v16, %v1906_v15 }
 0x13a   :  { %v1987_v20 = vpop.f32.mrb[33].mxu1 }
 0x13b   :  { %v1988_v21 = vadd.f32 %v1987_v20, %v1986_v17  ;;  %v890_v22 = vadd.f32 %v1908_v19, %v4070_v41  ;;  %v1909_v23 = vpop.f32.mrb[34].mxu0 }
 0x13c   :  { %v1910_v26 = vpop.f32.mrb[35].mxu0 }
 0x13d   :  { %v1989_v28 = vpop.f32.mrb[34].mxu1  ;;  %v4220_v29 = vadd.f32 %v1988_v21, %v890_v22  ;;  %v1911_v30 = vadd.f32 %v1910_v26, %v1909_v23 }
 0x13e   :  { %v1990_v31 = vpop.f32.mrb[35].mxu1 }
 0x13f   :  { %v1991_v32 = vadd.f32 %v1990_v31, %v1989_v28  ;;  %v895_v27 = vadd.f32 %v1911_v30, %v4085_v53  ;;  %v1912_v33 = vpop.f32.mrb[36].mxu0 }
 0x140   :  { %v1913_v35 = vpop.f32.mrb[37].mxu0 }
 0x141   :  { %v1992_v36 = vpop.f32.mrb[36].mxu1  ;;  %v4223_v37 = vadd.f32 %v1991_v32, %v895_v27  ;;  %v1914_v39 = vadd.f32 %v1913_v35, %v1912_v33 }
 0x142   :  { %v1993_v40 = vpop.f32.mrb[37].mxu1 }
 0x143   :  { %v1994_v42 = vadd.f32 %v1993_v40, %v1992_v36  ;;  %v900_v41 = vadd.f32 %v1914_v39, %v4100_v1  ;;  %v1915_v43 = vpop.f32.mrb[38].mxu0 }
 0x144   :  { %v1916_v45 = vpop.f32.mrb[39].mxu0 }
 0x145   :  { %v1995_v46 = vpop.f32.mrb[38].mxu1  ;;  %v4226_v47 = vadd.f32 %v1994_v42, %v900_v41  ;;  %v1917_v48 = vadd.f32 %v1916_v45, %v1915_v43 }
 0x146   :  { %v1996_v49 = vpop.f32.mrb[39].mxu1 }
 0x147   :  { %v1997_v50 = vadd.f32 %v1996_v49, %v1995_v46  ;;  %v905_v53 = vadd.f32 %v1917_v48, %v4115_v13  ;;  %v1918_v52 = vpop.f32.mrb[40].mxu0 }
 0x148   :  { %v1919_v55 = vpop.f32.mrb[41].mxu0 }
 0x149   :  { %v1998_v56 = vpop.f32.mrb[40].mxu1  ;;  %v4229_v57 = vadd.f32 %v1997_v50, %v905_v53  ;;  %v1920_v58 = vadd.f32 %v1919_v55, %v1918_v52 }
 0x14a   :  { %v1999_v59 = vpop.f32.mrb[41].mxu1 }
 0x14b   :  { %v2000_v60 = vadd.f32 %v1999_v59, %v1998_v56  ;;  %v910_v1 = vadd.f32 %v1920_v58, %v4130_v25  ;;  %v1921_v61 = vpop.f32.mrb[42].mxu0 }
 0x14c   :  { %v1922_v63 = vpop.f32.mrb[43].mxu0 }
 0x14d   :  { %v2001_v2 = vpop.f32.mrb[42].mxu1  ;;  %v4232_v3 = vadd.f32 %v2000_v60, %v910_v1  ;;  %v1923_v4 = vadd.f32 %v1922_v63, %v1921_v61 }
 0x14e   :  { %v2002_v5 = vpop.f32.mrb[43].mxu1 }
 0x14f   :  { %v2003_v6 = vadd.f32 %v2002_v5, %v2001_v2  ;;  %v915_v13 = vadd.f32 %v1923_v4, %v4145_v38  ;;  %v1924_v7 = vpop.f32.mrb[44].mxu0 }
 0x150   :  { %v1925_v9 = vpop.f32.mrb[45].mxu0 }
 0x151   :  { %v2004_v10 = vpop.f32.mrb[44].mxu1  ;;  %v4235_v11 = vadd.f32 %v2003_v6, %v915_v13  ;;  %v1926_v12 = vadd.f32 %v1925_v9, %v1924_v7 }
 0x152   :  { %v2005_v15 = vpop.f32.mrb[45].mxu1 }
 0x153   :  { %v2006_v16 = vadd.f32 %v2005_v15, %v2004_v10  ;;  %v920_v25 = vadd.f32 %v1926_v12, %v4160_v51  ;;  %v1927_v17 = vpop.f32.mrb[46].mxu0 }
 0x154   :  { %v1928_v19 = vpop.f32.mrb[47].mxu0 }
 0x155   :  { %v2007_v20 = vpop.f32.mrb[46].mxu1  ;;  %v4238_v21 = vadd.f32 %v2006_v16, %v920_v25  ;;  %v1929_v22 = vadd.f32 %v1928_v19, %v1927_v17 }
 0x156   :  { %v2008_v23 = vpop.f32.mrb[47].mxu1 }
 0x157   :  { %v2009_v26 = vadd.f32 %v2008_v23, %v2007_v20  ;;  %v925_v38 = vadd.f32 %v1929_v22, %v4175_v0  ;;  %v1930_v28 = vpop.f32.mrb[48].mxu0 }
 0x158   :  { %v1931_v30 = vpop.f32.mrb[49].mxu0 }
 0x159   :  { %v2010_v31 = vpop.f32.mrb[48].mxu1  ;;  %v4241_v32 = vadd.f32 %v2009_v26, %v925_v38  ;;  %v1932_v27 = vadd.f32 %v1931_v30, %v1930_v28 }
 0x15a   :  { %v2011_v33 = vpop.f32.mrb[49].mxu1 }
 0x15b   :  { %v2012_v35 = vadd.f32 %v2011_v33, %v2010_v31  ;;  %v930_v51 = vadd.f32 %v1932_v27, %v4190_v14  ;;  %v1933_v36 = vpop.f32.mrb[50].mxu0 }
 0x15c   :  { %v1934_v39 = vpop.f32.mrb[51].mxu0 }
 0x15d   :  { %v2013_v40 = vpop.f32.mrb[50].mxu1  ;;  %v4244_v42 = vadd.f32 %v2012_v35, %v930_v51  ;;  %v1935_v41 = vadd.f32 %v1934_v39, %v1933_v36 }
 0x15e   :  { %v2014_v43 = vpop.f32.mrb[51].mxu1 }
 0x15f   :  { %v2015_v45 = vadd.f32 %v2014_v43, %v2013_v40  ;;  %v935_v0 = vadd.f32 %v1935_v41, %v4199_v24  ;;  %v1936_v46 = vpop.f32.mrb[52].mxu0 }
 0x160   :  { %v1937_v48 = vpop.f32.mrb[53].mxu0 }
 0x161   :  { %v2016_v49 = vpop.f32.mrb[52].mxu1  ;;  %v4247_v50 = vadd.f32 %v2015_v45, %v935_v0  ;;  %v1938_v53 = vadd.f32 %v1937_v48, %v1936_v46 }
 0x162   :  { %v2017_v52 = vpop.f32.mrb[53].mxu1 }
 0x163   :  { %v2018_v55 = vadd.f32 %v2017_v52, %v2016_v49  ;;  %v940_v14 = vadd.f32 %v1938_v53, %v4202_v34  ;;  %v1939_v56 = vpop.f32.mrb[54].mxu0 }
 0x164   :  { %v1940_v58 = vpop.f32.mrb[55].mxu0 }
 0x165   :  { %v2019_v59 = vpop.f32.mrb[54].mxu1  ;;  %v4250_v60 = vadd.f32 %v2018_v55, %v940_v14  ;;  %v1941_v1 = vadd.f32 %v1940_v58, %v1939_v56 }
 0x166   :  { %v2020_v61 = vpop.f32.mrb[55].mxu1 }
 0x167   :  { %v2021_v63 = vadd.f32 %v2020_v61, %v2019_v59  ;;  %v945_v24 = vadd.f32 %v1941_v1, %v4205_v44  ;;  %v1942_v2 = vpop.f32.mrb[56].mxu0 }
 0x168   :  { %v1943_v4 = vpop.f32.mrb[57].mxu0 }
 0x169   :  { %v2022_v5 = vpop.f32.mrb[56].mxu1  ;;  %v4253_v6 = vadd.f32 %v2021_v63, %v945_v24  ;;  %v1944_v13 = vadd.f32 %v1943_v4, %v1942_v2 }
 0x16a   :  { %v2023_v7 = vpop.f32.mrb[57].mxu1 }
 0x16b   :  { %v2024_v9 = vadd.f32 %v2023_v7, %v2022_v5  ;;  %v950_v34 = vadd.f32 %v1944_v13, %v4208_v54  ;;  %v1945_v10 = vpop.f32.mrb[58].mxu0 }
 0x16c   :  { %v1946_v12 = vpop.f32.mrb[59].mxu0 }
 0x16d   :  { %v2025_v15 = vpop.f32.mrb[58].mxu1  ;;  %v4256_v16 = vadd.f32 %v2024_v9, %v950_v34  ;;  %v1947_v25 = vadd.f32 %v1946_v12, %v1945_v10 }
 0x16e   :  { %v2026_v17 = vpop.f32.mrb[59].mxu1 }
 0x16f   :  { %v2027_v19 = vadd.f32 %v2026_v17, %v2025_v15  ;;  %v955_v44 = vadd.f32 %v1947_v25, %v4211_v62  ;;  %v1948_v20 = vpop.f32.mrb[60].mxu0 }
 0x170   :  { %v1949_v22 = vpop.f32.mrb[61].mxu0 }
 0x171   :  { %v2028_v23 = vpop.f32.mrb[60].mxu1  ;;  %v4259_v26 = vadd.f32 %v2027_v19, %v955_v44  ;;  %v1950_v38 = vadd.f32 %v1949_v22, %v1948_v20 }
 0x172   :  { %v2029_v28 = vpop.f32.mrb[61].mxu1 }
 0x173   :  { %v2030_v30 = vadd.f32 %v2029_v28, %v2028_v23  ;;  %v960_v54 = vadd.f32 %v1950_v38, %v4214_v8  ;;  %v1951_v31 = vpop.f32.mrb[62].mxu0 }
 0x174   :  { %v1952_v27 = vpop.f32.mrb[63].mxu0 }
 0x175   :  { %v2031_v33 = vpop.f32.mrb[62].mxu1  ;;  %v4262_v35 = vadd.f32 %v2030_v30, %v960_v54  ;;  %v1953_v51 = vadd.f32 %v1952_v27, %v1951_v31 }
 0x176   :  { %v2032_v36 = vpop.f32.mrb[63].mxu1 }
 0x177   :  { %v2033_v39 = vadd.f32 %v2032_v36, %v2031_v33  ;;  %v965_v62 = vadd.f32 %v1953_v51, %v4217_v18  ;;  %v2066_v40 = vpop.f32.mrb[64].mxu0 }
 0x178   :  { %v2067_v41 = vpop.f32.mrb[65].mxu0 }
 0x179   :  { %v2146_v43 = vpop.f32.mrb[64].mxu1  ;;  %v4265_v45 = vadd.f32 %v2033_v39, %v965_v62  ;;  %v2068_v0 = vadd.f32 %v2067_v41, %v2066_v40 }
 0x17a   :  { %v2147_v46 = vpop.f32.mrb[65].mxu1 }
 0x17b   :  { %v2148_v48 = vadd.f32 %v2147_v46, %v2146_v43  ;;  %v1180_v8 = vadd.f32 %v2068_v0, %v4220_v29  ;;  %v2069_v49 = vpop.f32.mrb[66].mxu0 }
 0x17c   :  { %v2070_v53 = vpop.f32.mrb[67].mxu0 }
 0x17d   :  { %v2149_v52 = vpop.f32.mrb[66].mxu1  ;;  %v4268_v55 = vadd.f32 %v2148_v48, %v1180_v8  ;;  %v2071_v14 = vadd.f32 %v2070_v53, %v2069_v49 }
 0x17e   :  { %v2150_v56 = vpop.f32.mrb[67].mxu1 }
 0x17f   :  { %v2151_v58 = vadd.f32 %v2150_v56, %v2149_v52  ;;  %v1185_v18 = vadd.f32 %v2071_v14, %v4223_v37  ;;  %v2072_v59 = vpop.f32.mrb[68].mxu0 }
 0x180   :  { %v2073_v1 = vpop.f32.mrb[69].mxu0 }
 0x181   :  { %v2152_v61 = vpop.f32.mrb[68].mxu1  ;;  %v4271_v63 = vadd.f32 %v2151_v58, %v1185_v18  ;;  %v2074_v24 = vadd.f32 %v2073_v1, %v2072_v59 }
 0x182   :  { %v2153_v2 = vpop.f32.mrb[69].mxu1 }
 0x183   :  { %v2154_v4 = vadd.f32 %v2153_v2, %v2152_v61  ;;  %v1190_v29 = vadd.f32 %v2074_v24, %v4226_v47  ;;  %v2075_v5 = vpop.f32.mrb[70].mxu0 }
 0x184   :  { %v2076_v13 = vpop.f32.mrb[71].mxu0 }
 0x185   :  { %v2155_v7 = vpop.f32.mrb[70].mxu1  ;;  %v4274_v9 = vadd.f32 %v2154_v4, %v1190_v29  ;;  %v2077_v34 = vadd.f32 %v2076_v13, %v2075_v5 }
 0x186   :  { %v2156_v10 = vpop.f32.mrb[71].mxu1 }
 0x187   :  { %v2157_v12 = vadd.f32 %v2156_v10, %v2155_v7  ;;  %v1195_v37 = vadd.f32 %v2077_v34, %v4229_v57  ;;  %v2078_v15 = vpop.f32.mrb[72].mxu0 }
 0x188   :  { %v2079_v25 = vpop.f32.mrb[73].mxu0 }
 0x189   :  { %v2158_v17 = vpop.f32.mrb[72].mxu1  ;;  %v4277_v19 = vadd.f32 %v2157_v12, %v1195_v37  ;;  %v2080_v44 = vadd.f32 %v2079_v25, %v2078_v15 }
 0x18a   :  { %v2159_v20 = vpop.f32.mrb[73].mxu1 }
 0x18b   :  { %v2160_v22 = vadd.f32 %v2159_v20, %v2158_v17  ;;  %v1200_v47 = vadd.f32 %v2080_v44, %v4232_v3  ;;  %v2081_v23 = vpop.f32.mrb[74].mxu0 }
 0x18c   :  { %v2082_v38 = vpop.f32.mrb[75].mxu0 }
 0x18d   :  { %v2161_v28 = vpop.f32.mrb[74].mxu1  ;;  %v4280_v30 = vadd.f32 %v2160_v22, %v1200_v47  ;;  %v2083_v54 = vadd.f32 %v2082_v38, %v2081_v23 }
 0x18e   :  { %v2162_v31 = vpop.f32.mrb[75].mxu1 }
 0x18f   :  { %v2163_v27 = vadd.f32 %v2162_v31, %v2161_v28  ;;  %v1205_v57 = vadd.f32 %v2083_v54, %v4235_v11  ;;  %v2084_v33 = vpop.f32.mrb[76].mxu0 }
 0x190   :  { %v2085_v51 = vpop.f32.mrb[77].mxu0 }
 0x191   :  { %v2164_v36 = vpop.f32.mrb[76].mxu1  ;;  %v4283_v39 = vadd.f32 %v2163_v27, %v1205_v57  ;;  %v2086_v62 = vadd.f32 %v2085_v51, %v2084_v33 }
 0x192   :  { %v2165_v40 = vpop.f32.mrb[77].mxu1 }
 0x193   :  { %v2166_v41 = vadd.f32 %v2165_v40, %v2164_v36  ;;  %v1210_v3 = vadd.f32 %v2086_v62, %v4238_v21  ;;  %v2087_v43 = vpop.f32.mrb[78].mxu0 }
 0x194   :  { %v2088_v0 = vpop.f32.mrb[79].mxu0 }
 0x195   :  { %v2167_v46 = vpop.f32.mrb[78].mxu1  ;;  %v4286_v48 = vadd.f32 %v2166_v41, %v1210_v3  ;;  %v2089_v8 = vadd.f32 %v2088_v0, %v2087_v43 }
 0x196   :  { %v2168_v49 = vpop.f32.mrb[79].mxu1 }
 0x197   :  { %v2169_v53 = vadd.f32 %v2168_v49, %v2167_v46  ;;  %v1215_v11 = vadd.f32 %v2089_v8, %v4241_v32  ;;  %v2090_v52 = vpop.f32.mrb[80].mxu0 }
 0x198   :  { %v2091_v14 = vpop.f32.mrb[81].mxu0 }
 0x199   :  { %v2170_v56 = vpop.f32.mrb[80].mxu1  ;;  %v4289_v58 = vadd.f32 %v2169_v53, %v1215_v11  ;;  %v2092_v18 = vadd.f32 %v2091_v14, %v2090_v52 }
 0x19a   :  { %v2171_v59 = vpop.f32.mrb[81].mxu1 }
 0x19b   :  { %v2172_v1 = vadd.f32 %v2171_v59, %v2170_v56  ;;  %v1220_v21 = vadd.f32 %v2092_v18, %v4244_v42  ;;  %v2093_v61 = vpop.f32.mrb[82].mxu0 }
 0x19c   :  { %v2094_v24 = vpop.f32.mrb[83].mxu0 }
 0x19d   :  { %v2173_v2 = vpop.f32.mrb[82].mxu1  ;;  %v4292_v4 = vadd.f32 %v2172_v1, %v1220_v21  ;;  %v2095_v29 = vadd.f32 %v2094_v24, %v2093_v61 }
 0x19e   :  { %v2174_v5 = vpop.f32.mrb[83].mxu1 }
 0x19f   :  { %v2175_v13 = vadd.f32 %v2174_v5, %v2173_v2  ;;  %v1225_v32 = vadd.f32 %v2095_v29, %v4247_v50  ;;  %v2096_v7 = vpop.f32.mrb[84].mxu0 }
 0x1a0   :  { %v2097_v34 = vpop.f32.mrb[85].mxu0 }
 0x1a1   :  { %v2176_v10 = vpop.f32.mrb[84].mxu1  ;;  %v4295_v12 = vadd.f32 %v2175_v13, %v1225_v32  ;;  %v2098_v37 = vadd.f32 %v2097_v34, %v2096_v7 }
 0x1a2   :  { %v2177_v15 = vpop.f32.mrb[85].mxu1 }
 0x1a3   :  { %v2178_v25 = vadd.f32 %v2177_v15, %v2176_v10  ;;  %v1230_v42 = vadd.f32 %v2098_v37, %v4250_v60  ;;  %v2099_v17 = vpop.f32.mrb[86].mxu0 }
 0x1a4   :  { %v2100_v44 = vpop.f32.mrb[87].mxu0 }
 0x1a5   :  { %v2179_v20 = vpop.f32.mrb[86].mxu1  ;;  %v4298_v22 = vadd.f32 %v2178_v25, %v1230_v42  ;;  %v2101_v47 = vadd.f32 %v2100_v44, %v2099_v17 }
 0x1a6   :  { %v2180_v23 = vpop.f32.mrb[87].mxu1 }
 0x1a7   :  { %v2181_v38 = vadd.f32 %v2180_v23, %v2179_v20  ;;  %v1235_v50 = vadd.f32 %v2101_v47, %v4253_v6  ;;  %v2102_v28 = vpop.f32.mrb[88].mxu0 }
 0x1a8   :  { %v2103_v54 = vpop.f32.mrb[89].mxu0 }
 0x1a9   :  { %v2182_v31 = vpop.f32.mrb[88].mxu1  ;;  %v4301_v27 = vadd.f32 %v2181_v38, %v1235_v50  ;;  %v2104_v57 = vadd.f32 %v2103_v54, %v2102_v28 }
 0x1aa   :  { %v2183_v33 = vpop.f32.mrb[89].mxu1 }
 0x1ab   :  { %v2184_v51 = vadd.f32 %v2183_v33, %v2182_v31  ;;  %v1240_v60 = vadd.f32 %v2104_v57, %v4256_v16  ;;  %v2105_v36 = vpop.f32.mrb[90].mxu0 }
 0x1ac   :  { %v2106_v62 = vpop.f32.mrb[91].mxu0 }
 0x1ad   :  { %v2185_v40 = vpop.f32.mrb[90].mxu1  ;;  %v4304_v41 = vadd.f32 %v2184_v51, %v1240_v60  ;;  %v2107_v3 = vadd.f32 %v2106_v62, %v2105_v36 }
 0x1ae   :  { %v2186_v43 = vpop.f32.mrb[91].mxu1 }
 0x1af   :  { %v2187_v0 = vadd.f32 %v2186_v43, %v2185_v40  ;;  %v1245_v6 = vadd.f32 %v2107_v3, %v4259_v26  ;;  %v2108_v46 = vpop.f32.mrb[92].mxu0 }
 0x1b0   :  { %v2109_v8 = vpop.f32.mrb[93].mxu0 }
 0x1b1   :  { %v2188_v49 = vpop.f32.mrb[92].mxu1  ;;  %v4307_v53 = vadd.f32 %v2187_v0, %v1245_v6  ;;  %v2110_v11 = vadd.f32 %v2109_v8, %v2108_v46 }
 0x1b2   :  { %v2189_v52 = vpop.f32.mrb[93].mxu1 }
 0x1b3   :  { %v2190_v14 = vadd.f32 %v2189_v52, %v2188_v49  ;;  %v1250_v16 = vadd.f32 %v2110_v11, %v4262_v35  ;;  %v2111_v56 = vpop.f32.mrb[94].mxu0 }
 0x1b4   :  { %v2112_v18 = vpop.f32.mrb[95].mxu0 }
 0x1b5   :  { %v2191_v59 = vpop.f32.mrb[94].mxu1  ;;  %v4310_v1 = vadd.f32 %v2190_v14, %v1250_v16  ;;  %v2113_v21 = vadd.f32 %v2112_v18, %v2111_v56 }
 0x1b6   :  { %v2192_v61 = vpop.f32.mrb[95].mxu1 }
 0x1b7   :  { %v2193_v24 = vadd.f32 %v2192_v61, %v2191_v59  ;;  %v1255_v26 = vadd.f32 %v2113_v21, %v4265_v45  ;;  %v2226_v2 = vpop.f32.mrb[96].mxu0 }
 0x1b8   :  { %v2227_v29 = vpop.f32.mrb[97].mxu0 }
 0x1b9   :  { %v2306_v5 = vpop.f32.mrb[96].mxu1  ;;  %v4313_v13 = vadd.f32 %v2193_v24, %v1255_v26  ;;  %v2228_v32 = vadd.f32 %v2227_v29, %v2226_v2 }
 0x1ba   :  { %v2307_v7 = vpop.f32.mrb[97].mxu1 }
 0x1bb   :  { %v2308_v34 = vadd.f32 %v2307_v7, %v2306_v5  ;;  %v1470_v35 = vadd.f32 %v2228_v32, %v4268_v55  ;;  %v2229_v10 = vpop.f32.mrb[98].mxu0 }
 0x1bc   :  { %v2230_v37 = vpop.f32.mrb[99].mxu0 }
 0x1bd   :  { %v2309_v15 = vpop.f32.mrb[98].mxu1  ;;  %v1615_v25 = vadd.f32 %v2308_v34, %v1470_v35  ;;  %v2231_v42 = vadd.f32 %v2230_v37, %v2229_v10 }
 0x1be   :  { %v2310_v17 = vpop.f32.mrb[99].mxu1 }
 0x1bf   :  { %v2311_v44 = vadd.f32 %v2310_v17, %v2309_v15  ;;  %1693 = vst [vmem:[%s4382_s3] sm:$0xff] %v1615_v25  ;;  %v1475_v45 = vadd.f32 %v2231_v42, %v4271_v63  ;;  %v2232_v20 = vpop.f32.mrb[100].mxu0 }
 0x1c0   :  { %v2233_v47 = vpop.f32.mrb[101].mxu0 }
 0x1c1   :  { %v2312_v23 = vpop.f32.mrb[100].mxu1  ;;  %v1620_v38 = vadd.f32 %v2311_v44, %v1475_v45  ;;  %v2234_v50 = vadd.f32 %v2233_v47, %v2232_v20 }
 0x1c2   :  { %v2313_v28 = vpop.f32.mrb[101].mxu1 }
 0x1c3   :  { %v2314_v55 = vadd.f32 %v2313_v28, %v2312_v23  ;;  %1694 = vst [vmem:[%s4382_s3 + $0x8] sm:$0xff] %v1620_v38  ;;  %v1480_v54 = vadd.f32 %v2234_v50, %v4274_v9  ;;  %v2235_v31 = vpop.f32.mrb[102].mxu0 }
 0x1c4   :  { %v2236_v57 = vpop.f32.mrb[103].mxu0 }
 0x1c5   :  { %v2315_v33 = vpop.f32.mrb[102].mxu1  ;;  %v1625_v51 = vadd.f32 %v2314_v55, %v1480_v54  ;;  %v2237_v60 = vadd.f32 %v2236_v57, %v2235_v31 }
 0x1c6   :  { %v2316_v36 = vpop.f32.mrb[103].mxu1 }
 0x1c7   :  { %v2317_v63 = vadd.f32 %v2316_v36, %v2315_v33  ;;  %1695 = vst [vmem:[%s4382_s3 + $0x10] sm:$0xff] %v1625_v51  ;;  %v1485_v62 = vadd.f32 %v2237_v60, %v4277_v19  ;;  %v2238_v40 = vpop.f32.mrb[104].mxu0 }
 0x1c8   :  { %v2239_v3 = vpop.f32.mrb[105].mxu0 }
 0x1c9   :  { %v2318_v43 = vpop.f32.mrb[104].mxu1  ;;  %v1630_v0 = vadd.f32 %v2317_v63, %v1485_v62  ;;  %v2240_v6 = vadd.f32 %v2239_v3, %v2238_v40 }
 0x1ca   :  { %v2319_v46 = vpop.f32.mrb[105].mxu1 }
 0x1cb   :  { %v2320_v9 = vadd.f32 %v2319_v46, %v2318_v43  ;;  %1696 = vst [vmem:[%s4382_s3 + $0x18] sm:$0xff] %v1630_v0  ;;  %v1490_v8 = vadd.f32 %v2240_v6, %v4280_v30  ;;  %v2241_v49 = vpop.f32.mrb[106].mxu0 }
 0x1cc   :  { %v2242_v11 = vpop.f32.mrb[107].mxu0 }
 0x1cd   :  { %v2321_v52 = vpop.f32.mrb[106].mxu1  ;;  %v1635_v14 = vadd.f32 %v2320_v9, %v1490_v8  ;;  %v2243_v16 = vadd.f32 %v2242_v11, %v2241_v49 }
 0x1ce   :  { %v2322_v56 = vpop.f32.mrb[107].mxu1 }
 0x1cf   :  { %v2323_v19 = vadd.f32 %v2322_v56, %v2321_v52  ;;  %1697 = vst [vmem:[%s4382_s3 + $0x20] sm:$0xff] %v1635_v14  ;;  %v1495_v18 = vadd.f32 %v2243_v16, %v4283_v39  ;;  %v2244_v59 = vpop.f32.mrb[108].mxu0 }
 0x1d0   :  { %v2245_v21 = vpop.f32.mrb[109].mxu0 }
 0x1d1   :  { %v2324_v61 = vpop.f32.mrb[108].mxu1  ;;  %v1640_v24 = vadd.f32 %v2323_v19, %v1495_v18  ;;  %v2246_v26 = vadd.f32 %v2245_v21, %v2244_v59 }
 0x1d2   :  { %v2325_v2 = vpop.f32.mrb[109].mxu1 }
 0x1d3   :  { %v2326_v30 = vadd.f32 %v2325_v2, %v2324_v61  ;;  %1698 = vst [vmem:[%s4382_s3 + $0x28] sm:$0xff] %v1640_v24  ;;  %v1500_v29 = vadd.f32 %v2246_v26, %v4286_v48  ;;  %v2247_v5 = vpop.f32.mrb[110].mxu0 }
 0x1d4   :  { %v2248_v32 = vpop.f32.mrb[111].mxu0 }
 0x1d5   :  { %v2327_v7 = vpop.f32.mrb[110].mxu1  ;;  %v1645_v34 = vadd.f32 %v2326_v30, %v1500_v29  ;;  %v2249_v35 = vadd.f32 %v2248_v32, %v2247_v5 }
 0x1d6   :  { %v2328_v10 = vpop.f32.mrb[111].mxu1 }
 0x1d7   :  { %v2329_v39 = vadd.f32 %v2328_v10, %v2327_v7  ;;  %1699 = vst [vmem:[%s4382_s3 + $0x30] sm:$0xff] %v1645_v34  ;;  %v1505_v37 = vadd.f32 %v2249_v35, %v4289_v58  ;;  %v2250_v15 = vpop.f32.mrb[112].mxu0 }
 0x1d8   :  { %v2251_v25 = vpop.f32.mrb[113].mxu0 }
 0x1d9   :  { %v2330_v42 = vpop.f32.mrb[112].mxu1  ;;  %v1650_v17 = vadd.f32 %v2329_v39, %v1505_v37  ;;  %v2252_v44 = vadd.f32 %v2251_v25, %v2250_v15 }
 0x1da   :  { %v2331_v45 = vpop.f32.mrb[113].mxu1 }
 0x1db   :  { %v2332_v48 = vadd.f32 %v2331_v45, %v2330_v42  ;;  %1700 = vst [vmem:[%s4382_s3 + $0x38] sm:$0xff] %v1650_v17  ;;  %v1510_v20 = vadd.f32 %v2252_v44, %v4292_v4  ;;  %v2253_v47 = vpop.f32.mrb[114].mxu0 }
 0x1dc   :  { %v2254_v23 = vpop.f32.mrb[115].mxu0 }
 0x1dd   :  { %v2333_v38 = vpop.f32.mrb[114].mxu1  ;;  %v1655_v50 = vadd.f32 %v2332_v48, %v1510_v20  ;;  %v2255_v28 = vadd.f32 %v2254_v23, %v2253_v47 }
 0x1de   :  { %v2334_v55 = vpop.f32.mrb[115].mxu1 }
 0x1df   :  { %v2335_v58 = vadd.f32 %v2334_v55, %v2333_v38  ;;  %1701 = vst [vmem:[%s4382_s3 + $0x40] sm:$0xff] %v1655_v50  ;;  %v1515_v54 = vadd.f32 %v2255_v28, %v4295_v12  ;;  %v2256_v31 = vpop.f32.mrb[116].mxu0 }
 0x1e0   :  { %v2257_v57 = vpop.f32.mrb[117].mxu0 }
 0x1e1   :  { %v2336_v33 = vpop.f32.mrb[116].mxu1  ;;  %v1660_v51 = vadd.f32 %v2335_v58, %v1515_v54  ;;  %v2258_v60 = vadd.f32 %v2257_v57, %v2256_v31 }
 0x1e2   :  { %v2337_v36 = vpop.f32.mrb[117].mxu1 }
 0x1e3   :  { %v2338_v4 = vadd.f32 %v2337_v36, %v2336_v33  ;;  %1702 = vst [vmem:[%s4382_s3 + $0x48] sm:$0xff] %v1660_v51  ;;  %v1520_v63 = vadd.f32 %v2258_v60, %v4298_v22  ;;  %v2259_v62 = vpop.f32.mrb[118].mxu0 }
 0x1e4   :  { %v2260_v40 = vpop.f32.mrb[119].mxu0 }
 0x1e5   :  { %v2339_v3 = vpop.f32.mrb[118].mxu1  ;;  %v1665_v43 = vadd.f32 %v2338_v4, %v1520_v63  ;;  %v2261_v0 = vadd.f32 %v2260_v40, %v2259_v62 }
 0x1e6   :  { %v2340_v6 = vpop.f32.mrb[119].mxu1 }
 0x1e7   :  { %v2341_v12 = vadd.f32 %v2340_v6, %v2339_v3  ;;  %1703 = vst [vmem:[%s4382_s3 + $0x50] sm:$0xff] %v1665_v43  ;;  %v1525_v46 = vadd.f32 %v2261_v0, %v4301_v27  ;;  %v2262_v9 = vpop.f32.mrb[120].mxu0 }
 0x1e8   :  { %v2263_v8 = vpop.f32.mrb[121].mxu0 }
 0x1e9   :  { %v2342_v49 = vpop.f32.mrb[120].mxu1  ;;  %v1670_v11 = vadd.f32 %v2341_v12, %v1525_v46  ;;  %v2264_v52 = vadd.f32 %v2263_v8, %v2262_v9 }
 0x1ea   :  { %v2343_v14 = vpop.f32.mrb[121].mxu1 }
 0x1eb   :  { %v2344_v22 = vadd.f32 %v2343_v14, %v2342_v49  ;;  %1704 = vst [vmem:[%s4382_s3 + $0x58] sm:$0xff] %v1670_v11  ;;  %v1530_v16 = vadd.f32 %v2264_v52, %v4304_v41  ;;  %v2265_v56 = vpop.f32.mrb[122].mxu0 }
 0x1ec   :  { %v2266_v19 = vpop.f32.mrb[123].mxu0 }
 0x1ed   :  { %v2345_v18 = vpop.f32.mrb[122].mxu1  ;;  %v1675_v59 = vadd.f32 %v2344_v22, %v1530_v16  ;;  %v2267_v21 = vadd.f32 %v2266_v19, %v2265_v56 }
 0x1ee   :  { %v2346_v61 = vpop.f32.mrb[123].mxu1 }
 0x1ef   :  { %v2347_v27 = vadd.f32 %v2346_v61, %v2345_v18  ;;  %1705 = vst [vmem:[%s4382_s3 + $0x60] sm:$0xff] %v1675_v59  ;;  %v1535_v24 = vadd.f32 %v2267_v21, %v4307_v53  ;;  %v2268_v26 = vpop.f32.mrb[124].mxu0 }
 0x1f0   :  { %v2269_v2 = vpop.f32.mrb[125].mxu0 }
 0x1f1   :  { %v2348_v30 = vpop.f32.mrb[124].mxu1  ;;  %v1680_v29 = vadd.f32 %v2347_v27, %v1535_v24  ;;  %v2270_v5 = vadd.f32 %v2269_v2, %v2268_v26 }
 0x1f2   :  { %v2349_v32 = vpop.f32.mrb[125].mxu1 }
 0x1f3   :  { %v2350_v41 = vadd.f32 %v2349_v32, %v2348_v30  ;;  %1706 = vst [vmem:[%s4382_s3 + $0x68] sm:$0xff] %v1680_v29  ;;  %v1540_v7 = vadd.f32 %v2270_v5, %v4310_v1  ;;  %v2271_v34 = vpop.f32.mrb[126].mxu0 }
 0x1f4   :  { %v2272_v35 = vpop.f32.mrb[127].mxu0 }
 0x1f5   :  { %v2351_v10 = vpop.f32.mrb[126].mxu1  ;;  %v1685_v39 = vadd.f32 %v2350_v41, %v1540_v7  ;;  %v2273_v37 = vadd.f32 %v2272_v35, %v2271_v34 }
 0x1f6   :  { %v2352_v15 = vpop.f32.mrb[127].mxu1 }
 0x1f7   :  { %v2353_v53 = vadd.f32 %v2352_v15, %v2351_v10  ;;  %1707 = vst [vmem:[%s4382_s3 + $0x70] sm:$0xff] %v1685_v39  ;;  %v1545_v25 = vadd.f32 %v2273_v37, %v4313_v13 }
 0x1f9   :  { %v1690_v42 = vadd.f32 %v2353_v53, %v1545_v25 }
 0x1fb   :  { %1708 = vst [vmem:[%s4382_s3 + $0x78] sm:$0xff] %v1690_v42 }

</bundles_post_ra>
